<compile_context>
chip_gen: v5e
topology: v5e:2x2
jax: 0.10.0
libtpu: 0.0.40
codegen_flags: <defaults>
</compile_context>

<pallas_src>
import jax
import jax.numpy as jnp
from jax.experimental import pallas as pl
from jax.experimental.pallas import tpu as pltpu


# ----------------------------------------------------------------------------
# Fused Pallas kernel: conv1 -> ReLU -> pool -> conv2 -> ReLU -> pool -> MLP
# ----------------------------------------------------------------------------
def _cnn2d_fused_kernel(x_ref, w1_ref, b1_ref, w2_ref, b2_ref,
                        wf1_ref, bf1_ref, wf2_ref, bf2_ref,
                        o_ref,
                        xpad1_ref, xpad2_ref, pat_ref, p2_ref):
    f32 = jnp.float32
    bt, H, W, _ = x_ref.shape
    C1 = w1_ref.shape[-1]                      # 64
    C2 = w2_ref.shape[-1]                      # 128
    H2, W2 = H // 2, W // 2
    H4, W4 = H2 // 2, W2 // 2
    RB = 4                                     # conv1 row chunk (keeps vreg pressure low)

    # ---- stage 0: zero-padded inputs live in VMEM scratch (no jnp.pad in HBM) ----
    xpad1_ref[...] = jnp.zeros(xpad1_ref.shape, xpad1_ref.dtype)
    xpad1_ref[:, 1:H + 1, 1:W + 1, :] = x_ref[...].astype(f32)
    xpad2_ref[...] = jnp.zeros(xpad2_ref.shape, xpad2_ref.dtype)

    # ---- stage 1: conv1 (Cin=1) on the VPU + bias + ReLU + 2x2 max-pool ----------
    for rb in range(0, H, RB):
        acc = jnp.zeros((bt, RB, W, C1), f32)
        for kh in range(3):
            for kw in range(3):
                t = kh * 3 + kw
                patch = xpad1_ref[:, rb + kh:rb + kh + RB, kw:kw + W, :]  # (bt,RB,W,1)
                acc = acc + patch * w1_ref[t:t + 1, :]                    # -> (bt,RB,W,C1)
        acc = jnp.maximum(acc + b1_ref[...], 0.0)
        # 2x2 max-pool: row pairs via an outer-dim split, col pairs via a
        # sublane-pair reduce.  Channels stay on the lane dim throughout.
        r = acc.reshape(bt, RB // 2, 2, W, C1)
        rmax = jnp.maximum(r[:, :, 0], r[:, :, 1])                        # (bt,RB/2,W,C1)
        c = rmax.reshape(bt, RB // 2, W2, 2, C1)
        pooled = jnp.max(c, axis=3)                                       # (bt,RB/2,W2,C1)
        # Write straight into the interior of conv2's zero-padded input.
        xpad2_ref[:, 1 + rb // 2:1 + rb // 2 + RB // 2, 1:W2 + 1, :] = pooled

    # ---- stage 2: conv2 as ONE im2col matmul + bias + ReLU + 2x2 max-pool --------
    # Build the (bt*H2*W2, 9*C1) patch matrix in VMEM scratch (9 shifted copies).
    for kh in range(3):
        for kw in range(3):
            t = kh * 3 + kw
            piece = xpad2_ref[:, kh:kh + H2, kw:kw + W2, :].reshape(bt * H2 * W2, C1)
            pat_ref[:, t * C1:(t + 1) * C1] = piece
    a2 = jnp.dot(pat_ref[...], w2_ref[...], preferred_element_type=f32)   # (bt*H2*W2, C2)
    a2 = jnp.maximum(a2 + b2_ref[...], 0.0)

    r2 = a2.reshape(bt, H4, 2, W2, C2)
    rmax2 = jnp.maximum(r2[:, :, 0], r2[:, :, 1])                         # (bt,H4,W2,C2)
    c2 = rmax2.reshape(bt, H4, W4, 2, C2)
    p2_ref[...] = jnp.max(c2, axis=3)                                     # (bt,H4,W4,C2)

    # ---- stage 3: MLP head (Linear -> ReLU -> Dropout(eval) -> Linear) -----------
    # wf1 rows were permuted at init to NHWC flatten order, so the flatten is just
    # an accumulation over the H4*W4 spatial positions with 128-row wf1 blocks
    # (same MXU K-passes as one K=2048 matmul, far lower register pressure).
    hidden = wf1_ref.shape[-1]
    hacc = jnp.zeros((bt, hidden), f32)
    for hh in range(H4):
        for ww in range(W4):
            blk = (hh * W4 + ww) * C2
            hacc = hacc + jnp.dot(p2_ref[:, hh, ww, :],
                                  wf1_ref[blk:blk + C2, :],
                                  preferred_element_type=f32)
    h1 = jnp.maximum(hacc + bf1_ref[...], 0.0)
    # TODO(synk): Dropout(0.5) is eval-mode identity (no RNG mask).
    logits = jnp.dot(h1, wf2_ref[...], preferred_element_type=f32) + bf2_ref[...]
    o_ref[...] = logits.astype(o_ref.dtype)                               # lane-dense (bt,128)


# ----------------------------------------------------------------------------
# Wrapper: one pallas_call for the whole network
# ----------------------------------------------------------------------------
def cnn2d_forward(x_nchw, kparams, num_classes, batch_tile=None):
    """x_nchw: (B, 1, H, W) float32 -> (B, num_classes)."""
    (w1, b1), (w2, b2), (wf1, bf1), (wf2, bf2) = kparams
    B, Cin, H, W = x_nchw.shape
    assert Cin == 1 and H % 4 == 0 and W % 4 == 0
    bt = B if batch_tile is None else batch_tile
    assert B % bt == 0 and (bt == B or bt % 8 == 0)

    C1 = w1.shape[-1]                       # 64
    K2 = w2.shape[0]                        # 9 * C1
    H2, W2 = H // 2, W // 2
    Npad = wf2.shape[-1]                    # lane-padded logit width (128)

    # NCHW with C == 1 -> NHWC is a pure (free) reshape; W stays innermost.
    x = x_nchw.reshape(B, H, W, 1)

    out = pl.pallas_call(
        _cnn2d_fused_kernel,
        out_shape=jax.ShapeDtypeStruct((B, Npad), x_nchw.dtype),
        grid_spec=pltpu.PrefetchScalarGridSpec(
            num_scalar_prefetch=0,
            grid=(B // bt,),
            in_specs=[
                pl.BlockSpec((bt, H, W, 1), lambda i: (i, 0, 0, 0)),
                pl.BlockSpec(w1.shape, lambda i: (0, 0)),
                pl.BlockSpec(b1.shape, lambda i: (0, 0)),
                pl.BlockSpec(w2.shape, lambda i: (0, 0)),
                pl.BlockSpec(b2.shape, lambda i: (0, 0)),
                pl.BlockSpec(wf1.shape, lambda i: (0, 0)),
                pl.BlockSpec(bf1.shape, lambda i: (0, 0)),
                pl.BlockSpec(wf2.shape, lambda i: (0, 0)),
                pl.BlockSpec(bf2.shape, lambda i: (0, 0)),
            ],
            out_specs=pl.BlockSpec((bt, Npad), lambda i: (i, 0)),
            scratch_shapes=[
                pltpu.VMEM((bt, H + 2, W + 2, 1), jnp.float32),       # padded conv1 input
                pltpu.VMEM((bt, H2 + 2, W2 + 2, C1), jnp.float32),    # padded conv2 input
                pltpu.VMEM((bt * H2 * W2, K2), jnp.float32),          # conv2 im2col patches
                pltpu.VMEM((bt, H2 // 2, W2 // 2, w2.shape[-1]), jnp.float32),  # pooled conv2
            ],
        ),
        compiler_params=pltpu.CompilerParams(
            dimension_semantics=("parallel",)),
    )(x, w1, b1, w2, b2, wf1, bf1, wf2, bf2)
    return out[:, :num_classes]


# ----------------------------------------------------------------------------
# Parameter init (PyTorch layout) + one-time conversion to kernel layout
# ----------------------------------------------------------------------------
def init_params(key, num_features, sequence_length, num_classes):
    ks = jax.random.split(key, 8)
    flat_dim = 128 * (num_features // 4) * (sequence_length // 4)

    def unif(k, shape, fan_in):
        bound = 1.0 / jnp.sqrt(float(fan_in))
        return jax.random.uniform(k, shape, jnp.float32, -bound, bound)

    w1 = unif(ks[0], (9, 1, 64), 1 * 9)
    b1 = unif(ks[1], (1, 64), 1 * 9)
    w2 = unif(ks[2], (9, 64, 128), 64 * 9)
    b2 = unif(ks[3], (1, 128), 64 * 9)
    wf1 = unif(ks[4], (flat_dim, 128), flat_dim)       # rows in torch (C,H,W) flatten order
    bf1 = unif(ks[5], (1, 128), flat_dim)
    wf2 = unif(ks[6], (128, num_classes), 128)
    bf2 = unif(ks[7], (1, num_classes), 128)
    return ((w1, b1), (w2, b2), (wf1, bf1), (wf2, bf2))


def prepare_params(params, num_features, sequence_length, num_classes):
    """One-time host-side conversion to the layouts the fused kernel expects."""
    (w1, b1), (w2, b2), (wf1, bf1), (wf2, bf2) = params
    H4, W4 = num_features // 4, sequence_length // 4
    C1, C2 = w1.shape[-1], w2.shape[-1]
    hidden = wf1.shape[-1]

    kw1 = w1.reshape(9, C1)                            # Cin == 1
    kw2 = w2.reshape(9 * C1, C2)                       # rows: tap-major then cin (im2col order)
    # Permute Linear#1 rows from torch NCHW-flatten order (c,h,w) to NHWC (h,w,c).
    kwf1 = (wf1.reshape(C2, H4, W4, hidden)
               .transpose(1, 2, 0, 3)
               .reshape(H4 * W4 * C2, hidden))
    # Lane-pad the classifier to a 128-wide output slab (lane-dense store).
    npad = max(128, ((num_classes + 127) // 128) * 128)
    kwf2 = jnp.zeros((hidden, npad), wf2.dtype).at[:, :num_classes].set(wf2)
    kbf2 = jnp.zeros((1, npad), bf2.dtype).at[:, :num_classes].set(bf2)
    return ((kw1, b1), (kw2, b2), (kwf1, bf1), (kwf2, kbf2))


# ----------------------------------------------------------------------------
# Pure-JAX reference (torch-layout params) for a correctness sanity check
# ----------------------------------------------------------------------------
def _ref_forward(x_nchw, params):
    (w1, b1), (w2, b2), (wf1, bf1), (wf2, bf2) = params

    def conv(x, w, b):
        cin, cout = w.shape[1], w.shape[2]
        w_oihw = w.reshape(3, 3, cin, cout).transpose(3, 2, 0, 1)
        y = jax.lax.conv_general_dilated(
            x, w_oihw, window_strides=(1, 1), padding="SAME",
            dimension_numbers=("NCHW", "OIHW", "NCHW"))
        return y + b.reshape(1, -1, 1, 1)

    def pool(x):
        return jax.lax.reduce_window(x, -jnp.inf, jax.lax.max,
                                     (1, 1, 2, 2), (1, 1, 2, 2), "VALID")

    x = pool(jnp.maximum(conv(x_nchw, w1, b1), 0.0))
    x = pool(jnp.maximum(conv(x, w2, b2), 0.0))
    x = x.reshape(x.shape[0], -1)                      # NCHW channel-major flatten
    x = jnp.maximum(x @ wf1 + bf1, 0.0)
    return x @ wf2 + bf2


# ----------------------------------------------------------------------------
# Main
# ----------------------------------------------------------------------------
if __name__ == "__main__":
    num_features, sequence_length, num_classes = 16, 16, 10
    batch = 2

    key = jax.random.PRNGKey(0)
    kx, kp = jax.random.split(key)
    # layout: input follows the PyTorch NCHW convention (B, 1, H, W)
    x = jax.random.normal(kx, (batch, 1, num_features, sequence_length), jnp.float32)
    params = init_params(kp, num_features, sequence_length, num_classes)
    kparams = prepare_params(params, num_features, sequence_length, num_classes)

    fwd = jax.jit(lambda xx, pp: cnn2d_forward(xx, pp, num_classes))
    out = jax.block_until_ready(fwd(x, kparams))
    assert out.shape == (batch, num_classes), out.shape

    ref = _ref_forward(x, params)
    assert jnp.allclose(out, ref, rtol=2e-3, atol=2e-3), (
        float(jnp.max(jnp.abs(out - ref))))

    print("KERNEL_OK")
</pallas_src>

<mosaic_0001>
module attributes {stable_mosaic.version = 11 : i64} {
  func.func @_cnn2d_fused_kernel(%arg0: i32, %arg1: memref<2x16x16x1xf32, #tpu.memory_space<vmem>>, %arg2: memref<9x64xf32, #tpu.memory_space<vmem>>, %arg3: memref<1x64xf32, #tpu.memory_space<vmem>>, %arg4: memref<576x128xf32, #tpu.memory_space<vmem>>, %arg5: memref<1x128xf32, #tpu.memory_space<vmem>>, %arg6: memref<2048x128xf32, #tpu.memory_space<vmem>>, %arg7: memref<1x128xf32, #tpu.memory_space<vmem>>, %arg8: memref<128x128xf32, #tpu.memory_space<vmem>>, %arg9: memref<1x128xf32, #tpu.memory_space<vmem>>, %arg10: memref<2x128xf32, #tpu.memory_space<vmem>>, %arg11: memref<2x18x18x1xf32, #tpu.memory_space<vmem>>, %arg12: memref<2x10x10x64xf32, #tpu.memory_space<vmem>>, %arg13: memref<128x576xf32, #tpu.memory_space<vmem>>, %arg14: memref<2x4x4x128xf32, #tpu.memory_space<vmem>>) attributes {dimension_semantics = [#tpu.dimension_semantics<parallel>], iteration_bounds = array<i64: 1>, scalar_prefetch = 0 : i64, scratch_operands = 4 : i64, tpu.core_type = #tpu.core_type<tc>, window_params = [{transform_indices = @transform_0, window_bounds = array<i64: 2, 16, 16, 1>}, {pipeline_mode = #tpu.pipeline_mode<synchronous>, transform_indices = @transform_1, window_bounds = array<i64: 9, 64>}, {pipeline_mode = #tpu.pipeline_mode<synchronous>, transform_indices = @transform_2, window_bounds = array<i64: 1, 64>}, {pipeline_mode = #tpu.pipeline_mode<synchronous>, transform_indices = @transform_3, window_bounds = array<i64: 576, 128>}, {pipeline_mode = #tpu.pipeline_mode<synchronous>, transform_indices = @transform_4, window_bounds = array<i64: 1, 128>}, {pipeline_mode = #tpu.pipeline_mode<synchronous>, transform_indices = @transform_5, window_bounds = array<i64: 2048, 128>}, {pipeline_mode = #tpu.pipeline_mode<synchronous>, transform_indices = @transform_6, window_bounds = array<i64: 1, 128>}, {pipeline_mode = #tpu.pipeline_mode<synchronous>, transform_indices = @transform_7, window_bounds = array<i64: 128, 128>}, {pipeline_mode = #tpu.pipeline_mode<synchronous>, transform_indices = @transform_8, window_bounds = array<i64: 1, 128>}, {transform_indices = @transform_9, window_bounds = array<i64: 2, 128>}]} {
    %cst = arith.constant 0.000000e+00 : f32
    %0 = vector.broadcast %cst : f32 to vector<2x18x18x1xf32>
    %c0 = arith.constant 0 : index
    %c0_0 = arith.constant 0 : index
    %c0_1 = arith.constant 0 : index
    %c0_2 = arith.constant 0 : index
    %1 = vector.load %arg11[%c0, %c0_0, %c0_1, %c0_2] : memref<2x18x18x1xf32, #tpu.memory_space<vmem>>, vector<2x18x18x1xf32>
    tpu.vector_store %arg11[%c0, %c0_0, %c0_1, %c0_2], %0 {strides = array<i32>} : memref<2x18x18x1xf32, #tpu.memory_space<vmem>>, vector<2x18x18x1xf32>,
    %c0_3 = arith.constant 0 : index
    %c0_4 = arith.constant 0 : index
    %c0_5 = arith.constant 0 : index
    %c0_6 = arith.constant 0 : index
    %2 = vector.load %arg1[%c0_3, %c0_4, %c0_5, %c0_6] : memref<2x16x16x1xf32, #tpu.memory_space<vmem>>, vector<2x16x16x1xf32>
    %c0_7 = arith.constant 0 : index
    %c1 = arith.constant 1 : index
    %c1_8 = arith.constant 1 : index
    %c0_9 = arith.constant 0 : index
    %3 = vector.load %arg11[%c0_7, %c1, %c1_8, %c0_9] : memref<2x18x18x1xf32, #tpu.memory_space<vmem>>, vector<2x16x16x1xf32>
    tpu.vector_store %arg11[%c0_7, %c1, %c1_8, %c0_9], %2 {strides = array<i32>} : memref<2x18x18x1xf32, #tpu.memory_space<vmem>>, vector<2x16x16x1xf32>,
    %cst_10 = arith.constant 0.000000e+00 : f32
    %4 = vector.broadcast %cst_10 : f32 to vector<2x10x10x64xf32>
    %c0_11 = arith.constant 0 : index
    %c0_12 = arith.constant 0 : index
    %c0_13 = arith.constant 0 : index
    %c0_14 = arith.constant 0 : index
    %5 = vector.load %arg12[%c0_11, %c0_12, %c0_13, %c0_14] : memref<2x10x10x64xf32, #tpu.memory_space<vmem>>, vector<2x10x10x64xf32>
    tpu.vector_store %arg12[%c0_11, %c0_12, %c0_13, %c0_14], %4 {strides = array<i32>} : memref<2x10x10x64xf32, #tpu.memory_space<vmem>>, vector<2x10x10x64xf32>,
    %cst_15 = arith.constant 0.000000e+00 : f32
    %6 = vector.broadcast %cst_15 : f32 to vector<2x4x16x64xf32>
    %c0_16 = arith.constant 0 : index
    %c0_17 = arith.constant 0 : index
    %c0_18 = arith.constant 0 : index
    %c0_19 = arith.constant 0 : index
    %7 = vector.load %arg11[%c0_16, %c0_17, %c0_18, %c0_19] : memref<2x18x18x1xf32, #tpu.memory_space<vmem>>, vector<2x4x16x1xf32>
    %c0_20 = arith.constant 0 : index
    %c0_21 = arith.constant 0 : index
    %8 = vector.load %arg2[%c0_20, %c0_21] : memref<9x64xf32, #tpu.memory_space<vmem>>, vector<1x64xf32>
    %9 = vector.shape_cast %8 : vector<1x64xf32> to vector<1x1x1x64xf32>
    %10 = vector.broadcast %7 : vector<2x4x16x1xf32> to vector<2x4x16x64xf32>
    %11 = vector.broadcast %9 : vector<1x1x1x64xf32> to vector<2x4x16x64xf32>
    %12 = arith.mulf %10, %11 : vector<2x4x16x64xf32>
    %13 = arith.addf %6, %12 : vector<2x4x16x64xf32>
    %c0_22 = arith.constant 0 : index
    %c0_23 = arith.constant 0 : index
    %c1_24 = arith.constant 1 : index
    %c0_25 = arith.constant 0 : index
    %14 = vector.load %arg11[%c0_22, %c0_23, %c1_24, %c0_25] : memref<2x18x18x1xf32, #tpu.memory_space<vmem>>, vector<2x4x16x1xf32>
    %c1_26 = arith.constant 1 : index
    %c0_27 = arith.constant 0 : index
    %15 = vector.load %arg2[%c1_26, %c0_27] : memref<9x64xf32, #tpu.memory_space<vmem>>, vector<1x64xf32>
    %16 = vector.shape_cast %15 : vector<1x64xf32> to vector<1x1x1x64xf32>
    %17 = vector.broadcast %14 : vector<2x4x16x1xf32> to vector<2x4x16x64xf32>
    %18 = vector.broadcast %16 : vector<1x1x1x64xf32> to vector<2x4x16x64xf32>
    %19 = arith.mulf %17, %18 : vector<2x4x16x64xf32>
    %20 = arith.addf %13, %19 : vector<2x4x16x64xf32>
    %c0_28 = arith.constant 0 : index
    %c0_29 = arith.constant 0 : index
    %c2 = arith.constant 2 : index
    %c0_30 = arith.constant 0 : index
    %21 = vector.load %arg11[%c0_28, %c0_29, %c2, %c0_30] : memref<2x18x18x1xf32, #tpu.memory_space<vmem>>, vector<2x4x16x1xf32>
    %c2_31 = arith.constant 2 : index
    %c0_32 = arith.constant 0 : index
    %22 = vector.load %arg2[%c2_31, %c0_32] : memref<9x64xf32, #tpu.memory_space<vmem>>, vector<1x64xf32>
    %23 = vector.shape_cast %22 : vector<1x64xf32> to vector<1x1x1x64xf32>
    %24 = vector.broadcast %21 : vector<2x4x16x1xf32> to vector<2x4x16x64xf32>
    %25 = vector.broadcast %23 : vector<1x1x1x64xf32> to vector<2x4x16x64xf32>
    %26 = arith.mulf %24, %25 : vector<2x4x16x64xf32>
    %27 = arith.addf %20, %26 : vector<2x4x16x64xf32>
    %c0_33 = arith.constant 0 : index
    %c1_34 = arith.constant 1 : index
    %c0_35 = arith.constant 0 : index
    %c0_36 = arith.constant 0 : index
    %28 = vector.load %arg11[%c0_33, %c1_34, %c0_35, %c0_36] : memref<2x18x18x1xf32, #tpu.memory_space<vmem>>, vector<2x4x16x1xf32>
    %c3 = arith.constant 3 : index
    %c0_37 = arith.constant 0 : index
    %29 = vector.load %arg2[%c3, %c0_37] : memref<9x64xf32, #tpu.memory_space<vmem>>, vector<1x64xf32>
    %30 = vector.shape_cast %29 : vector<1x64xf32> to vector<1x1x1x64xf32>
    %31 = vector.broadcast %28 : vector<2x4x16x1xf32> to vector<2x4x16x64xf32>
    %32 = vector.broadcast %30 : vector<1x1x1x64xf32> to vector<2x4x16x64xf32>
    %33 = arith.mulf %31, %32 : vector<2x4x16x64xf32>
    %34 = arith.addf %27, %33 : vector<2x4x16x64xf32>
    %c0_38 = arith.constant 0 : index
    %c1_39 = arith.constant 1 : index
    %c1_40 = arith.constant 1 : index
    %c0_41 = arith.constant 0 : index
    %35 = vector.load %arg11[%c0_38, %c1_39, %c1_40, %c0_41] : memref<2x18x18x1xf32, #tpu.memory_space<vmem>>, vector<2x4x16x1xf32>
    %c4 = arith.constant 4 : index
    %c0_42 = arith.constant 0 : index
    %36 = vector.load %arg2[%c4, %c0_42] : memref<9x64xf32, #tpu.memory_space<vmem>>, vector<1x64xf32>
    %37 = vector.shape_cast %36 : vector<1x64xf32> to vector<1x1x1x64xf32>
    %38 = vector.broadcast %35 : vector<2x4x16x1xf32> to vector<2x4x16x64xf32>
    %39 = vector.broadcast %37 : vector<1x1x1x64xf32> to vector<2x4x16x64xf32>
    %40 = arith.mulf %38, %39 : vector<2x4x16x64xf32>
    %41 = arith.addf %34, %40 : vector<2x4x16x64xf32>
    %c0_43 = arith.constant 0 : index
    %c1_44 = arith.constant 1 : index
    %c2_45 = arith.constant 2 : index
    %c0_46 = arith.constant 0 : index
    %42 = vector.load %arg11[%c0_43, %c1_44, %c2_45, %c0_46] : memref<2x18x18x1xf32, #tpu.memory_space<vmem>>, vector<2x4x16x1xf32>
    %c5 = arith.constant 5 : index
    %c0_47 = arith.constant 0 : index
    %43 = vector.load %arg2[%c5, %c0_47] : memref<9x64xf32, #tpu.memory_space<vmem>>, vector<1x64xf32>
    %44 = vector.shape_cast %43 : vector<1x64xf32> to vector<1x1x1x64xf32>
    %45 = vector.broadcast %42 : vector<2x4x16x1xf32> to vector<2x4x16x64xf32>
    %46 = vector.broadcast %44 : vector<1x1x1x64xf32> to vector<2x4x16x64xf32>
    %47 = arith.mulf %45, %46 : vector<2x4x16x64xf32>
    %48 = arith.addf %41, %47 : vector<2x4x16x64xf32>
    %c0_48 = arith.constant 0 : index
    %c2_49 = arith.constant 2 : index
    %c0_50 = arith.constant 0 : index
    %c0_51 = arith.constant 0 : index
    %49 = vector.load %arg11[%c0_48, %c2_49, %c0_50, %c0_51] : memref<2x18x18x1xf32, #tpu.memory_space<vmem>>, vector<2x4x16x1xf32>
    %c6 = arith.constant 6 : index
    %c0_52 = arith.constant 0 : index
    %50 = vector.load %arg2[%c6, %c0_52] : memref<9x64xf32, #tpu.memory_space<vmem>>, vector<1x64xf32>
    %51 = vector.shape_cast %50 : vector<1x64xf32> to vector<1x1x1x64xf32>
    %52 = vector.broadcast %49 : vector<2x4x16x1xf32> to vector<2x4x16x64xf32>
    %53 = vector.broadcast %51 : vector<1x1x1x64xf32> to vector<2x4x16x64xf32>
    %54 = arith.mulf %52, %53 : vector<2x4x16x64xf32>
    %55 = arith.addf %48, %54 : vector<2x4x16x64xf32>
    %c0_53 = arith.constant 0 : index
    %c2_54 = arith.constant 2 : index
    %c1_55 = arith.constant 1 : index
    %c0_56 = arith.constant 0 : index
    %56 = vector.load %arg11[%c0_53, %c2_54, %c1_55, %c0_56] : memref<2x18x18x1xf32, #tpu.memory_space<vmem>>, vector<2x4x16x1xf32>
    %c7 = arith.constant 7 : index
    %c0_57 = arith.constant 0 : index
    %57 = vector.load %arg2[%c7, %c0_57] : memref<9x64xf32, #tpu.memory_space<vmem>>, vector<1x64xf32>
    %58 = vector.shape_cast %57 : vector<1x64xf32> to vector<1x1x1x64xf32>
    %59 = vector.broadcast %56 : vector<2x4x16x1xf32> to vector<2x4x16x64xf32>
    %60 = vector.broadcast %58 : vector<1x1x1x64xf32> to vector<2x4x16x64xf32>
    %61 = arith.mulf %59, %60 : vector<2x4x16x64xf32>
    %62 = arith.addf %55, %61 : vector<2x4x16x64xf32>
    %c0_58 = arith.constant 0 : index
    %c2_59 = arith.constant 2 : index
    %c2_60 = arith.constant 2 : index
    %c0_61 = arith.constant 0 : index
    %63 = vector.load %arg11[%c0_58, %c2_59, %c2_60, %c0_61] : memref<2x18x18x1xf32, #tpu.memory_space<vmem>>, vector<2x4x16x1xf32>
    %c8 = arith.constant 8 : index
    %c0_62 = arith.constant 0 : index
    %64 = vector.load %arg2[%c8, %c0_62] : memref<9x64xf32, #tpu.memory_space<vmem>>, vector<1x64xf32>
    %65 = vector.shape_cast %64 : vector<1x64xf32> to vector<1x1x1x64xf32>
    %66 = vector.broadcast %63 : vector<2x4x16x1xf32> to vector<2x4x16x64xf32>
    %67 = vector.broadcast %65 : vector<1x1x1x64xf32> to vector<2x4x16x64xf32>
    %68 = arith.mulf %66, %67 : vector<2x4x16x64xf32>
    %69 = arith.addf %62, %68 : vector<2x4x16x64xf32>
    %c0_63 = arith.constant 0 : index
    %c0_64 = arith.constant 0 : index
    %70 = vector.load %arg3[%c0_63, %c0_64] : memref<1x64xf32, #tpu.memory_space<vmem>>, vector<1x64xf32>
    %71 = vector.shape_cast %70 : vector<1x64xf32> to vector<1x1x1x64xf32>
    %72 = vector.broadcast %71 : vector<1x1x1x64xf32> to vector<2x4x16x64xf32>
    %73 = arith.addf %69, %72 : vector<2x4x16x64xf32>
    %cst_65 = arith.constant 0.000000e+00 : f32
    %74 = vector.broadcast %cst_65 : f32 to vector<2x4x16x64xf32>
    %75 = arith.maximumf %73, %74 : vector<2x4x16x64xf32>
    %76 = vector.shape_cast %75 : vector<2x4x16x64xf32> to vector<2x2x2x16x64xf32>
    %77 = vector.extract_strided_slice %76 {offsets = [0, 0, 0, 0, 0], sizes = [2, 2, 1, 16, 64], strides = [1, 1, 1, 1, 1]} : vector<2x2x2x16x64xf32> to vector<2x2x1x16x64xf32>
    %78 = vector.shape_cast %77 : vector<2x2x1x16x64xf32> to vector<2x2x16x64xf32>
    %79 = vector.extract_strided_slice %76 {offsets = [0, 0, 1, 0, 0], sizes = [2, 2, 1, 16, 64], strides = [1, 1, 1, 1, 1]} : vector<2x2x2x16x64xf32> to vector<2x2x1x16x64xf32>
    %80 = vector.shape_cast %79 : vector<2x2x1x16x64xf32> to vector<2x2x16x64xf32>
    %81 = arith.maximumf %78, %80 : vector<2x2x16x64xf32>
    %82 = vector.shape_cast %81 : vector<2x2x16x64xf32> to vector<2x2x8x2x64xf32>
    %cst_66 = arith.constant dense<0xFF800000> : vector<2x2x8x64xf32>
    %83 = vector.multi_reduction <maximumf>, %82, %cst_66 [3] : vector<2x2x8x2x64xf32> to vector<2x2x8x64xf32>
    %c0_67 = arith.constant 0 : index
    %c1_68 = arith.constant 1 : index
    %c1_69 = arith.constant 1 : index
    %c0_70 = arith.constant 0 : index
    %84 = vector.load %arg12[%c0_67, %c1_68, %c1_69, %c0_70] : memref<2x10x10x64xf32, #tpu.memory_space<vmem>>, vector<2x2x8x64xf32>
    tpu.vector_store %arg12[%c0_67, %c1_68, %c1_69, %c0_70], %83 {strides = array<i32>} : memref<2x10x10x64xf32, #tpu.memory_space<vmem>>, vector<2x2x8x64xf32>,
    %cst_71 = arith.constant 0.000000e+00 : f32
    %85 = vector.broadcast %cst_71 : f32 to vector<2x4x16x64xf32>
    %c0_72 = arith.constant 0 : index
    %c4_73 = arith.constant 4 : index
    %c0_74 = arith.constant 0 : index
    %c0_75 = arith.constant 0 : index
    %86 = vector.load %arg11[%c0_72, %c4_73, %c0_74, %c0_75] : memref<2x18x18x1xf32, #tpu.memory_space<vmem>>, vector<2x4x16x1xf32>
    %c0_76 = arith.constant 0 : index
    %c0_77 = arith.constant 0 : index
    %87 = vector.load %arg2[%c0_76, %c0_77] : memref<9x64xf32, #tpu.memory_space<vmem>>, vector<1x64xf32>
    %88 = vector.shape_cast %87 : vector<1x64xf32> to vector<1x1x1x64xf32>
    %89 = vector.broadcast %86 : vector<2x4x16x1xf32> to vector<2x4x16x64xf32>
    %90 = vector.broadcast %88 : vector<1x1x1x64xf32> to vector<2x4x16x64xf32>
    %91 = arith.mulf %89, %90 : vector<2x4x16x64xf32>
    %92 = arith.addf %85, %91 : vector<2x4x16x64xf32>
    %c0_78 = arith.constant 0 : index
    %c4_79 = arith.constant 4 : index
    %c1_80 = arith.constant 1 : index
    %c0_81 = arith.constant 0 : index
    %93 = vector.load %arg11[%c0_78, %c4_79, %c1_80, %c0_81] : memref<2x18x18x1xf32, #tpu.memory_space<vmem>>, vector<2x4x16x1xf32>
    %c1_82 = arith.constant 1 : index
    %c0_83 = arith.constant 0 : index
    %94 = vector.load %arg2[%c1_82, %c0_83] : memref<9x64xf32, #tpu.memory_space<vmem>>, vector<1x64xf32>
    %95 = vector.shape_cast %94 : vector<1x64xf32> to vector<1x1x1x64xf32>
    %96 = vector.broadcast %93 : vector<2x4x16x1xf32> to vector<2x4x16x64xf32>
    %97 = vector.broadcast %95 : vector<1x1x1x64xf32> to vector<2x4x16x64xf32>
    %98 = arith.mulf %96, %97 : vector<2x4x16x64xf32>
    %99 = arith.addf %92, %98 : vector<2x4x16x64xf32>
    %c0_84 = arith.constant 0 : index
    %c4_85 = arith.constant 4 : index
    %c2_86 = arith.constant 2 : index
    %c0_87 = arith.constant 0 : index
    %100 = vector.load %arg11[%c0_84, %c4_85, %c2_86, %c0_87] : memref<2x18x18x1xf32, #tpu.memory_space<vmem>>, vector<2x4x16x1xf32>
    %c2_88 = arith.constant 2 : index
    %c0_89 = arith.constant 0 : index
    %101 = vector.load %arg2[%c2_88, %c0_89] : memref<9x64xf32, #tpu.memory_space<vmem>>, vector<1x64xf32>
    %102 = vector.shape_cast %101 : vector<1x64xf32> to vector<1x1x1x64xf32>
    %103 = vector.broadcast %100 : vector<2x4x16x1xf32> to vector<2x4x16x64xf32>
    %104 = vector.broadcast %102 : vector<1x1x1x64xf32> to vector<2x4x16x64xf32>
    %105 = arith.mulf %103, %104 : vector<2x4x16x64xf32>
    %106 = arith.addf %99, %105 : vector<2x4x16x64xf32>
    %c0_90 = arith.constant 0 : index
    %c5_91 = arith.constant 5 : index
    %c0_92 = arith.constant 0 : index
    %c0_93 = arith.constant 0 : index
    %107 = vector.load %arg11[%c0_90, %c5_91, %c0_92, %c0_93] : memref<2x18x18x1xf32, #tpu.memory_space<vmem>>, vector<2x4x16x1xf32>
    %c3_94 = arith.constant 3 : index
    %c0_95 = arith.constant 0 : index
    %108 = vector.load %arg2[%c3_94, %c0_95] : memref<9x64xf32, #tpu.memory_space<vmem>>, vector<1x64xf32>
    %109 = vector.shape_cast %108 : vector<1x64xf32> to vector<1x1x1x64xf32>
    %110 = vector.broadcast %107 : vector<2x4x16x1xf32> to vector<2x4x16x64xf32>
    %111 = vector.broadcast %109 : vector<1x1x1x64xf32> to vector<2x4x16x64xf32>
    %112 = arith.mulf %110, %111 : vector<2x4x16x64xf32>
    %113 = arith.addf %106, %112 : vector<2x4x16x64xf32>
    %c0_96 = arith.constant 0 : index
    %c5_97 = arith.constant 5 : index
    %c1_98 = arith.constant 1 : index
    %c0_99 = arith.constant 0 : index
    %114 = vector.load %arg11[%c0_96, %c5_97, %c1_98, %c0_99] : memref<2x18x18x1xf32, #tpu.memory_space<vmem>>, vector<2x4x16x1xf32>
    %c4_100 = arith.constant 4 : index
    %c0_101 = arith.constant 0 : index
    %115 = vector.load %arg2[%c4_100, %c0_101] : memref<9x64xf32, #tpu.memory_space<vmem>>, vector<1x64xf32>
    %116 = vector.shape_cast %115 : vector<1x64xf32> to vector<1x1x1x64xf32>
    %117 = vector.broadcast %114 : vector<2x4x16x1xf32> to vector<2x4x16x64xf32>
    %118 = vector.broadcast %116 : vector<1x1x1x64xf32> to vector<2x4x16x64xf32>
    %119 = arith.mulf %117, %118 : vector<2x4x16x64xf32>
    %120 = arith.addf %113, %119 : vector<2x4x16x64xf32>
    %c0_102 = arith.constant 0 : index
    %c5_103 = arith.constant 5 : index
    %c2_104 = arith.constant 2 : index
    %c0_105 = arith.constant 0 : index
    %121 = vector.load %arg11[%c0_102, %c5_103, %c2_104, %c0_105] : memref<2x18x18x1xf32, #tpu.memory_space<vmem>>, vector<2x4x16x1xf32>
    %c5_106 = arith.constant 5 : index
    %c0_107 = arith.constant 0 : index
    %122 = vector.load %arg2[%c5_106, %c0_107] : memref<9x64xf32, #tpu.memory_space<vmem>>, vector<1x64xf32>
    %123 = vector.shape_cast %122 : vector<1x64xf32> to vector<1x1x1x64xf32>
    %124 = vector.broadcast %121 : vector<2x4x16x1xf32> to vector<2x4x16x64xf32>
    %125 = vector.broadcast %123 : vector<1x1x1x64xf32> to vector<2x4x16x64xf32>
    %126 = arith.mulf %124, %125 : vector<2x4x16x64xf32>
    %127 = arith.addf %120, %126 : vector<2x4x16x64xf32>
    %c0_108 = arith.constant 0 : index
    %c6_109 = arith.constant 6 : index
    %c0_110 = arith.constant 0 : index
    %c0_111 = arith.constant 0 : index
    %128 = vector.load %arg11[%c0_108, %c6_109, %c0_110, %c0_111] : memref<2x18x18x1xf32, #tpu.memory_space<vmem>>, vector<2x4x16x1xf32>
    %c6_112 = arith.constant 6 : index
    %c0_113 = arith.constant 0 : index
    %129 = vector.load %arg2[%c6_112, %c0_113] : memref<9x64xf32, #tpu.memory_space<vmem>>, vector<1x64xf32>
    %130 = vector.shape_cast %129 : vector<1x64xf32> to vector<1x1x1x64xf32>
    %131 = vector.broadcast %128 : vector<2x4x16x1xf32> to vector<2x4x16x64xf32>
    %132 = vector.broadcast %130 : vector<1x1x1x64xf32> to vector<2x4x16x64xf32>
    %133 = arith.mulf %131, %132 : vector<2x4x16x64xf32>
    %134 = arith.addf %127, %133 : vector<2x4x16x64xf32>
    %c0_114 = arith.constant 0 : index
    %c6_115 = arith.constant 6 : index
    %c1_116 = arith.constant 1 : index
    %c0_117 = arith.constant 0 : index
    %135 = vector.load %arg11[%c0_114, %c6_115, %c1_116, %c0_117] : memref<2x18x18x1xf32, #tpu.memory_space<vmem>>, vector<2x4x16x1xf32>
    %c7_118 = arith.constant 7 : index
    %c0_119 = arith.constant 0 : index
    %136 = vector.load %arg2[%c7_118, %c0_119] : memref<9x64xf32, #tpu.memory_space<vmem>>, vector<1x64xf32>
    %137 = vector.shape_cast %136 : vector<1x64xf32> to vector<1x1x1x64xf32>
    %138 = vector.broadcast %135 : vector<2x4x16x1xf32> to vector<2x4x16x64xf32>
    %139 = vector.broadcast %137 : vector<1x1x1x64xf32> to vector<2x4x16x64xf32>
    %140 = arith.mulf %138, %139 : vector<2x4x16x64xf32>
    %141 = arith.addf %134, %140 : vector<2x4x16x64xf32>
    %c0_120 = arith.constant 0 : index
    %c6_121 = arith.constant 6 : index
    %c2_122 = arith.constant 2 : index
    %c0_123 = arith.constant 0 : index
    %142 = vector.load %arg11[%c0_120, %c6_121, %c2_122, %c0_123] : memref<2x18x18x1xf32, #tpu.memory_space<vmem>>, vector<2x4x16x1xf32>
    %c8_124 = arith.constant 8 : index
    %c0_125 = arith.constant 0 : index
    %143 = vector.load %arg2[%c8_124, %c0_125] : memref<9x64xf32, #tpu.memory_space<vmem>>, vector<1x64xf32>
    %144 = vector.shape_cast %143 : vector<1x64xf32> to vector<1x1x1x64xf32>
    %145 = vector.broadcast %142 : vector<2x4x16x1xf32> to vector<2x4x16x64xf32>
    %146 = vector.broadcast %144 : vector<1x1x1x64xf32> to vector<2x4x16x64xf32>
    %147 = arith.mulf %145, %146 : vector<2x4x16x64xf32>
    %148 = arith.addf %141, %147 : vector<2x4x16x64xf32>
    %c0_126 = arith.constant 0 : index
    %c0_127 = arith.constant 0 : index
    %149 = vector.load %arg3[%c0_126, %c0_127] : memref<1x64xf32, #tpu.memory_space<vmem>>, vector<1x64xf32>
    %150 = vector.shape_cast %149 : vector<1x64xf32> to vector<1x1x1x64xf32>
    %151 = vector.broadcast %150 : vector<1x1x1x64xf32> to vector<2x4x16x64xf32>
    %152 = arith.addf %148, %151 : vector<2x4x16x64xf32>
    %cst_128 = arith.constant 0.000000e+00 : f32
    %153 = vector.broadcast %cst_128 : f32 to vector<2x4x16x64xf32>
    %154 = arith.maximumf %152, %153 : vector<2x4x16x64xf32>
    %155 = vector.shape_cast %154 : vector<2x4x16x64xf32> to vector<2x2x2x16x64xf32>
    %156 = vector.extract_strided_slice %155 {offsets = [0, 0, 0, 0, 0], sizes = [2, 2, 1, 16, 64], strides = [1, 1, 1, 1, 1]} : vector<2x2x2x16x64xf32> to vector<2x2x1x16x64xf32>
    %157 = vector.shape_cast %156 : vector<2x2x1x16x64xf32> to vector<2x2x16x64xf32>
    %158 = vector.extract_strided_slice %155 {offsets = [0, 0, 1, 0, 0], sizes = [2, 2, 1, 16, 64], strides = [1, 1, 1, 1, 1]} : vector<2x2x2x16x64xf32> to vector<2x2x1x16x64xf32>
    %159 = vector.shape_cast %158 : vector<2x2x1x16x64xf32> to vector<2x2x16x64xf32>
    %160 = arith.maximumf %157, %159 : vector<2x2x16x64xf32>
    %161 = vector.shape_cast %160 : vector<2x2x16x64xf32> to vector<2x2x8x2x64xf32>
    %cst_129 = arith.constant dense<0xFF800000> : vector<2x2x8x64xf32>
    %162 = vector.multi_reduction <maximumf>, %161, %cst_129 [3] : vector<2x2x8x2x64xf32> to vector<2x2x8x64xf32>
    %c0_130 = arith.constant 0 : index
    %c3_131 = arith.constant 3 : index
    %c1_132 = arith.constant 1 : index
    %c0_133 = arith.constant 0 : index
    %163 = vector.load %arg12[%c0_130, %c3_131, %c1_132, %c0_133] : memref<2x10x10x64xf32, #tpu.memory_space<vmem>>, vector<2x2x8x64xf32>
    tpu.vector_store %arg12[%c0_130, %c3_131, %c1_132, %c0_133], %162 {strides = array<i32>} : memref<2x10x10x64xf32, #tpu.memory_space<vmem>>, vector<2x2x8x64xf32>,
    %cst_134 = arith.constant 0.000000e+00 : f32
    %164 = vector.broadcast %cst_134 : f32 to vector<2x4x16x64xf32>
    %c0_135 = arith.constant 0 : index
    %c8_136 = arith.constant 8 : index
    %c0_137 = arith.constant 0 : index
    %c0_138 = arith.constant 0 : index
    %165 = vector.load %arg11[%c0_135, %c8_136, %c0_137, %c0_138] : memref<2x18x18x1xf32, #tpu.memory_space<vmem>>, vector<2x4x16x1xf32>
    %c0_139 = arith.constant 0 : index
    %c0_140 = arith.constant 0 : index
    %166 = vector.load %arg2[%c0_139, %c0_140] : memref<9x64xf32, #tpu.memory_space<vmem>>, vector<1x64xf32>
    %167 = vector.shape_cast %166 : vector<1x64xf32> to vector<1x1x1x64xf32>
    %168 = vector.broadcast %165 : vector<2x4x16x1xf32> to vector<2x4x16x64xf32>
    %169 = vector.broadcast %167 : vector<1x1x1x64xf32> to vector<2x4x16x64xf32>
    %170 = arith.mulf %168, %169 : vector<2x4x16x64xf32>
    %171 = arith.addf %164, %170 : vector<2x4x16x64xf32>
    %c0_141 = arith.constant 0 : index
    %c8_142 = arith.constant 8 : index
    %c1_143 = arith.constant 1 : index
    %c0_144 = arith.constant 0 : index
    %172 = vector.load %arg11[%c0_141, %c8_142, %c1_143, %c0_144] : memref<2x18x18x1xf32, #tpu.memory_space<vmem>>, vector<2x4x16x1xf32>
    %c1_145 = arith.constant 1 : index
    %c0_146 = arith.constant 0 : index
    %173 = vector.load %arg2[%c1_145, %c0_146] : memref<9x64xf32, #tpu.memory_space<vmem>>, vector<1x64xf32>
    %174 = vector.shape_cast %173 : vector<1x64xf32> to vector<1x1x1x64xf32>
    %175 = vector.broadcast %172 : vector<2x4x16x1xf32> to vector<2x4x16x64xf32>
    %176 = vector.broadcast %174 : vector<1x1x1x64xf32> to vector<2x4x16x64xf32>
    %177 = arith.mulf %175, %176 : vector<2x4x16x64xf32>
    %178 = arith.addf %171, %177 : vector<2x4x16x64xf32>
    %c0_147 = arith.constant 0 : index
    %c8_148 = arith.constant 8 : index
    %c2_149 = arith.constant 2 : index
    %c0_150 = arith.constant 0 : index
    %179 = vector.load %arg11[%c0_147, %c8_148, %c2_149, %c0_150] : memref<2x18x18x1xf32, #tpu.memory_space<vmem>>, vector<2x4x16x1xf32>
    %c2_151 = arith.constant 2 : index
    %c0_152 = arith.constant 0 : index
    %180 = vector.load %arg2[%c2_151, %c0_152] : memref<9x64xf32, #tpu.memory_space<vmem>>, vector<1x64xf32>
    %181 = vector.shape_cast %180 : vector<1x64xf32> to vector<1x1x1x64xf32>
    %182 = vector.broadcast %179 : vector<2x4x16x1xf32> to vector<2x4x16x64xf32>
    %183 = vector.broadcast %181 : vector<1x1x1x64xf32> to vector<2x4x16x64xf32>
    %184 = arith.mulf %182, %183 : vector<2x4x16x64xf32>
    %185 = arith.addf %178, %184 : vector<2x4x16x64xf32>
    %c0_153 = arith.constant 0 : index
    %c9 = arith.constant 9 : index
    %c0_154 = arith.constant 0 : index
    %c0_155 = arith.constant 0 : index
    %186 = vector.load %arg11[%c0_153, %c9, %c0_154, %c0_155] : memref<2x18x18x1xf32, #tpu.memory_space<vmem>>, vector<2x4x16x1xf32>
    %c3_156 = arith.constant 3 : index
    %c0_157 = arith.constant 0 : index
    %187 = vector.load %arg2[%c3_156, %c0_157] : memref<9x64xf32, #tpu.memory_space<vmem>>, vector<1x64xf32>
    %188 = vector.shape_cast %187 : vector<1x64xf32> to vector<1x1x1x64xf32>
    %189 = vector.broadcast %186 : vector<2x4x16x1xf32> to vector<2x4x16x64xf32>
    %190 = vector.broadcast %188 : vector<1x1x1x64xf32> to vector<2x4x16x64xf32>
    %191 = arith.mulf %189, %190 : vector<2x4x16x64xf32>
    %192 = arith.addf %185, %191 : vector<2x4x16x64xf32>
    %c0_158 = arith.constant 0 : index
    %c9_159 = arith.constant 9 : index
    %c1_160 = arith.constant 1 : index
    %c0_161 = arith.constant 0 : index
    %193 = vector.load %arg11[%c0_158, %c9_159, %c1_160, %c0_161] : memref<2x18x18x1xf32, #tpu.memory_space<vmem>>, vector<2x4x16x1xf32>
    %c4_162 = arith.constant 4 : index
    %c0_163 = arith.constant 0 : index
    %194 = vector.load %arg2[%c4_162, %c0_163] : memref<9x64xf32, #tpu.memory_space<vmem>>, vector<1x64xf32>
    %195 = vector.shape_cast %194 : vector<1x64xf32> to vector<1x1x1x64xf32>
    %196 = vector.broadcast %193 : vector<2x4x16x1xf32> to vector<2x4x16x64xf32>
    %197 = vector.broadcast %195 : vector<1x1x1x64xf32> to vector<2x4x16x64xf32>
    %198 = arith.mulf %196, %197 : vector<2x4x16x64xf32>
    %199 = arith.addf %192, %198 : vector<2x4x16x64xf32>
    %c0_164 = arith.constant 0 : index
    %c9_165 = arith.constant 9 : index
    %c2_166 = arith.constant 2 : index
    %c0_167 = arith.constant 0 : index
    %200 = vector.load %arg11[%c0_164, %c9_165, %c2_166, %c0_167] : memref<2x18x18x1xf32, #tpu.memory_space<vmem>>, vector<2x4x16x1xf32>
    %c5_168 = arith.constant 5 : index
    %c0_169 = arith.constant 0 : index
    %201 = vector.load %arg2[%c5_168, %c0_169] : memref<9x64xf32, #tpu.memory_space<vmem>>, vector<1x64xf32>
    %202 = vector.shape_cast %201 : vector<1x64xf32> to vector<1x1x1x64xf32>
    %203 = vector.broadcast %200 : vector<2x4x16x1xf32> to vector<2x4x16x64xf32>
    %204 = vector.broadcast %202 : vector<1x1x1x64xf32> to vector<2x4x16x64xf32>
    %205 = arith.mulf %203, %204 : vector<2x4x16x64xf32>
    %206 = arith.addf %199, %205 : vector<2x4x16x64xf32>
    %c0_170 = arith.constant 0 : index
    %c10 = arith.constant 10 : index
    %c0_171 = arith.constant 0 : index
    %c0_172 = arith.constant 0 : index
    %207 = vector.load %arg11[%c0_170, %c10, %c0_171, %c0_172] : memref<2x18x18x1xf32, #tpu.memory_space<vmem>>, vector<2x4x16x1xf32>
    %c6_173 = arith.constant 6 : index
    %c0_174 = arith.constant 0 : index
    %208 = vector.load %arg2[%c6_173, %c0_174] : memref<9x64xf32, #tpu.memory_space<vmem>>, vector<1x64xf32>
    %209 = vector.shape_cast %208 : vector<1x64xf32> to vector<1x1x1x64xf32>
    %210 = vector.broadcast %207 : vector<2x4x16x1xf32> to vector<2x4x16x64xf32>
    %211 = vector.broadcast %209 : vector<1x1x1x64xf32> to vector<2x4x16x64xf32>
    %212 = arith.mulf %210, %211 : vector<2x4x16x64xf32>
    %213 = arith.addf %206, %212 : vector<2x4x16x64xf32>
    %c0_175 = arith.constant 0 : index
    %c10_176 = arith.constant 10 : index
    %c1_177 = arith.constant 1 : index
    %c0_178 = arith.constant 0 : index
    %214 = vector.load %arg11[%c0_175, %c10_176, %c1_177, %c0_178] : memref<2x18x18x1xf32, #tpu.memory_space<vmem>>, vector<2x4x16x1xf32>
    %c7_179 = arith.constant 7 : index
    %c0_180 = arith.constant 0 : index
    %215 = vector.load %arg2[%c7_179, %c0_180] : memref<9x64xf32, #tpu.memory_space<vmem>>, vector<1x64xf32>
    %216 = vector.shape_cast %215 : vector<1x64xf32> to vector<1x1x1x64xf32>
    %217 = vector.broadcast %214 : vector<2x4x16x1xf32> to vector<2x4x16x64xf32>
    %218 = vector.broadcast %216 : vector<1x1x1x64xf32> to vector<2x4x16x64xf32>
    %219 = arith.mulf %217, %218 : vector<2x4x16x64xf32>
    %220 = arith.addf %213, %219 : vector<2x4x16x64xf32>
    %c0_181 = arith.constant 0 : index
    %c10_182 = arith.constant 10 : index
    %c2_183 = arith.constant 2 : index
    %c0_184 = arith.constant 0 : index
    %221 = vector.load %arg11[%c0_181, %c10_182, %c2_183, %c0_184] : memref<2x18x18x1xf32, #tpu.memory_space<vmem>>, vector<2x4x16x1xf32>
    %c8_185 = arith.constant 8 : index
    %c0_186 = arith.constant 0 : index
    %222 = vector.load %arg2[%c8_185, %c0_186] : memref<9x64xf32, #tpu.memory_space<vmem>>, vector<1x64xf32>
    %223 = vector.shape_cast %222 : vector<1x64xf32> to vector<1x1x1x64xf32>
    %224 = vector.broadcast %221 : vector<2x4x16x1xf32> to vector<2x4x16x64xf32>
    %225 = vector.broadcast %223 : vector<1x1x1x64xf32> to vector<2x4x16x64xf32>
    %226 = arith.mulf %224, %225 : vector<2x4x16x64xf32>
    %227 = arith.addf %220, %226 : vector<2x4x16x64xf32>
    %c0_187 = arith.constant 0 : index
    %c0_188 = arith.constant 0 : index
    %228 = vector.load %arg3[%c0_187, %c0_188] : memref<1x64xf32, #tpu.memory_space<vmem>>, vector<1x64xf32>
    %229 = vector.shape_cast %228 : vector<1x64xf32> to vector<1x1x1x64xf32>
    %230 = vector.broadcast %229 : vector<1x1x1x64xf32> to vector<2x4x16x64xf32>
    %231 = arith.addf %227, %230 : vector<2x4x16x64xf32>
    %cst_189 = arith.constant 0.000000e+00 : f32
    %232 = vector.broadcast %cst_189 : f32 to vector<2x4x16x64xf32>
    %233 = arith.maximumf %231, %232 : vector<2x4x16x64xf32>
    %234 = vector.shape_cast %233 : vector<2x4x16x64xf32> to vector<2x2x2x16x64xf32>
    %235 = vector.extract_strided_slice %234 {offsets = [0, 0, 0, 0, 0], sizes = [2, 2, 1, 16, 64], strides = [1, 1, 1, 1, 1]} : vector<2x2x2x16x64xf32> to vector<2x2x1x16x64xf32>
    %236 = vector.shape_cast %235 : vector<2x2x1x16x64xf32> to vector<2x2x16x64xf32>
    %237 = vector.extract_strided_slice %234 {offsets = [0, 0, 1, 0, 0], sizes = [2, 2, 1, 16, 64], strides = [1, 1, 1, 1, 1]} : vector<2x2x2x16x64xf32> to vector<2x2x1x16x64xf32>
    %238 = vector.shape_cast %237 : vector<2x2x1x16x64xf32> to vector<2x2x16x64xf32>
    %239 = arith.maximumf %236, %238 : vector<2x2x16x64xf32>
    %240 = vector.shape_cast %239 : vector<2x2x16x64xf32> to vector<2x2x8x2x64xf32>
    %cst_190 = arith.constant dense<0xFF800000> : vector<2x2x8x64xf32>
    %241 = vector.multi_reduction <maximumf>, %240, %cst_190 [3] : vector<2x2x8x2x64xf32> to vector<2x2x8x64xf32>
    %c0_191 = arith.constant 0 : index
    %c5_192 = arith.constant 5 : index
    %c1_193 = arith.constant 1 : index
    %c0_194 = arith.constant 0 : index
    %242 = vector.load %arg12[%c0_191, %c5_192, %c1_193, %c0_194] : memref<2x10x10x64xf32, #tpu.memory_space<vmem>>, vector<2x2x8x64xf32>
    tpu.vector_store %arg12[%c0_191, %c5_192, %c1_193, %c0_194], %241 {strides = array<i32>} : memref<2x10x10x64xf32, #tpu.memory_space<vmem>>, vector<2x2x8x64xf32>,
    %cst_195 = arith.constant 0.000000e+00 : f32
    %243 = vector.broadcast %cst_195 : f32 to vector<2x4x16x64xf32>
    %c0_196 = arith.constant 0 : index
    %c12 = arith.constant 12 : index
    %c0_197 = arith.constant 0 : index
    %c0_198 = arith.constant 0 : index
    %244 = vector.load %arg11[%c0_196, %c12, %c0_197, %c0_198] : memref<2x18x18x1xf32, #tpu.memory_space<vmem>>, vector<2x4x16x1xf32>
    %c0_199 = arith.constant 0 : index
    %c0_200 = arith.constant 0 : index
    %245 = vector.load %arg2[%c0_199, %c0_200] : memref<9x64xf32, #tpu.memory_space<vmem>>, vector<1x64xf32>
    %246 = vector.shape_cast %245 : vector<1x64xf32> to vector<1x1x1x64xf32>
    %247 = vector.broadcast %244 : vector<2x4x16x1xf32> to vector<2x4x16x64xf32>
    %248 = vector.broadcast %246 : vector<1x1x1x64xf32> to vector<2x4x16x64xf32>
    %249 = arith.mulf %247, %248 : vector<2x4x16x64xf32>
    %250 = arith.addf %243, %249 : vector<2x4x16x64xf32>
    %c0_201 = arith.constant 0 : index
    %c12_202 = arith.constant 12 : index
    %c1_203 = arith.constant 1 : index
    %c0_204 = arith.constant 0 : index
    %251 = vector.load %arg11[%c0_201, %c12_202, %c1_203, %c0_204] : memref<2x18x18x1xf32, #tpu.memory_space<vmem>>, vector<2x4x16x1xf32>
    %c1_205 = arith.constant 1 : index
    %c0_206 = arith.constant 0 : index
    %252 = vector.load %arg2[%c1_205, %c0_206] : memref<9x64xf32, #tpu.memory_space<vmem>>, vector<1x64xf32>
    %253 = vector.shape_cast %252 : vector<1x64xf32> to vector<1x1x1x64xf32>
    %254 = vector.broadcast %251 : vector<2x4x16x1xf32> to vector<2x4x16x64xf32>
    %255 = vector.broadcast %253 : vector<1x1x1x64xf32> to vector<2x4x16x64xf32>
    %256 = arith.mulf %254, %255 : vector<2x4x16x64xf32>
    %257 = arith.addf %250, %256 : vector<2x4x16x64xf32>
    %c0_207 = arith.constant 0 : index
    %c12_208 = arith.constant 12 : index
    %c2_209 = arith.constant 2 : index
    %c0_210 = arith.constant 0 : index
    %258 = vector.load %arg11[%c0_207, %c12_208, %c2_209, %c0_210] : memref<2x18x18x1xf32, #tpu.memory_space<vmem>>, vector<2x4x16x1xf32>
    %c2_211 = arith.constant 2 : index
    %c0_212 = arith.constant 0 : index
    %259 = vector.load %arg2[%c2_211, %c0_212] : memref<9x64xf32, #tpu.memory_space<vmem>>, vector<1x64xf32>
    %260 = vector.shape_cast %259 : vector<1x64xf32> to vector<1x1x1x64xf32>
    %261 = vector.broadcast %258 : vector<2x4x16x1xf32> to vector<2x4x16x64xf32>
    %262 = vector.broadcast %260 : vector<1x1x1x64xf32> to vector<2x4x16x64xf32>
    %263 = arith.mulf %261, %262 : vector<2x4x16x64xf32>
    %264 = arith.addf %257, %263 : vector<2x4x16x64xf32>
    %c0_213 = arith.constant 0 : index
    %c13 = arith.constant 13 : index
    %c0_214 = arith.constant 0 : index
    %c0_215 = arith.constant 0 : index
    %265 = vector.load %arg11[%c0_213, %c13, %c0_214, %c0_215] : memref<2x18x18x1xf32, #tpu.memory_space<vmem>>, vector<2x4x16x1xf32>
    %c3_216 = arith.constant 3 : index
    %c0_217 = arith.constant 0 : index
    %266 = vector.load %arg2[%c3_216, %c0_217] : memref<9x64xf32, #tpu.memory_space<vmem>>, vector<1x64xf32>
    %267 = vector.shape_cast %266 : vector<1x64xf32> to vector<1x1x1x64xf32>
    %268 = vector.broadcast %265 : vector<2x4x16x1xf32> to vector<2x4x16x64xf32>
    %269 = vector.broadcast %267 : vector<1x1x1x64xf32> to vector<2x4x16x64xf32>
    %270 = arith.mulf %268, %269 : vector<2x4x16x64xf32>
    %271 = arith.addf %264, %270 : vector<2x4x16x64xf32>
    %c0_218 = arith.constant 0 : index
    %c13_219 = arith.constant 13 : index
    %c1_220 = arith.constant 1 : index
    %c0_221 = arith.constant 0 : index
    %272 = vector.load %arg11[%c0_218, %c13_219, %c1_220, %c0_221] : memref<2x18x18x1xf32, #tpu.memory_space<vmem>>, vector<2x4x16x1xf32>
    %c4_222 = arith.constant 4 : index
    %c0_223 = arith.constant 0 : index
    %273 = vector.load %arg2[%c4_222, %c0_223] : memref<9x64xf32, #tpu.memory_space<vmem>>, vector<1x64xf32>
    %274 = vector.shape_cast %273 : vector<1x64xf32> to vector<1x1x1x64xf32>
    %275 = vector.broadcast %272 : vector<2x4x16x1xf32> to vector<2x4x16x64xf32>
    %276 = vector.broadcast %274 : vector<1x1x1x64xf32> to vector<2x4x16x64xf32>
    %277 = arith.mulf %275, %276 : vector<2x4x16x64xf32>
    %278 = arith.addf %271, %277 : vector<2x4x16x64xf32>
    %c0_224 = arith.constant 0 : index
    %c13_225 = arith.constant 13 : index
    %c2_226 = arith.constant 2 : index
    %c0_227 = arith.constant 0 : index
    %279 = vector.load %arg11[%c0_224, %c13_225, %c2_226, %c0_227] : memref<2x18x18x1xf32, #tpu.memory_space<vmem>>, vector<2x4x16x1xf32>
    %c5_228 = arith.constant 5 : index
    %c0_229 = arith.constant 0 : index
    %280 = vector.load %arg2[%c5_228, %c0_229] : memref<9x64xf32, #tpu.memory_space<vmem>>, vector<1x64xf32>
    %281 = vector.shape_cast %280 : vector<1x64xf32> to vector<1x1x1x64xf32>
    %282 = vector.broadcast %279 : vector<2x4x16x1xf32> to vector<2x4x16x64xf32>
    %283 = vector.broadcast %281 : vector<1x1x1x64xf32> to vector<2x4x16x64xf32>
    %284 = arith.mulf %282, %283 : vector<2x4x16x64xf32>
    %285 = arith.addf %278, %284 : vector<2x4x16x64xf32>
    %c0_230 = arith.constant 0 : index
    %c14 = arith.constant 14 : index
    %c0_231 = arith.constant 0 : index
    %c0_232 = arith.constant 0 : index
    %286 = vector.load %arg11[%c0_230, %c14, %c0_231, %c0_232] : memref<2x18x18x1xf32, #tpu.memory_space<vmem>>, vector<2x4x16x1xf32>
    %c6_233 = arith.constant 6 : index
    %c0_234 = arith.constant 0 : index
    %287 = vector.load %arg2[%c6_233, %c0_234] : memref<9x64xf32, #tpu.memory_space<vmem>>, vector<1x64xf32>
    %288 = vector.shape_cast %287 : vector<1x64xf32> to vector<1x1x1x64xf32>
    %289 = vector.broadcast %286 : vector<2x4x16x1xf32> to vector<2x4x16x64xf32>
    %290 = vector.broadcast %288 : vector<1x1x1x64xf32> to vector<2x4x16x64xf32>
    %291 = arith.mulf %289, %290 : vector<2x4x16x64xf32>
    %292 = arith.addf %285, %291 : vector<2x4x16x64xf32>
    %c0_235 = arith.constant 0 : index
    %c14_236 = arith.constant 14 : index
    %c1_237 = arith.constant 1 : index
    %c0_238 = arith.constant 0 : index
    %293 = vector.load %arg11[%c0_235, %c14_236, %c1_237, %c0_238] : memref<2x18x18x1xf32, #tpu.memory_space<vmem>>, vector<2x4x16x1xf32>
    %c7_239 = arith.constant 7 : index
    %c0_240 = arith.constant 0 : index
    %294 = vector.load %arg2[%c7_239, %c0_240] : memref<9x64xf32, #tpu.memory_space<vmem>>, vector<1x64xf32>
    %295 = vector.shape_cast %294 : vector<1x64xf32> to vector<1x1x1x64xf32>
    %296 = vector.broadcast %293 : vector<2x4x16x1xf32> to vector<2x4x16x64xf32>
    %297 = vector.broadcast %295 : vector<1x1x1x64xf32> to vector<2x4x16x64xf32>
    %298 = arith.mulf %296, %297 : vector<2x4x16x64xf32>
    %299 = arith.addf %292, %298 : vector<2x4x16x64xf32>
    %c0_241 = arith.constant 0 : index
    %c14_242 = arith.constant 14 : index
    %c2_243 = arith.constant 2 : index
    %c0_244 = arith.constant 0 : index
    %300 = vector.load %arg11[%c0_241, %c14_242, %c2_243, %c0_244] : memref<2x18x18x1xf32, #tpu.memory_space<vmem>>, vector<2x4x16x1xf32>
    %c8_245 = arith.constant 8 : index
    %c0_246 = arith.constant 0 : index
    %301 = vector.load %arg2[%c8_245, %c0_246] : memref<9x64xf32, #tpu.memory_space<vmem>>, vector<1x64xf32>
    %302 = vector.shape_cast %301 : vector<1x64xf32> to vector<1x1x1x64xf32>
    %303 = vector.broadcast %300 : vector<2x4x16x1xf32> to vector<2x4x16x64xf32>
    %304 = vector.broadcast %302 : vector<1x1x1x64xf32> to vector<2x4x16x64xf32>
    %305 = arith.mulf %303, %304 : vector<2x4x16x64xf32>
    %306 = arith.addf %299, %305 : vector<2x4x16x64xf32>
    %c0_247 = arith.constant 0 : index
    %c0_248 = arith.constant 0 : index
    %307 = vector.load %arg3[%c0_247, %c0_248] : memref<1x64xf32, #tpu.memory_space<vmem>>, vector<1x64xf32>
    %308 = vector.shape_cast %307 : vector<1x64xf32> to vector<1x1x1x64xf32>
    %309 = vector.broadcast %308 : vector<1x1x1x64xf32> to vector<2x4x16x64xf32>
    %310 = arith.addf %306, %309 : vector<2x4x16x64xf32>
    %cst_249 = arith.constant 0.000000e+00 : f32
    %311 = vector.broadcast %cst_249 : f32 to vector<2x4x16x64xf32>
    %312 = arith.maximumf %310, %311 : vector<2x4x16x64xf32>
    %313 = vector.shape_cast %312 : vector<2x4x16x64xf32> to vector<2x2x2x16x64xf32>
    %314 = vector.extract_strided_slice %313 {offsets = [0, 0, 0, 0, 0], sizes = [2, 2, 1, 16, 64], strides = [1, 1, 1, 1, 1]} : vector<2x2x2x16x64xf32> to vector<2x2x1x16x64xf32>
    %315 = vector.shape_cast %314 : vector<2x2x1x16x64xf32> to vector<2x2x16x64xf32>
    %316 = vector.extract_strided_slice %313 {offsets = [0, 0, 1, 0, 0], sizes = [2, 2, 1, 16, 64], strides = [1, 1, 1, 1, 1]} : vector<2x2x2x16x64xf32> to vector<2x2x1x16x64xf32>
    %317 = vector.shape_cast %316 : vector<2x2x1x16x64xf32> to vector<2x2x16x64xf32>
    %318 = arith.maximumf %315, %317 : vector<2x2x16x64xf32>
    %319 = vector.shape_cast %318 : vector<2x2x16x64xf32> to vector<2x2x8x2x64xf32>
    %cst_250 = arith.constant dense<0xFF800000> : vector<2x2x8x64xf32>
    %320 = vector.multi_reduction <maximumf>, %319, %cst_250 [3] : vector<2x2x8x2x64xf32> to vector<2x2x8x64xf32>
    %c0_251 = arith.constant 0 : index
    %c7_252 = arith.constant 7 : index
    %c1_253 = arith.constant 1 : index
    %c0_254 = arith.constant 0 : index
    %321 = vector.load %arg12[%c0_251, %c7_252, %c1_253, %c0_254] : memref<2x10x10x64xf32, #tpu.memory_space<vmem>>, vector<2x2x8x64xf32>
    tpu.vector_store %arg12[%c0_251, %c7_252, %c1_253, %c0_254], %320 {strides = array<i32>} : memref<2x10x10x64xf32, #tpu.memory_space<vmem>>, vector<2x2x8x64xf32>,
    %c0_255 = arith.constant 0 : index
    %c0_256 = arith.constant 0 : index
    %c0_257 = arith.constant 0 : index
    %c0_258 = arith.constant 0 : index
    %322 = vector.load %arg12[%c0_255, %c0_256, %c0_257, %c0_258] : memref<2x10x10x64xf32, #tpu.memory_space<vmem>>, vector<2x8x8x64xf32>
    %323 = vector.shape_cast %322 : vector<2x8x8x64xf32> to vector<128x64xf32>
    %c0_259 = arith.constant 0 : index
    %c0_260 = arith.constant 0 : index
    %324 = vector.load %arg13[%c0_259, %c0_260] : memref<128x576xf32, #tpu.memory_space<vmem>>, vector<128x64xf32>
    tpu.vector_store %arg13[%c0_259, %c0_260], %323 {strides = array<i32>} : memref<128x576xf32, #tpu.memory_space<vmem>>, vector<128x64xf32>,
    %c0_261 = arith.constant 0 : index
    %c0_262 = arith.constant 0 : index
    %c1_263 = arith.constant 1 : index
    %c0_264 = arith.constant 0 : index
    %325 = vector.load %arg12[%c0_261, %c0_262, %c1_263, %c0_264] : memref<2x10x10x64xf32, #tpu.memory_space<vmem>>, vector<2x8x8x64xf32>
    %326 = vector.shape_cast %325 : vector<2x8x8x64xf32> to vector<128x64xf32>
    %c0_265 = arith.constant 0 : index
    %c64 = arith.constant 64 : index
    %327 = vector.load %arg13[%c0_265, %c64] : memref<128x576xf32, #tpu.memory_space<vmem>>, vector<128x64xf32>
    tpu.vector_store %arg13[%c0_265, %c64], %326 {strides = array<i32>} : memref<128x576xf32, #tpu.memory_space<vmem>>, vector<128x64xf32>,
    %c0_266 = arith.constant 0 : index
    %c0_267 = arith.constant 0 : index
    %c2_268 = arith.constant 2 : index
    %c0_269 = arith.constant 0 : index
    %328 = vector.load %arg12[%c0_266, %c0_267, %c2_268, %c0_269] : memref<2x10x10x64xf32, #tpu.memory_space<vmem>>, vector<2x8x8x64xf32>
    %329 = vector.shape_cast %328 : vector<2x8x8x64xf32> to vector<128x64xf32>
    %c0_270 = arith.constant 0 : index
    %c128 = arith.constant 128 : index
    %330 = vector.load %arg13[%c0_270, %c128] : memref<128x576xf32, #tpu.memory_space<vmem>>, vector<128x64xf32>
    tpu.vector_store %arg13[%c0_270, %c128], %329 {strides = array<i32>} : memref<128x576xf32, #tpu.memory_space<vmem>>, vector<128x64xf32>,
    %c0_271 = arith.constant 0 : index
    %c1_272 = arith.constant 1 : index
    %c0_273 = arith.constant 0 : index
    %c0_274 = arith.constant 0 : index
    %331 = vector.load %arg12[%c0_271, %c1_272, %c0_273, %c0_274] : memref<2x10x10x64xf32, #tpu.memory_space<vmem>>, vector<2x8x8x64xf32>
    %332 = vector.shape_cast %331 : vector<2x8x8x64xf32> to vector<128x64xf32>
    %c0_275 = arith.constant 0 : index
    %c192 = arith.constant 192 : index
    %333 = vector.load %arg13[%c0_275, %c192] : memref<128x576xf32, #tpu.memory_space<vmem>>, vector<128x64xf32>
    tpu.vector_store %arg13[%c0_275, %c192], %332 {strides = array<i32>} : memref<128x576xf32, #tpu.memory_space<vmem>>, vector<128x64xf32>,
    %c0_276 = arith.constant 0 : index
    %c1_277 = arith.constant 1 : index
    %c1_278 = arith.constant 1 : index
    %c0_279 = arith.constant 0 : index
    %334 = vector.load %arg12[%c0_276, %c1_277, %c1_278, %c0_279] : memref<2x10x10x64xf32, #tpu.memory_space<vmem>>, vector<2x8x8x64xf32>
    %335 = vector.shape_cast %334 : vector<2x8x8x64xf32> to vector<128x64xf32>
    %c0_280 = arith.constant 0 : index
    %c256 = arith.constant 256 : index
    %336 = vector.load %arg13[%c0_280, %c256] : memref<128x576xf32, #tpu.memory_space<vmem>>, vector<128x64xf32>
    tpu.vector_store %arg13[%c0_280, %c256], %335 {strides = array<i32>} : memref<128x576xf32, #tpu.memory_space<vmem>>, vector<128x64xf32>,
    %c0_281 = arith.constant 0 : index
    %c1_282 = arith.constant 1 : index
    %c2_283 = arith.constant 2 : index
    %c0_284 = arith.constant 0 : index
    %337 = vector.load %arg12[%c0_281, %c1_282, %c2_283, %c0_284] : memref<2x10x10x64xf32, #tpu.memory_space<vmem>>, vector<2x8x8x64xf32>
    %338 = vector.shape_cast %337 : vector<2x8x8x64xf32> to vector<128x64xf32>
    %c0_285 = arith.constant 0 : index
    %c320 = arith.constant 320 : index
    %339 = vector.load %arg13[%c0_285, %c320] : memref<128x576xf32, #tpu.memory_space<vmem>>, vector<128x64xf32>
    tpu.vector_store %arg13[%c0_285, %c320], %338 {strides = array<i32>} : memref<128x576xf32, #tpu.memory_space<vmem>>, vector<128x64xf32>,
    %c0_286 = arith.constant 0 : index
    %c2_287 = arith.constant 2 : index
    %c0_288 = arith.constant 0 : index
    %c0_289 = arith.constant 0 : index
    %340 = vector.load %arg12[%c0_286, %c2_287, %c0_288, %c0_289] : memref<2x10x10x64xf32, #tpu.memory_space<vmem>>, vector<2x8x8x64xf32>
    %341 = vector.shape_cast %340 : vector<2x8x8x64xf32> to vector<128x64xf32>
    %c0_290 = arith.constant 0 : index
    %c384 = arith.constant 384 : index
    %342 = vector.load %arg13[%c0_290, %c384] : memref<128x576xf32, #tpu.memory_space<vmem>>, vector<128x64xf32>
    tpu.vector_store %arg13[%c0_290, %c384], %341 {strides = array<i32>} : memref<128x576xf32, #tpu.memory_space<vmem>>, vector<128x64xf32>,
    %c0_291 = arith.constant 0 : index
    %c2_292 = arith.constant 2 : index
    %c1_293 = arith.constant 1 : index
    %c0_294 = arith.constant 0 : index
    %343 = vector.load %arg12[%c0_291, %c2_292, %c1_293, %c0_294] : memref<2x10x10x64xf32, #tpu.memory_space<vmem>>, vector<2x8x8x64xf32>
    %344 = vector.shape_cast %343 : vector<2x8x8x64xf32> to vector<128x64xf32>
    %c0_295 = arith.constant 0 : index
    %c448 = arith.constant 448 : index
    %345 = vector.load %arg13[%c0_295, %c448] : memref<128x576xf32, #tpu.memory_space<vmem>>, vector<128x64xf32>
    tpu.vector_store %arg13[%c0_295, %c448], %344 {strides = array<i32>} : memref<128x576xf32, #tpu.memory_space<vmem>>, vector<128x64xf32>,
    %c0_296 = arith.constant 0 : index
    %c2_297 = arith.constant 2 : index
    %c2_298 = arith.constant 2 : index
    %c0_299 = arith.constant 0 : index
    %346 = vector.load %arg12[%c0_296, %c2_297, %c2_298, %c0_299] : memref<2x10x10x64xf32, #tpu.memory_space<vmem>>, vector<2x8x8x64xf32>
    %347 = vector.shape_cast %346 : vector<2x8x8x64xf32> to vector<128x64xf32>
    %c0_300 = arith.constant 0 : index
    %c512 = arith.constant 512 : index
    %348 = vector.load %arg13[%c0_300, %c512] : memref<128x576xf32, #tpu.memory_space<vmem>>, vector<128x64xf32>
    tpu.vector_store %arg13[%c0_300, %c512], %347 {strides = array<i32>} : memref<128x576xf32, #tpu.memory_space<vmem>>, vector<128x64xf32>,
    %c0_301 = arith.constant 0 : index
    %c0_302 = arith.constant 0 : index
    %349 = vector.load %arg13[%c0_301, %c0_302] : memref<128x576xf32, #tpu.memory_space<vmem>>, vector<128x576xf32>
    %c0_303 = arith.constant 0 : index
    %c0_304 = arith.constant 0 : index
    %350 = vector.load %arg4[%c0_303, %c0_304] : memref<576x128xf32, #tpu.memory_space<vmem>>, vector<576x128xf32>
    %cst_305 = arith.constant dense<0.000000e+00> : vector<128x128xf32>
    %351 = tpu.matmul %349, %350, %cst_305 {dimension_numbers = #tpu.dot_dimension_numbers<[1], [0], [0], [1], [0, 0, 1, 1], [], []>} : vector<128x576xf32>, vector<576x128xf32>, vector<128x128xf32> -> vector<128x128xf32>
    %c0_306 = arith.constant 0 : index
    %c0_307 = arith.constant 0 : index
    %352 = vector.load %arg5[%c0_306, %c0_307] : memref<1x128xf32, #tpu.memory_space<vmem>>, vector<1x128xf32>
    %353 = vector.broadcast %352 : vector<1x128xf32> to vector<128x128xf32>
    %354 = arith.addf %351, %353 : vector<128x128xf32>
    %cst_308 = arith.constant 0.000000e+00 : f32
    %355 = vector.broadcast %cst_308 : f32 to vector<128x128xf32>
    %356 = arith.maximumf %354, %355 : vector<128x128xf32>
    %357 = vector.shape_cast %356 : vector<128x128xf32> to vector<2x4x2x8x128xf32>
    %358 = vector.extract_strided_slice %357 {offsets = [0, 0, 0, 0, 0], sizes = [2, 4, 1, 8, 128], strides = [1, 1, 1, 1, 1]} : vector<2x4x2x8x128xf32> to vector<2x4x1x8x128xf32>
    %359 = vector.shape_cast %358 : vector<2x4x1x8x128xf32> to vector<2x4x8x128xf32>
    %360 = vector.extract_strided_slice %357 {offsets = [0, 0, 1, 0, 0], sizes = [2, 4, 1, 8, 128], strides = [1, 1, 1, 1, 1]} : vector<2x4x2x8x128xf32> to vector<2x4x1x8x128xf32>
    %361 = vector.shape_cast %360 : vector<2x4x1x8x128xf32> to vector<2x4x8x128xf32>
    %362 = arith.maximumf %359, %361 : vector<2x4x8x128xf32>
    %363 = vector.shape_cast %362 : vector<2x4x8x128xf32> to vector<2x4x4x2x128xf32>
    %cst_309 = arith.constant dense<0xFF800000> : vector<2x4x4x128xf32>
    %364 = vector.multi_reduction <maximumf>, %363, %cst_309 [3] : vector<2x4x4x2x128xf32> to vector<2x4x4x128xf32>
    %c0_310 = arith.constant 0 : index
    %c0_311 = arith.constant 0 : index
    %c0_312 = arith.constant 0 : index
    %c0_313 = arith.constant 0 : index
    %365 = vector.load %arg14[%c0_310, %c0_311, %c0_312, %c0_313] : memref<2x4x4x128xf32, #tpu.memory_space<vmem>>, vector<2x4x4x128xf32>
    tpu.vector_store %arg14[%c0_310, %c0_311, %c0_312, %c0_313], %364 {strides = array<i32>} : memref<2x4x4x128xf32, #tpu.memory_space<vmem>>, vector<2x4x4x128xf32>,
    %cst_314 = arith.constant 0.000000e+00 : f32
    %366 = vector.broadcast %cst_314 : f32 to vector<2x128xf32>
    %c0_315 = arith.constant 0 : index
    %c0_316 = arith.constant 0 : index
    %c0_317 = arith.constant 0 : index
    %c0_318 = arith.constant 0 : index
    %367 = vector.load %arg14[%c0_315, %c0_316, %c0_317, %c0_318] : memref<2x4x4x128xf32, #tpu.memory_space<vmem>>, vector<2x1x1x128xf32>
    %368 = vector.shape_cast %367 : vector<2x1x1x128xf32> to vector<2x128xf32>
    %c0_319 = arith.constant 0 : index
    %c0_320 = arith.constant 0 : index
    %369 = vector.load %arg6[%c0_319, %c0_320] : memref<2048x128xf32, #tpu.memory_space<vmem>>, vector<128x128xf32>
    %cst_321 = arith.constant dense<0.000000e+00> : vector<2x128xf32>
    %370 = tpu.matmul %368, %369, %cst_321 {dimension_numbers = #tpu.dot_dimension_numbers<[1], [0], [0], [1], [0, 0, 1, 1], [], []>} : vector<2x128xf32>, vector<128x128xf32>, vector<2x128xf32> -> vector<2x128xf32>
    %371 = arith.addf %366, %370 : vector<2x128xf32>
    %c0_322 = arith.constant 0 : index
    %c0_323 = arith.constant 0 : index
    %c1_324 = arith.constant 1 : index
    %c0_325 = arith.constant 0 : index
    %372 = vector.load %arg14[%c0_322, %c0_323, %c1_324, %c0_325] : memref<2x4x4x128xf32, #tpu.memory_space<vmem>>, vector<2x1x1x128xf32>
    %373 = vector.shape_cast %372 : vector<2x1x1x128xf32> to vector<2x128xf32>
    %c128_326 = arith.constant 128 : index
    %c0_327 = arith.constant 0 : index
    %374 = vector.load %arg6[%c128_326, %c0_327] : memref<2048x128xf32, #tpu.memory_space<vmem>>, vector<128x128xf32>
    %cst_328 = arith.constant dense<0.000000e+00> : vector<2x128xf32>
    %375 = tpu.matmul %373, %374, %cst_328 {dimension_numbers = #tpu.dot_dimension_numbers<[1], [0], [0], [1], [0, 0, 1, 1], [], []>} : vector<2x128xf32>, vector<128x128xf32>, vector<2x128xf32> -> vector<2x128xf32>
    %376 = arith.addf %371, %375 : vector<2x128xf32>
    %c0_329 = arith.constant 0 : index
    %c0_330 = arith.constant 0 : index
    %c2_331 = arith.constant 2 : index
    %c0_332 = arith.constant 0 : index
    %377 = vector.load %arg14[%c0_329, %c0_330, %c2_331, %c0_332] : memref<2x4x4x128xf32, #tpu.memory_space<vmem>>, vector<2x1x1x128xf32>
    %378 = vector.shape_cast %377 : vector<2x1x1x128xf32> to vector<2x128xf32>
    %c256_333 = arith.constant 256 : index
    %c0_334 = arith.constant 0 : index
    %379 = vector.load %arg6[%c256_333, %c0_334] : memref<2048x128xf32, #tpu.memory_space<vmem>>, vector<128x128xf32>
    %cst_335 = arith.constant dense<0.000000e+00> : vector<2x128xf32>
    %380 = tpu.matmul %378, %379, %cst_335 {dimension_numbers = #tpu.dot_dimension_numbers<[1], [0], [0], [1], [0, 0, 1, 1], [], []>} : vector<2x128xf32>, vector<128x128xf32>, vector<2x128xf32> -> vector<2x128xf32>
    %381 = arith.addf %376, %380 : vector<2x128xf32>
    %c0_336 = arith.constant 0 : index
    %c0_337 = arith.constant 0 : index
    %c3_338 = arith.constant 3 : index
    %c0_339 = arith.constant 0 : index
    %382 = vector.load %arg14[%c0_336, %c0_337, %c3_338, %c0_339] : memref<2x4x4x128xf32, #tpu.memory_space<vmem>>, vector<2x1x1x128xf32>
    %383 = vector.shape_cast %382 : vector<2x1x1x128xf32> to vector<2x128xf32>
    %c384_340 = arith.constant 384 : index
    %c0_341 = arith.constant 0 : index
    %384 = vector.load %arg6[%c384_340, %c0_341] : memref<2048x128xf32, #tpu.memory_space<vmem>>, vector<128x128xf32>
    %cst_342 = arith.constant dense<0.000000e+00> : vector<2x128xf32>
    %385 = tpu.matmul %383, %384, %cst_342 {dimension_numbers = #tpu.dot_dimension_numbers<[1], [0], [0], [1], [0, 0, 1, 1], [], []>} : vector<2x128xf32>, vector<128x128xf32>, vector<2x128xf32> -> vector<2x128xf32>
    %386 = arith.addf %381, %385 : vector<2x128xf32>
    %c0_343 = arith.constant 0 : index
    %c1_344 = arith.constant 1 : index
    %c0_345 = arith.constant 0 : index
    %c0_346 = arith.constant 0 : index
    %387 = vector.load %arg14[%c0_343, %c1_344, %c0_345, %c0_346] : memref<2x4x4x128xf32, #tpu.memory_space<vmem>>, vector<2x1x1x128xf32>
    %388 = vector.shape_cast %387 : vector<2x1x1x128xf32> to vector<2x128xf32>
    %c512_347 = arith.constant 512 : index
    %c0_348 = arith.constant 0 : index
    %389 = vector.load %arg6[%c512_347, %c0_348] : memref<2048x128xf32, #tpu.memory_space<vmem>>, vector<128x128xf32>
    %cst_349 = arith.constant dense<0.000000e+00> : vector<2x128xf32>
    %390 = tpu.matmul %388, %389, %cst_349 {dimension_numbers = #tpu.dot_dimension_numbers<[1], [0], [0], [1], [0, 0, 1, 1], [], []>} : vector<2x128xf32>, vector<128x128xf32>, vector<2x128xf32> -> vector<2x128xf32>
    %391 = arith.addf %386, %390 : vector<2x128xf32>
    %c0_350 = arith.constant 0 : index
    %c1_351 = arith.constant 1 : index
    %c1_352 = arith.constant 1 : index
    %c0_353 = arith.constant 0 : index
    %392 = vector.load %arg14[%c0_350, %c1_351, %c1_352, %c0_353] : memref<2x4x4x128xf32, #tpu.memory_space<vmem>>, vector<2x1x1x128xf32>
    %393 = vector.shape_cast %392 : vector<2x1x1x128xf32> to vector<2x128xf32>
    %c640 = arith.constant 640 : index
    %c0_354 = arith.constant 0 : index
    %394 = vector.load %arg6[%c640, %c0_354] : memref<2048x128xf32, #tpu.memory_space<vmem>>, vector<128x128xf32>
    %cst_355 = arith.constant dense<0.000000e+00> : vector<2x128xf32>
    %395 = tpu.matmul %393, %394, %cst_355 {dimension_numbers = #tpu.dot_dimension_numbers<[1], [0], [0], [1], [0, 0, 1, 1], [], []>} : vector<2x128xf32>, vector<128x128xf32>, vector<2x128xf32> -> vector<2x128xf32>
    %396 = arith.addf %391, %395 : vector<2x128xf32>
    %c0_356 = arith.constant 0 : index
    %c1_357 = arith.constant 1 : index
    %c2_358 = arith.constant 2 : index
    %c0_359 = arith.constant 0 : index
    %397 = vector.load %arg14[%c0_356, %c1_357, %c2_358, %c0_359] : memref<2x4x4x128xf32, #tpu.memory_space<vmem>>, vector<2x1x1x128xf32>
    %398 = vector.shape_cast %397 : vector<2x1x1x128xf32> to vector<2x128xf32>
    %c768 = arith.constant 768 : index
    %c0_360 = arith.constant 0 : index
    %399 = vector.load %arg6[%c768, %c0_360] : memref<2048x128xf32, #tpu.memory_space<vmem>>, vector<128x128xf32>
    %cst_361 = arith.constant dense<0.000000e+00> : vector<2x128xf32>
    %400 = tpu.matmul %398, %399, %cst_361 {dimension_numbers = #tpu.dot_dimension_numbers<[1], [0], [0], [1], [0, 0, 1, 1], [], []>} : vector<2x128xf32>, vector<128x128xf32>, vector<2x128xf32> -> vector<2x128xf32>
    %401 = arith.addf %396, %400 : vector<2x128xf32>
    %c0_362 = arith.constant 0 : index
    %c1_363 = arith.constant 1 : index
    %c3_364 = arith.constant 3 : index
    %c0_365 = arith.constant 0 : index
    %402 = vector.load %arg14[%c0_362, %c1_363, %c3_364, %c0_365] : memref<2x4x4x128xf32, #tpu.memory_space<vmem>>, vector<2x1x1x128xf32>
    %403 = vector.shape_cast %402 : vector<2x1x1x128xf32> to vector<2x128xf32>
    %c896 = arith.constant 896 : index
    %c0_366 = arith.constant 0 : index
    %404 = vector.load %arg6[%c896, %c0_366] : memref<2048x128xf32, #tpu.memory_space<vmem>>, vector<128x128xf32>
    %cst_367 = arith.constant dense<0.000000e+00> : vector<2x128xf32>
    %405 = tpu.matmul %403, %404, %cst_367 {dimension_numbers = #tpu.dot_dimension_numbers<[1], [0], [0], [1], [0, 0, 1, 1], [], []>} : vector<2x128xf32>, vector<128x128xf32>, vector<2x128xf32> -> vector<2x128xf32>
    %406 = arith.addf %401, %405 : vector<2x128xf32>
    %c0_368 = arith.constant 0 : index
    %c2_369 = arith.constant 2 : index
    %c0_370 = arith.constant 0 : index
    %c0_371 = arith.constant 0 : index
    %407 = vector.load %arg14[%c0_368, %c2_369, %c0_370, %c0_371] : memref<2x4x4x128xf32, #tpu.memory_space<vmem>>, vector<2x1x1x128xf32>
    %408 = vector.shape_cast %407 : vector<2x1x1x128xf32> to vector<2x128xf32>
    %c1024 = arith.constant 1024 : index
    %c0_372 = arith.constant 0 : index
    %409 = vector.load %arg6[%c1024, %c0_372] : memref<2048x128xf32, #tpu.memory_space<vmem>>, vector<128x128xf32>
    %cst_373 = arith.constant dense<0.000000e+00> : vector<2x128xf32>
    %410 = tpu.matmul %408, %409, %cst_373 {dimension_numbers = #tpu.dot_dimension_numbers<[1], [0], [0], [1], [0, 0, 1, 1], [], []>} : vector<2x128xf32>, vector<128x128xf32>, vector<2x128xf32> -> vector<2x128xf32>
    %411 = arith.addf %406, %410 : vector<2x128xf32>
    %c0_374 = arith.constant 0 : index
    %c2_375 = arith.constant 2 : index
    %c1_376 = arith.constant 1 : index
    %c0_377 = arith.constant 0 : index
    %412 = vector.load %arg14[%c0_374, %c2_375, %c1_376, %c0_377] : memref<2x4x4x128xf32, #tpu.memory_space<vmem>>, vector<2x1x1x128xf32>
    %413 = vector.shape_cast %412 : vector<2x1x1x128xf32> to vector<2x128xf32>
    %c1152 = arith.constant 1152 : index
    %c0_378 = arith.constant 0 : index
    %414 = vector.load %arg6[%c1152, %c0_378] : memref<2048x128xf32, #tpu.memory_space<vmem>>, vector<128x128xf32>
    %cst_379 = arith.constant dense<0.000000e+00> : vector<2x128xf32>
    %415 = tpu.matmul %413, %414, %cst_379 {dimension_numbers = #tpu.dot_dimension_numbers<[1], [0], [0], [1], [0, 0, 1, 1], [], []>} : vector<2x128xf32>, vector<128x128xf32>, vector<2x128xf32> -> vector<2x128xf32>
    %416 = arith.addf %411, %415 : vector<2x128xf32>
    %c0_380 = arith.constant 0 : index
    %c2_381 = arith.constant 2 : index
    %c2_382 = arith.constant 2 : index
    %c0_383 = arith.constant 0 : index
    %417 = vector.load %arg14[%c0_380, %c2_381, %c2_382, %c0_383] : memref<2x4x4x128xf32, #tpu.memory_space<vmem>>, vector<2x1x1x128xf32>
    %418 = vector.shape_cast %417 : vector<2x1x1x128xf32> to vector<2x128xf32>
    %c1280 = arith.constant 1280 : index
    %c0_384 = arith.constant 0 : index
    %419 = vector.load %arg6[%c1280, %c0_384] : memref<2048x128xf32, #tpu.memory_space<vmem>>, vector<128x128xf32>
    %cst_385 = arith.constant dense<0.000000e+00> : vector<2x128xf32>
    %420 = tpu.matmul %418, %419, %cst_385 {dimension_numbers = #tpu.dot_dimension_numbers<[1], [0], [0], [1], [0, 0, 1, 1], [], []>} : vector<2x128xf32>, vector<128x128xf32>, vector<2x128xf32> -> vector<2x128xf32>
    %421 = arith.addf %416, %420 : vector<2x128xf32>
    %c0_386 = arith.constant 0 : index
    %c2_387 = arith.constant 2 : index
    %c3_388 = arith.constant 3 : index
    %c0_389 = arith.constant 0 : index
    %422 = vector.load %arg14[%c0_386, %c2_387, %c3_388, %c0_389] : memref<2x4x4x128xf32, #tpu.memory_space<vmem>>, vector<2x1x1x128xf32>
    %423 = vector.shape_cast %422 : vector<2x1x1x128xf32> to vector<2x128xf32>
    %c1408 = arith.constant 1408 : index
    %c0_390 = arith.constant 0 : index
    %424 = vector.load %arg6[%c1408, %c0_390] : memref<2048x128xf32, #tpu.memory_space<vmem>>, vector<128x128xf32>
    %cst_391 = arith.constant dense<0.000000e+00> : vector<2x128xf32>
    %425 = tpu.matmul %423, %424, %cst_391 {dimension_numbers = #tpu.dot_dimension_numbers<[1], [0], [0], [1], [0, 0, 1, 1], [], []>} : vector<2x128xf32>, vector<128x128xf32>, vector<2x128xf32> -> vector<2x128xf32>
    %426 = arith.addf %421, %425 : vector<2x128xf32>
    %c0_392 = arith.constant 0 : index
    %c3_393 = arith.constant 3 : index
    %c0_394 = arith.constant 0 : index
    %c0_395 = arith.constant 0 : index
    %427 = vector.load %arg14[%c0_392, %c3_393, %c0_394, %c0_395] : memref<2x4x4x128xf32, #tpu.memory_space<vmem>>, vector<2x1x1x128xf32>
    %428 = vector.shape_cast %427 : vector<2x1x1x128xf32> to vector<2x128xf32>
    %c1536 = arith.constant 1536 : index
    %c0_396 = arith.constant 0 : index
    %429 = vector.load %arg6[%c1536, %c0_396] : memref<2048x128xf32, #tpu.memory_space<vmem>>, vector<128x128xf32>
    %cst_397 = arith.constant dense<0.000000e+00> : vector<2x128xf32>
    %430 = tpu.matmul %428, %429, %cst_397 {dimension_numbers = #tpu.dot_dimension_numbers<[1], [0], [0], [1], [0, 0, 1, 1], [], []>} : vector<2x128xf32>, vector<128x128xf32>, vector<2x128xf32> -> vector<2x128xf32>
    %431 = arith.addf %426, %430 : vector<2x128xf32>
    %c0_398 = arith.constant 0 : index
    %c3_399 = arith.constant 3 : index
    %c1_400 = arith.constant 1 : index
    %c0_401 = arith.constant 0 : index
    %432 = vector.load %arg14[%c0_398, %c3_399, %c1_400, %c0_401] : memref<2x4x4x128xf32, #tpu.memory_space<vmem>>, vector<2x1x1x128xf32>
    %433 = vector.shape_cast %432 : vector<2x1x1x128xf32> to vector<2x128xf32>
    %c1664 = arith.constant 1664 : index
    %c0_402 = arith.constant 0 : index
    %434 = vector.load %arg6[%c1664, %c0_402] : memref<2048x128xf32, #tpu.memory_space<vmem>>, vector<128x128xf32>
    %cst_403 = arith.constant dense<0.000000e+00> : vector<2x128xf32>
    %435 = tpu.matmul %433, %434, %cst_403 {dimension_numbers = #tpu.dot_dimension_numbers<[1], [0], [0], [1], [0, 0, 1, 1], [], []>} : vector<2x128xf32>, vector<128x128xf32>, vector<2x128xf32> -> vector<2x128xf32>
    %436 = arith.addf %431, %435 : vector<2x128xf32>
    %c0_404 = arith.constant 0 : index
    %c3_405 = arith.constant 3 : index
    %c2_406 = arith.constant 2 : index
    %c0_407 = arith.constant 0 : index
    %437 = vector.load %arg14[%c0_404, %c3_405, %c2_406, %c0_407] : memref<2x4x4x128xf32, #tpu.memory_space<vmem>>, vector<2x1x1x128xf32>
    %438 = vector.shape_cast %437 : vector<2x1x1x128xf32> to vector<2x128xf32>
    %c1792 = arith.constant 1792 : index
    %c0_408 = arith.constant 0 : index
    %439 = vector.load %arg6[%c1792, %c0_408] : memref<2048x128xf32, #tpu.memory_space<vmem>>, vector<128x128xf32>
    %cst_409 = arith.constant dense<0.000000e+00> : vector<2x128xf32>
    %440 = tpu.matmul %438, %439, %cst_409 {dimension_numbers = #tpu.dot_dimension_numbers<[1], [0], [0], [1], [0, 0, 1, 1], [], []>} : vector<2x128xf32>, vector<128x128xf32>, vector<2x128xf32> -> vector<2x128xf32>
    %441 = arith.addf %436, %440 : vector<2x128xf32>
    %c0_410 = arith.constant 0 : index
    %c3_411 = arith.constant 3 : index
    %c3_412 = arith.constant 3 : index
    %c0_413 = arith.constant 0 : index
    %442 = vector.load %arg14[%c0_410, %c3_411, %c3_412, %c0_413] : memref<2x4x4x128xf32, #tpu.memory_space<vmem>>, vector<2x1x1x128xf32>
    %443 = vector.shape_cast %442 : vector<2x1x1x128xf32> to vector<2x128xf32>
    %c1920 = arith.constant 1920 : index
    %c0_414 = arith.constant 0 : index
    %444 = vector.load %arg6[%c1920, %c0_414] : memref<2048x128xf32, #tpu.memory_space<vmem>>, vector<128x128xf32>
    %cst_415 = arith.constant dense<0.000000e+00> : vector<2x128xf32>
    %445 = tpu.matmul %443, %444, %cst_415 {dimension_numbers = #tpu.dot_dimension_numbers<[1], [0], [0], [1], [0, 0, 1, 1], [], []>} : vector<2x128xf32>, vector<128x128xf32>, vector<2x128xf32> -> vector<2x128xf32>
    %446 = arith.addf %441, %445 : vector<2x128xf32>
    %c0_416 = arith.constant 0 : index
    %c0_417 = arith.constant 0 : index
    %447 = vector.load %arg7[%c0_416, %c0_417] : memref<1x128xf32, #tpu.memory_space<vmem>>, vector<1x128xf32>
    %448 = vector.broadcast %447 : vector<1x128xf32> to vector<2x128xf32>
    %449 = arith.addf %446, %448 : vector<2x128xf32>
    %cst_418 = arith.constant 0.000000e+00 : f32
    %450 = vector.broadcast %cst_418 : f32 to vector<2x128xf32>
    %451 = arith.maximumf %449, %450 : vector<2x128xf32>
    %c0_419 = arith.constant 0 : index
    %c0_420 = arith.constant 0 : index
    %452 = vector.load %arg8[%c0_419, %c0_420] : memref<128x128xf32, #tpu.memory_space<vmem>>, vector<128x128xf32>
    %cst_421 = arith.constant dense<0.000000e+00> : vector<2x128xf32>
    %453 = tpu.matmul %451, %452, %cst_421 {dimension_numbers = #tpu.dot_dimension_numbers<[1], [0], [0], [1], [0, 0, 1, 1], [], []>} : vector<2x128xf32>, vector<128x128xf32>, vector<2x128xf32> -> vector<2x128xf32>
    %c0_422 = arith.constant 0 : index
    %c0_423 = arith.constant 0 : index
    %454 = vector.load %arg9[%c0_422, %c0_423] : memref<1x128xf32, #tpu.memory_space<vmem>>, vector<1x128xf32>
    %455 = vector.broadcast %454 : vector<1x128xf32> to vector<2x128xf32>
    %456 = arith.addf %453, %455 : vector<2x128xf32>
    %c0_424 = arith.constant 0 : index
    %c0_425 = arith.constant 0 : index
    %457 = vector.load %arg10[%c0_424, %c0_425] : memref<2x128xf32, #tpu.memory_space<vmem>>, vector<2x128xf32>
    tpu.vector_store %arg10[%c0_424, %c0_425], %456 {strides = array<i32>} : memref<2x128xf32, #tpu.memory_space<vmem>>, vector<2x128xf32>,
    return
  }
  func.func @transform_0(%arg0: i32) -> (i32, i32, i32, i32) {
    %c0_i32 = arith.constant 0 : i32
    %c0_i32_0 = arith.constant 0 : i32
    %c0_i32_1 = arith.constant 0 : i32
    %c0_i32_2 = arith.constant 0 : i32
    return %arg0, %c0_i32, %c0_i32_0, %c0_i32_1 : i32, i32, i32, i32
  }
  func.func @transform_1(%arg0: i32) -> (i32, i32) {
    %c0_i32 = arith.constant 0 : i32
    %c0_i32_0 = arith.constant 0 : i32
    %c0_i32_1 = arith.constant 0 : i32
    return %c0_i32, %c0_i32_0 : i32, i32
  }
  func.func @transform_2(%arg0: i32) -> (i32, i32) {
    %c0_i32 = arith.constant 0 : i32
    %c0_i32_0 = arith.constant 0 : i32
    %c0_i32_1 = arith.constant 0 : i32
    return %c0_i32, %c0_i32_0 : i32, i32
  }
  func.func @transform_3(%arg0: i32) -> (i32, i32) {
    %c0_i32 = arith.constant 0 : i32
    %c0_i32_0 = arith.constant 0 : i32
    %c0_i32_1 = arith.constant 0 : i32
    return %c0_i32, %c0_i32_0 : i32, i32
  }
  func.func @transform_4(%arg0: i32) -> (i32, i32) {
    %c0_i32 = arith.constant 0 : i32
    %c0_i32_0 = arith.constant 0 : i32
    %c0_i32_1 = arith.constant 0 : i32
    return %c0_i32, %c0_i32_0 : i32, i32
  }
  func.func @transform_5(%arg0: i32) -> (i32, i32) {
    %c0_i32 = arith.constant 0 : i32
    %c0_i32_0 = arith.constant 0 : i32
    %c0_i32_1 = arith.constant 0 : i32
    return %c0_i32, %c0_i32_0 : i32, i32
  }
  func.func @transform_6(%arg0: i32) -> (i32, i32) {
    %c0_i32 = arith.constant 0 : i32
    %c0_i32_0 = arith.constant 0 : i32
    %c0_i32_1 = arith.constant 0 : i32
    return %c0_i32, %c0_i32_0 : i32, i32
  }
  func.func @transform_7(%arg0: i32) -> (i32, i32) {
    %c0_i32 = arith.constant 0 : i32
    %c0_i32_0 = arith.constant 0 : i32
    %c0_i32_1 = arith.constant 0 : i32
    return %c0_i32, %c0_i32_0 : i32, i32
  }
  func.func @transform_8(%arg0: i32) -> (i32, i32) {
    %c0_i32 = arith.constant 0 : i32
    %c0_i32_0 = arith.constant 0 : i32
    %c0_i32_1 = arith.constant 0 : i32
    return %c0_i32, %c0_i32_0 : i32, i32
  }
  func.func @transform_9(%arg0: i32) -> (i32, i32) {
    %c0_i32 = arith.constant 0 : i32
    %c0_i32_0 = arith.constant 0 : i32
    return %arg0, %c0_i32 : i32, i32
  }
}

</mosaic_0001>

<bundles_post_ra>
// kernel: _lambda_.1
= control target key start
LH: loop header
LB: loop body
LE: loop exit
PB: predicated region body
PF: predicated region fallthrough
CT: control target
= control target key end

     0   :  { %14 = vsyncpa [#allocation7], 0  ;;  %s14052_s0 = inlined_call_operand.vmem [shape: f32[2,16,16,1], index: 0, kind: input, shape index: {}]   ;;  %s14053_s1 = inlined_call_operand.vmem [shape: f32[9,64], index: 1, kind: input, shape index: {}]   ;;  %s14054_s2 = inlined_call_operand.vmem [shape: f32[1,64], index: 2, kind: input, shape index: {}]   ;;  %s14055_s3 = inlined_call_operand.hbm [shape: f32[576,128], index: 3, kind: input, shape index: {}]   ;;  %s14056_s4 = inlined_call_operand.vmem [shape: f32[1,128], index: 4, kind: input, shape index: {}]   ;;  %s14057_s5 = inlined_call_operand.hbm [shape: f32[2048,128], index: 5, kind: input, shape index: {}]   ;;  %s14058_s6 = inlined_call_operand.vmem [shape: f32[1,128], index: 6, kind: input, shape index: {}]   ;;  %s14059_s7 = inlined_call_operand.vmem [shape: f32[128,128], index: 7, kind: input, shape index: {}]   ;;  %s14060_s8 = inlined_call_operand.vmem [shape: f32[1,128], index: 8, kind: input, shape index: {}]   ;;  %s14061_s9 = inlined_call_operand.hbm [shape: f32[2,128], index: 9, kind: output, shape index: {}]  }
   0x1   :  { %15 = vsyncpa [#allocation10], 0 }
   0x2   :  { %16 = vsyncpa [#allocation8], 0  ;;  %s27_s11 = sshll.u32 %s14055_s3, 4  ;;  %s9002_s12 = smov [#allocation6]   ;;  %s28_s11 = int_to_ptr.hbm [resolvable:$true] %s27_s11 }
   0x3   :  { %s29_s13 = sshll.u32 %s9002_s12, 4  ;;  %s42_s16 = sshll.u32 %s14057_s5, 4  ;;  %s30_s13 = int_to_ptr.vmem [resolvable:$true] %s29_s13  ;;  %s43_s16 = int_to_ptr.hbm [resolvable:$true] %s42_s16 }
   0x4   :  { %s9003_s17 = smov 128   ;;  %s9004_s18 = smov 8  }
   0x5   :  { %35 = dma.hbm_to_vmem [thread:$0]  %s28_s11, 9216, %s30_s13, [#allocation7], %s9003_s17, %s9003_s17, %s9004_s18  }
   0x6   :  { %s9005_s19 = smov [#allocation9]  }
   0x7   :  { %s44_s20 = sshll.u32 %s9005_s19, 4  ;;  %s45_s20 = int_to_ptr.vmem [resolvable:$true] %s44_s20 }
   0x8   :  { %50 = dma.hbm_to_vmem [thread:$0]  %s43_s16, 32768, %s45_s20, [#allocation10], %s9003_s17, %s9003_s17, %s9004_s18  }
   0x9   :  { %8996 = dma.done.wait [#allocation7], 9216  }
   0xa   :  { %8997 = vsyncadd [#allocation7], 4294958080 }
   0xb   :  { %8998 = dma.done.wait [#allocation10], 32768  }
   0xc   :  { %8999 = vsyncadd [#allocation10], 4294934528  ;;  %vm65_vm0 = vcmask 7168   ;;  %v9006_v0 = vmov 0   ;;  %v14062_v1 = vmov 0.0   ;;  %v175_v5 = vld [vmem:[%s14052_s0] sm:$0xff] }
   0xd   :  { %8862 = vset.pattern.permute.xlu2 %v9006_v0  ;;  %8861 = vset.pattern.permute.xlu0 %v9006_v0  ;;  %121 = vst.msk [vmem:[#allocation2 + $0x1b0] sm:$0xff] %vm65_vm0, %v14062_v1  ;;  %v177_v6 = vld [vmem:[%s14052_s0 + $0x10] sm:$0xff]  ;;  %vm68_vm1 = vcmask 1024   ;;  %v176_v7 = vld [vmem:[%s14052_s0 + $0x8] sm:$0xff]  ;;  %v178_v11 = vld [vmem:[%s14052_s0 + $0x18] sm:$0xff]  ;;  %vm306_vm2 = vcmask 517120  }
   0xe   :  { %66 = vst.msk [vmem:[#allocation2] sm:$0xff] %vm65_vm0, %v14062_v1  ;;  %8863 = vset.pattern.permute.xlu1 %v9006_v0  ;;  %v179_v12 = vld [vmem:[%s14052_s0 + $0x20] sm:$0xff]  ;;  %v180_v13 = vld [vmem:[%s14052_s0 + $0x28] sm:$0xff]  ;;  %v209_v17 = vld [vmem:[%s14052_s0 + $0x110] sm:$0xff]  ;;  %vm1873_vm3 = vcmask 1041409   ;;  %vm1875_vm4 = vcmask 1042434  }
   0xf   :  { %67 = vst.msk [vmem:[#allocation2 + $0x8] sm:$0xff] %vm65_vm0, %v14062_v1  ;;  %v207_v14 = vld [vmem:[%s14052_s0 + $0x100] sm:$0xff]  ;;  %v208_v15 = vld [vmem:[%s14052_s0 + $0x108] sm:$0xff]  ;;  %v210_v18 = vld [vmem:[%s14052_s0 + $0x118] sm:$0xff]  ;;  %vm1877_vm5 = vcmask 1043459   ;;  %vm1879_vm6 = vcmask 1044484  }
  0x10   :  { %70 = vst.msk [vmem:[#allocation2 + $0x18] sm:$0xff] %vm65_vm0, %v14062_v1  ;;  %v211_v16 = vld [vmem:[%s14052_s0 + $0x120] sm:$0xff]  ;;  %v212_v19 = vld [vmem:[%s14052_s0 + $0x128] sm:$0xff]  ;;  %v181_v58 = vld [vmem:[%s14052_s0 + $0x30] sm:$0xff]  ;;  %vm1881_vm7 = vcmask 1045509   ;;  %vm1883_vm8 = vcmask 1046534  }
  0x11   :  { %71 = vst.msk [vmem:[#allocation2 + $0x20] sm:$0xff] %vm65_vm0, %v14062_v1  ;;  %v182_v0 = vld [vmem:[%s14052_s0 + $0x38] sm:$0xff]  ;;  %vm1885_vm9 = vcmask 1047559   ;;  %vm304_vm10 = vcmask 523264   ;;  %s9008_s17 = smov 64   ;;  %vm6727_vm11 = vcmask 1048064  }
  0x12   :  { %73 = vst.msk [vmem:[#allocation2 + $0x30] sm:$0xff] %vm65_vm0, %v14062_v1  ;;  %vm7770_vm12 = vcmask 1041408   ;;  %s9009_s26 = smov [#allocation11]   ;;  %s8826_s30 = sshll.u32 %s14061_s9, 4  ;;  %s8827_s30 = int_to_ptr.hbm [resolvable:$true] %s8826_s30 }
  0x13   :  { %74 = vst.msk [vmem:[#allocation2 + $0x38] sm:$0xff] %vm65_vm0, %v14062_v1  ;;  %s8824_s27 = sshll.u32 %s9009_s26, 4  ;;  %s8825_s27 = int_to_ptr.vmem [resolvable:$true] %s8824_s27 }
  0x14   :  { %v354_v2 = vld [vmem:[#allocation2 + $0x1b0] sm:$0xff]  ;;  %76 = vst.msk [vmem:[#allocation2 + $0x48] sm:$0xff] %vm65_vm0, %v14062_v1 }
  0x15   :  { %405 = vperm.xlu2 %8862, %v354_v2   ;;  %77 = vst.msk [vmem:[#allocation2 + $0x50] sm:$0xff] %vm65_vm0, %v14062_v1  ;;  %v346_v3 = vld [vmem:[#allocation2] sm:$0xff] }
  0x16   :  { %79 = vst.msk [vmem:[#allocation2 + $0x60] sm:$0xff] %vm65_vm0, %v14062_v1  ;;  %365 = vperm.xlu0 %8861, %v346_v3   ;;  %v347_v4 = vld [vmem:[#allocation2 + $0x8] sm:$0xff] }
  0x17   :  { %80 = vst.msk [vmem:[#allocation2 + $0x68] sm:$0xff] %vm65_vm0, %v14062_v1  ;;  %v476_v31 = vld [vmem:[#allocation2 + $0x1] sm:$0xff] }
  0x18   :  { %82 = vst.msk [vmem:[#allocation2 + $0x78] sm:$0xff] %vm65_vm0, %v14062_v1  ;;  %v606_v44 = vld [vmem:[#allocation2 + $0x2] sm:$0xff] }
  0x19   :  { %83 = vst.msk [vmem:[#allocation2 + $0x80] sm:$0xff] %vm65_vm0, %v14062_v1 }
  0x1a   :  { %85 = vst.msk [vmem:[#allocation2 + $0x90] sm:$0xff] %vm65_vm0, %v14062_v1 }
  0x1b   :  { %86 = vst.msk [vmem:[#allocation2 + $0x98] sm:$0xff] %vm65_vm0, %v14062_v1 }
  0x1c   :  { %88 = vst.msk [vmem:[#allocation2 + $0xa8] sm:$0xff] %vm65_vm0, %v14062_v1 }
  0x1d   :  { %89 = vst.msk [vmem:[#allocation2 + $0xb0] sm:$0xff] %vm65_vm0, %v14062_v1 }
  0x1e   :  { %91 = vst.msk [vmem:[#allocation2 + $0xc0] sm:$0xff] %vm65_vm0, %v14062_v1  ;;  %370 = vperm.xlu0 %8861, %v347_v4  }
  0x1f   :  { %92 = vst.msk [vmem:[#allocation2 + $0xc8] sm:$0xff] %vm65_vm0, %v14062_v1 }
  0x20   :  { %94 = vst.msk [vmem:[#allocation2 + $0xd8] sm:$0xff] %vm65_vm0, %v14062_v1 }
  0x21   :  { %95 = vst.msk [vmem:[#allocation2 + $0xe0] sm:$0xff] %vm65_vm0, %v14062_v1 }
  0x22   :  { %97 = vst.msk [vmem:[#allocation2 + $0xf0] sm:$0xff] %vm65_vm0, %v14062_v1 }
  0x23   :  { %98 = vst.msk [vmem:[#allocation2 + $0xf8] sm:$0xff] %vm65_vm0, %v14062_v1 }
  0x24   :  { %100 = vst.msk [vmem:[#allocation2 + $0x108] sm:$0xff] %vm65_vm0, %v14062_v1 }
  0x25   :  { %101 = vst.msk [vmem:[#allocation2 + $0x110] sm:$0xff] %vm65_vm0, %v14062_v1 }
  0x26   :  { %103 = vst.msk [vmem:[#allocation2 + $0x120] sm:$0xff] %vm65_vm0, %v14062_v1 }
  0x27   :  { %104 = vst.msk [vmem:[#allocation2 + $0x128] sm:$0xff] %vm65_vm0, %v14062_v1 }
  0x28   :  { %106 = vst.msk [vmem:[#allocation2 + $0x138] sm:$0xff] %vm65_vm0, %v14062_v1 }
  0x29   :  { %107 = vst.msk [vmem:[#allocation2 + $0x140] sm:$0xff] %vm65_vm0, %v14062_v1 }
  0x2a   :  { %109 = vst.msk [vmem:[#allocation2 + $0x150] sm:$0xff] %vm65_vm0, %v14062_v1 }
  0x2b   :  { %110 = vst.msk [vmem:[#allocation2 + $0x158] sm:$0xff] %vm65_vm0, %v14062_v1 }
  0x2c   :  { %112 = vst.msk [vmem:[#allocation2 + $0x168] sm:$0xff] %vm65_vm0, %v14062_v1 }
  0x2d   :  { %113 = vst.msk [vmem:[#allocation2 + $0x170] sm:$0xff] %vm65_vm0, %v14062_v1 }
  0x2e   :  { %115 = vst.msk [vmem:[#allocation2 + $0x180] sm:$0xff] %vm65_vm0, %v14062_v1 }
  0x2f   :  { %116 = vst.msk [vmem:[#allocation2 + $0x188] sm:$0xff] %vm65_vm0, %v14062_v1 }
  0x30   :  { %118 = vst.msk [vmem:[#allocation2 + $0x198] sm:$0xff] %vm65_vm0, %v14062_v1 }
  0x31   :  { %119 = vst.msk [vmem:[#allocation2 + $0x1a0] sm:$0xff] %vm65_vm0, %v14062_v1 }
  0x32   :  { %122 = vst.msk [vmem:[#allocation2 + $0x1b8] sm:$0xff] %vm65_vm0, %v14062_v1 }
  0x33   :  { %124 = vst.msk [vmem:[#allocation2 + $0x1c8] sm:$0xff] %vm65_vm0, %v14062_v1 }
  0x34   :  { %125 = vst.msk [vmem:[#allocation2 + $0x1d0] sm:$0xff] %vm65_vm0, %v14062_v1 }
  0x35   :  { %127 = vst.msk [vmem:[#allocation2 + $0x1e0] sm:$0xff] %vm65_vm0, %v14062_v1 }
  0x36   :  { %128 = vst.msk [vmem:[#allocation2 + $0x1e8] sm:$0xff] %vm65_vm0, %v14062_v1 }
  0x37   :  { %130 = vst.msk [vmem:[#allocation2 + $0x1f8] sm:$0xff] %vm65_vm0, %v14062_v1 }
  0x38   :  { %131 = vst.msk [vmem:[#allocation2 + $0x200] sm:$0xff] %vm65_vm0, %v14062_v1 }
  0x39   :  { %133 = vst.msk [vmem:[#allocation2 + $0x210] sm:$0xff] %vm65_vm0, %v14062_v1  ;;  %v355_v24 = vld [vmem:[#allocation2 + $0x1b8] sm:$0xff] }
  0x3a   :  { %134 = vst.msk [vmem:[#allocation2 + $0x218] sm:$0xff] %vm65_vm0, %v14062_v1  ;;  %v484_v39 = vld [vmem:[#allocation2 + $0x1b1] sm:$0xff] }
  0x3b   :  { %136 = vst.msk [vmem:[#allocation2 + $0x228] sm:$0xff] %vm65_vm0, %v14062_v1  ;;  %v614_v57 = vld [vmem:[#allocation2 + $0x1b2] sm:$0xff] }
  0x3c   :  { %137 = vst.msk [vmem:[#allocation2 + $0x230] sm:$0xff] %vm65_vm0, %v14062_v1 }
  0x3d   :  { %139 = vst.msk [vmem:[#allocation2 + $0x240] sm:$0xff] %vm65_vm0, %v14062_v1 }
  0x3e   :  { %140 = vst.msk [vmem:[#allocation2 + $0x248] sm:$0xff] %vm65_vm0, %v14062_v1 }
  0x3f   :  { %142 = vst.msk [vmem:[#allocation2 + $0x258] sm:$0xff] %vm65_vm0, %v14062_v1 }
  0x40   :  { %143 = vst.msk [vmem:[#allocation2 + $0x260] sm:$0xff] %vm65_vm0, %v14062_v1 }
  0x41   :  { %145 = vst.msk [vmem:[#allocation2 + $0x270] sm:$0xff] %vm65_vm0, %v14062_v1 }
  0x42   :  { %146 = vst.msk [vmem:[#allocation2 + $0x278] sm:$0xff] %vm65_vm0, %v14062_v1 }
  0x43   :  { %148 = vst.msk [vmem:[#allocation2 + $0x288] sm:$0xff] %vm65_vm0, %v14062_v1 }
  0x44   :  { %149 = vst.msk [vmem:[#allocation2 + $0x290] sm:$0xff] %vm65_vm0, %v14062_v1 }
  0x45   :  { %151 = vst.msk [vmem:[#allocation2 + $0x2a0] sm:$0xff] %vm65_vm0, %v14062_v1 }
  0x46   :  { %152 = vst.msk [vmem:[#allocation2 + $0x2a8] sm:$0xff] %vm65_vm0, %v14062_v1 }
  0x47   :  { %154 = vst.msk [vmem:[#allocation2 + $0x2b8] sm:$0xff] %vm65_vm0, %v14062_v1 }
  0x48   :  { %155 = vst.msk [vmem:[#allocation2 + $0x2c0] sm:$0xff] %vm65_vm0, %v14062_v1 }
  0x49   :  { %157 = vst.msk [vmem:[#allocation2 + $0x2d0] sm:$0xff] %vm65_vm0, %v14062_v1 }
  0x4a   :  { %158 = vst.msk [vmem:[#allocation2 + $0x2d8] sm:$0xff] %vm65_vm0, %v14062_v1 }
  0x4b   :  { %160 = vst.msk [vmem:[#allocation2 + $0x2e8] sm:$0xff] %vm65_vm0, %v14062_v1 }
  0x4c   :  { %161 = vst.msk [vmem:[#allocation2 + $0x2f0] sm:$0xff] %vm65_vm0, %v14062_v1 }
  0x4d   :  { %163 = vst.msk [vmem:[#allocation2 + $0x300] sm:$0xff] %vm65_vm0, %v14062_v1 }
  0x4e   :  { %164 = vst.msk [vmem:[#allocation2 + $0x308] sm:$0xff] %vm65_vm0, %v14062_v1 }
  0x4f   :  { %166 = vst.msk [vmem:[#allocation2 + $0x318] sm:$0xff] %vm65_vm0, %v14062_v1 }
  0x50   :  { %167 = vst.msk [vmem:[#allocation2 + $0x320] sm:$0xff] %vm65_vm0, %v14062_v1 }
  0x51   :  { %169 = vst.msk [vmem:[#allocation2 + $0x330] sm:$0xff] %vm65_vm0, %v14062_v1 }
  0x52   :  { %170 = vst.msk [vmem:[#allocation2 + $0x338] sm:$0xff] %vm65_vm0, %v14062_v1 }
  0x53   :  { %172 = vst.msk [vmem:[#allocation2 + $0x348] sm:$0xff] %vm65_vm0, %v14062_v1 }
  0x54   :  { %173 = vst.msk [vmem:[#allocation2 + $0x350] sm:$0xff] %vm65_vm0, %v14062_v1 }
  0x55   :  { %240 = vst.msk [vmem:[#allocation2 + $0x19] sm:$0xff] %vm65_vm0, %v175_v5 }
  0x56   :  { %242 = vst.msk [vmem:[#allocation2 + $0x31] sm:$0xff] %vm65_vm0, %v177_v6 }
  0x57   :  { %72 = vst.msk [vmem:[#allocation2 + $0x28] sm:$0x3] %vm68_vm1, %v14062_v1 }
  0x58   :  { %241 = vst.msk [vmem:[#allocation2 + $0x21] sm:$0xff] %vm65_vm0, %v176_v7  ;;  %v213_v7 = vld [vmem:[%s14052_s0 + $0x130] sm:$0xff] }
  0x59   :  { %69 = vst.msk [vmem:[#allocation2 + $0x10] sm:$0x3] %vm68_vm1, %v14062_v1 }
  0x5a   :  { %75 = vst.msk [vmem:[#allocation2 + $0x40] sm:$0x3] %vm68_vm1, %v14062_v1 }
  0x5b   :  { %78 = vst.msk [vmem:[#allocation2 + $0x58] sm:$0x3] %vm68_vm1, %v14062_v1 }
  0x5c   :  { %v9230_v8 = vld [vmem:[#allocation2 + $0x18] sm:$0xff]  ;;  %81 = vst.msk [vmem:[#allocation2 + $0x70] sm:$0x3] %vm68_vm1, %v14062_v1 }
  0x5d   :  { %375 = vperm.xlu1 %8863, %v9230_v8   ;;  %v9235_v9 = vld [vmem:[#allocation2 + $0x30] sm:$0xff]  ;;  %84 = vst.msk [vmem:[#allocation2 + $0x88] sm:$0x3] %vm68_vm1, %v14062_v1  ;;  %v9368_v33 = vld [vmem:[#allocation2 + $0x19] sm:$0xff] }
  0x5e   :  { %385 = vperm.xlu2 %8862, %v9235_v9   ;;  %87 = vst.msk [vmem:[#allocation2 + $0xa0] sm:$0x3] %vm68_vm1, %v14062_v1  ;;  %v9366_v32 = vld [vmem:[#allocation2 + $0x31] sm:$0xff] }
  0x5f   :  { %90 = vst.msk [vmem:[#allocation2 + $0xb8] sm:$0x3] %vm68_vm1, %v14062_v1  ;;  %v9248_v10 = vld [vmem:[#allocation2 + $0x20] sm:$0xff] }
  0x60   :  { %93 = vst.msk [vmem:[#allocation2 + $0xd0] sm:$0x3] %vm68_vm1, %v14062_v1  ;;  %v477_v29 = vld [vmem:[#allocation2 + $0x9] sm:$0xff]  ;;  %v9370_v34 = vld [vmem:[#allocation2 + $0x21] sm:$0xff] }
  0x61   :  { %96 = vst.msk [vmem:[#allocation2 + $0xe8] sm:$0x3] %vm68_vm1, %v14062_v1  ;;  %v9402_v47 = vld [vmem:[#allocation2 + $0x22] sm:$0xff]  ;;  %v607_v48 = vld [vmem:[#allocation2 + $0xa] sm:$0xff]  ;;  %v9406_v50 = vld [vmem:[#allocation2 + $0x1a] sm:$0xff] }
  0x62   :  { %99 = vst.msk [vmem:[#allocation2 + $0x100] sm:$0x3] %vm68_vm1, %v14062_v1 }
  0x63   :  { %102 = vst.msk [vmem:[#allocation2 + $0x118] sm:$0x3] %vm68_vm1, %v14062_v1 }
  0x64   :  { %105 = vst.msk [vmem:[#allocation2 + $0x130] sm:$0x3] %vm68_vm1, %v14062_v1 }
  0x65   :  { %380 = vperm.xlu1 %8863, %v9248_v10   ;;  %108 = vst.msk [vmem:[#allocation2 + $0x148] sm:$0x3] %vm68_vm1, %v14062_v1 }
  0x66   :  { %111 = vst.msk [vmem:[#allocation2 + $0x160] sm:$0x3] %vm68_vm1, %v14062_v1 }
  0x67   :  { %114 = vst.msk [vmem:[#allocation2 + $0x178] sm:$0x3] %vm68_vm1, %v14062_v1 }
  0x68   :  { %117 = vst.msk [vmem:[#allocation2 + $0x190] sm:$0x3] %vm68_vm1, %v14062_v1 }
  0x69   :  { %120 = vst.msk [vmem:[#allocation2 + $0x1a8] sm:$0x3] %vm68_vm1, %v14062_v1 }
  0x6a   :  { %123 = vst.msk [vmem:[#allocation2 + $0x1c0] sm:$0x3] %vm68_vm1, %v14062_v1 }
  0x6b   :  { %126 = vst.msk [vmem:[#allocation2 + $0x1d8] sm:$0x3] %vm68_vm1, %v14062_v1 }
  0x6c   :  { %129 = vst.msk [vmem:[#allocation2 + $0x1f0] sm:$0x3] %vm68_vm1, %v14062_v1 }
  0x6d   :  { %132 = vst.msk [vmem:[#allocation2 + $0x208] sm:$0x3] %vm68_vm1, %v14062_v1 }
  0x6e   :  { %135 = vst.msk [vmem:[#allocation2 + $0x220] sm:$0x3] %vm68_vm1, %v14062_v1 }
  0x6f   :  { %138 = vst.msk [vmem:[#allocation2 + $0x238] sm:$0x3] %vm68_vm1, %v14062_v1  ;;  %v9404_v49 = vpop.permute.xlu2 %405 }
  0x70   :  { %141 = vst.msk [vmem:[#allocation2 + $0x250] sm:$0x3] %vm68_vm1, %v14062_v1 }
  0x71   :  { %144 = vst.msk [vmem:[#allocation2 + $0x268] sm:$0x3] %vm68_vm1, %v14062_v1  ;;  %v485_v40 = vld [vmem:[#allocation2 + $0x1b9] sm:$0xff] }
  0x72   :  { %147 = vst.msk [vmem:[#allocation2 + $0x280] sm:$0x3] %vm68_vm1, %v14062_v1  ;;  %v615_v55 = vld [vmem:[#allocation2 + $0x1ba] sm:$0xff] }
  0x73   :  { %150 = vst.msk [vmem:[#allocation2 + $0x298] sm:$0x3] %vm68_vm1, %v14062_v1 }
  0x74   :  { %153 = vst.msk [vmem:[#allocation2 + $0x2b0] sm:$0x3] %vm68_vm1, %v14062_v1 }
  0x75   :  { %156 = vst.msk [vmem:[#allocation2 + $0x2c8] sm:$0x3] %vm68_vm1, %v14062_v1 }
  0x76   :  { %159 = vst.msk [vmem:[#allocation2 + $0x2e0] sm:$0x3] %vm68_vm1, %v14062_v1 }
  0x77   :  { %162 = vst.msk [vmem:[#allocation2 + $0x2f8] sm:$0x3] %vm68_vm1, %v14062_v1 }
  0x78   :  { %165 = vst.msk [vmem:[#allocation2 + $0x310] sm:$0x3] %vm68_vm1, %v14062_v1 }
  0x79   :  { %168 = vst.msk [vmem:[#allocation2 + $0x328] sm:$0x3] %vm68_vm1, %v14062_v1 }
  0x7a   :  { %171 = vst.msk [vmem:[#allocation2 + $0x340] sm:$0x3] %vm68_vm1, %v14062_v1 }
  0x7b   :  { %174 = vst.msk [vmem:[#allocation2 + $0x358] sm:$0x3] %vm68_vm1, %v14062_v1 }
  0x7c   :  { %243 = vst.msk [vmem:[#allocation2 + $0x39] sm:$0xff] %vm65_vm0, %v178_v11 }
  0x7d   :  { %244 = vst.msk [vmem:[#allocation2 + $0x49] sm:$0xff] %vm65_vm0, %v179_v12 }
  0x7e   :  { %245 = vst.msk [vmem:[#allocation2 + $0x51] sm:$0xff] %vm65_vm0, %v180_v13 }
  0x7f   :  { %272 = vst.msk [vmem:[#allocation2 + $0x1c9] sm:$0xff] %vm65_vm0, %v207_v14  ;;  %v214_v14 = vld [vmem:[%s14052_s0 + $0x138] sm:$0xff] }
  0x80   :  { %273 = vst.msk [vmem:[#allocation2 + $0x1d1] sm:$0xff] %vm65_vm0, %v208_v15 }
  0x81   :  { %276 = vst.msk [vmem:[#allocation2 + $0x1f9] sm:$0xff] %vm65_vm0, %v211_v16 }
  0x82   :  { %274 = vst.msk [vmem:[#allocation2 + $0x1e1] sm:$0xff] %vm65_vm0, %v209_v17 }
  0x83   :  { %v9337_v20 = vld [vmem:[#allocation2 + $0x38] sm:$0xff]  ;;  %275 = vst.msk [vmem:[#allocation2 + $0x1e9] sm:$0xff] %vm65_vm0, %v210_v18 }
  0x84   :  { %390 = vperm.xlu2 %8862, %v9337_v20   ;;  %v9341_v21 = vld [vmem:[#allocation2 + $0x48] sm:$0xff]  ;;  %277 = vst.msk [vmem:[#allocation2 + $0x201] sm:$0xff] %vm65_vm0, %v212_v19  ;;  %v9377_v36 = vld [vmem:[#allocation2 + $0x39] sm:$0xff] }
  0x85   :  { %395 = vperm.xlu0 %8861, %v9341_v21   ;;  %v9345_v22 = vld [vmem:[#allocation2 + $0x50] sm:$0xff]  ;;  %v9414_v53 = vld [vmem:[#allocation2 + $0x3a] sm:$0xff]  ;;  %246 = vst.msk [vmem:[#allocation2 + $0x61] sm:$0xff] %vm65_vm0, %v181_v58 }
  0x86   :  { %400 = vperm.xlu1 %8863, %v9345_v22   ;;  %v9350_v25 = vld [vmem:[#allocation2 + $0x1c8] sm:$0xff]  ;;  %v9375_v35 = vld [vmem:[#allocation2 + $0x51] sm:$0xff]  ;;  %247 = vst.msk [vmem:[#allocation2 + $0x69] sm:$0xff] %vm65_vm0, %v182_v0 }
  0x87   :  { %v9348_v23 = vld [vmem:[#allocation2 + $0x1d0] sm:$0xff]  ;;  %278 = vst.msk [vmem:[#allocation2 + $0x211] sm:$0xff] %vm65_vm0, %v213_v7 }
  0x88   :  { %v9354_v26 = vld [vmem:[#allocation2 + $0x1f8] sm:$0xff]  ;;  %v9379_v37 = vld [vmem:[#allocation2 + $0x49] sm:$0xff]  ;;  %v9434_v62 = vpop.permute.xlu0 %365  ;;  %279 = vst.msk [vmem:[#allocation2 + $0x219] sm:$0xff] %vm65_vm0, %v214_v14 }
  0x89   :  { %v9356_v27 = vld [vmem:[#allocation2 + $0x1e0] sm:$0xff]  ;;  %v9384_v38 = vld [vmem:[#allocation2 + $0x1c9] sm:$0xff]  ;;  %v9389_v42 = vld [vmem:[#allocation2 + $0x1d1] sm:$0xff] }
  0x8a   :  { %v9358_v28 = vld [vmem:[#allocation2 + $0x1e8] sm:$0xff]  ;;  %v9396_v45 = vld [vmem:[#allocation2 + $0x1f9] sm:$0xff] }
  0x8b   :  { %v9363_v30 = vld [vmem:[#allocation2 + $0x200] sm:$0xff]  ;;  %v9387_v41 = vld [vmem:[#allocation2 + $0x1e9] sm:$0xff]  ;;  %v9412_v52 = vld [vmem:[#allocation2 + $0x32] sm:$0xff] }
  0x8c   :  { %420 = vperm.xlu2 %8862, %v9348_v23   ;;  %v9391_v43 = vld [vmem:[#allocation2 + $0x1e1] sm:$0xff]  ;;  %v9410_v51 = vld [vmem:[#allocation2 + $0x4a] sm:$0xff]  ;;  %v9421_v56 = vld [vmem:[#allocation2 + $0x52] sm:$0xff] }
  0x8d   :  { %410 = vperm.xlu0 %8861, %v355_v24   ;;  %v9398_v46 = vld [vmem:[#allocation2 + $0x201] sm:$0xff]  ;;  %v9432_v61 = vld [vmem:[#allocation2 + $0x1ca] sm:$0xff]  ;;  %v9436_v63 = vld [vmem:[#allocation2 + $0x1d2] sm:$0xff] }
  0x8e   :  { %415 = vperm.xlu1 %8863, %v9350_v25   ;;  %v9430_v60 = vld [vmem:[#allocation2 + $0x1e2] sm:$0xff]  ;;  %v9451_v5 = vld [vmem:[#allocation2 + $0x1ea] sm:$0xff]  ;;  %v9453_v6 = vld [vmem:[#allocation2 + $0x1fa] sm:$0xff] }
  0x8f   :  { %v9449_v4 = vld [vmem:[#allocation2 + $0x202] sm:$0xff]  ;;  %v9523_v58 = vld [vmem:[#allocation2 + $0x218] sm:$0xff] }
  0x90   :  { %v9460_v11 = vpop.permute.xlu0 %370  ;;  %v9490_v24 = vld [vmem:[#allocation2 + $0x60] sm:$0xff] }
  0x94   :  { %435 = vperm.xlu2 %8862, %v9354_v26  }
  0x95   :  { %425 = vperm.xlu0 %8861, %v9356_v27  }
  0x96   :  { %430 = vperm.xlu1 %8863, %v9358_v28  }
  0x9c   :  { %500 = vperm.xlu2 %8862, %v477_v29   ;;  %v9492_v29 = vld [vmem:[#allocation2 + $0x68] sm:$0xff] }
  0x9d   :  { %440 = vperm.xlu0 %8861, %v9363_v30  }
  0x9e   :  { %495 = vperm.xlu1 %8863, %v476_v31  }
  0xa4   :  { %515 = vperm.xlu2 %8862, %v9366_v32  }
  0xa5   :  { %505 = vperm.xlu0 %8861, %v9368_v33  }
  0xa6   :  { %510 = vperm.xlu1 %8863, %v9370_v34  }
  0xac   :  { %530 = vperm.xlu2 %8862, %v9375_v35  }
  0xad   :  { %520 = vperm.xlu0 %8861, %v9377_v36  }
  0xae   :  { %525 = vperm.xlu1 %8863, %v9379_v37  }
  0xb4   :  { %545 = vperm.xlu2 %8862, %v9384_v38  }
  0xb5   :  { %535 = vperm.xlu0 %8861, %v484_v39  }
  0xb6   :  { %540 = vperm.xlu1 %8863, %v485_v40  }
  0xb8   :  { %v9417_v54 = vpop.permute.xlu2 %385 }
  0xbc   :  { %560 = vperm.xlu2 %8862, %v9387_v41  }
  0xbd   :  { %550 = vperm.xlu0 %8861, %v9389_v42  }
  0xbe   :  { %555 = vperm.xlu1 %8863, %v9391_v43  }
  0xc4   :  { %625 = vperm.xlu2 %8862, %v606_v44  }
  0xc5   :  { %565 = vperm.xlu0 %8861, %v9396_v45  }
  0xc6   :  { %570 = vperm.xlu1 %8863, %v9398_v46  }
  0xcc   :  { %640 = vperm.xlu2 %8862, %v9402_v47  }
  0xcd   :  { %630 = vperm.xlu0 %8861, %v607_v48   ;;  %v9512_v48 = vld [vmem:[#allocation2 + $0x210] sm:$0xff] }
  0xce   :  { %635 = vperm.xlu1 %8863, %v9406_v50  }
  0xcf   :  { %v9442_v2 = vpop.permute.xlu1 %375 }
  0xd4   :  { %655 = vperm.xlu2 %8862, %v9410_v51  }
  0xd5   :  { %645 = vperm.xlu0 %8861, %v9412_v52  }
  0xd6   :  { %650 = vperm.xlu1 %8863, %v9414_v53  }
  0xd7   :  { %v9466_v13 = vpop.permute.xlu1 %380 }
  0xdc   :  { %670 = vperm.xlu2 %8862, %v615_v55  }
  0xdd   :  { %660 = vperm.xlu0 %8861, %v9421_v56  }
  0xde   :  { %v9428_v59 = vpop.permute.xlu2 %390  ;;  %665 = vperm.xlu1 %8863, %v614_v57  }
  0xe4   :  { %685 = vperm.xlu2 %8862, %v9430_v60  }
  0xe5   :  { %675 = vperm.xlu0 %8861, %v9432_v61  }
  0xe6   :  { %v9446_v3 = vpop.permute.xlu2 %420  ;;  %680 = vperm.xlu1 %8863, %v9436_v63  }
  0xec   :  { %700 = vperm.xlu2 %8862, %v9449_v4  }
  0xed   :  { %690 = vperm.xlu0 %8861, %v9451_v5  }
  0xee   :  { %v9463_v12 = vpop.permute.xlu2 %435  ;;  %695 = vperm.xlu1 %8863, %v9453_v6  }
  0xf4   :  { %765 = vperm.xlu2 %8862, %v9235_v9  }
  0xf5   :  { %755 = vperm.xlu0 %8861, %v9230_v8  }
  0xf6   :  { %v9474_v15 = vpop.permute.xlu2 %500  ;;  %760 = vperm.xlu1 %8863, %v9248_v10  }
  0xf7   :  { %v9477_v16 = vpop.permute.xlu0 %395 }
  0xf8   :  { %v9479_v17 = vpop.permute.xlu1 %400 }
  0xfc   :  { %780 = vperm.xlu2 %8862, %v9345_v22  }
  0xfd   :  { %770 = vperm.xlu0 %8861, %v9337_v20  }
  0xfe   :  { %v9483_v18 = vpop.permute.xlu2 %515  ;;  %775 = vperm.xlu1 %8863, %v9341_v21  }
  0xff   :  { %v9486_v19 = vpop.permute.xlu0 %410 }
 0x100   :  { %v9488_v8 = vpop.permute.xlu1 %415 }
 0x104   :  { %795 = vperm.xlu2 %8862, %v9350_v25  }
 0x105   :  { %785 = vperm.xlu0 %8861, %v9490_v24  }
 0x106   :  { %v9496_v10 = vpop.permute.xlu2 %530  ;;  %790 = vperm.xlu1 %8863, %v9492_v29  }
 0x107   :  { %v9499_v31 = vpop.permute.xlu0 %425 }
 0x108   :  { %v9501_v39 = vpop.permute.xlu1 %430 }
 0x10c   :  { %810 = vperm.xlu2 %8862, %v9358_v28  }
 0x10d   :  { %800 = vperm.xlu0 %8861, %v9348_v23  }
 0x10e   :  { %v9505_v40 = vpop.permute.xlu2 %545  ;;  %805 = vperm.xlu1 %8863, %v9356_v27  }
 0x10f   :  { %v9508_v44 = vpop.permute.xlu0 %440 }
 0x110   :  { %v9510_v25 = vpop.permute.xlu1 %495 }
 0x114   :  { %825 = vperm.xlu2 %8862, %v9512_v48  }
 0x115   :  { %815 = vperm.xlu0 %8861, %v9354_v26  }
 0x116   :  { %v9516_v55 = vpop.permute.xlu2 %560  ;;  %820 = vperm.xlu1 %8863, %v9363_v30  }
 0x117   :  { %v9519_v57 = vpop.permute.xlu0 %505 }
 0x118   :  { %14110 = vst [vmem:[#allocation15_spill] sm:$0xff] %v9519_v57  ;;  %v9521_v23 = vpop.permute.xlu1 %510 }
 0x119   :  { %14111 = vst [vmem:[#allocation16_spill] sm:$0xff] %v9521_v23  ;;  %v9543_v23 = vld [vmem:[#allocation2 + $0x69] sm:$0xff] }
 0x11c   :  { %890 = vperm.xlu2 %8862, %v9370_v34  }
 0x11d   :  { %830 = vperm.xlu0 %8861, %v9523_v58  }
 0x11e   :  { %v9527_v0 = vpop.permute.xlu2 %625  ;;  %885 = vperm.xlu1 %8863, %v9368_v33  }
 0x11f   :  { %14112 = vst [vmem:[#allocation17_spill] sm:$0xff] %v9527_v0  ;;  %v9530_v7 = vpop.permute.xlu0 %520  ;;  %v9545_v0 = vld [vmem:[#allocation2 + $0x61] sm:$0xff] }
 0x120   :  { %14113 = vst [vmem:[#allocation18_spill] sm:$0xff] %v9530_v7  ;;  %v9532_v14 = vpop.permute.xlu1 %525 }
 0x121   :  { %14114 = vst [vmem:[#allocation19_spill] sm:$0xff] %v9532_v14 }
 0x124   :  { %905 = vperm.xlu2 %8862, %v9379_v37  }
 0x125   :  { %895 = vperm.xlu0 %8861, %v9366_v32  }
 0x126   :  { %v9536_v1 = vpop.permute.xlu2 %640  ;;  %900 = vperm.xlu1 %8863, %v9377_v36  }
 0x127   :  { %14115 = vst [vmem:[#allocation20_spill] sm:$0xff] %v9536_v1  ;;  %v9539_v57 = vpop.permute.xlu0 %535 }
 0x128   :  { %14116 = vst [vmem:[#allocation21_spill] sm:$0xff] %v9539_v57  ;;  %v9541_v34 = vpop.permute.xlu1 %540 }
 0x129   :  { %14117 = vst [vmem:[#allocation22_spill] sm:$0xff] %v9541_v34 }
 0x12c   :  { %920 = vperm.xlu2 %8862, %v9543_v23  }
 0x12d   :  { %910 = vperm.xlu0 %8861, %v9375_v35  }
 0x12e   :  { %v9549_v33 = vpop.permute.xlu2 %655  ;;  %915 = vperm.xlu1 %8863, %v9545_v0  }
 0x12f   :  { %14118 = vst [vmem:[#allocation23_spill] sm:$0xff] %v9549_v33  ;;  %v9552_v7 = vpop.permute.xlu0 %550 }
 0x130   :  { %14119 = vst [vmem:[#allocation24_spill] sm:$0xff] %v9552_v7  ;;  %v9554_v1 = vpop.permute.xlu1 %555 }
 0x131   :  { %14120 = vst [vmem:[#allocation25_spill] sm:$0xff] %v9554_v1 }
 0x134   :  { %935 = vperm.xlu2 %8862, %v9391_v43  }
 0x135   :  { %925 = vperm.xlu0 %8861, %v9384_v38   ;;  %v9574_v38 = vld [vmem:[#allocation2 + $0x211] sm:$0xff] }
 0x136   :  { %v9558_v57 = vpop.permute.xlu2 %670  ;;  %930 = vperm.xlu1 %8863, %v9389_v42   ;;  %14127 = vst [vmem:[#allocation32_spill] sm:$0xff] %v9574_v38 }
 0x137   :  { %14121 = vst [vmem:[#allocation26_spill] sm:$0xff] %v9558_v57  ;;  %v9561_v34 = vpop.permute.xlu0 %565  ;;  %v9576_v57 = vld [vmem:[#allocation2 + $0x219] sm:$0xff] }
 0x138   :  { %14122 = vst [vmem:[#allocation27_spill] sm:$0xff] %v9561_v34  ;;  %v9563_v14 = vpop.permute.xlu1 %570  ;;  %v9596_v34 = vld [vmem:[#allocation2 + $0x62] sm:$0xff] }
 0x139   :  { %14123 = vst [vmem:[#allocation28_spill] sm:$0xff] %v9563_v14 }
 0x13a   :  { %14128 = vst [vmem:[#allocation33_spill] sm:$0xff] %v9576_v57 }
 0x13c   :  { %950 = vperm.xlu2 %8862, %v9398_v46  }
 0x13d   :  { %940 = vperm.xlu0 %8861, %v9387_v41  }
 0x13e   :  { %v9567_v33 = vpop.permute.xlu2 %685  ;;  %945 = vperm.xlu1 %8863, %v9396_v45  }
 0x13f   :  { %14124 = vst [vmem:[#allocation29_spill] sm:$0xff] %v9567_v33  ;;  %v9570_v1 = vpop.permute.xlu0 %630 }
 0x140   :  { %14125 = vst [vmem:[#allocation30_spill] sm:$0xff] %v9570_v1  ;;  %v9572_v7 = vpop.permute.xlu1 %635 }
 0x141   :  { %14126 = vst [vmem:[#allocation31_spill] sm:$0xff] %v9572_v7 }
 0x144   :  { %1015 = vperm.xlu2 %8862, %v9406_v50  }
 0x145   :  { %955 = vperm.xlu0 %8861, %v9574_v38  }
 0x146   :  { %v9580_v42 = vpop.permute.xlu2 %700  ;;  %960 = vperm.xlu1 %8863, %v9576_v57  }
 0x147   :  { %14129 = vst [vmem:[#allocation34_spill] sm:$0xff] %v9580_v42  ;;  %v9583_v14 = vpop.permute.xlu0 %645 }
 0x148   :  { %14130 = vst [vmem:[#allocation35_spill] sm:$0xff] %v9583_v14  ;;  %v9585_v33 = vpop.permute.xlu1 %650 }
 0x149   :  { %14131 = vst [vmem:[#allocation36_spill] sm:$0xff] %v9585_v33 }
 0x14c   :  { %1030 = vperm.xlu2 %8862, %v9414_v53  }
 0x14d   :  { %1020 = vperm.xlu0 %8861, %v9402_v47  }
 0x14e   :  { %v9589_v7 = vpop.permute.xlu2 %765  ;;  %1025 = vperm.xlu1 %8863, %v9412_v52  }
 0x14f   :  { %14132 = vst [vmem:[#allocation37_spill] sm:$0xff] %v9589_v7  ;;  %v9592_v1 = vpop.permute.xlu0 %660  ;;  %v9607_v7 = vld [vmem:[#allocation2 + $0x6a] sm:$0xff] }
 0x150   :  { %14133 = vst [vmem:[#allocation38_spill] sm:$0xff] %v9592_v1  ;;  %v9594_v50 = vpop.permute.xlu1 %665  ;;  %v183_v1 = vld [vmem:[%s14052_s0 + $0x40] sm:$0xff] }
 0x151   :  { %14134 = vst [vmem:[#allocation39_spill] sm:$0xff] %v9594_v50 }
 0x152   :  { %248 = vst.msk [vmem:[#allocation2 + $0x79] sm:$0xff] %vm65_vm0, %v183_v1 }
 0x154   :  { %1045 = vperm.xlu2 %8862, %v9596_v34  }
 0x155   :  { %1035 = vperm.xlu0 %8861, %v9410_v51  }
 0x156   :  { %v9600_v14 = vpop.permute.xlu2 %780  ;;  %1040 = vperm.xlu1 %8863, %v9421_v56  }
 0x157   :  { %14135 = vst [vmem:[#allocation40_spill] sm:$0xff] %v9600_v14  ;;  %v9603_v42 = vpop.permute.xlu0 %675 }
 0x158   :  { %14136 = vst [vmem:[#allocation41_spill] sm:$0xff] %v9603_v42  ;;  %v9605_v47 = vpop.permute.xlu1 %680 }
 0x159   :  { %14137 = vst [vmem:[#allocation42_spill] sm:$0xff] %v9605_v47 }
 0x15c   :  { %1060 = vperm.xlu2 %8862, %v9436_v63   ;;  %v184_v63 = vld [vmem:[%s14052_s0 + $0x48] sm:$0xff] }
 0x15d   :  { %1050 = vperm.xlu0 %8861, %v9607_v7   ;;  %249 = vst.msk [vmem:[#allocation2 + $0x81] sm:$0xff] %vm65_vm0, %v184_v63  ;;  %v215_v63 = vld [vmem:[%s14052_s0 + $0x140] sm:$0xff] }
 0x15e   :  { %v9615_v50 = vpop.permute.xlu2 %795  ;;  %1055 = vperm.xlu1 %8863, %v9432_v61   ;;  %280 = vst.msk [vmem:[#allocation2 + $0x229] sm:$0xff] %vm65_vm0, %v215_v63 }
 0x15f   :  { %14138 = vst [vmem:[#allocation43_spill] sm:$0xff] %v9615_v50  ;;  %v9618_v14 = vpop.permute.xlu0 %690  ;;  %v216_v50 = vld [vmem:[%s14052_s0 + $0x148] sm:$0xff] }
 0x160   :  { %14139 = vst [vmem:[#allocation44_spill] sm:$0xff] %v9618_v14  ;;  %v9620_v42 = vpop.permute.xlu1 %695  ;;  %v9635_v14 = vld [vmem:[#allocation2 + $0x21a] sm:$0xff] }
 0x161   :  { %14140 = vst [vmem:[#allocation45_spill] sm:$0xff] %v9620_v42  ;;  %v9637_v42 = vld [vmem:[#allocation2 + $0x212] sm:$0xff] }
 0x162   :  { %281 = vst.msk [vmem:[#allocation2 + $0x231] sm:$0xff] %vm65_vm0, %v216_v50  ;;  %v9674_v50 = vld [vmem:[#allocation2 + $0x78] sm:$0xff] }
 0x164   :  { %1075 = vperm.xlu2 %8862, %v9453_v6  }
 0x165   :  { %1065 = vperm.xlu0 %8861, %v9430_v60  }
 0x166   :  { %v9628_v47 = vpop.permute.xlu2 %810  ;;  %1070 = vperm.xlu1 %8863, %v9451_v5  }
 0x167   :  { %14141 = vst [vmem:[#allocation46_spill] sm:$0xff] %v9628_v47  ;;  %v9631_v1 = vpop.permute.xlu0 %755 }
 0x168   :  { %14142 = vst [vmem:[#allocation47_spill] sm:$0xff] %v9631_v1  ;;  %v9633_v61 = vpop.permute.xlu1 %760 }
 0x169   :  { %14143 = vst [vmem:[#allocation48_spill] sm:$0xff] %v9633_v61 }
 0x16c   :  { %1090 = vperm.xlu2 %8862, %v9635_v14  }
 0x16d   :  { %1080 = vperm.xlu0 %8861, %v9449_v4  }
 0x16e   :  { %v9645_v47 = vpop.permute.xlu2 %825  ;;  %1085 = vperm.xlu1 %8863, %v9637_v42  }
 0x16f   :  { %14144 = vst [vmem:[#allocation49_spill] sm:$0xff] %v9645_v47  ;;  %v9648_v1 = vpop.permute.xlu0 %770 }
 0x170   :  { %14145 = vst [vmem:[#allocation50_spill] sm:$0xff] %v9648_v1  ;;  %v9650_v61 = vpop.permute.xlu1 %775 }
 0x174   :  { %1156 = vperm.xlu2 %8862, %v9341_v21  }
 0x175   :  { %1146 = vperm.xlu0 %8861, %v9235_v9  }
 0x176   :  { %v9658_v33 = vpop.permute.xlu2 %890  ;;  %1151 = vperm.xlu1 %8863, %v9337_v20  }
 0x177   :  { %14146 = vst [vmem:[#allocation51_spill] sm:$0xff] %v9658_v33  ;;  %v9661_v63 = vpop.permute.xlu0 %785  ;;  %v9676_v33 = vld [vmem:[#allocation2 + $0x80] sm:$0xff] }
 0x178   :  { %14147 = vst [vmem:[#allocation52_spill] sm:$0xff] %v9661_v63  ;;  %v9663_v47 = vpop.permute.xlu1 %790  ;;  %v9696_v63 = vld [vmem:[#allocation2 + $0x228] sm:$0xff] }
 0x17c   :  { %1171 = vperm.xlu2 %8862, %v9492_v29  }
 0x17d   :  { %1161 = vperm.xlu0 %8861, %v9345_v22  }
 0x17e   :  { %v9667_v21 = vpop.permute.xlu2 %905  ;;  %1166 = vperm.xlu1 %8863, %v9490_v24  }
 0x17f   :  { %14148 = vst [vmem:[#allocation53_spill] sm:$0xff] %v9667_v21  ;;  %v9670_v1 = vpop.permute.xlu0 %800 }
 0x180   :  { %14149 = vst [vmem:[#allocation54_spill] sm:$0xff] %v9670_v1  ;;  %v9672_v9 = vpop.permute.xlu1 %805 }
 0x181   :  { %14150 = vst [vmem:[#allocation55_spill] sm:$0xff] %v9672_v9 }
 0x184   :  { %1186 = vperm.xlu2 %8862, %v9356_v27  }
 0x185   :  { %1176 = vperm.xlu0 %8861, %v9674_v50  }
 0x186   :  { %v9680_v20 = vpop.permute.xlu2 %920  ;;  %1181 = vperm.xlu1 %8863, %v9676_v33  }
 0x187   :  { %v9683_v22 = vpop.permute.xlu0 %815 }
 0x188   :  { %14151 = vst [vmem:[#allocation56_spill] sm:$0xff] %v9683_v22  ;;  %v9685_v21 = vpop.permute.xlu1 %820 }
 0x18c   :  { %1201 = vperm.xlu2 %8862, %v9363_v30  }
 0x18d   :  { %1191 = vperm.xlu0 %8861, %v9358_v28  }
 0x18e   :  { %v9689_v9 = vpop.permute.xlu2 %935  ;;  %1196 = vperm.xlu1 %8863, %v9354_v26  }
 0x18f   :  { %14152 = vst [vmem:[#allocation57_spill] sm:$0xff] %v9689_v9  ;;  %v9692_v1 = vpop.permute.xlu0 %830  ;;  %v9707_v9 = vld [vmem:[#allocation2 + $0x230] sm:$0xff] }
 0x190   :  { %14153 = vst [vmem:[#allocation58_spill] sm:$0xff] %v9692_v1  ;;  %v9694_v27 = vpop.permute.xlu1 %885 }
 0x191   :  { %14154 = vst [vmem:[#allocation59_spill] sm:$0xff] %v9694_v27 }
 0x194   :  { %1216 = vperm.xlu2 %8862, %v9696_v63  }
 0x195   :  { %1206 = vperm.xlu0 %8861, %v9512_v48  }
 0x196   :  { %v9700_v22 = vpop.permute.xlu2 %950  ;;  %1211 = vperm.xlu1 %8863, %v9523_v58  }
 0x197   :  { %14155 = vst [vmem:[#allocation60_spill] sm:$0xff] %v9700_v22  ;;  %v9703_v30 = vpop.permute.xlu0 %895  ;;  %v9727_v22 = vld [vmem:[#allocation2 + $0x81] sm:$0xff] }
 0x198   :  { %14156 = vst [vmem:[#allocation61_spill] sm:$0xff] %v9703_v30  ;;  %v9705_v28 = vpop.permute.xlu1 %900 }
 0x199   :  { %14157 = vst [vmem:[#allocation62_spill] sm:$0xff] %v9705_v28 }
 0x19a   :  { %14161 = vst [vmem:[#allocation66_spill] sm:$0xff] %v9727_v22 }
 0x19c   :  { %1281 = vperm.xlu2 %8862, %v9377_v36  }
 0x19d   :  { %1221 = vperm.xlu0 %8861, %v9707_v9  }
 0x19e   :  { %v9711_v26 = vpop.permute.xlu2 %1015  ;;  %1276 = vperm.xlu1 %8863, %v9366_v32  }
 0x19f   :  { %14158 = vst [vmem:[#allocation63_spill] sm:$0xff] %v9711_v26  ;;  %v9714_v27 = vpop.permute.xlu0 %910  ;;  %v9729_v26 = vld [vmem:[#allocation2 + $0x79] sm:$0xff] }
 0x1a0   :  { %v9716_v1 = vpop.permute.xlu1 %915 }
 0x1a4   :  { %1296 = vperm.xlu2 %8862, %v9545_v0  }
 0x1a5   :  { %1286 = vperm.xlu0 %8861, %v9379_v37  }
 0x1a6   :  { %v9720_v30 = vpop.permute.xlu2 %1030  ;;  %1291 = vperm.xlu1 %8863, %v9375_v35  }
 0x1a7   :  { %14159 = vst [vmem:[#allocation64_spill] sm:$0xff] %v9720_v30  ;;  %v9723_v28 = vpop.permute.xlu0 %925 }
 0x1a8   :  { %v9725_v36 = vpop.permute.xlu1 %930 }
 0x1a9   :  { %14160 = vst [vmem:[#allocation65_spill] sm:$0xff] %v9725_v36 }
 0x1ac   :  { %1311 = vperm.xlu2 %8862, %v9727_v22  }
 0x1ad   :  { %1301 = vperm.xlu0 %8861, %v9543_v23  }
 0x1ae   :  { %v9733_v32 = vpop.permute.xlu2 %1045  ;;  %1306 = vperm.xlu1 %8863, %v9729_v26  }
 0x1af   :  { %14162 = vst [vmem:[#allocation67_spill] sm:$0xff] %v9733_v32  ;;  %v9736_v37 = vpop.permute.xlu0 %940 }
 0x1b0   :  { %v9738_v30 = vpop.permute.xlu1 %945 }
 0x1b1   :  { %14163 = vst [vmem:[#allocation68_spill] sm:$0xff] %v9738_v30 }
 0x1b4   :  { %1326 = vperm.xlu2 %8862, %v9396_v45  }
 0x1b5   :  { %1316 = vperm.xlu0 %8861, %v9391_v43   ;;  %v9758_v43 = vld [vmem:[#allocation2 + $0x229] sm:$0xff] }
 0x1b6   :  { %v9742_v35 = vpop.permute.xlu2 %1060  ;;  %1321 = vperm.xlu1 %8863, %v9387_v41   ;;  %14166 = vst [vmem:[#allocation71_spill] sm:$0xff] %v9758_v43 }
 0x1b7   :  { %14164 = vst [vmem:[#allocation69_spill] sm:$0xff] %v9742_v35  ;;  %v9745_v36 = vpop.permute.xlu0 %955  ;;  %v9760_v35 = vld [vmem:[#allocation2 + $0x231] sm:$0xff] }
 0x1b8   :  { %v9747_v22 = vpop.permute.xlu1 %960  ;;  %14167 = vst [vmem:[#allocation72_spill] sm:$0xff] %v9760_v35 }
 0x1bc   :  { %1341 = vperm.xlu2 %8862, %v9576_v57  }
 0x1bd   :  { %1331 = vperm.xlu0 %8861, %v9398_v46  }
 0x1be   :  { %v9751_v32 = vpop.permute.xlu2 %1075  ;;  %1336 = vperm.xlu1 %8863, %v9574_v38  }
 0x1bf   :  { %v9754_v30 = vpop.permute.xlu0 %1020 }
 0x1c0   :  { %v9756_v45 = vpop.permute.xlu1 %1025 }
 0x1c1   :  { %14165 = vst [vmem:[#allocation70_spill] sm:$0xff] %v9756_v45 }
 0x1c4   :  { %1406 = vperm.xlu2 %8862, %v9412_v52  }
 0x1c5   :  { %1346 = vperm.xlu0 %8861, %v9758_v43   ;;  %v9780_v43 = vld [vmem:[#allocation2 + $0x7a] sm:$0xff] }
 0x1c6   :  { %v9764_v41 = vpop.permute.xlu2 %1090  ;;  %1351 = vperm.xlu1 %8863, %v9760_v35   ;;  %14172 = vst [vmem:[#allocation77_spill] sm:$0xff] %v9780_v43  ;;  %v185_v35 = vld [vmem:[%s14052_s0 + $0x50] sm:$0xff] }
 0x1c7   :  { %v9767_v46 = vpop.permute.xlu0 %1035  ;;  %250 = vst.msk [vmem:[#allocation2 + $0x91] sm:$0xff] %vm65_vm0, %v185_v35 }
 0x1c8   :  { %v9769_v57 = vpop.permute.xlu1 %1040 }
 0x1c9   :  { %14168 = vst [vmem:[#allocation73_spill] sm:$0xff] %v9769_v57 }
 0x1cc   :  { %1421 = vperm.xlu2 %8862, %v9421_v56  }
 0x1cd   :  { %1411 = vperm.xlu0 %8861, %v9414_v53   ;;  %v186_v53 = vld [vmem:[%s14052_s0 + $0x58] sm:$0xff] }
 0x1ce   :  { %v9773_v38 = vpop.permute.xlu2 %1156  ;;  %1416 = vperm.xlu1 %8863, %v9410_v51   ;;  %251 = vst.msk [vmem:[#allocation2 + $0x99] sm:$0xff] %vm65_vm0, %v186_v53 }
 0x1cf   :  { %14169 = vst [vmem:[#allocation74_spill] sm:$0xff] %v9773_v38  ;;  %v9776_v45 = vpop.permute.xlu0 %1050 }
 0x1d0   :  { %14170 = vst [vmem:[#allocation75_spill] sm:$0xff] %v9776_v45  ;;  %v9778_v52 = vpop.permute.xlu1 %1055 }
 0x1d1   :  { %14171 = vst [vmem:[#allocation76_spill] sm:$0xff] %v9778_v52  ;;  %v9799_v52 = vld [vmem:[#allocation2 + $0x82] sm:$0xff] }
 0x1d2   :  { %14176 = vst [vmem:[#allocation81_spill] sm:$0xff] %v9799_v52 }
 0x1d4   :  { %1436 = vperm.xlu2 %8862, %v9780_v43  }
 0x1d5   :  { %1426 = vperm.xlu0 %8861, %v9596_v34   ;;  %v187_v34 = vld [vmem:[%s14052_s0 + $0x60] sm:$0xff] }
 0x1d6   :  { %v9791_v51 = vpop.permute.xlu2 %1171  ;;  %1431 = vperm.xlu1 %8863, %v9607_v7   ;;  %252 = vst.msk [vmem:[#allocation2 + $0xa9] sm:$0xff] %vm65_vm0, %v187_v34 }
 0x1d7   :  { %14173 = vst [vmem:[#allocation78_spill] sm:$0xff] %v9791_v51  ;;  %v9795_v56 = vpop.permute.xlu0 %1065  ;;  %v14208_v51 = vld [vmem:[#allocation27_spill] sm:$0xff] }
 0x1d8   :  { %14174 = vst [vmem:[#allocation79_spill] sm:$0xff] %v9795_v56  ;;  %v9797_v43 = vpop.permute.xlu1 %1070 }
 0x1d9   :  { %14175 = vst [vmem:[#allocation80_spill] sm:$0xff] %v9797_v43 }
 0x1dc   :  { %1451 = vperm.xlu2 %8862, %v9451_v5   ;;  %v188_v5 = vld [vmem:[%s14052_s0 + $0x68] sm:$0xff] }
 0x1dd   :  { %1441 = vperm.xlu0 %8861, %v9799_v52   ;;  %253 = vst.msk [vmem:[#allocation2 + $0xb1] sm:$0xff] %vm65_vm0, %v188_v5  ;;  %v218_v5 = vld [vmem:[%s14052_s0 + $0x158] sm:$0xff] }
 0x1de   :  { %v9807_v35 = vpop.permute.xlu2 %1186  ;;  %1446 = vperm.xlu1 %8863, %v9430_v60   ;;  %283 = vst.msk [vmem:[#allocation2 + $0x249] sm:$0xff] %vm65_vm0, %v218_v5 }
 0x1df   :  { %14177 = vst [vmem:[#allocation82_spill] sm:$0xff] %v9807_v35  ;;  %v9810_v7 = vpop.permute.xlu0 %1080  ;;  %v219_v35 = vld [vmem:[%s14052_s0 + $0x160] sm:$0xff] }
 0x1e0   :  { %14178 = vst [vmem:[#allocation83_spill] sm:$0xff] %v9810_v7  ;;  %v9812_v53 = vpop.permute.xlu1 %1085  ;;  %v1402_v7 = vld [vmem:[#allocation2 + $0x232] sm:$0xff] }
 0x1e1   :  { %14179 = vst [vmem:[#allocation84_spill] sm:$0xff] %v9812_v53  ;;  %v1401_v53 = vld [vmem:[#allocation2 + $0x22a] sm:$0xff] }
 0x1e2   :  { %284 = vst.msk [vmem:[#allocation2 + $0x259] sm:$0xff] %vm65_vm0, %v219_v35 }
 0x1e4   :  { %1466 = vperm.xlu2 %8862, %v9637_v42   ;;  %v217_v42 = vld [vmem:[%s14052_s0 + $0x150] sm:$0xff] }
 0x1e5   :  { %1456 = vperm.xlu0 %8861, %v9453_v6   ;;  %282 = vst.msk [vmem:[#allocation2 + $0x241] sm:$0xff] %vm65_vm0, %v217_v42 }
 0x1e6   :  { %v9820_v52 = vpop.permute.xlu2 %1201  ;;  %1461 = vperm.xlu1 %8863, %v9449_v4  }
 0x1e7   :  { %14180 = vst [vmem:[#allocation85_spill] sm:$0xff] %v9820_v52  ;;  %v9823_v34 = vpop.permute.xlu0 %1146  ;;  %v14203_v52 = vld [vmem:[#allocation23_spill] sm:$0xff] }
 0x1e8   :  { %14181 = vst [vmem:[#allocation86_spill] sm:$0xff] %v9823_v34  ;;  %v9825_v60 = vpop.permute.xlu1 %1151 }
 0x1e9   :  { %14182 = vst [vmem:[#allocation87_spill] sm:$0xff] %v9825_v60 }
 0x1ec   :  { %1481 = vperm.xlu2 %8862, %v1402_v7  }
 0x1ed   :  { %1471 = vperm.xlu0 %8861, %v9635_v14   ;;  %v220_v14 = vld [vmem:[%s14052_s0 + $0x168] sm:$0xff] }
 0x1ee   :  { %v9835_v4 = vpop.permute.xlu2 %1216  ;;  %1476 = vperm.xlu1 %8863, %v1401_v53   ;;  %285 = vst.msk [vmem:[#allocation2 + $0x261] sm:$0xff] %vm65_vm0, %v220_v14  ;;  %v8864_v14 = vld [vmem:[%s14053_s1] ss:$0 sm:$0xff] }
 0x1ef   :  { %14183 = vst [vmem:[#allocation88_spill] sm:$0xff] %v9835_v4  ;;  %v9838_v6 = vpop.permute.xlu0 %1161 }
 0x1f0   :  { %14184 = vst [vmem:[#allocation89_spill] sm:$0xff] %v9838_v6  ;;  %v9840_v7 = vpop.permute.xlu1 %1166 }
 0x1f1   :  { %14185 = vst [vmem:[#allocation90_spill] sm:$0xff] %v9840_v7  ;;  %v1923_v7 = vld [vmem:[#allocation2 + $0x98] sm:$0xff] }
 0x1f4   :  { %1947 = vperm.xlu2 %8862, %v9674_v50   ;;  %v1922_v50 = vld [vmem:[#allocation2 + $0x90] sm:$0xff] }
 0x1f5   :  { %1937 = vperm.xlu0 %8861, %v9490_v24  }
 0x1f6   :  { %v9852_v35 = vpop.permute.xlu2 %1281  ;;  %1942 = vperm.xlu1 %8863, %v9492_v29   ;;  %v8865_v29 = vld [vmem:[%s14053_s1 + $0x1] ss:$0 sm:$0xff] }
 0x1f7   :  { %14186 = vst [vmem:[#allocation91_spill] sm:$0xff] %v9852_v35  ;;  %v9855_v53 = vpop.permute.xlu0 %1176  ;;  %v1925_v35 = vld [vmem:[#allocation2 + $0xb0] sm:$0xff]  ;;  %v588_v45 = vmul.f32 %v8865_v29, %v14208_v51  ;;  %v9950_v51 = vld [vmem:[%s14053_s1 + $0x3] ss:$0 sm:$0xff] }
 0x1f8   :  { %14187 = vst [vmem:[#allocation92_spill] sm:$0xff] %v9855_v53  ;;  %v9857_v42 = vpop.permute.xlu1 %1181  ;;  %v581_v53 = vmul.f32 %v8865_v29, %v9496_v10  ;;  %v584_v10 = vmul.f32 %v8865_v29, %v9505_v40  ;;  %v457_v40 = vmul.f32 %v8864_v14, %v9501_v39  ;;  %v14200_v39 = vld [vmem:[#allocation18_spill] sm:$0xff] }
 0x1f9   :  { %14188 = vst [vmem:[#allocation93_spill] sm:$0xff] %v9857_v42  ;;  %v1924_v42 = vld [vmem:[#allocation2 + $0xa8] sm:$0xff] }
 0x1fc   :  { %1962 = vperm.xlu2 %8862, %v1923_v7   ;;  %v575_v7 = vmul.f32 %v8865_v29, %v9474_v15  ;;  %v445_v15 = vmul.f32 %v8864_v14, %v9460_v11 }
 0x1fd   :  { %1952 = vperm.xlu0 %8861, %v9676_v33   ;;  %v452_v33 = vmul.f32 %v8864_v14, %v9404_v49  ;;  %v455_v49 = vmul.f32 %v8864_v14, %v9446_v3 }
 0x1fe   :  { %v9860_v5 = vpop.permute.xlu2 %1296  ;;  %1957 = vperm.xlu1 %8863, %v1922_v50   ;;  %v578_v50 = vmul.f32 %v8865_v29, %v9483_v18  ;;  %v447_v18 = vmul.f32 %v8864_v14, %v9466_v13  ;;  %v9899_v11 = vadd.f32 %v575_v7, %v445_v15  ;;  %v14195_v7 = vld [vmem:[#allocation16_spill] sm:$0xff] }
 0x1ff   :  { %14189 = vst [vmem:[#allocation94_spill] sm:$0xff] %v9860_v5  ;;  %v9862_v6 = vpop.permute.xlu0 %1191  ;;  %v446_v5 = vmul.f32 %v8864_v14, %v9442_v2  ;;  %v451_v2 = vmul.f32 %v8864_v14, %v9479_v17  ;;  %v456_v17 = vmul.f32 %v8864_v14, %v9499_v31  ;;  %v577_v15 = vmul.f32 %v8865_v29, %v14195_v7  ;;  %v14199_v31 = vld [vmem:[#allocation22_spill] sm:$0xff] }
 0x200   :  { %14190 = vst [vmem:[#allocation95_spill] sm:$0xff] %v9862_v6  ;;  %v9864_v24 = vpop.permute.xlu1 %1196  ;;  %v448_v6 = vmul.f32 %v8864_v14, %v9417_v54  ;;  %v458_v54 = vmul.f32 %v8864_v14, %v9463_v12  ;;  %v454_v12 = vmul.f32 %v8864_v14, %v9488_v8  ;;  %v583_v34 = vmul.f32 %v8865_v29, %v14199_v31  ;;  %v14206_v31 = vld [vmem:[#allocation26_spill] sm:$0xff] }
 0x201   :  { %14191 = vst [vmem:[#allocation96_spill] sm:$0xff] %v9864_v24  ;;  %v444_v24 = vmul.f32 %v8864_v14, %v9434_v62  ;;  %v450_v62 = vmul.f32 %v8864_v14, %v9477_v16  ;;  %v9905_v16 = vadd.f32 %v581_v53, %v451_v2  ;;  %v14198_v53 = vld [vmem:[#allocation17_spill] sm:$0xff] }
 0x202   :  { %v9901_v13 = vadd.f32 %v578_v50, %v448_v6  ;;  %v14196_v6 = vld [vmem:[#allocation19_spill] sm:$0xff]  ;;  %v9914_v60 = vadd.f32 %v584_v10, %v454_v12 }
 0x203   :  { %v580_v50 = vmul.f32 %v8865_v29, %v14196_v6  ;;  %v14204_v6 = vld [vmem:[#allocation24_spill] sm:$0xff] }
 0x204   :  { %1977 = vperm.xlu2 %8862, %v9512_v48   ;;  %v449_v48 = vmul.f32 %v8864_v14, %v9428_v59  ;;  %v9895_v59 = vld [vmem:[%s14053_s1 + $0x2] ss:$0 sm:$0xff] }
 0x205   :  { %1967 = vperm.xlu0 %8861, %v1924_v42   ;;  %v704_v2 = vmul.f32 %v9895_v59, %v14198_v53  ;;  %v710_v10 = vmul.f32 %v9895_v59, %v14203_v52  ;;  %v14205_v53 = vld [vmem:[#allocation25_spill] sm:$0xff] }
 0x206   :  { %v9880_v4 = vpop.permute.xlu2 %1311  ;;  %1972 = vperm.xlu1 %8863, %v1925_v35   ;;  %v453_v35 = vmul.f32 %v8864_v14, %v9486_v19  ;;  %v14197_v19 = vld [vmem:[#allocation15_spill] sm:$0xff]  ;;  %v586_v43 = vmul.f32 %v8865_v29, %v14205_v53 }
 0x207   :  { %14192 = vst [vmem:[#allocation97_spill] sm:$0xff] %v9880_v4  ;;  %v9886_v42 = vpop.permute.xlu0 %1206  ;;  %v459_v4 = vmul.f32 %v8864_v14, %v9508_v44  ;;  %v576_v8 = vmul.f32 %v8865_v29, %v14197_v19  ;;  %v14201_v44 = vld [vmem:[#allocation20_spill] sm:$0xff]  ;;  %v14202_v14 = vld [vmem:[#allocation21_spill] sm:$0xff]  ;;  %v585_v19 = vmul.f32 %v8865_v29, %v14204_v6 }
 0x208   :  { %14193 = vst [vmem:[#allocation98_spill] sm:$0xff] %v9886_v42  ;;  %v9897_v3 = vpop.permute.xlu1 %1211  ;;  %v574_v42 = vmul.f32 %v8865_v29, %v9510_v25  ;;  %v579_v25 = vmul.f32 %v8865_v29, %v14200_v39  ;;  %v582_v7 = vmul.f32 %v8865_v29, %v14202_v14  ;;  %v596_v14 = vadd.f32 %v580_v50, %v450_v62  ;;  %v14209_v6 = vld [vmem:[#allocation28_spill] sm:$0xff] }
 0x209   :  { %14194 = vst [vmem:[#allocation99_spill] sm:$0xff] %v9897_v3  ;;  %v587_v3 = vmul.f32 %v8865_v29, %v9516_v55  ;;  %v707_v55 = vmul.f32 %v9895_v59, %v14201_v44  ;;  %v593_v44 = vadd.f32 %v577_v15, %v447_v18  ;;  %v589_v53 = vmul.f32 %v8865_v29, %v14209_v6  ;;  %v1932_v18 = vld [vmem:[#allocation2 + $0x258] sm:$0xff]  ;;  %v14212_v15 = vld [vmem:[#allocation31_spill] sm:$0xff] }
 0x20a   :  { %v590_v12 = vadd.f32 %v574_v42, %v444_v24  ;;  %v599_v42 = vadd.f32 %v583_v34, %v453_v35  ;;  %v602_v62 = vadd.f32 %v586_v43, %v456_v17  ;;  %v14210_v34 = vld [vmem:[#allocation29_spill] sm:$0xff]  ;;  %v1930_v35 = vld [vmem:[#allocation2 + $0x240] sm:$0xff]  ;;  %v706_v50 = vmul.f32 %v9895_v59, %v14212_v15  ;;  %v14223_v15 = vld [vmem:[#allocation44_spill] sm:$0xff] }
 0x20b   :  { %v603_v39 = vadd.f32 %v587_v3, %v457_v40  ;;  %v9943_v57 = vadd.f32 %v707_v55, %v593_v44  ;;  %v716_v29 = vmul.f32 %v9895_v59, %v14210_v34  ;;  %v14211_v40 = vld [vmem:[#allocation30_spill] sm:$0xff]  ;;  %v605_v55 = vadd.f32 %v589_v53, %v459_v4  ;;  %v14215_v17 = vld [vmem:[#allocation35_spill] sm:$0xff]  ;;  %v14219_v44 = vld [vmem:[#allocation40_spill] sm:$0xff] }
 0x20c   :  { %1992 = vperm.xlu2 %8862, %v9707_v9   ;;  %v713_v9 = vmul.f32 %v9895_v59, %v14206_v31  ;;  %v9938_v24 = vadd.f32 %v704_v2, %v590_v12  ;;  %v595_v31 = vadd.f32 %v579_v25, %v449_v48  ;;  %v604_v48 = vadd.f32 %v588_v45, %v458_v54  ;;  %v1931_v25 = vld [vmem:[#allocation2 + $0x248] sm:$0xff]  ;;  %v14217_v54 = vld [vmem:[#allocation37_spill] sm:$0xff]  ;;  %v14221_v53 = vld [vmem:[#allocation42_spill] sm:$0xff] }
 0x20d   :  { %1982 = vperm.xlu0 %8861, %v9523_v58   ;;  %v592_v58 = vadd.f32 %v576_v8, %v446_v5  ;;  %v601_v5 = vadd.f32 %v585_v19, %v455_v49  ;;  %v14213_v8 = vld [vmem:[#allocation36_spill] sm:$0xff]  ;;  %v14214_v49 = vld [vmem:[#allocation34_spill] sm:$0xff]  ;;  %v836_v12 = vmul.f32 %v9950_v51, %v14217_v54  ;;  %v14220_v4 = vld [vmem:[#allocation41_spill] sm:$0xff]  ;;  %v9976_v6 = vadd.f32 %v716_v29, %v602_v62 }
 0x20e   :  { %v9932_v56 = vpop.permute.xlu2 %1326  ;;  %1987 = vperm.xlu1 %8863, %v9696_v63   ;;  %v9945_v63 = vadd.f32 %v710_v10, %v596_v14  ;;  %v9952_v3 = vadd.f32 %v713_v9, %v599_v42  ;;  %v709_v2 = vmul.f32 %v9895_v59, %v14213_v8  ;;  %v719_v43 = vmul.f32 %v9895_v59, %v14214_v49  ;;  %v14216_v10 = vld [vmem:[#allocation39_spill] sm:$0xff]  ;;  %v14218_v19 = vld [vmem:[#allocation38_spill] sm:$0xff] }
 0x20f   :  { %14207 = vst [vmem:[#allocation16_spill] sm:$0xff] %v9932_v56  ;;  %v9936_v52 = vpop.permute.xlu0 %1221  ;;  %v598_v56 = vadd.f32 %v582_v7, %v452_v33  ;;  %v705_v33 = vmul.f32 %v9895_v59, %v14211_v40  ;;  %v708_v7 = vmul.f32 %v9895_v59, %v14215_v17  ;;  %v712_v45 = vmul.f32 %v9895_v59, %v14216_v10  ;;  %v14222_v40 = vld [vmem:[#allocation43_spill] sm:$0xff] }
 0x210   :  { %v9941_v38 = vpop.permute.xlu1 %1276  ;;  %v711_v9 = vmul.f32 %v9895_v59, %v14218_v19  ;;  %v839_v14 = vmul.f32 %v9950_v51, %v14219_v44  ;;  %v714_v42 = vmul.f32 %v9895_v59, %v14220_v4  ;;  %v715_v34 = vmul.f32 %v9895_v59, %v14221_v53  ;;  %v14224_v19 = vld [vmem:[#allocation45_spill] sm:$0xff]  ;;  %v14225_v53 = vld [vmem:[#allocation46_spill] sm:$0xff] }
 0x211   :  { %v717_v8 = vmul.f32 %v9895_v59, %v14223_v15  ;;  %v721_v17 = vadd.f32 %v705_v33, %v9899_v11  ;;  %v722_v10 = vadd.f32 %v706_v50, %v592_v58  ;;  %v725_v54 = vadd.f32 %v709_v2, %v595_v31  ;;  %v14226_v2 = vld [vmem:[#allocation48_spill] sm:$0xff] }
 0x212   :  { %v718_v62 = vmul.f32 %v9895_v59, %v14224_v19  ;;  %v724_v44 = vadd.f32 %v708_v7, %v9901_v13  ;;  %v728_v4 = vadd.f32 %v712_v45, %v598_v56  ;;  %v727_v59 = vadd.f32 %v711_v9, %v9905_v16  ;;  %v14227_v45 = vld [vmem:[#allocation47_spill] sm:$0xff] }
 0x213   :  { %v10001_v58 = vadd.f32 %v836_v12, %v722_v10  ;;  %v10004_v31 = vadd.f32 %v839_v14, %v725_v54  ;;  %v730_v33 = vadd.f32 %v714_v42, %v9914_v60  ;;  %v731_v13 = vadd.f32 %v715_v34, %v601_v5  ;;  %v14228_v12 = vld [vmem:[#allocation49_spill] sm:$0xff]  ;;  %v14229_v60 = vld [vmem:[#allocation50_spill] sm:$0xff]  ;;  %v14231_v42 = vld [vmem:[#allocation52_spill] sm:$0xff] }
 0x214   :  { %2007 = vperm.xlu2 %8862, %v1932_v18   ;;  %v842_v18 = vmul.f32 %v9950_v51, %v14222_v40  ;;  %v845_v40 = vmul.f32 %v9950_v51, %v14225_v53  ;;  %v733_v50 = vadd.f32 %v717_v8, %v603_v39  ;;  %v734_v7 = vadd.f32 %v718_v62, %v604_v48  ;;  %v14230_v39 = vld [vmem:[#allocation51_spill] sm:$0xff] }
 0x215   :  { %1997 = vperm.xlu0 %8861, %v1930_v35   ;;  %v735_v35 = vadd.f32 %v719_v43, %v605_v55  ;;  %v835_v55 = vmul.f32 %v9950_v51, %v14226_v2  ;;  %v1933_v43 = vld [vmem:[#allocation2 + $0x260] sm:$0xff]  ;;  %v834_v15 = vmul.f32 %v9950_v51, %v14227_v45  ;;  %v848_v10 = vmul.f32 %v9950_v51, %v14228_v12 }
 0x216   :  { %v9984_v49 = vpop.permute.xlu2 %1341  ;;  %2002 = vperm.xlu1 %8863, %v1931_v25   ;;  %v9997_v25 = vld [vmem:[%s14053_s1 + $0x4] ss:$0 sm:$0xff]  ;;  %v10007_v56 = vadd.f32 %v842_v18, %v728_v4  ;;  %v838_v16 = vmul.f32 %v9950_v51, %v9650_v61  ;;  %v10017_v9 = vadd.f32 %v845_v40, %v731_v13  ;;  %v837_v5 = vmul.f32 %v9950_v51, %v14229_v60  ;;  %v14232_v18 = vld [vmem:[#allocation53_spill] sm:$0xff]  ;;  %v14233_v61 = vld [vmem:[#allocation54_spill] sm:$0xff] }
 0x217   :  { %v9989_v29 = vpop.permute.xlu0 %1286  ;;  %v965_v14 = vmul.f32 %v9997_v25, %v14230_v39  ;;  %v841_v48 = vmul.f32 %v9950_v51, %v9663_v47  ;;  %v840_v34 = vmul.f32 %v9950_v51, %v14231_v42  ;;  %v968_v8 = vmul.f32 %v9997_v25, %v14232_v18  ;;  %v14234_v19 = vld [vmem:[#allocation55_spill] sm:$0xff]  ;;  %v14235_v47 = vld [vmem:[#allocation56_spill] sm:$0xff] }
 0x218   :  { %v9999_v11 = vpop.permute.xlu1 %1291  ;;  %v843_v54 = vmul.f32 %v9950_v51, %v14233_v61  ;;  %v844_v62 = vmul.f32 %v9950_v51, %v14234_v19  ;;  %v851_v4 = vadd.f32 %v835_v55, %v721_v17  ;;  %v971_v53 = vmul.f32 %v9997_v25, %v9680_v20  ;;  %v14239_v18 = vld [vmem:[#allocation60_spill] sm:$0xff] }
 0x219   :  { %v847_v40 = vmul.f32 %v9950_v51, %v9685_v21  ;;  %v850_v2 = vadd.f32 %v834_v15, %v9938_v24  ;;  %v10044_v45 = vadd.f32 %v848_v10, %v734_v7  ;;  %v854_v12 = vadd.f32 %v838_v16, %v724_v44  ;;  %v14237_v21 = vld [vmem:[#allocation58_spill] sm:$0xff]  ;;  %v2052_v10 = vld [vmem:[#allocation2 + $0x91] sm:$0xff] }
 0x21a   :  { %v853_v20 = vadd.f32 %v837_v5, %v9943_v57  ;;  %v10051_v60 = vadd.f32 %v965_v14, %v851_v4  ;;  %v857_v39 = vadd.f32 %v841_v48, %v727_v59  ;;  %v849_v42 = vmul.f32 %v9950_v51, %v14237_v21  ;;  %v14238_v5 = vld [vmem:[#allocation59_spill] sm:$0xff]  ;;  %v14248_v21 = vld [vmem:[#allocation68_spill] sm:$0xff] }
 0x21b   :  { %v856_v44 = vadd.f32 %v840_v34, %v9945_v63  ;;  %v10063_v7 = vadd.f32 %v968_v8, %v854_v12  ;;  %v859_v15 = vadd.f32 %v843_v54, %v9952_v3  ;;  %v860_v57 = vadd.f32 %v844_v62, %v730_v33  ;;  %v14240_v63 = vld [vmem:[#allocation61_spill] sm:$0xff]  ;;  %v14241_v8 = vld [vmem:[#allocation62_spill] sm:$0xff]  ;;  %v14242_v54 = vld [vmem:[#allocation63_spill] sm:$0xff] }
 0x21c   :  { %2072 = vperm.xlu2 %8862, %v9543_v23   ;;  %v846_v23 = vmul.f32 %v9950_v51, %v14235_v47  ;;  %v10066_v16 = vadd.f32 %v971_v53, %v857_v39  ;;  %v863_v51 = vadd.f32 %v847_v40, %v733_v50  ;;  %v964_v14 = vmul.f32 %v9997_v25, %v14238_v5  ;;  %v14243_v62 = vld [vmem:[#allocation64_spill] sm:$0xff]  ;;  %v14244_v47 = vld [vmem:[#allocation65_spill] sm:$0xff]  ;;  %v14245_v40 = vld [vmem:[#allocation67_spill] sm:$0xff] }
 0x21d   :  { %2012 = vperm.xlu0 %8861, %v1933_v43   ;;  %v14236_v43 = vld [vmem:[#allocation57_spill] sm:$0xff]  ;;  %v977_v61 = vmul.f32 %v9997_v25, %v14239_v18  ;;  %v966_v34 = vmul.f32 %v9997_v25, %v14240_v63  ;;  %v967_v3 = vmul.f32 %v9997_v25, %v14241_v8  ;;  %v865_v33 = vadd.f32 %v849_v42, %v735_v35 }
 0x21e   :  { %v10040_v13 = vpop.permute.xlu2 %1406  ;;  %2067 = vperm.xlu1 %8863, %v9545_v0   ;;  %v974_v17 = vmul.f32 %v9997_v25, %v14236_v43  ;;  %v10058_v0 = vld [vmem:[%s14053_s1 + $0x5] ss:$0 sm:$0xff]  ;;  %v862_v59 = vadd.f32 %v846_v23, %v9976_v6  ;;  %v969_v6 = vmul.f32 %v9997_v25, %v9714_v27  ;;  %v970_v50 = vmul.f32 %v9997_v25, %v9716_v1  ;;  %v14246_v43 = vld [vmem:[#allocation66_spill] sm:$0xff]  ;;  %v14249_v5 = vld [vmem:[#allocation69_spill] sm:$0xff] }
 0x21f   :  { %v10048_v55 = vpop.permute.xlu0 %1301  ;;  %v1094_v19 = vmul.f32 %v10058_v0, %v14242_v54  ;;  %v1097_v4 = vmul.f32 %v10058_v0, %v14243_v62  ;;  %v972_v53 = vmul.f32 %v9997_v25, %v9723_v28  ;;  %v973_v23 = vmul.f32 %v9997_v25, %v14244_v47  ;;  %v14250_v54 = vld [vmem:[#allocation70_spill] sm:$0xff]  ;;  %v14253_v62 = vld [vmem:[#allocation75_spill] sm:$0xff]  ;;  %v14254_v47 = vld [vmem:[#allocation76_spill] sm:$0xff] }
 0x220   :  { %v10060_v24 = vpop.permute.xlu1 %1306  ;;  %v10071_v48 = vadd.f32 %v974_v17, %v860_v57  ;;  %v980_v35 = vadd.f32 %v964_v14, %v850_v2  ;;  %v1100_v27 = vmul.f32 %v10058_v0, %v14245_v40  ;;  %v975_v1 = vmul.f32 %v9997_v25, %v9736_v37 }
 0x221   :  { %v14247_v17 = vmov 0.0   ;;  %v10101_v28 = vadd.f32 %v977_v61, %v863_v51  ;;  %v982_v39 = vadd.f32 %v966_v34, %v10001_v58  ;;  %v976_v2 = vmul.f32 %v9997_v25, %v14248_v21 }
 0x222   :  { %307 = vst.msk [vmem:[#allocation3 + $0x8] sm:$0x3] %vm306_vm2, %v14247_v17  ;;  %v10110_v37 = vadd.f32 %v1094_v19, %v980_v35  ;;  %v985_v57 = vadd.f32 %v969_v6, %v10004_v31  ;;  %v1103_v51 = vmul.f32 %v10058_v0, %v14249_v5  ;;  %v989_v18 = vadd.f32 %v973_v23, %v859_v15  ;;  %v10127_v31 = vld [vmem:[%s14053_s1 + $0x6] ss:$0 sm:$0xff]  ;;  %v2054_v6 = vld [vmem:[#allocation2 + $0xa9] sm:$0xff] }
 0x223   :  { %309 = vst.msk [vmem:[#allocation3 + $0x18] sm:$0x3] %vm306_vm2, %v14247_v17  ;;  %v979_v61 = vmul.f32 %v9997_v25, %v9747_v22  ;;  %v991_v34 = vadd.f32 %v975_v1, %v10017_v9  ;;  %v1106_v15 = vmul.f32 %v10058_v0, %v9751_v32  ;;  %v2053_v22 = vld [vmem:[#allocation2 + $0x99] sm:$0xff]  ;;  %v992_v8 = vadd.f32 %v976_v2, %v862_v59  ;;  %v14256_v2 = vld [vmem:[#allocation79_spill] sm:$0xff]  ;;  %v14257_v5 = vld [vmem:[#allocation80_spill] sm:$0xff] }
 0x224   :  { %2087 = vperm.xlu2 %8862, %v2052_v10   ;;  %v986_v10 = vadd.f32 %v970_v50, %v856_v44  ;;  %311 = vst.msk [vmem:[#allocation3 + $0x28] sm:$0x3] %vm306_vm2, %v14247_v17  ;;  %v2055_v44 = vld [vmem:[#allocation2 + $0xb1] sm:$0xff]  ;;  %v1096_v19 = vmul.f32 %v10058_v0, %v14250_v54  ;;  %v1109_v9 = vmul.f32 %v10058_v0, %v9764_v41  ;;  %v14252_v50 = vld [vmem:[#allocation74_spill] sm:$0xff] }
 0x225   :  { %2077 = vperm.xlu0 %8861, %v9729_v26   ;;  %v983_v26 = vadd.f32 %v967_v3, %v853_v20  ;;  %v988_v20 = vadd.f32 %v972_v53, %v10007_v56  ;;  %313 = vst.msk [vmem:[#allocation3 + $0x38] sm:$0x3] %vm306_vm2, %v14247_v17  ;;  %v978_v56 = vmul.f32 %v9997_v25, %v9745_v36  ;;  %v14251_v25 = vld [vmem:[#allocation73_spill] sm:$0xff]  ;;  %v14255_v1 = vld [vmem:[#allocation78_spill] sm:$0xff] }
 0x226   :  { %v10096_v12 = vpop.permute.xlu2 %1421  ;;  %2082 = vperm.xlu1 %8863, %v14246_v43   ;;  %v10131_v63 = vadd.f32 %v1100_v27, %v986_v10  ;;  %315 = vst.msk [vmem:[#allocation3 + $0x48] sm:$0x3] %vm306_vm2, %v14247_v17  ;;  %v1095_v3 = vmul.f32 %v10058_v0, %v9754_v30  ;;  %v10148_v36 = vadd.f32 %v1103_v51, %v989_v18  ;;  %v14262_v54 = vld [vmem:[#allocation86_spill] sm:$0xff] }
 0x227   :  { %v10106_v42 = vpop.permute.xlu0 %1316  ;;  %v10119_v58 = vadd.f32 %v1097_v4, %v983_v26  ;;  %317 = vst.msk [vmem:[#allocation3 + $0x58] sm:$0x3] %vm306_vm2, %v14247_v17  ;;  %v1098_v32 = vmul.f32 %v10058_v0, %v9767_v46  ;;  %v1099_v59 = vmul.f32 %v10058_v0, %v14251_v25  ;;  %v995_v30 = vadd.f32 %v979_v61, %v865_v33  ;;  %v14258_v61 = vld [vmem:[#allocation82_spill] sm:$0xff]  ;;  %v14265_v25 = vld [vmem:[#allocation89_spill] sm:$0xff] }
 0x228   :  { %v10115_v14 = vpop.permute.xlu1 %1321  ;;  %319 = vst.msk [vmem:[#allocation3 + $0x68] sm:$0x3] %vm306_vm2, %v14247_v17  ;;  %v1227_v41 = vmul.f32 %v10127_v31, %v14252_v50  ;;  %v1101_v4 = vmul.f32 %v10058_v0, %v14253_v62  ;;  %v994_v46 = vadd.f32 %v978_v56, %v10044_v45  ;;  %v10163_v53 = vadd.f32 %v1106_v15, %v992_v8  ;;  %v14260_v15 = vld [vmem:[#allocation83_spill] sm:$0xff]  ;;  %v14261_v8 = vld [vmem:[#allocation85_spill] sm:$0xff]  ;;  %v14266_v50 = vld [vmem:[#allocation90_spill] sm:$0xff] }
 0x229   :  { %321 = vst.msk [vmem:[#allocation3 + $0x78] sm:$0x3] %vm306_vm2, %v14247_v17  ;;  %v1102_v23 = vmul.f32 %v10058_v0, %v14254_v47  ;;  %v1111_v33 = vadd.f32 %v1095_v3, %v10051_v60  ;;  %v1112_v40 = vadd.f32 %v1096_v19, %v982_v39  ;;  %v10172_v27 = vadd.f32 %v1109_v9, %v995_v30  ;;  %v14263_v9 = vld [vmem:[#allocation87_spill] sm:$0xff] }
 0x22a   :  { %323 = vst.msk [vmem:[#allocation3 + $0x88] sm:$0x3] %vm306_vm2, %v14247_v17  ;;  %v1230_v43 = vmul.f32 %v10127_v31, %v14255_v1  ;;  %v1114_v26 = vadd.f32 %v1098_v32, %v10063_v7  ;;  %v1115_v21 = vadd.f32 %v1099_v59, %v985_v57  ;;  %v1104_v10 = vmul.f32 %v10058_v0, %v14256_v2  ;;  %v14259_v7 = vld [vmem:[#allocation84_spill] sm:$0xff]  ;;  %v10222_v62 = vld [vmem:[%s14053_s1 + $0x7] ss:$0 sm:$0xff] }
 0x22b   :  { %325 = vst.msk [vmem:[#allocation3 + $0x98] sm:$0x3] %vm306_vm2, %v14247_v17  ;;  %v1105_v60 = vmul.f32 %v10058_v0, %v14257_v5  ;;  %v10189_v51 = vadd.f32 %v1227_v41, %v1112_v40  ;;  %v1117_v18 = vadd.f32 %v1101_v4, %v10066_v16  ;;  %v1108_v57 = vmul.f32 %v10058_v0, %v14259_v7  ;;  %v14264_v32 = vld [vmem:[#allocation88_spill] sm:$0xff]  ;;  %v14267_v4 = vld [vmem:[#allocation71_spill] sm:$0xff] }
 0x22c   :  { %2102 = vperm.xlu2 %8862, %v2055_v44   ;;  %327 = vst.msk [vmem:[#allocation3 + $0xa8] sm:$0x3] %vm306_vm2, %v14247_v17  ;;  %v1233_v44 = vmul.f32 %v10127_v31, %v14258_v61  ;;  %v1118_v56 = vadd.f32 %v1102_v23, %v988_v20  ;;  %v1236_v3 = vmul.f32 %v10127_v31, %v14261_v8  ;;  %v14268_v40 = vld [vmem:[#allocation92_spill] sm:$0xff]  ;;  %v14271_v7 = vld [vmem:[#allocation91_spill] sm:$0xff] }
 0x22d   :  { %2092 = vperm.xlu0 %8861, %v2053_v22   ;;  %329 = vst.msk [vmem:[#allocation3 + $0xb8] sm:$0x3] %vm306_vm2, %v14247_v17  ;;  %v1107_v22 = vmul.f32 %v10058_v0, %v14260_v15  ;;  %v1225_v19 = vmul.f32 %v10127_v31, %v14262_v54  ;;  %v10206_v16 = vadd.f32 %v1230_v43, %v1115_v21  ;;  %v14269_v1 = vld [vmem:[#allocation32_spill] sm:$0xff] }
 0x22e   :  { %v10167_v35 = vpop.permute.xlu2 %1436  ;;  %2097 = vperm.xlu1 %8863, %v2054_v6   ;;  %331 = vst.msk [vmem:[#allocation3 + $0xc8] sm:$0x3] %vm306_vm2, %v14247_v17  ;;  %v1226_v6 = vmul.f32 %v10127_v31, %v14263_v9  ;;  %v1239_v20 = vmul.f32 %v10127_v31, %v14264_v32  ;;  %v1228_v0 = vmul.f32 %v10127_v31, %v14265_v25  ;;  %v14277_v25 = vld [vmem:[#allocation98_spill] sm:$0xff] }
 0x22f   :  { %v10176_v45 = vpop.permute.xlu0 %1331  ;;  %333 = vst.msk [vmem:[#allocation3 + $0xd8] sm:$0x3] %vm306_vm2, %v14247_v17  ;;  %v1120_v59 = vadd.f32 %v1104_v10, %v10071_v48  ;;  %v1121_v30 = vadd.f32 %v1105_v60, %v991_v34  ;;  %v1229_v41 = vmul.f32 %v10127_v31, %v14266_v50  ;;  %v10227_v47 = vadd.f32 %v1233_v44, %v1118_v56  ;;  %v10234_v34 = vld [vmem:[%s14053_s1 + $0x8] ss:$0 sm:$0xff]  ;;  %v14270_v10 = vld [vmem:[#allocation33_spill] sm:$0xff]  ;;  %v14279_v50 = vld [vmem:[#allocation16_spill] sm:$0xff] }
 0x230   :  { %v10185_v39 = vpop.permute.xlu1 %1336  ;;  %335 = vst.msk [vmem:[#allocation3 + $0xe8] sm:$0x3] %vm306_vm2, %v14247_v17  ;;  %v1124_v23 = vadd.f32 %v1108_v57, %v994_v46  ;;  %v1231_v48 = vmul.f32 %v10127_v31, %v14268_v40  ;;  %v1123_v43 = vadd.f32 %v1107_v22, %v10101_v28  ;;  %v1241_v2 = vadd.f32 %v1225_v19, %v10110_v37  ;;  %v14272_v56 = vld [vmem:[#allocation93_spill] sm:$0xff]  ;;  %v2061_v19 = vld [vmem:[#allocation2 + $0x249] sm:$0xff] }
 0x231   :  { %337 = vst.msk [vmem:[#allocation3 + $0xf8] sm:$0x3] %vm306_vm2, %v14247_v17  ;;  %v10240_v21 = vadd.f32 %v1236_v3, %v1121_v30  ;;  %v1242_v5 = vadd.f32 %v1226_v6, %v1111_v33  ;;  %v1244_v61 = vadd.f32 %v1228_v0, %v10119_v58  ;;  %v1355_v44 = vmul.f32 %v10222_v62, %v9941_v38  ;;  %v14273_v58 = vld [vmem:[#allocation94_spill] sm:$0xff]  ;;  %v14274_v3 = vld [vmem:[#allocation96_spill] sm:$0xff]  ;;  %v14276_v6 = vld [vmem:[#allocation97_spill] sm:$0xff] }
 0x232   :  { %339 = vst.msk [vmem:[#allocation3 + $0x108] sm:$0x3] %vm306_vm2, %v14247_v17  ;;  %v10248_v60 = vadd.f32 %v1239_v20, %v1124_v23  ;;  %v1245_v37 = vadd.f32 %v1229_v41, %v1114_v26  ;;  %v1356_v57 = vmul.f32 %v10222_v62, %v14271_v7  ;;  %v1232_v15 = vmul.f32 %v10127_v31, %v14272_v56  ;;  %v2060_v23 = vld [vmem:[#allocation2 + $0x241] sm:$0xff]  ;;  %v10297_v56 = vld [vmem:[%s14054_s2] ss:$0 sm:$0xff] }
 0x233   :  { %341 = vst.msk [vmem:[#allocation3 + $0x118] sm:$0x3] %vm306_vm2, %v14247_v17  ;;  %v1358_v33 = vmul.f32 %v10222_v62, %v9999_v11  ;;  %v1247_v38 = vadd.f32 %v1231_v48, %v10131_v63  ;;  %v1359_v8 = vmul.f32 %v10222_v62, %v14273_v58  ;;  %v1235_v26 = vmul.f32 %v10127_v31, %v14274_v3  ;;  %v14275_v11 = vld [vmem:[#allocation95_spill] sm:$0xff] }
 0x234   :  { %2117 = vperm.xlu2 %8862, %v14267_v4   ;;  %343 = vst.msk [vmem:[#allocation3 + $0x128] sm:$0x3] %vm306_vm2, %v14247_v17  ;;  %v1485_v54 = vmul.f32 %v10234_v34, %v10040_v13  ;;  %v1234_v9 = vmul.f32 %v10127_v31, %v14275_v11  ;;  %v1362_v32 = vmul.f32 %v10222_v62, %v14276_v6  ;;  %v14278_v13 = vld [vmem:[#allocation99_spill] sm:$0xff]  ;;  %v2062_v11 = vld [vmem:[#allocation2 + $0x259] sm:$0xff] }
 0x235   :  { %2107 = vperm.xlu0 %8861, %v14269_v1   ;;  %345 = vst.msk [vmem:[#allocation3 + $0x138] sm:$0x3] %vm306_vm2, %v14247_v17  ;;  %v1361_v63 = vmul.f32 %v10222_v62, %v10060_v24  ;;  %v1488_v20 = vmul.f32 %v10234_v34, %v10096_v12  ;;  %v1237_v0 = vmul.f32 %v10127_v31, %v14277_v25 }
 0x236   :  { %v10243_v46 = vpop.permute.xlu2 %1451  ;;  %2112 = vperm.xlu1 %8863, %v14270_v10   ;;  %v1238_v30 = vmul.f32 %v10127_v31, %v14278_v13  ;;  %v1365_v41 = vmul.f32 %v10222_v62, %v14279_v50  ;;  %v1371_v4 = vadd.f32 %v1355_v44, %v1241_v2  ;;  %v1248_v40 = vadd.f32 %v1232_v15, %v1117_v18  ;;  %v14280_v44 = vld [vmem:[#allocation72_spill] sm:$0xff] }
 0x237   :  { %v10253_v28 = vpop.permute.xlu0 %1346  ;;  %v1357_v48 = vmul.f32 %v10222_v62, %v9989_v29  ;;  %v1374_v1 = vadd.f32 %v1358_v33, %v1244_v61  ;;  %v1491_v24 = vmul.f32 %v10234_v34, %v10167_v35  ;;  %v1372_v12 = vadd.f32 %v1356_v57, %v1242_v5  ;;  %310 = vst.msk [vmem:[#allocation3 + $0x20] sm:$0xff] %vm304_vm10, %v14247_v17 }
 0x238   :  { %v1352_v22 = vpop.permute.xlu1 %1351  ;;  %v10292_v10 = vadd.f32 %v1359_v8, %v1245_v37  ;;  %v1251_v7 = vadd.f32 %v1235_v26, %v1120_v59  ;;  %v1501_v2 = vadd.f32 %v1485_v54, %v1371_v4  ;;  %v1250_v18 = vadd.f32 %v1234_v9, %v10148_v36  ;;  %v2178_v54 = vld [vmem:[#allocation2 + $0x62] sm:$0xff]  ;;  %305 = vst.msk [vmem:[#allocation3] sm:$0xff] %vm304_vm10, %v14247_v17 }
 0x239   :  { %v10301_v29 = vadd.f32 %v1362_v32, %v1248_v40  ;;  %v1377_v61 = vadd.f32 %v1361_v63, %v1247_v38  ;;  %v1504_v15 = vadd.f32 %v1488_v20, %v1374_v1  ;;  %v1253_v5 = vadd.f32 %v1237_v0, %v10163_v53  ;;  %v2063_v32 = vld [vmem:[#allocation2 + $0x261] sm:$0xff]  ;;  %308 = vst.msk [vmem:[#allocation3 + $0x10] sm:$0xff] %vm304_vm10, %v14247_v17 }
 0x23a   :  { %v1254_v37 = vadd.f32 %v1238_v30, %v1123_v43  ;;  %v10304_v59 = vadd.f32 %v1365_v41, %v1251_v7  ;;  %v1240_v57 = vmul.f32 %v10127_v31, %v9936_v52  ;;  %v1368_v58 = vmul.f32 %v10222_v62, %v9984_v49  ;;  %312 = vst.msk [vmem:[#allocation3 + $0x30] sm:$0xff] %vm304_vm10, %v14247_v17 }
 0x23b   :  { %v1373_v36 = vadd.f32 %v1357_v48, %v10189_v51  ;;  %v1507_v8 = vadd.f32 %v1491_v24, %v1377_v61  ;;  %v1521_v26 = vadd.f32 %v10297_v56, %v1501_v2  ;;  %v1360_v53 = vmul.f32 %v10222_v62, %v10048_v55  ;;  %314 = vst.msk [vmem:[#allocation3 + $0x40] sm:$0xff] %vm304_vm10, %v14247_v17 }
 0x23c   :  { %2132 = vperm.xlu2 %8862, %v2061_v19   ;;  %v1363_v43 = vmul.f32 %v10222_v62, %v10106_v42  ;;  %v1524_v31 = vadd.f32 %v10297_v56, %v1504_v15  ;;  %v1364_v49 = vmul.f32 %v10222_v62, %v10115_v14  ;;  %v1366_v51 = vmul.f32 %v10222_v62, %v10176_v45 }
 0x23d   :  { %2122 = vperm.xlu0 %8861, %v14280_v44   ;;  %v1256_v9 = vadd.f32 %v1240_v57, %v10172_v27  ;;  %v1367_v55 = vmul.f32 %v10222_v62, %v10185_v39  ;;  %v1370_v42 = vmul.f32 %v10222_v62, %v1352_v22  ;;  %v10327_v63 = vadd.f32 %v1368_v58, %v1254_v37  ;;  %v2179_v37 = vld [vmem:[#allocation2 + $0x6a] sm:$0xff] }
 0x23e   :  { %v1467_v35 = vpop.permute.xlu2 %1466  ;;  %2127 = vperm.xlu1 %8863, %v2060_v23   ;;  %v10330_v20 = vadd.f32 %v10297_v56, %v1507_v8  ;;  %v1494_v14 = vmul.f32 %v10234_v34, %v10243_v46  ;;  %v1537_v25 = vmax.f32 %v1521_v26, 0.0  ;;  %v10336_v27 = vadd.f32 %v1360_v53, %v10206_v16  ;;  %316 = vst.msk [vmem:[#allocation3 + $0x50] sm:$0xff] %vm304_vm10, %v14247_v17 }
 0x23f   :  { %v1412_v33 = vpop.permute.xlu0 %1411  ;;  %v10339_v39 = vadd.f32 %v1363_v43, %v10227_v47  ;;  %v1540_v0 = vmax.f32 %v1524_v31, 0.0  ;;  %v1380_v13 = vadd.f32 %v1364_v49, %v1250_v18  ;;  %v10343_v30 = vadd.f32 %v1366_v51, %v10240_v21  ;;  %318 = vst.msk [vmem:[#allocation3 + $0x60] sm:$0xff] %vm304_vm10, %v14247_v17 }
 0x240   :  { %v1486_v38 = vmul.f32 %v10234_v34, %v1412_v33  ;;  %v1417_v3 = vpop.permute.xlu1 %1416  ;;  %v10345_v41 = vadd.f32 %v1367_v55, %v1253_v5  ;;  %v1386_v4 = vadd.f32 %v1370_v42, %v1256_v9  ;;  %v1543_v47 = vmax.f32 %v10330_v20, 0.0  ;;  %320 = vst.msk [vmem:[#allocation3 + $0x70] sm:$0xff] %vm304_vm10, %v14247_v17 }
 0x241   :  { %v1487_v52 = vmul.f32 %v10234_v34, %v1417_v3  ;;  %v10349_v48 = vadd.f32 %v1494_v14, %v1380_v13  ;;  %v10353_v1 = vmul.f32 %v10222_v62, %v10253_v28  ;;  %322 = vst.msk [vmem:[#allocation3 + $0x80] sm:$0xff] %vm304_vm10, %v14247_v17 }
 0x242   :  { %v1502_v19 = vadd.f32 %v1486_v38, %v1372_v12  ;;  %v10358_v12 = vmul.f32 %v10234_v34, %v1467_v35  ;;  %v14281_v38 = vld [vmem:[#allocation81_spill] sm:$0xff]  ;;  %324 = vst.msk [vmem:[#allocation3 + $0x90] sm:$0xff] %vm304_vm10, %v14247_v17 }
 0x243   :  { %v1503_v6 = vadd.f32 %v1487_v52, %v1373_v36  ;;  %326 = vst.msk [vmem:[#allocation3 + $0xa0] sm:$0xff] %vm304_vm10, %v14247_v17 }
 0x244   :  { %v1522_v45 = vadd.f32 %v10297_v56, %v1502_v19  ;;  %2197 = vperm.xlu2 %8862, %v2178_v54   ;;  %v14282_v19 = vld [vmem:[#allocation77_spill] sm:$0xff]  ;;  %328 = vst.msk [vmem:[#allocation3 + $0xb0] sm:$0xff] %vm304_vm10, %v14247_v17 }
 0x245   :  { %2137 = vperm.xlu0 %8861, %v2062_v11   ;;  %v1523_v22 = vadd.f32 %v10297_v56, %v1503_v6  ;;  %330 = vst.msk [vmem:[#allocation3 + $0xc0] sm:$0xff] %vm304_vm10, %v14247_v17 }
 0x246   :  { %v1538_v50 = vmax.f32 %v1522_v45, 0.0  ;;  %v1482_v46 = vpop.permute.xlu2 %1481  ;;  %2142 = vperm.xlu1 %8863, %v2063_v32   ;;  %332 = vst.msk [vmem:[#allocation3 + $0xd0] sm:$0xff] %vm304_vm10, %v14247_v17 }
 0x247   :  { %v1539_v23 = vmax.f32 %v1523_v22, 0.0  ;;  %v1500_v16 = vmul.f32 %v10234_v34, %v1482_v46  ;;  %v1427_v40 = vpop.permute.xlu0 %1426  ;;  %v10379_v46 = vld [vmem:[#allocation2 + $0xaa] sm:$0xff]  ;;  %334 = vst.msk [vmem:[#allocation3 + $0xe0] sm:$0xff] %vm304_vm10, %v14247_v17 }
 0x248   :  { %v1554_v21 = vmax.f32 %v1538_v50, %v1540_v0  ;;  %v10355_v24 = vpop.permute.xlu1 %1431  ;;  %v10363_v44 = vmul.f32 %v10234_v34, %v1427_v40  ;;  %336 = vst.msk [vmem:[#allocation3 + $0xf0] sm:$0xff] %vm304_vm10, %v14247_v17 }
 0x249   :  { %v1553_v7 = vmax.f32 %v1537_v25, %v1539_v23  ;;  %v10360_v2 = vadd.f32 %v1500_v16, %v1386_v4  ;;  %338 = vst.msk [vmem:[#allocation3 + $0x100] sm:$0xff] %vm304_vm10, %v14247_v17 }
 0x24a   :  { %v1572_v18 = vrot.slane %v1554_v21, 2  ;;  %v1573_v61 = vrot.slane %v1554_v21, 4  ;;  %v1574_v15 = vrot.slane %v1554_v21, 6  ;;  %v1645_v5 = vsel %vm306_vm2, %v1554_v21, -inf  ;;  %340 = vst.msk [vmem:[#allocation3 + $0x110] sm:$0xff] %vm304_vm10, %v14247_v17 }
 0x24b   :  { %v1646_v62 = vrot.slane %v1645_v5, 4  ;;  %v1569_v28 = vrot.slane %v1553_v7, 2  ;;  %v1570_v57 = vrot.slane %v1553_v7, 4  ;;  %v1571_v33 = vrot.slane %v1553_v7, 6  ;;  %342 = vst.msk [vmem:[#allocation3 + $0x120] sm:$0xff] %vm304_vm10, %v14247_v17 }
 0x24c   :  { %v1652_v58 = vsel %vm306_vm2, %v1572_v18, -inf  ;;  %v1659_v35 = vsel %vm306_vm2, %v1573_v61, -inf  ;;  %v1666_v36 = vsel %vm306_vm2, %v1574_v15, -inf  ;;  %v1617_v8 = vsel %vm306_vm2, %v1553_v7, -inf  ;;  %2212 = vperm.xlu2 %8862, %v14281_v38   ;;  %v10381_v7 = vld [vmem:[#allocation2 + $0x92] sm:$0xff]  ;;  %344 = vst.msk [vmem:[#allocation3 + $0x130] sm:$0xff] %vm304_vm10, %v14247_v17 }
 0x24d   :  { %v1647_v3 = vmax.f32 %v1645_v5, %v1646_v62  ;;  %v1653_v26 = vrot.slane %v1652_v58, 4  ;;  %v1660_v53 = vrot.slane %v1659_v35, 4  ;;  %v1667_v43 = vrot.slane %v1666_v36, 4  ;;  %2202 = vperm.xlu0 %8861, %v2179_v37   ;;  %v10383_v37 = vld [vmem:[#allocation2 + $0x9a] sm:$0xff] }
 0x24e   :  { %v1618_v54 = vrot.slane %v1617_v8, 4  ;;  %v1624_v52 = vsel %vm306_vm2, %v1569_v28, -inf  ;;  %v1631_v31 = vsel %vm306_vm2, %v1570_v57, -inf  ;;  %v1638_v49 = vsel %vm306_vm2, %v1571_v33, -inf  ;;  %v10374_v51 = vpop.permute.xlu2 %1947  ;;  %2207 = vperm.xlu1 %8863, %v14282_v19  }
 0x24f   :  { %v1648_v11 = vrot.slane %v1647_v3, 2  ;;  %v1654_v9 = vmax.f32 %v1652_v58, %v1653_v26  ;;  %v1661_v55 = vmax.f32 %v1659_v35, %v1660_v53  ;;  %v1668_v42 = vmax.f32 %v1666_v36, %v1667_v43  ;;  %v10377_v6 = vpop.permute.xlu0 %1441 }
 0x250   :  { %v1619_v32 = vmax.f32 %v1617_v8, %v1618_v54  ;;  %v1625_v14 = vrot.slane %v1624_v52, 4  ;;  %v1632_v45 = vrot.slane %v1631_v31, 4  ;;  %v1639_v25 = vrot.slane %v1638_v49, 4  ;;  %v1447_v4 = vpop.permute.xlu1 %1446 }
 0x251   :  { %v1649_v22 = vmax.f32 %v1647_v3, %v1648_v11  ;;  %v1655_v0 = vrot.slane %v1654_v9, 2  ;;  %v1662_v13 = vrot.slane %v1661_v55, 2  ;;  %v1669_v50 = vrot.slane %v1668_v42, 2 }
 0x252   :  { %v1620_v23 = vrot.slane %v1619_v32, 2  ;;  %v1626_v16 = vmax.f32 %v1624_v52, %v1625_v14  ;;  %v1633_v40 = vmax.f32 %v1631_v31, %v1632_v45  ;;  %v1640_v21 = vmax.f32 %v1638_v49, %v1639_v25 }
 0x253   :  { %v1650_v18 = vrot.slane %v1649_v22, 1  ;;  %v1656_v61 = vmax.f32 %v1654_v9, %v1655_v0  ;;  %v1663_v15 = vmax.f32 %v1661_v55, %v1662_v13  ;;  %v1670_v5 = vmax.f32 %v1668_v42, %v1669_v50 }
 0x254   :  { %v1621_v62 = vmax.f32 %v1619_v32, %v1620_v23  ;;  %v1627_v28 = vrot.slane %v1626_v16, 2  ;;  %v1634_v57 = vrot.slane %v1633_v40, 2  ;;  %v1641_v33 = vrot.slane %v1640_v21, 2  ;;  %2227 = vperm.xlu2 %8862, %v10379_v46  }
 0x255   :  { %v1657_v58 = vrot.slane %v1656_v61, 1  ;;  %v1664_v35 = vrot.slane %v1663_v15, 1  ;;  %v1671_v36 = vrot.slane %v1670_v5, 1  ;;  %v1490_v8 = vmul.f32 %v10234_v34, %v10355_v24  ;;  %2217 = vperm.xlu0 %8861, %v10381_v7  }
 0x256   :  { %v1622_v38 = vrot.slane %v1621_v62, 1  ;;  %v1628_v3 = vmax.f32 %v1626_v16, %v1627_v28  ;;  %v1635_v26 = vmax.f32 %v1633_v40, %v1634_v57  ;;  %v1642_v53 = vmax.f32 %v1640_v21, %v1641_v33  ;;  %v10389_v43 = vpop.permute.xlu2 %1962  ;;  %2222 = vperm.xlu1 %8863, %v10383_v37  }
 0x257   :  { %v10394_v54 = vadd.f32 %v10297_v56, %v10349_v48  ;;  %v10398_v52 = vadd.f32 %v10358_v12, %v10345_v41  ;;  %v1651_v24 = vmax.f32 %v1649_v22, %v1650_v18  ;;  %v1658_v31 = vmax.f32 %v1656_v61, %v1657_v58  ;;  %v1457_v49 = vpop.permute.xlu0 %1456  ;;  %v2187_v41 = vld [vmem:[#allocation2 + $0x21a] sm:$0xff]  ;;  %v10407_v22 = vld [vmem:[#allocation2 + $0xb2] sm:$0xff] }
 0x258   :  { %v1665_v19 = vmax.f32 %v1663_v15, %v1664_v35  ;;  %v1629_v11 = vrot.slane %v1628_v3, 1  ;;  %v1636_v9 = vrot.slane %v1635_v26, 1  ;;  %v1643_v55 = vrot.slane %v1642_v53, 1  ;;  %v2186_v35 = vld [vmem:[#allocation2 + $0x212] sm:$0xff] }
 0x259   :  { %v1672_v42 = vmax.f32 %v1670_v5, %v1671_v36  ;;  %v10402_v32 = vadd.f32 %v10297_v56, %v10360_v2  ;;  %v1505_v48 = vadd.f32 %v10363_v44, %v10292_v10  ;;  %v1506_v14 = vadd.f32 %v1490_v8, %v10336_v27  ;;  %v1462_v27 = vpop.permute.xlu1 %1461 }
 0x25a   :  { %v1623_v12 = vmax.f32 %v1621_v62, %v1622_v38  ;;  %v1630_v45 = vmax.f32 %v1628_v3, %v1629_v11  ;;  %v1637_v25 = vmax.f32 %v1635_v26, %v1636_v9  ;;  %v1492_v2 = vmul.f32 %v10234_v34, %v10377_v6  ;;  %v10454_v26 = vld [vmem:[#allocation2 + $0x242] sm:$0xff] }
 0x25b   :  { %v1525_v0 = vadd.f32 %v10297_v56, %v1505_v48  ;;  %v1526_v13 = vadd.f32 %v10297_v56, %v1506_v14  ;;  %v1493_v10 = vmul.f32 %v10234_v34, %v1447_v4  ;;  %v1546_v44 = vmax.f32 %v10394_v54, 0.0 }
 0x25c   :  { %v1644_v50 = vmax.f32 %v1642_v53, %v1643_v55  ;;  %v1874_v23 = vsel %vm1873_vm3, %v1630_v45, %v1623_v12  ;;  %v1495_v16 = vmul.f32 %v10234_v34, %v1457_v49  ;;  %2242 = vperm.xlu2 %8862, %v2187_v41   ;;  %v1552_v21 = vmax.f32 %v10402_v32, 0.0  ;;  %v10463_v49 = vld [vmem:[#allocation2 + $0x22a] sm:$0xff] }
 0x25d   :  { %v1876_v40 = vsel %vm1875_vm4, %v1637_v25, %v1874_v23  ;;  %v1541_v18 = vmax.f32 %v1525_v0, 0.0  ;;  %v1508_v6 = vadd.f32 %v1492_v2, %v10301_v29  ;;  %2232 = vperm.xlu0 %8861, %v10407_v22   ;;  %v1509_v61 = vadd.f32 %v1493_v10, %v10339_v39 }
 0x25e   :  { %v1878_v4 = vsel %vm1877_vm5, %v1644_v50, %v1876_v40  ;;  %v1511_v15 = vadd.f32 %v1495_v16, %v10304_v59  ;;  %v1496_v5 = vmul.f32 %v10234_v34, %v1462_v27  ;;  %v10433_v62 = vpop.permute.xlu2 %1977  ;;  %v1542_v57 = vmax.f32 %v1526_v13, 0.0  ;;  %2237 = vperm.xlu1 %8863, %v2186_v35  }
 0x25f   :  { %v1880_v29 = vsel %vm1879_vm6, %v1651_v24, %v1878_v4  ;;  %v1555_v28 = vmax.f32 %v1541_v18, %v1543_v47  ;;  %v1528_v33 = vadd.f32 %v10297_v56, %v1508_v6  ;;  %v10445_v59 = vadd.f32 %v10297_v56, %v1509_v61  ;;  %v1472_v47 = vpop.permute.xlu0 %1471 }
 0x260   :  { %v1882_v58 = vsel %vm1881_vm7, %v1658_v31, %v1880_v29  ;;  %v10448_v39 = vadd.f32 %v10297_v56, %v1511_v15  ;;  %v1512_v20 = vadd.f32 %v1496_v5, %v10343_v30  ;;  %v1498_v0 = vmul.f32 %v10234_v34, %v1472_v47 }
 0x261   :  { %v1884_v36 = vsel %vm1883_vm8, %v1665_v19, %v1882_v58  ;;  %v1575_v8 = vrot.slane %v1555_v28, 2  ;;  %v1576_v38 = vrot.slane %v1555_v28, 4  ;;  %v1577_v3 = vrot.slane %v1555_v28, 6  ;;  %v10486_v18 = vpop.permute.xlu1 %1476 }
 0x262   :  { %v10457_v53 = vsel %vm1885_vm9, %v1672_v42, %v1884_v36  ;;  %v1673_v24 = vsel %vm306_vm2, %v1555_v28, -inf  ;;  %v1544_v31 = vmax.f32 %v1528_v33, 0.0  ;;  %v1545_v30 = vmax.f32 %v10445_v59, 0.0 }
 0x263   :  { %v1674_v19 = vrot.slane %v1673_v24, 4  ;;  %v1680_v11 = vsel %vm306_vm2, %v1575_v8, -inf  ;;  %v1687_v9 = vsel %vm306_vm2, %v1576_v38, -inf  ;;  %v1694_v55 = vsel %vm306_vm2, %v1577_v3, -inf  ;;  %1913 = vst.msk [vmem:[#allocation3 + $0x11] sm:$0xff] %vm304_vm10, %v10457_v53 }
 0x264   :  { %v1681_v42 = vrot.slane %v1680_v11, 4  ;;  %v1688_v48 = vrot.slane %v1687_v9, 4  ;;  %v1695_v14 = vrot.slane %v1694_v55, 4  ;;  %v1556_v41 = vmax.f32 %v1542_v57, %v1544_v31  ;;  %2257 = vperm.xlu2 %8862, %v10454_v26  }
 0x265   :  { %v1675_v12 = vmax.f32 %v1673_v24, %v1674_v19  ;;  %v1547_v45 = vmax.f32 %v10448_v39, 0.0  ;;  %v10477_v25 = vadd.f32 %v10297_v56, %v1512_v20  ;;  %2247 = vperm.xlu0 %8861, %v10463_v49  }
 0x266   :  { %v1682_v13 = vmax.f32 %v1680_v11, %v1681_v42  ;;  %v1689_v2 = vmax.f32 %v1687_v9, %v1688_v48  ;;  %v1696_v10 = vmax.f32 %v1694_v55, %v1695_v14  ;;  %v1578_v27 = vrot.slane %v1556_v41, 2  ;;  %v10490_v5 = vpop.permute.xlu2 %1992 }
 0x267   :  { %v1676_v50 = vrot.slane %v1675_v12, 2  ;;  %v1579_v23 = vrot.slane %v1556_v41, 4  ;;  %v1580_v16 = vrot.slane %v1556_v41, 6  ;;  %v1701_v40 = vsel %vm306_vm2, %v1556_v41, -inf  ;;  %v10499_v35 = vpop.permute.xlu0 %1937 }
 0x268   :  { %v1683_v6 = vrot.slane %v1682_v13, 2  ;;  %v1690_v4 = vrot.slane %v1689_v2, 2  ;;  %v1697_v61 = vrot.slane %v1696_v10, 2  ;;  %v1702_v15 = vrot.slane %v1701_v40, 4 }
 0x269   :  { %v1677_v29 = vmax.f32 %v1675_v12, %v1676_v50  ;;  %v1708_v28 = vsel %vm306_vm2, %v1578_v27, -inf  ;;  %v1715_v57 = vsel %vm306_vm2, %v1579_v23, -inf  ;;  %v1722_v33 = vsel %vm306_vm2, %v1580_v16, -inf  ;;  %v10516_v16 = vld [vmem:[#allocation2 + $0x262] sm:$0xff] }
 0x26a   :  { %v1684_v58 = vmax.f32 %v1682_v13, %v1683_v6  ;;  %v1691_v39 = vmax.f32 %v1689_v2, %v1690_v4  ;;  %v1698_v20 = vmax.f32 %v1696_v10, %v1697_v61  ;;  %v1703_v47 = vmax.f32 %v1701_v40, %v1702_v15  ;;  %v10509_v2 = vld [vmem:[#allocation2 + $0x232] sm:$0xff]  ;;  %v10518_v40 = vld [vmem:[#allocation2 + $0x24a] sm:$0xff]  ;;  %v10526_v15 = vpop.permute.xlu1 %1942 }
 0x26b   :  { %v1678_v36 = vrot.slane %v1677_v29, 1  ;;  %v1709_v8 = vrot.slane %v1708_v28, 4  ;;  %v1716_v38 = vrot.slane %v1715_v57, 4  ;;  %v1723_v3 = vrot.slane %v1722_v33, 4  ;;  %2252 = vperm.xlu1 %8863, %v10509_v2  }
 0x26c   :  { %v1685_v24 = vrot.slane %v1684_v58, 1  ;;  %v1692_v31 = vrot.slane %v1691_v39, 1  ;;  %v1699_v19 = vrot.slane %v1698_v20, 1  ;;  %v1704_v11 = vrot.slane %v1703_v47, 2  ;;  %2272 = vperm.xlu2 %8862, %v10516_v16  }
 0x26d   :  { %v1679_v9 = vmax.f32 %v1677_v29, %v1678_v36  ;;  %v1710_v55 = vmax.f32 %v1708_v28, %v1709_v8  ;;  %v1717_v42 = vmax.f32 %v1715_v57, %v1716_v38  ;;  %v1724_v48 = vmax.f32 %v1722_v33, %v1723_v3  ;;  %2262 = vperm.xlu0 %8861, %v10518_v40  }
 0x26e   :  { %v1686_v14 = vmax.f32 %v1684_v58, %v1685_v24  ;;  %v1693_v41 = vmax.f32 %v1691_v39, %v1692_v31  ;;  %v1700_v12 = vmax.f32 %v1698_v20, %v1699_v19  ;;  %v1705_v13 = vmax.f32 %v1703_v47, %v1704_v11  ;;  %v10529_v58 = vpop.permute.xlu2 %2007 }
 0x26f   :  { %v1711_v10 = vrot.slane %v1710_v55, 2  ;;  %v1718_v27 = vrot.slane %v1717_v42, 2  ;;  %v1725_v50 = vrot.slane %v1724_v48, 2  ;;  %v1557_v23 = vmax.f32 %v1545_v30, %v1547_v45 }
 0x270   :  { %v1887_v6 = vsel %vm1873_vm3, %v1686_v14, %v1679_v9  ;;  %v1706_v17 = vrot.slane %v1705_v13, 1  ;;  %v1548_v4 = vmax.f32 %v10477_v25, 0.0  ;;  %v1514_v61 = vadd.f32 %v1498_v0, %v10327_v63  ;;  %v10531_v25 = vpop.permute.xlu0 %1952 }
 0x271   :  { %v1888_v59 = vsel %vm1875_vm4, %v1693_v41, %v1887_v6  ;;  %v1712_v53 = vmax.f32 %v1710_v55, %v1711_v10  ;;  %v1719_v30 = vmax.f32 %v1717_v42, %v1718_v27  ;;  %v1726_v45 = vmax.f32 %v1724_v48, %v1725_v50  ;;  %v10540_v48 = vld [vmem:[#allocation2 + $0x25a] sm:$0xff]  ;;  %v10547_v10 = vld [vmem:[#allocation2 + $0x90] sm:$0xff] }
 0x272   :  { %v1889_v29 = vsel %vm1877_vm5, %v1700_v12, %v1888_v59  ;;  %v1707_v28 = vmax.f32 %v1705_v13, %v1706_v17  ;;  %v1581_v57 = vrot.slane %v1557_v23, 2  ;;  %v1582_v33 = vrot.slane %v1557_v23, 4  ;;  %v2309_v27 = vld [vmem:[#allocation2 + $0x78] sm:$0xff] }
 0x273   :  { %v1713_v63 = vrot.slane %v1712_v53, 1  ;;  %v1720_v0 = vrot.slane %v1719_v30, 1  ;;  %v1727_v39 = vrot.slane %v1726_v45, 1  ;;  %v1583_v20 = vrot.slane %v1557_v23, 6  ;;  %2267 = vperm.xlu1 %8863, %v10540_v48  }
 0x274   :  { %v1890_v47 = vsel %vm1879_vm6, %v1707_v28, %v1889_v29  ;;  %v1729_v36 = vsel %vm306_vm2, %v1557_v23, -inf  ;;  %v1736_v8 = vsel %vm306_vm2, %v1581_v57, -inf  ;;  %v1743_v38 = vsel %vm306_vm2, %v1582_v33, -inf  ;;  %2338 = vperm.xlu2 %8862, %v10547_v10  }
 0x275   :  { %v1714_v3 = vmax.f32 %v1712_v53, %v1713_v63  ;;  %v1721_v24 = vmax.f32 %v1719_v30, %v1720_v0  ;;  %v1728_v31 = vmax.f32 %v1726_v45, %v1727_v39  ;;  %v1730_v19 = vrot.slane %v1729_v36, 4  ;;  %2328 = vperm.xlu0 %8861, %v2309_v27  }
 0x276   :  { %v1737_v11 = vrot.slane %v1736_v8, 4  ;;  %v1744_v9 = vrot.slane %v1743_v38, 4  ;;  %v1750_v55 = vsel %vm306_vm2, %v1583_v20, -inf  ;;  %v1558_v42 = vmax.f32 %v1546_v44, %v1548_v4  ;;  %v10556_v28 = vpop.permute.xlu2 %2072 }
 0x277   :  { %v1891_v14 = vsel %vm1881_vm7, %v1714_v3, %v1890_v47  ;;  %v1731_v41 = vmax.f32 %v1729_v36, %v1730_v19  ;;  %v1751_v12 = vrot.slane %v1750_v55, 4  ;;  %v10544_v13 = vadd.f32 %v10297_v56, %v1514_v61  ;;  %v10552_v61 = vpop.permute.xlu1 %1957  ;;  %v10564_v3 = vld [vmem:[#allocation3 + $0x12] sm:$0xff] }
 0x278   :  { %v1892_v50 = vsel %vm1883_vm8, %v1721_v24, %v1891_v14  ;;  %v1738_v23 = vmax.f32 %v1736_v8, %v1737_v11  ;;  %v1745_v6 = vmax.f32 %v1743_v38, %v1744_v9  ;;  %v1584_v54 = vrot.slane %v1558_v42, 2  ;;  %v10558_v57 = vpop.permute.xlu0 %1967  ;;  %v10562_v38 = vld [vmem:[#allocation3 + $0x10] sm:$0xff]  ;;  %14284 = vst [vmem:[#allocation15_spill] sm:$0xff] %v10564_v3 }
 0x279   :  { %v1893_v44 = vsel %vm1885_vm9, %v1728_v31, %v1892_v50  ;;  %v1732_v17 = vrot.slane %v1731_v41, 2  ;;  %v1752_v4 = vmax.f32 %v1750_v55, %v1751_v12  ;;  %v1585_v59 = vrot.slane %v1558_v42, 4  ;;  %14283 = vst [vmem:[#allocation19_spill] sm:$0xff] %v10562_v38  ;;  %v6872_v9 = vld [vmem:[#allocation3 + $0x11] sm:$0xff]  ;;  %v2310_v12 = vld [vmem:[#allocation2 + $0x80] sm:$0xff] }
 0x27a   :  { %1914 = vst.msk [vmem:[#allocation3 + $0x21] sm:$0xff] %vm304_vm10, %v1893_v44  ;;  %v1739_v53 = vrot.slane %v1738_v23, 2  ;;  %v1746_v30 = vrot.slane %v1745_v6, 2  ;;  %v1586_v45 = vrot.slane %v1558_v42, 6  ;;  %v1757_v29 = vsel %vm306_vm2, %v1558_v42, -inf  ;;  %v10572_v44 = vld [vmem:[#allocation2 + $0x98] sm:$0xff] }
 0x27b   :  { %v1733_v33 = vmax.f32 %v1731_v41, %v1732_v17  ;;  %v1753_v63 = vrot.slane %v1752_v4, 2  ;;  %v1758_v0 = vrot.slane %v1757_v29, 4  ;;  %v1764_v39 = vsel %vm306_vm2, %v1584_v54, -inf  ;;  %6632 = vst.msk [vmem:[#allocation4 + $0x28] sm:$0xff] %vm304_vm10, %v10562_v38  ;;  %2333 = vperm.xlu1 %8863, %v2310_v12   ;;  %v10570_v54 = vld [vmem:[#allocation2 + $0xb0] sm:$0xff] }
 0x27c   :  { %v1740_v20 = vmax.f32 %v1738_v23, %v1739_v53  ;;  %v1747_v47 = vmax.f32 %v1745_v6, %v1746_v30  ;;  %v1765_v36 = vrot.slane %v1764_v39, 4  ;;  %v1771_v8 = vsel %vm306_vm2, %v1585_v59, -inf  ;;  %6888 = vst.msk [vmem:[#allocation4 + $0x10] sm:$0xff] %vm304_vm10, %v6872_v9  ;;  %v189_v17 = vld [vmem:[%s14052_s0 + $0x70] sm:$0xff]  ;;  %2353 = vperm.xlu2 %8862, %v10570_v54  }
 0x27d   :  { %v1734_v24 = vrot.slane %v1733_v33, 1  ;;  %v1754_v31 = vmax.f32 %v1752_v4, %v1753_v63  ;;  %v1759_v19 = vmax.f32 %v1757_v29, %v1758_v0  ;;  %v1772_v11 = vrot.slane %v1771_v8, 4  ;;  %6761 = vst.msk [vmem:[#allocation4 + $0x30] sm:$0xff] %vm304_vm10, %v10564_v3  ;;  %2343 = vperm.xlu0 %8861, %v10572_v44  }
 0x27e   :  { %v1741_v55 = vrot.slane %v1740_v20, 1  ;;  %v1748_v42 = vrot.slane %v1747_v47, 1  ;;  %v1766_v14 = vmax.f32 %v1764_v39, %v1765_v36  ;;  %v1778_v41 = vsel %vm306_vm2, %v1586_v45, -inf  ;;  %254 = vst.msk [vmem:[#allocation2 + $0xc1] sm:$0xff] %vm65_vm0, %v189_v17  ;;  %v10608_v17 = vld [vmem:[#allocation2 + $0xa8] sm:$0xff] }
 0x27f   :  { %v1735_v27 = vmax.f32 %v1733_v33, %v1734_v24  ;;  %v1755_v50 = vrot.slane %v1754_v31, 1  ;;  %v1760_v23 = vrot.slane %v1759_v19, 2  ;;  %v1773_v6 = vmax.f32 %v1771_v8, %v1772_v11  ;;  %v10583_v0 = vpop.permute.xlu1 %1972  ;;  %v10592_v11 = vpop.permute.xlu2 %2087 }
 0x280   :  { %v1742_v4 = vmax.f32 %v1740_v20, %v1741_v55  ;;  %v1749_v59 = vmax.f32 %v1747_v47, %v1748_v42  ;;  %v1767_v53 = vrot.slane %v1766_v14, 2  ;;  %v1779_v30 = vrot.slane %v1778_v41, 4  ;;  %14285 = vst [vmem:[#allocation17_spill] sm:$0xff] %v10583_v0 }
 0x281   :  { %v1756_v45 = vmax.f32 %v1754_v31, %v1755_v50  ;;  %v1761_v29 = vmax.f32 %v1759_v19, %v1760_v23  ;;  %v1774_v33 = vrot.slane %v1773_v6, 2  ;;  %v1550_v63 = vmax.f32 %v10544_v13, 0.0  ;;  %v10585_v39 = vld [vmem:[#allocation3 + $0x20] sm:$0xff]  ;;  %v10594_v31 = vpop.permute.xlu0 %1982 }
 0x282   :  { %14286 = vst [vmem:[#allocation22_spill] sm:$0xff] %v10585_v39  ;;  %v10587_v36 = vld [vmem:[#allocation3 + $0x22] sm:$0xff]  ;;  %v1894_v20 = vsel %vm1873_vm3, %v1742_v4, %v1735_v27  ;;  %v1768_v47 = vmax.f32 %v1766_v14, %v1767_v53  ;;  %v1780_v8 = vmax.f32 %v1778_v41, %v1779_v30  ;;  %v1499_v24 = vmul.f32 %v10234_v34, %v10486_v18 }
 0x283   :  { %14287 = vst [vmem:[#allocation18_spill] sm:$0xff] %v10587_v36  ;;  %v7001_v13 = vld [vmem:[#allocation3 + $0x20] sm:$0xff]  ;;  %v1895_v9 = vsel %vm1875_vm4, %v1749_v59, %v1894_v20  ;;  %v1762_v55 = vrot.slane %v1761_v29, 1  ;;  %v1775_v42 = vmax.f32 %v1773_v6, %v1774_v33  ;;  %v1560_v14 = vmax.f32 %v1550_v63, %v1552_v21  ;;  %v2317_v4 = vld [vmem:[#allocation2 + $0x228] sm:$0xff]  ;;  %2348 = vperm.xlu1 %8863, %v10608_v17  }
 0x284   :  { %14288 = vst [vmem:[#allocation20_spill] sm:$0xff] %v10594_v31  ;;  %v6873_v19 = vld [vmem:[#allocation3 + $0x21] sm:$0xff]  ;;  %v1385_v34 = vadd.f32 %v10353_v1, %v10248_v60  ;;  %v1769_v18 = vrot.slane %v1768_v47, 1  ;;  %v1781_v41 = vrot.slane %v1780_v8, 2  ;;  %v1896_v12 = vsel %vm1877_vm5, %v1756_v45, %v1895_v9  ;;  %v190_v60 = vld [vmem:[%s14052_s0 + $0x78] sm:$0xff]  ;;  %2368 = vperm.xlu2 %8862, %v2317_v4  }
 0x285   :  { %6633 = vst.msk [vmem:[#allocation4 + $0x50] sm:$0xff] %vm304_vm10, %v10585_v39  ;;  %v1763_v27 = vmax.f32 %v1761_v29, %v1762_v55  ;;  %v1776_v50 = vrot.slane %v1775_v42, 1  ;;  %v1590_v32 = vrot.slane %v1560_v14, 2  ;;  %v1533_v1 = vadd.f32 %v10297_v56, %v10398_v52  ;;  %v10619_v45 = vld [vmem:[#allocation2 + $0xc0] sm:$0xff]  ;;  %v221_v52 = vld [vmem:[%s14052_s0 + $0x170] sm:$0xff] }
 0x286   :  { %7017 = vst.msk [vmem:[#allocation4 + $0x18] sm:$0xff] %vm304_vm10, %v7001_v13  ;;  %v1770_v23 = vmax.f32 %v1768_v47, %v1769_v18  ;;  %v1782_v6 = vmax.f32 %v1780_v8, %v1781_v41  ;;  %v1515_v21 = vadd.f32 %v1499_v24, %v1385_v34  ;;  %v1591_v30 = vrot.slane %v1560_v14, 4  ;;  %2358 = vperm.xlu0 %8861, %v10619_v45   ;;  %v222_v24 = vld [vmem:[%s14052_s0 + $0x178] sm:$0xff]  ;;  %v10683_v31 = vld [vmem:[#allocation2 + $0x260] sm:$0xff] }
 0x287   :  { %6762 = vst.msk [vmem:[#allocation4 + $0x58] sm:$0xff] %vm304_vm10, %v10587_v36  ;;  %v1777_v59 = vmax.f32 %v1775_v42, %v1776_v50  ;;  %v1897_v53 = vsel %vm1879_vm6, %v1763_v27, %v1896_v12  ;;  %v1592_v63 = vrot.slane %v1560_v14, 6  ;;  %v1813_v47 = vsel %vm306_vm2, %v1560_v14, -inf  ;;  %v10629_v8 = vpop.permute.xlu1 %1987  ;;  %v10637_v55 = vpop.permute.xlu2 %2102 }
 0x288   :  { %6889 = vst.msk [vmem:[#allocation4 + $0x38] sm:$0xff] %vm304_vm10, %v6873_v19  ;;  %v1783_v29 = vrot.slane %v1782_v6, 1  ;;  %v1898_v33 = vsel %vm1881_vm7, %v1770_v23, %v1897_v53  ;;  %v1820_v19 = vsel %vm306_vm2, %v1590_v32, -inf  ;;  %v1535_v9 = vadd.f32 %v10297_v56, %v1515_v21  ;;  %v10646_v23 = vld [vmem:[#allocation2 + $0x248] sm:$0xff]  ;;  %v2318_v56 = vld [vmem:[#allocation2 + $0x230] sm:$0xff] }
 0x289   :  { %7145 = vst.msk [vmem:[#allocation4 + $0x20] sm:$0xff] %vm304_vm10, %v10587_v36  ;;  %v1899_v20 = vsel %vm1883_vm8, %v1777_v59, %v1898_v33  ;;  %v10639_v42 = vpop.permute.xlu0 %1997  ;;  %v1549_v14 = vmax.f32 %v1533_v1, 0.0  ;;  %v1827_v34 = vsel %vm306_vm2, %v1591_v30, -inf  ;;  %v1814_v41 = vrot.slane %v1813_v47, 4 }
 0x28a   :  { %255 = vst.msk [vmem:[#allocation2 + $0xc9] sm:$0xff] %vm65_vm0, %v190_v60  ;;  %v1784_v13 = vmax.f32 %v1782_v6, %v1783_v29  ;;  %v1834_v12 = vsel %vm306_vm2, %v1592_v63, -inf  ;;  %v1551_v27 = vmax.f32 %v1535_v9, 0.0  ;;  %v1821_v50 = vrot.slane %v1820_v19, 4 }
 0x28b   :  { %14289 = vst [vmem:[#allocation21_spill] sm:$0xff] %v10629_v8  ;;  %v1828_v6 = vrot.slane %v1827_v34, 4  ;;  %v1835_v4 = vrot.slane %v1834_v12, 4  ;;  %v1815_v60 = vmax.f32 %v1813_v47, %v1814_v41 }
 0x28c   :  { %286 = vst.msk [vmem:[#allocation2 + $0x271] sm:$0xff] %vm65_vm0, %v221_v52  ;;  %v1900_v18 = vsel %vm1885_vm9, %v1784_v13, %v1899_v20  ;;  %v1559_v32 = vmax.f32 %v1549_v14, %v1551_v27  ;;  %2383 = vperm.xlu2 %8862, %v10646_v23   ;;  %v1822_v53 = vmax.f32 %v1820_v19, %v1821_v50 }
 0x28d   :  { %14290 = vst [vmem:[#allocation23_spill] sm:$0xff] %v10637_v55  ;;  %v1829_v63 = vmax.f32 %v1827_v34, %v1828_v6  ;;  %v1836_v47 = vmax.f32 %v1834_v12, %v1835_v4  ;;  %v1816_v19 = vrot.slane %v1815_v60, 2  ;;  %v10664_v34 = vld [vmem:[#allocation2 + $0x258] sm:$0xff] }
 0x28e   :  { %14291 = vst [vmem:[#allocation24_spill] sm:$0xff] %v10639_v42  ;;  %v1587_v1 = vrot.slane %v1559_v32, 2  ;;  %v1588_v59 = vrot.slane %v1559_v32, 4  ;;  %2373 = vperm.xlu0 %8861, %v2318_v56   ;;  %v1589_v30 = vrot.slane %v1559_v32, 6  ;;  %v1785_v29 = vsel %vm306_vm2, %v1559_v32, -inf  ;;  %v10662_v56 = vld [vmem:[#allocation2 + $0x240] sm:$0xff] }
 0x28f   :  { %287 = vst.msk [vmem:[#allocation2 + $0x279] sm:$0xff] %vm65_vm0, %v222_v24  ;;  %v10653_v33 = vpop.permute.xlu1 %2002  ;;  %v1786_v52 = vrot.slane %v1785_v29, 4  ;;  %v10656_v24 = vpop.permute.xlu2 %2117  ;;  %v1823_v32 = vrot.slane %v1822_v53, 2 }
 0x290   :  { %1915 = vst.msk [vmem:[#allocation3 + $0xb1] sm:$0xff] %vm304_vm10, %v1900_v18  ;;  %v1792_v20 = vsel %vm306_vm2, %v1587_v1, -inf  ;;  %v1799_v14 = vsel %vm306_vm2, %v1588_v59, -inf  ;;  %v1806_v18 = vsel %vm306_vm2, %v1589_v30, -inf  ;;  %v1830_v59 = vrot.slane %v1829_v63, 2 }
 0x291   :  { %v10648_v21 = vld [vmem:[#allocation2 + $0xc8] sm:$0xff]  ;;  %14292 = vst [vmem:[#allocation25_spill] sm:$0xff] %v10656_v24  ;;  %v10658_v13 = vpop.permute.xlu0 %2012  ;;  %v1793_v9 = vrot.slane %v1792_v20, 4  ;;  %v1787_v41 = vmax.f32 %v1785_v29, %v1786_v52  ;;  %v1800_v27 = vrot.slane %v1799_v14, 4  ;;  %v1807_v50 = vrot.slane %v1806_v18, 4 }
 0x292   :  { %2363 = vperm.xlu1 %8863, %v10648_v21   ;;  %v1837_v52 = vrot.slane %v1836_v47, 2  ;;  %v1824_v42 = vmax.f32 %v1822_v53, %v1823_v32  ;;  %v2440_v32 = vld [vmem:[#allocation2 + $0x81] sm:$0xff] }
 0x293   :  { %v1794_v1 = vmax.f32 %v1792_v20, %v1793_v9  ;;  %v10666_v36 = vld [vmem:[#allocation2 + $0x270] sm:$0xff]  ;;  %v1788_v30 = vrot.slane %v1787_v41, 2  ;;  %v1801_v39 = vmax.f32 %v1799_v14, %v1800_v27  ;;  %v1808_v29 = vmax.f32 %v1806_v18, %v1807_v50 }
 0x294   :  { %v1817_v20 = vmax.f32 %v1815_v60, %v1816_v19  ;;  %2398 = vperm.xlu2 %8862, %v10666_v36   ;;  %v1831_v27 = vmax.f32 %v1829_v63, %v1830_v59  ;;  %v1838_v60 = vmax.f32 %v1836_v47, %v1837_v52  ;;  %v1825_v0 = vrot.slane %v1824_v42, 1 }
 0x295   :  { %v1795_v38 = vrot.slane %v1794_v1, 2  ;;  %v1789_v9 = vmax.f32 %v1787_v41, %v1788_v30  ;;  %v1802_v3 = vrot.slane %v1801_v39, 2 }
 0x296   :  { %2388 = vperm.xlu0 %8861, %v10664_v34   ;;  %v1818_v41 = vrot.slane %v1817_v20, 1  ;;  %v1832_v63 = vrot.slane %v1831_v27, 1 }
 0x297   :  { %v6624_v6 = vld [vmem:[#allocation3 + $0xb0] sm:$0xff]  ;;  %v1796_v14 = vmax.f32 %v1794_v1, %v1795_v38  ;;  %v10677_v18 = vpop.permute.xlu1 %2067  ;;  %v1790_v50 = vrot.slane %v1789_v9, 1  ;;  %v10679_v55 = vpop.permute.xlu2 %2132  ;;  %v10685_v1 = vld [vmem:[#allocation2 + $0x278] sm:$0xff] }
 0x298   :  { %6640 = vst.msk [vmem:[#allocation4 + $0x168] sm:$0xff] %vm304_vm10, %v6624_v6  ;;  %v10669_v12 = vld [vmem:[#allocation3 + $0xb2] sm:$0xff]  ;;  %v1809_v6 = vrot.slane %v1808_v29, 2  ;;  %v1819_v47 = vmax.f32 %v1817_v20, %v1818_v41 }
 0x299   :  { %14293 = vst [vmem:[#allocation26_spill] sm:$0xff] %v10669_v12  ;;  %v6880_v4 = vld [vmem:[#allocation3 + $0xb1] sm:$0xff]  ;;  %v10681_v8 = vpop.permute.xlu0 %2077  ;;  %v1797_v19 = vrot.slane %v1796_v14, 1  ;;  %v1791_v53 = vmax.f32 %v1789_v9, %v1790_v50  ;;  %v1833_v50 = vmax.f32 %v1831_v27, %v1832_v63  ;;  %v10717_v63 = vld [vmem:[#allocation2 + $0xc9] sm:$0xff] }
 0x29a   :  { %6769 = vst.msk [vmem:[#allocation4 + $0x170] sm:$0xff] %vm304_vm10, %v10669_v12  ;;  %2378 = vperm.xlu1 %8863, %v10662_v56   ;;  %v1803_v12 = vmax.f32 %v1801_v39, %v1802_v3  ;;  %v1810_v24 = vmax.f32 %v1808_v29, %v1809_v6  ;;  %v1839_v39 = vrot.slane %v1838_v60, 1  ;;  %v1826_v6 = vmax.f32 %v1824_v42, %v1825_v0  ;;  %v10702_v0 = vld [vmem:[#allocation2 + $0xa9] sm:$0xff]  ;;  %v10704_v42 = vld [vmem:[#allocation2 + $0x91] sm:$0xff] }
 0x29b   :  { %6896 = vst.msk [vmem:[#allocation4 + $0x150] sm:$0xff] %vm304_vm10, %v6880_v4  ;;  %v1798_v38 = vmax.f32 %v1796_v14, %v1797_v19 }
 0x29c   :  { %v1804_v4 = vrot.slane %v1803_v12, 1  ;;  %v1811_v30 = vrot.slane %v1810_v24, 1  ;;  %2463 = vperm.xlu2 %8862, %v2440_v32   ;;  %v10715_v32 = vld [vmem:[#allocation2 + $0x99] sm:$0xff] }
 0x29d   :  { %v1901_v29 = vsel %vm1873_vm3, %v1798_v38, %v1791_v53 }
 0x29e   :  { %v1805_v3 = vmax.f32 %v1803_v12, %v1804_v4  ;;  %v1812_v59 = vmax.f32 %v1810_v24, %v1811_v30  ;;  %2403 = vperm.xlu0 %8861, %v10685_v1   ;;  %v1840_v4 = vmax.f32 %v1838_v60, %v1839_v39  ;;  %v2439_v30 = vld [vmem:[#allocation2 + $0x79] sm:$0xff] }
 0x29f   :  { %v10692_v14 = vpop.permute.xlu1 %2082  ;;  %v10695_v19 = vpop.permute.xlu2 %2197 }
 0x2a0   :  { %v1902_v52 = vsel %vm1875_vm4, %v1805_v3, %v1901_v29  ;;  %v10719_v3 = vld [vmem:[#allocation2 + $0xb1] sm:$0xff] }
 0x2a1   :  { %v1903_v9 = vsel %vm1877_vm5, %v1812_v59, %v1902_v52  ;;  %v10697_v24 = vpop.permute.xlu0 %2092 }
 0x2a2   :  { %2393 = vperm.xlu1 %8863, %v10683_v31   ;;  %v1904_v12 = vsel %vm1879_vm6, %v1819_v47, %v1903_v9  ;;  %14294 = vst [vmem:[#allocation27_spill] sm:$0xff] %v10697_v24 }
 0x2a3   :  { %v1905_v20 = vsel %vm1881_vm7, %v1826_v6, %v1904_v12  ;;  %v10744_v12 = vld [vmem:[#allocation2 + $0x241] sm:$0xff] }
 0x2a4   :  { %v1906_v41 = vsel %vm1883_vm8, %v1833_v50, %v1905_v20  ;;  %2478 = vperm.xlu2 %8862, %v10702_v0   ;;  %v10742_v50 = vld [vmem:[#allocation2 + $0xc1] sm:$0xff] }
 0x2a5   :  { %v1907_v53 = vsel %vm1885_vm9, %v1840_v4, %v1906_v41  ;;  %v2447_v4 = vld [vmem:[#allocation2 + $0x229] sm:$0xff] }
 0x2a6   :  { %1916 = vst.msk [vmem:[#allocation3 + $0xc1] sm:$0xff] %vm304_vm10, %v1907_v53  ;;  %2468 = vperm.xlu0 %8861, %v10704_v42   ;;  %v2448_v53 = vld [vmem:[#allocation2 + $0x231] sm:$0xff] }
 0x2a7   :  { %v10709_v27 = vpop.permute.xlu1 %2097  ;;  %v10711_v60 = vpop.permute.xlu2 %2212 }
 0x2a8   :  { %14295 = vst [vmem:[#allocation28_spill] sm:$0xff] %v10711_v60 }
 0x2a9   :  { %v10713_v38 = vpop.permute.xlu0 %2107 }
 0x2aa   :  { %2458 = vperm.xlu1 %8863, %v2439_v30   ;;  %14296 = vst [vmem:[#allocation29_spill] sm:$0xff] %v10713_v38  ;;  %v10785_v38 = vld [vmem:[#allocation2 + $0xc2] sm:$0xff] }
 0x2ac   :  { %2493 = vperm.xlu2 %8862, %v10717_v63  }
 0x2ad   :  { %v6625_v39 = vld [vmem:[#allocation3 + $0xc0] sm:$0xff] }
 0x2ae   :  { %6641 = vst.msk [vmem:[#allocation4 + $0x190] sm:$0xff] %vm304_vm10, %v6625_v39  ;;  %v10722_v59 = vld [vmem:[#allocation3 + $0xc0] sm:$0xff]  ;;  %2483 = vperm.xlu0 %8861, %v10719_v3   ;;  %v10754_v39 = vld [vmem:[#allocation2 + $0x249] sm:$0xff] }
 0x2af   :  { %14297 = vst [vmem:[#allocation30_spill] sm:$0xff] %v10722_v59  ;;  %v10724_v29 = vld [vmem:[#allocation3 + $0xc2] sm:$0xff]  ;;  %v10733_v52 = vpop.permute.xlu1 %2112  ;;  %v10737_v6 = vpop.permute.xlu2 %2227 }
 0x2b0   :  { %14298 = vst [vmem:[#allocation31_spill] sm:$0xff] %v10724_v29  ;;  %v6881_v47 = vld [vmem:[#allocation3 + $0xc1] sm:$0xff] }
 0x2b1   :  { %7025 = vst.msk [vmem:[#allocation4 + $0x158] sm:$0xff] %vm304_vm10, %v10722_v59  ;;  %v10739_v9 = vpop.permute.xlu0 %2122 }
 0x2b2   :  { %2473 = vperm.xlu1 %8863, %v10715_v32   ;;  %7153 = vst.msk [vmem:[#allocation4 + $0x160] sm:$0xff] %vm304_vm10, %v10724_v29 }
 0x2b3   :  { %14299 = vst [vmem:[#allocation36_spill] sm:$0xff] %v10733_v52 }
 0x2b4   :  { %6770 = vst.msk [vmem:[#allocation4 + $0x198] sm:$0xff] %vm304_vm10, %v10724_v29  ;;  %2508 = vperm.xlu2 %8862, %v10744_v12  }
 0x2b5   :  { %14300 = vst [vmem:[#allocation34_spill] sm:$0xff] %v10737_v6  ;;  %v10775_v6 = vld [vmem:[#allocation2 + $0x279] sm:$0xff] }
 0x2b6   :  { %14301 = vst [vmem:[#allocation35_spill] sm:$0xff] %v10739_v9  ;;  %2498 = vperm.xlu0 %8861, %v2447_v4   ;;  %v10763_v4 = vld [vmem:[#allocation2 + $0x259] sm:$0xff] }
 0x2b7   :  { %6897 = vst.msk [vmem:[#allocation4 + $0x178] sm:$0xff] %vm304_vm10, %v6881_v47  ;;  %v10748_v20 = vpop.permute.xlu1 %2127  ;;  %v10750_v41 = vpop.permute.xlu2 %2242  ;;  %v8907_v47 = vld [vmem:[#allocation2 + $0x261] sm:$0xff] }
 0x2b8   :  { %14302 = vst [vmem:[#allocation39_spill] sm:$0xff] %v10748_v20  ;;  %v2569_v20 = vld [vmem:[#allocation2 + $0x7a] sm:$0xff] }
 0x2b9   :  { %14303 = vst [vmem:[#allocation37_spill] sm:$0xff] %v10750_v41  ;;  %v10752_v30 = vpop.permute.xlu0 %2137  ;;  %v10765_v41 = vld [vmem:[#allocation2 + $0x271] sm:$0xff] }
 0x2ba   :  { %2488 = vperm.xlu1 %8863, %v10742_v50   ;;  %14304 = vst [vmem:[#allocation38_spill] sm:$0xff] %v10752_v30 }
 0x2bb   :  { %14307 = vst [vmem:[#allocation42_spill] sm:$0xff] %v10765_v41 }
 0x2bc   :  { %2523 = vperm.xlu2 %8862, %v8907_v47   ;;  %14310 = vst [vmem:[#allocation45_spill] sm:$0xff] %v10775_v6 }
 0x2be   :  { %2513 = vperm.xlu0 %8861, %v10754_v39  }
 0x2bf   :  { %v10757_v29 = vpop.permute.xlu1 %2142  ;;  %v10759_v59 = vpop.permute.xlu2 %2257 }
 0x2c0   :  { %14305 = vst [vmem:[#allocation40_spill] sm:$0xff] %v10759_v59  ;;  %v2570_v59 = vld [vmem:[#allocation2 + $0x82] sm:$0xff] }
 0x2c1   :  { %v10761_v9 = vpop.permute.xlu0 %2202 }
 0x2c2   :  { %2503 = vperm.xlu1 %8863, %v2448_v53   ;;  %14306 = vst [vmem:[#allocation41_spill] sm:$0xff] %v10761_v9 }
 0x2c4   :  { %2588 = vperm.xlu2 %8862, %v2569_v20  }
 0x2c6   :  { %2528 = vperm.xlu0 %8861, %v10765_v41  }
 0x2c7   :  { %v10769_v53 = vpop.permute.xlu1 %2207  ;;  %v10771_v47 = vpop.permute.xlu2 %2272 }
 0x2c8   :  { %14308 = vst [vmem:[#allocation43_spill] sm:$0xff] %v10769_v53 }
 0x2c9   :  { %v10773_v30 = vpop.permute.xlu0 %2217 }
 0x2ca   :  { %2518 = vperm.xlu1 %8863, %v10763_v4   ;;  %14309 = vst [vmem:[#allocation44_spill] sm:$0xff] %v10773_v30 }
 0x2cc   :  { %2603 = vperm.xlu2 %8862, %v10383_v37  }
 0x2ce   :  { %2593 = vperm.xlu0 %8861, %v2570_v59   ;;  %v10796_v59 = vld [vmem:[#allocation2 + $0xca] sm:$0xff] }
 0x2cf   :  { %v10779_v9 = vpop.permute.xlu1 %2222  ;;  %v10781_v52 = vpop.permute.xlu2 %2338 }
 0x2d0   :  { %14311 = vst [vmem:[#allocation46_spill] sm:$0xff] %v10779_v9 }
 0x2d1   :  { %14312 = vst [vmem:[#allocation48_spill] sm:$0xff] %v10781_v52  ;;  %v10783_v20 = vpop.permute.xlu0 %2232 }
 0x2d2   :  { %2533 = vperm.xlu1 %8863, %v10775_v6   ;;  %14313 = vst [vmem:[#allocation47_spill] sm:$0xff] %v10783_v20 }
 0x2d4   :  { %2618 = vperm.xlu2 %8862, %v10785_v38  }
 0x2d6   :  { %2608 = vperm.xlu0 %8861, %v10379_v46   ;;  %v191_v46 = vld [vmem:[%s14052_s0 + $0x80] sm:$0xff] }
 0x2d7   :  { %v10790_v30 = vpop.permute.xlu1 %2237  ;;  %v10792_v53 = vpop.permute.xlu2 %2353  ;;  %256 = vst.msk [vmem:[#allocation2 + $0xd9] sm:$0xff] %vm65_vm0, %v191_v46 }
 0x2d8   :  { %14314 = vst [vmem:[#allocation49_spill] sm:$0xff] %v10790_v30 }
 0x2d9   :  { %14315 = vst [vmem:[#allocation50_spill] sm:$0xff] %v10792_v53  ;;  %v10794_v37 = vpop.permute.xlu0 %2247 }
 0x2da   :  { %2598 = vperm.xlu1 %8863, %v10381_v7   ;;  %14316 = vst [vmem:[#allocation51_spill] sm:$0xff] %v10794_v37 }
 0x2dc   :  { %2633 = vperm.xlu2 %8862, %v10509_v2  }
 0x2de   :  { %2623 = vperm.xlu0 %8861, %v10796_v59  }
 0x2df   :  { %v10801_v20 = vpop.permute.xlu1 %2252  ;;  %v10803_v7 = vpop.permute.xlu2 %2368 }
 0x2e0   :  { %14317 = vst [vmem:[#allocation52_spill] sm:$0xff] %v10801_v20  ;;  %v10904_v20 = vld [vmem:[%s14053_s1 + $0x3] ss:$0 sm:$0xff] }
 0x2e1   :  { %14318 = vst [vmem:[#allocation53_spill] sm:$0xff] %v10803_v7  ;;  %v2263_v52 = vpop.permute.xlu0 %2262  ;;  %v10818_v7 = vld [vmem:[#allocation2 + $0x27a] sm:$0xff] }
 0x2e2   :  { %2613 = vperm.xlu1 %8863, %v10407_v22  }
 0x2e4   :  { %2648 = vperm.xlu2 %8862, %v10540_v48  }
 0x2e6   :  { %2638 = vperm.xlu0 %8861, %v10454_v26  }
 0x2e7   :  { %v10811_v22 = vpop.permute.xlu1 %2267  ;;  %v10814_v2 = vpop.permute.xlu2 %2383 }
 0x2e8   :  { %14319 = vst [vmem:[#allocation54_spill] sm:$0xff] %v10811_v22 }
 0x2e9   :  { %14320 = vst [vmem:[#allocation55_spill] sm:$0xff] %v10814_v2  ;;  %v10816_v37 = vpop.permute.xlu0 %2328 }
 0x2ea   :  { %2628 = vperm.xlu1 %8863, %v10463_v49   ;;  %14321 = vst [vmem:[#allocation56_spill] sm:$0xff] %v10816_v37  ;;  %v192_v49 = vld [vmem:[%s14052_s0 + $0x88] sm:$0xff]  ;;  %v10833_v37 = vld [vmem:[#allocation2 + $0x272] sm:$0xff] }
 0x2eb   :  { %257 = vst.msk [vmem:[#allocation2 + $0xe1] sm:$0xff] %vm65_vm0, %v192_v49  ;;  %v223_v49 = vld [vmem:[%s14052_s0 + $0x180] sm:$0xff] }
 0x2ec   :  { %2663 = vperm.xlu2 %8862, %v10818_v7   ;;  %288 = vst.msk [vmem:[#allocation2 + $0x289] sm:$0xff] %vm65_vm0, %v223_v49 }
 0x2ee   :  { %2653 = vperm.xlu0 %8861, %v10516_v16  }
 0x2ef   :  { %v10827_v26 = vpop.permute.xlu1 %2333  ;;  %v10829_v46 = vpop.permute.xlu2 %2398 }
 0x2f0   :  { %14322 = vst [vmem:[#allocation57_spill] sm:$0xff] %v10827_v26 }
 0x2f1   :  { %14323 = vst [vmem:[#allocation58_spill] sm:$0xff] %v10829_v46  ;;  %v10831_v2 = vpop.permute.xlu0 %2343 }
 0x2f2   :  { %2643 = vperm.xlu1 %8863, %v10518_v40   ;;  %14324 = vst [vmem:[#allocation59_spill] sm:$0xff] %v10831_v2 }
 0x2f3   :  { %v10916_v24 = vld [vmem:[#allocation2 + $0x288] sm:$0xff] }
 0x2f4   :  { %2729 = vperm.xlu2 %8862, %v10608_v17   ;;  %v224_v17 = vld [vmem:[%s14052_s0 + $0x188] sm:$0xff] }
 0x2f5   :  { %289 = vst.msk [vmem:[#allocation2 + $0x291] sm:$0xff] %vm65_vm0, %v224_v17 }
 0x2f6   :  { %2719 = vperm.xlu0 %8861, %v10547_v10  }
 0x2f7   :  { %v10842_v22 = vpop.permute.xlu1 %2348  ;;  %v10844_v26 = vpop.permute.xlu2 %2463 }
 0x2f8   :  { %14325 = vst [vmem:[#allocation60_spill] sm:$0xff] %v10842_v22 }
 0x2f9   :  { %14326 = vst [vmem:[#allocation61_spill] sm:$0xff] %v10844_v26  ;;  %v10846_v46 = vpop.permute.xlu0 %2358  ;;  %v10861_v26 = vld [vmem:[#allocation2 + $0xd8] sm:$0xff] }
 0x2fa   :  { %2658 = vperm.xlu1 %8863, %v10833_v37   ;;  %14327 = vst [vmem:[#allocation62_spill] sm:$0xff] %v10846_v46  ;;  %v10887_v46 = vld [vmem:[%s14053_s1 + $0x2] ss:$0 sm:$0xff] }
 0x2fc   :  { %2744 = vperm.xlu2 %8862, %v10648_v21  }
 0x2fe   :  { %2734 = vperm.xlu0 %8861, %v10570_v54  }
 0x2ff   :  { %v10857_v10 = vpop.permute.xlu2 %2478 }
 0x300   :  { %14329 = vst [vmem:[#allocation64_spill] sm:$0xff] %v10857_v10 }
 0x301   :  { %v10859_v49 = vpop.permute.xlu0 %2373 }
 0x302   :  { %2724 = vperm.xlu1 %8863, %v10572_v44   ;;  %14330 = vst [vmem:[#allocation65_spill] sm:$0xff] %v10859_v49  ;;  %v10871_v44 = vld [vmem:[%s14053_s1 + $0x1] ss:$0 sm:$0xff]  ;;  %v10880_v49 = vld [vmem:[%s14053_s1] ss:$0 sm:$0xff] }
 0x303   :  { %v2031_v22 = vmul.f32 %v10880_v49, %v10658_v13 }
 0x304   :  { %v10854_v2 = vpop.permute.xlu1 %2363  ;;  %2759 = vperm.xlu2 %8862, %v10662_v56   ;;  %v2159_v56 = vmul.f32 %v10871_v44, %v10679_v55  ;;  %v2291_v55 = vmul.f32 %v10887_v46, %v10771_v47 }
 0x305   :  { %14328 = vst [vmem:[#allocation63_spill] sm:$0xff] %v10854_v2  ;;  %v2289_v2 = vmul.f32 %v10887_v46, %v2263_v52 }
 0x306   :  { %2749 = vperm.xlu0 %8861, %v10861_v26  }
 0x307   :  { %v10873_v17 = vpop.permute.xlu2 %2493 }
 0x308   :  { %14332 = vst [vmem:[#allocation66_spill] sm:$0xff] %v10873_v17  ;;  %v2161_v17 = vmul.f32 %v10871_v44, %v10757_v29 }
 0x309   :  { %v10875_v10 = vpop.permute.xlu0 %2388 }
 0x30a   :  { %2739 = vperm.xlu1 %8863, %v10619_v45   ;;  %14333 = vst [vmem:[#allocation68_spill] sm:$0xff] %v10875_v10  ;;  %v2029_v10 = vmul.f32 %v10880_v49, %v10653_v33  ;;  %v2177_v33 = vadd.f32 %v2161_v17, %v2031_v22  ;;  %v10927_v22 = vld [vmem:[#allocation2 + $0x290] sm:$0xff] }
 0x30c   :  { %v10866_v54 = vpop.permute.xlu1 %2378  ;;  %v2175_v53 = vadd.f32 %v2159_v56, %v2029_v10  ;;  %2774 = vperm.xlu2 %8862, %v10683_v31   ;;  %v2307_v9 = vadd.f32 %v2291_v55, %v2177_v33 }
 0x30d   :  { %14331 = vst [vmem:[#allocation67_spill] sm:$0xff] %v10866_v54  ;;  %v10889_v54 = vld [vmem:[#allocation2 + $0xe0] sm:$0xff] }
 0x30e   :  { %2764 = vperm.xlu0 %8861, %v10646_v23   ;;  %v2305_v52 = vadd.f32 %v2289_v2, %v2175_v53 }
 0x30f   :  { %v10909_v30 = vpop.permute.xlu2 %2508 }
 0x311   :  { %v2404_v47 = vpop.permute.xlu0 %2403 }
 0x312   :  { %2754 = vperm.xlu1 %8863, %v10889_v54   ;;  %v2422_v10 = vmul.f32 %v10904_v20, %v2404_v47 }
 0x314   :  { %v2394_v29 = vpop.permute.xlu1 %2393  ;;  %v10914_v60 = vadd.f32 %v2422_v10, %v2307_v9  ;;  %2789 = vperm.xlu2 %8862, %v10916_v24   ;;  %v2841_v10 = vld [vmem:[#allocation2 + $0x261] sm:$0xff] }
 0x315   :  { %v2420_v13 = vmul.f32 %v10904_v20, %v2394_v29 }
 0x316   :  { %2779 = vperm.xlu0 %8861, %v10666_v36  }
 0x317   :  { %v10912_v56 = vadd.f32 %v2420_v13, %v2305_v52  ;;  %v10923_v23 = vpop.permute.xlu2 %2523 }
 0x319   :  { %v10925_v53 = vpop.permute.xlu0 %2468 }
 0x31a   :  { %2769 = vperm.xlu1 %8863, %v10664_v34  }
 0x31c   :  { %v10921_v31 = vpop.permute.xlu1 %2458  ;;  %2854 = vperm.xlu2 %8862, %v10715_v32   ;;  %v10947_v32 = vld [vmem:[#allocation2 + $0xe1] sm:$0xff] }
 0x31d   :  { %14335 = vst [vmem:[#allocation70_spill] sm:$0xff] %v10947_v32 }
 0x31e   :  { %2794 = vperm.xlu0 %8861, %v10927_v22  }
 0x31f   :  { %v10934_v34 = vpop.permute.xlu2 %2588 }
 0x321   :  { %v10936_v2 = vpop.permute.xlu0 %2483 }
 0x322   :  { %2784 = vperm.xlu1 %8863, %v10685_v1  }
 0x324   :  { %v10932_v9 = vpop.permute.xlu1 %2473  ;;  %2869 = vperm.xlu2 %8862, %v10742_v50  }
 0x326   :  { %2859 = vperm.xlu0 %8861, %v10702_v0   ;;  %v10958_v0 = vld [vmem:[#allocation2 + $0xd9] sm:$0xff] }
 0x327   :  { %v10943_v55 = vpop.permute.xlu2 %2603 }
 0x329   :  { %v10945_v33 = vpop.permute.xlu0 %2498 }
 0x32a   :  { %2849 = vperm.xlu1 %8863, %v10704_v42   ;;  %14334 = vst [vmem:[#allocation69_spill] sm:$0xff] %v10945_v33 }
 0x32c   :  { %v10941_v17 = vpop.permute.xlu1 %2488  ;;  %2884 = vperm.xlu2 %8862, %v10947_v32  }
 0x32e   :  { %2874 = vperm.xlu0 %8861, %v10717_v63  }
 0x32f   :  { %v10954_v42 = vpop.permute.xlu2 %2618 }
 0x330   :  { %14336 = vst [vmem:[#allocation73_spill] sm:$0xff] %v10954_v42 }
 0x331   :  { %v10956_v52 = vpop.permute.xlu0 %2513 }
 0x332   :  { %2864 = vperm.xlu1 %8863, %v10719_v3   ;;  %14337 = vst [vmem:[#allocation74_spill] sm:$0xff] %v10956_v52 }
 0x334   :  { %v10952_v29 = vpop.permute.xlu1 %2503  ;;  %2899 = vperm.xlu2 %8862, %v10763_v4   ;;  %v2960_v4 = vld [vmem:[#allocation2 + $0x92] sm:$0xff] }
 0x336   :  { %2889 = vperm.xlu0 %8861, %v10744_v12   ;;  %v10977_v12 = vld [vmem:[#allocation2 + $0x289] sm:$0xff] }
 0x337   :  { %v10965_v3 = vpop.permute.xlu2 %2633  ;;  %14342 = vst [vmem:[#allocation80_spill] sm:$0xff] %v10977_v12 }
 0x338   :  { %14338 = vst [vmem:[#allocation75_spill] sm:$0xff] %v10965_v3  ;;  %v2963_v3 = vld [vmem:[#allocation2 + $0xb2] sm:$0xff] }
 0x339   :  { %v10967_v47 = vpop.permute.xlu0 %2528 }
 0x33a   :  { %2879 = vperm.xlu1 %8863, %v10958_v0   ;;  %14339 = vst [vmem:[#allocation76_spill] sm:$0xff] %v10967_v47 }
 0x33c   :  { %v10963_v13 = vpop.permute.xlu1 %2518  ;;  %2914 = vperm.xlu2 %8862, %v10775_v6  }
 0x33e   :  { %2904 = vperm.xlu0 %8861, %v2841_v10   ;;  %v10987_v10 = vld [vmem:[#allocation2 + $0x291] sm:$0xff] }
 0x33f   :  { %v10973_v52 = vpop.permute.xlu2 %2648  ;;  %14345 = vst [vmem:[#allocation83_spill] sm:$0xff] %v10987_v10 }
 0x340   :  { %14340 = vst [vmem:[#allocation78_spill] sm:$0xff] %v10973_v52  ;;  %v2961_v52 = vld [vmem:[#allocation2 + $0x9a] sm:$0xff] }
 0x341   :  { %v10975_v42 = vpop.permute.xlu0 %2593 }
 0x342   :  { %2894 = vperm.xlu1 %8863, %v10754_v39   ;;  %14341 = vst [vmem:[#allocation79_spill] sm:$0xff] %v10975_v42 }
 0x344   :  { %v10971_v32 = vpop.permute.xlu1 %2533  ;;  %2979 = vperm.xlu2 %8862, %v2960_v4  }
 0x346   :  { %2919 = vperm.xlu0 %8861, %v10977_v12   ;;  %v2962_v12 = vld [vmem:[#allocation2 + $0xaa] sm:$0xff] }
 0x347   :  { %v10983_v39 = vpop.permute.xlu2 %2663 }
 0x349   :  { %v10985_v6 = vpop.permute.xlu0 %2608 }
 0x34a   :  { %2909 = vperm.xlu1 %8863, %v10765_v41   ;;  %14344 = vst [vmem:[#allocation84_spill] sm:$0xff] %v10985_v6 }
 0x34c   :  { %v10981_v47 = vpop.permute.xlu1 %2598  ;;  %2994 = vperm.xlu2 %8862, %v2963_v3  }
 0x34d   :  { %14343 = vst [vmem:[#allocation82_spill] sm:$0xff] %v10981_v47  ;;  %v10996_v47 = vld [vmem:[#allocation2 + $0xda] sm:$0xff] }
 0x34e   :  { %2984 = vperm.xlu0 %8861, %v2961_v52   ;;  %14347 = vst [vmem:[#allocation86_spill] sm:$0xff] %v10996_v47  ;;  %v11006_v52 = vld [vmem:[#allocation2 + $0xe2] sm:$0xff] }
 0x34f   :  { %v10992_v41 = vpop.permute.xlu2 %2729  ;;  %14351 = vst [vmem:[#allocation90_spill] sm:$0xff] %v11006_v52 }
 0x351   :  { %v10994_v4 = vpop.permute.xlu0 %2623 }
 0x352   :  { %2924 = vperm.xlu1 %8863, %v10987_v10   ;;  %14346 = vst [vmem:[#allocation85_spill] sm:$0xff] %v10994_v4  ;;  %v193_v10 = vld [vmem:[%s14052_s0 + $0x90] sm:$0xff] }
 0x353   :  { %258 = vst.msk [vmem:[#allocation2 + $0xf1] sm:$0xff] %vm65_vm0, %v193_v10 }
 0x354   :  { %v10990_v42 = vpop.permute.xlu1 %2613  ;;  %3009 = vperm.xlu2 %8862, %v10996_v47  }
 0x356   :  { %2999 = vperm.xlu0 %8861, %v10785_v38  }
 0x357   :  { %v11002_v33 = vpop.permute.xlu2 %2744 }
 0x358   :  { %14349 = vst [vmem:[#allocation88_spill] sm:$0xff] %v11002_v33 }
 0x359   :  { %v11004_v3 = vpop.permute.xlu0 %2638 }
 0x35a   :  { %2989 = vperm.xlu1 %8863, %v2962_v12   ;;  %14350 = vst [vmem:[#allocation89_spill] sm:$0xff] %v11004_v3  ;;  %v194_v12 = vld [vmem:[%s14052_s0 + $0x98] sm:$0xff]  ;;  %v2968_v3 = vld [vmem:[#allocation2 + $0x242] sm:$0xff] }
 0x35b   :  { %259 = vst.msk [vmem:[#allocation2 + $0xf9] sm:$0xff] %vm65_vm0, %v194_v12 }
 0x35c   :  { %v11000_v6 = vpop.permute.xlu1 %2628  ;;  %3024 = vperm.xlu2 %8862, %v10518_v40   ;;  %v195_v40 = vld [vmem:[%s14052_s0 + $0xa0] sm:$0xff] }
 0x35d   :  { %14348 = vst [vmem:[#allocation87_spill] sm:$0xff] %v11000_v6 }
 0x35e   :  { %3014 = vperm.xlu0 %8861, %v11006_v52   ;;  %260 = vst.msk [vmem:[#allocation2 + $0x109] sm:$0xff] %vm65_vm0, %v195_v40 }
 0x35f   :  { %v11021_v47 = vpop.permute.xlu2 %2759 }
 0x360   :  { %14353 = vst [vmem:[#allocation92_spill] sm:$0xff] %v11021_v47  ;;  %v2975_v47 = vld [vmem:[#allocation2 + $0x292] sm:$0xff] }
 0x362   :  { %3004 = vperm.xlu1 %8863, %v10796_v59   ;;  %v2654_v59 = vpop.permute.xlu0 %2653 }
 0x364   :  { %v11018_v38 = vpop.permute.xlu1 %2643  ;;  %3039 = vperm.xlu2 %8862, %v10833_v37  }
 0x365   :  { %14352 = vst [vmem:[#allocation71_spill] sm:$0xff] %v11018_v38 }
 0x366   :  { %3029 = vperm.xlu0 %8861, %v10540_v48  }
 0x367   :  { %v11031_v10 = vpop.permute.xlu2 %2774 }
 0x368   :  { %14355 = vst [vmem:[#allocation33_spill] sm:$0xff] %v11031_v10  ;;  %v2974_v10 = vld [vmem:[#allocation2 + $0x28a] sm:$0xff] }
 0x36a   :  { %3019 = vperm.xlu1 %8863, %v2968_v3   ;;  %v11033_v12 = vpop.permute.xlu0 %2719  ;;  %v196_v3 = vld [vmem:[%s14052_s0 + $0xa8] sm:$0xff] }
 0x36b   :  { %14356 = vst [vmem:[#allocation91_spill] sm:$0xff] %v11033_v12  ;;  %v227_v12 = vld [vmem:[%s14052_s0 + $0x1a0] sm:$0xff] }
 0x36c   :  { %v11028_v52 = vpop.permute.xlu1 %2658  ;;  %261 = vst.msk [vmem:[#allocation2 + $0x111] sm:$0xff] %vm65_vm0, %v196_v3  ;;  %3054 = vperm.xlu2 %8862, %v2975_v47   ;;  %v3489_v3 = vld [vmem:[#allocation2 + $0xf8] sm:$0xff] }
 0x36d   :  { %14354 = vst [vmem:[#allocation32_spill] sm:$0xff] %v11028_v52  ;;  %v14385_v52 = vld [vmem:[#allocation37_spill] sm:$0xff] }
 0x36e   :  { %3044 = vperm.xlu0 %8861, %v10818_v7   ;;  %292 = vst.msk [vmem:[#allocation2 + $0x2b9] sm:$0xff] %vm65_vm0, %v227_v12 }
 0x36f   :  { %v11043_v37 = vpop.permute.xlu2 %2789 }
 0x370   :  { %14358 = vst [vmem:[#allocation94_spill] sm:$0xff] %v11043_v37 }
 0x372   :  { %3034 = vperm.xlu1 %8863, %v10516_v16   ;;  %v11045_v40 = vpop.permute.xlu0 %2734  ;;  %v225_v16 = vld [vmem:[%s14052_s0 + $0x190] sm:$0xff] }
 0x373   :  { %14359 = vst [vmem:[#allocation96_spill] sm:$0xff] %v11045_v40 }
 0x374   :  { %v11041_v48 = vpop.permute.xlu1 %2724  ;;  %3513 = vperm.xlu2 %8862, %v10861_v26   ;;  %290 = vst.msk [vmem:[#allocation2 + $0x2a1] sm:$0xff] %vm65_vm0, %v225_v16  ;;  %v226_v26 = vld [vmem:[%s14052_s0 + $0x198] sm:$0xff] }
 0x375   :  { %14357 = vst [vmem:[#allocation93_spill] sm:$0xff] %v11041_v48 }
 0x376   :  { %3503 = vperm.xlu0 %8861, %v10619_v45   ;;  %291 = vst.msk [vmem:[#allocation2 + $0x2a9] sm:$0xff] %vm65_vm0, %v226_v26  ;;  %v228_v45 = vld [vmem:[%s14052_s0 + $0x1a8] sm:$0xff] }
 0x377   :  { %v11059_v47 = vpop.permute.xlu2 %2854  ;;  %293 = vst.msk [vmem:[#allocation2 + $0x2c1] sm:$0xff] %vm65_vm0, %v228_v45 }
 0x378   :  { %14361 = vst [vmem:[#allocation97_spill] sm:$0xff] %v11059_v47 }
 0x37a   :  { %3049 = vperm.xlu1 %8863, %v2974_v10   ;;  %v11061_v10 = vpop.permute.xlu0 %2749 }
 0x37b   :  { %14362 = vst [vmem:[#allocation98_spill] sm:$0xff] %v11061_v10  ;;  %v3490_v10 = vld [vmem:[#allocation2 + $0x108] sm:$0xff] }
 0x37c   :  { %v11056_v7 = vpop.permute.xlu1 %2739  ;;  %3528 = vperm.xlu2 %8862, %v3489_v3  }
 0x37d   :  { %14360 = vst [vmem:[#allocation95_spill] sm:$0xff] %v11056_v7  ;;  %v3488_v7 = vld [vmem:[#allocation2 + $0xf0] sm:$0xff] }
 0x37e   :  { %3518 = vperm.xlu0 %8861, %v10889_v54   ;;  %v11085_v54 = vld [vmem:[%s14053_s1 + $0x4] ss:$0 sm:$0xff] }
 0x37f   :  { %v11075_v16 = vpop.permute.xlu2 %2869  ;;  %v2550_v45 = vmul.f32 %v11085_v54, %v10923_v23 }
 0x380   :  { %14364 = vst [vmem:[#allocation16_spill] sm:$0xff] %v11075_v16  ;;  %v11115_v16 = vmul.f32 %v10880_v49, %v10490_v5  ;;  %v11131_v5 = vld [vmem:[%s14053_s1 + $0x6] ss:$0 sm:$0xff] }
 0x382   :  { %3508 = vperm.xlu1 %8863, %v10648_v21   ;;  %v11077_v47 = vpop.permute.xlu0 %2764 }
 0x383   :  { %14365 = vst [vmem:[#allocation72_spill] sm:$0xff] %v11077_v47  ;;  %v11111_v47 = vmul.f32 %v10880_v49, %v10433_v62  ;;  %v2566_v62 = vadd.f32 %v2550_v45, %v10912_v56  ;;  %v2146_v45 = vmul.f32 %v10871_v44, %v10677_v18 }
 0x384   :  { %v11072_v12 = vpop.permute.xlu1 %2754  ;;  %3543 = vperm.xlu2 %8862, %v10666_v36   ;;  %v3491_v36 = vld [vmem:[#allocation2 + $0x110] sm:$0xff] }
 0x385   :  { %14363 = vst [vmem:[#allocation99_spill] sm:$0xff] %v11072_v12  ;;  %v14370_v12 = vld [vmem:[#allocation17_spill] sm:$0xff] }
 0x386   :  { %3533 = vperm.xlu0 %8861, %v3490_v10   ;;  %v2552_v10 = vmul.f32 %v11085_v54, %v10971_v32  ;;  %v11125_v32 = vmul.f32 %v10880_v49, %v10529_v58  ;;  %v2150_v58 = vmul.f32 %v10871_v44, %v10592_v11  ;;  %v2023_v11 = vmul.f32 %v10880_v49, %v14370_v12 }
 0x387   :  { %v11087_v3 = vpop.permute.xlu2 %2884  ;;  %v2149_v12 = vmul.f32 %v10871_v44, %v10692_v14 }
 0x388   :  { %14367 = vst [vmem:[#allocation77_spill] sm:$0xff] %v11087_v3  ;;  %v11104_v3 = vmul.f32 %v10880_v49, %v10389_v43  ;;  %v2568_v56 = vadd.f32 %v2552_v10, %v10914_v60 }
 0x38a   :  { %3523 = vperm.xlu1 %8863, %v3488_v7   ;;  %v11089_v26 = vpop.permute.xlu0 %2779  ;;  %v11096_v7 = vld [vmem:[%s14053_s1 + $0x5] ss:$0 sm:$0xff] }
 0x38b   :  { %14368 = vst [vmem:[#allocation100_spill] sm:$0xff] %v11089_v26  ;;  %v2147_v26 = vmul.f32 %v10871_v44, %v10556_v28  ;;  %v2680_v23 = vmul.f32 %v11096_v7, %v2654_v59  ;;  %v2682_v43 = vmul.f32 %v11096_v7, %v10983_v39  ;;  %v2017_v28 = vmul.f32 %v10880_v49, %v10526_v15 }
 0x38c   :  { %v11080_v21 = vpop.permute.xlu1 %2769  ;;  %3558 = vperm.xlu2 %8862, %v10927_v22   ;;  %v2020_v15 = vmul.f32 %v10880_v49, %v10552_v61  ;;  %v2022_v61 = vmul.f32 %v10880_v49, %v10558_v57  ;;  %v14375_v57 = vld [vmem:[#allocation25_spill] sm:$0xff] }
 0x38d   :  { %14366 = vst [vmem:[#allocation81_spill] sm:$0xff] %v11080_v21  ;;  %v2018_v21 = vmul.f32 %v10880_v49, %v10374_v51  ;;  %v2016_v51 = vmul.f32 %v10880_v49, %v10499_v35  ;;  %v2019_v35 = vmul.f32 %v10880_v49, %v10531_v25  ;;  %v11142_v59 = vadd.f32 %v2147_v26, %v2017_v28  ;;  %v14371_v26 = vld [vmem:[#allocation20_spill] sm:$0xff]  ;;  %v14372_v28 = vld [vmem:[#allocation21_spill] sm:$0xff] }
 0x38e   :  { %3548 = vperm.xlu0 %8861, %v10685_v1   ;;  %v2696_v22 = vadd.f32 %v2680_v23, %v2566_v62  ;;  %v2698_v37 = vadd.f32 %v2682_v43, %v2568_v56  ;;  %v2025_v10 = vmul.f32 %v10880_v49, %v14371_v26  ;;  %v2026_v18 = vmul.f32 %v10880_v49, %v14372_v28  ;;  %v14373_v23 = vld [vmem:[#allocation23_spill] sm:$0xff]  ;;  %v3498_v56 = vld [vmem:[#allocation2 + $0x2b8] sm:$0xff] }
 0x38f   :  { %v2153_v62 = vmul.f32 %v10871_v44, %v14373_v23  ;;  %v2156_v40 = vmul.f32 %v10871_v44, %v14375_v57  ;;  %v2162_v26 = vadd.f32 %v2146_v45, %v2016_v51  ;;  %v2148_v28 = vmul.f32 %v10871_v44, %v10681_v8  ;;  %v14378_v23 = vld [vmem:[#allocation28_spill] sm:$0xff]  ;;  %v14381_v8 = vld [vmem:[#allocation34_spill] sm:$0xff]  ;;  %v14382_v45 = vld [vmem:[#allocation35_spill] sm:$0xff] }
 0x390   :  { %v2279_v14 = vmul.f32 %v10887_v46, %v14378_v23  ;;  %v14380_v57 = vld [vmem:[#allocation36_spill] sm:$0xff]  ;;  %v2165_v48 = vadd.f32 %v2149_v12, %v2019_v35 }
 0x391   :  { %v2155_v51 = vmul.f32 %v10871_v44, %v14380_v57  ;;  %v2169_v23 = vadd.f32 %v2153_v62, %v2023_v11  ;;  %v2285_v57 = vmul.f32 %v10887_v46, %v14385_v52  ;;  %v2172_v38 = vadd.f32 %v2156_v40, %v2026_v18  ;;  %v14386_v40 = vld [vmem:[#allocation38_spill] sm:$0xff]  ;;  %v14387_v12 = vld [vmem:[#allocation40_spill] sm:$0xff] }
 0x392   :  { %3538 = vperm.xlu1 %8863, %v3491_v36   ;;  %v11147_v36 = vpop.permute.xlu2 %2899  ;;  %v2795_v25 = vpop.permute.xlu0 %2794  ;;  %v11202_v11 = vadd.f32 %v2279_v14, %v2165_v48  ;;  %v14394_v14 = vld [vmem:[#allocation48_spill] sm:$0xff] }
 0x393   :  { %14369 = vst [vmem:[#allocation101_spill] sm:$0xff] %v11147_v36  ;;  %v2813_v60 = vmul.f32 %v11131_v5, %v2795_v25  ;;  %v11162_v36 = vadd.f32 %v2150_v58, %v2020_v15  ;;  %v3496_v25 = vld [vmem:[#allocation2 + $0x2a0] sm:$0xff]  ;;  %v2152_v15 = vmul.f32 %v10871_v44, %v10709_v27  ;;  %v2157_v27 = vmul.f32 %v10871_v44, %v14382_v45 }
 0x394   :  { %v2785_v39 = vpop.permute.xlu1 %2784  ;;  %v14377_v58 = vld [vmem:[#allocation27_spill] sm:$0xff]  ;;  %3573 = vperm.xlu2 %8862, %v3498_v56   ;;  %v2171_v35 = vadd.f32 %v2155_v51, %v2025_v10  ;;  %v2288_v56 = vmul.f32 %v10887_v46, %v14387_v12  ;;  %v14390_v10 = vld [vmem:[#allocation41_spill] sm:$0xff]  ;;  %v14399_v12 = vld [vmem:[#allocation54_spill] sm:$0xff] }
 0x395   :  { %v2811_v1 = vmul.f32 %v11131_v5, %v2785_v39  ;;  %v11168_v43 = vadd.f32 %v2813_v60, %v2698_v37  ;;  %v14379_v37 = vld [vmem:[#allocation29_spill] sm:$0xff]  ;;  %v2168_v6 = vadd.f32 %v2152_v15, %v2022_v61  ;;  %v2173_v52 = vadd.f32 %v2157_v27, %v11115_v16  ;;  %v3497_v61 = vld [vmem:[#allocation2 + $0x2a8] sm:$0xff]  ;;  %v14396_v27 = vld [vmem:[#allocation50_spill] sm:$0xff] }
 0x396   :  { %v2154_v60 = vmul.f32 %v10871_v44, %v14379_v37  ;;  %3563 = vperm.xlu0 %8861, %v3496_v25   ;;  %v11210_v18 = vadd.f32 %v2285_v57, %v2171_v35  ;;  %v14389_v25 = vld [vmem:[#allocation46_spill] sm:$0xff]  ;;  %v2277_v16 = vmul.f32 %v10887_v46, %v14390_v10  ;;  %v14393_v15 = vld [vmem:[#allocation52_spill] sm:$0xff]  ;;  %v14395_v51 = vld [vmem:[#allocation47_spill] sm:$0xff] }
 0x397   :  { %v11160_v39 = vadd.f32 %v2811_v1, %v2696_v22  ;;  %14376 = vst [vmem:[#allocation20_spill] sm:$0xff] %v11168_v43  ;;  %v2276_v22 = vmul.f32 %v10887_v46, %v10695_v19  ;;  %v2151_v1 = vmul.f32 %v10871_v44, %v14377_v58  ;;  %v2282_v19 = vmul.f32 %v10887_v46, %v14381_v8  ;;  %v14383_v43 = vld [vmem:[#allocation39_spill] sm:$0xff]  ;;  %v14398_v35 = vld [vmem:[#allocation53_spill] sm:$0xff] }
 0x398   :  { %v2158_v58 = vmul.f32 %v10871_v44, %v14383_v43  ;;  %v2164_v8 = vadd.f32 %v2148_v28, %v2018_v21  ;;  %v2160_v21 = vmul.f32 %v10871_v44, %v14386_v40  ;;  %v14392_v44 = vld [vmem:[#allocation49_spill] sm:$0xff]  ;;  %v2415_v40 = vmul.f32 %v10904_v20, %v14398_v35  ;;  %v14401_v35 = vld [vmem:[#allocation56_spill] sm:$0xff] }
 0x399   :  { %14374 = vst [vmem:[#allocation17_spill] sm:$0xff] %v11160_v39  ;;  %v14384_v39 = vld [vmem:[#allocation24_spill] sm:$0xff]  ;;  %v2292_v33 = vadd.f32 %v2276_v22, %v2162_v26  ;;  %v2167_v43 = vadd.f32 %v2151_v1, %v11104_v3  ;;  %v11205_v62 = vadd.f32 %v2282_v19, %v2168_v6  ;;  %v14388_v3 = vld [vmem:[#allocation43_spill] sm:$0xff]  ;;  %v2284_v22 = vmul.f32 %v10887_v46, %v14392_v44 }
 0x39a   :  { %3553 = vperm.xlu1 %8863, %v10916_v24   ;;  %v2028_v37 = vmul.f32 %v10880_v49, %v14384_v39  ;;  %v11197_v45 = vpop.permute.xlu2 %2914  ;;  %v11199_v4 = vpop.permute.xlu0 %2859  ;;  %v2170_v49 = vadd.f32 %v2154_v60, %v11111_v47  ;;  %v2278_v48 = vmul.f32 %v10887_v46, %v14388_v3  ;;  %v2281_v47 = vmul.f32 %v10887_v46, %v14389_v25  ;;  %v3499_v6 = vld [vmem:[#allocation2 + $0x2c0] sm:$0xff]  ;;  %v14391_v26 = vld [vmem:[#allocation44_spill] sm:$0xff] }
 0x39b   :  { %v2280_v28 = vmul.f32 %v10887_v46, %v14391_v26  ;;  %v2287_v1 = vmul.f32 %v10887_v46, %v14393_v15  ;;  %v2409_v60 = vmul.f32 %v10904_v20, %v14394_v14  ;;  %v2283_v19 = vmul.f32 %v10887_v46, %v14395_v51  ;;  %v14400_v25 = vld [vmem:[#allocation55_spill] sm:$0xff] }
 0x39c   :  { %v11195_v24 = vpop.permute.xlu1 %2849  ;;  %v2174_v39 = vadd.f32 %v2158_v58, %v2028_v37  ;;  %v2412_v58 = vmul.f32 %v10904_v20, %v14396_v27  ;;  %v14397_v37 = vld [vmem:[#allocation51_spill] sm:$0xff]  ;;  %v2290_v3 = vmul.f32 %v10887_v46, %v14399_v12  ;;  %v2418_v10 = vmul.f32 %v10904_v20, %v14400_v25  ;;  %3638 = vperm.xlu2 %8862, %v10717_v63  }
 0x39d   :  { %v2286_v57 = vmul.f32 %v10887_v46, %v14397_v37  ;;  %v2176_v26 = vadd.f32 %v2160_v21, %v11125_v32  ;;  %v2294_v15 = vadd.f32 %v2278_v48, %v2164_v8  ;;  %v2297_v14 = vadd.f32 %v2281_v47, %v2167_v43  ;;  %v14404_v47 = vld [vmem:[#allocation59_spill] sm:$0xff] }
 0x39e   :  { %3578 = vperm.xlu0 %8861, %v3499_v6   ;;  %v2304_v44 = vadd.f32 %v2288_v56, %v2174_v39  ;;  %v2300_v27 = vadd.f32 %v2284_v22, %v2170_v49  ;;  %v2303_v37 = vadd.f32 %v2287_v1, %v2173_v52  ;;  %v2407_v46 = vmul.f32 %v10904_v20, %v14401_v35  ;;  %v14402_v49 = vld [vmem:[#allocation57_spill] sm:$0xff]  ;;  %v14403_v56 = vld [vmem:[#allocation58_spill] sm:$0xff] }
 0x39f   :  { %v2296_v63 = vadd.f32 %v2280_v28, %v11162_v36  ;;  %v2425_v6 = vadd.f32 %v2409_v60, %v2294_v15  ;;  %v2299_v32 = vadd.f32 %v2283_v19, %v2169_v23  ;;  %v11252_v39 = vadd.f32 %v2412_v58, %v2297_v14  ;;  %v14405_v36 = vld [vmem:[#allocation60_spill] sm:$0xff]  ;;  %v14407_v60 = vld [vmem:[#allocation63_spill] sm:$0xff]  ;;  %v14411_v15 = vld [vmem:[#allocation65_spill] sm:$0xff] }
 0x3a0   :  { %v2302_v8 = vadd.f32 %v2286_v57, %v2172_v38  ;;  %v11254_v43 = vadd.f32 %v2415_v40, %v2300_v27  ;;  %v2306_v21 = vadd.f32 %v2290_v3, %v2176_v26  ;;  %v2408_v52 = vmul.f32 %v10904_v20, %v14402_v49  ;;  %v3618_v28 = vld [vmem:[#allocation2 + $0xf1] sm:$0xff]  ;;  %v14408_v58 = vld [vmem:[#allocation67_spill] sm:$0xff]  ;;  %v14409_v40 = vld [vmem:[#allocation62_spill] sm:$0xff] }
 0x3a1   :  { %v2421_v48 = vmul.f32 %v10904_v20, %v14403_v56  ;;  %v2411_v23 = vmul.f32 %v10904_v20, %v14405_v36  ;;  %v2423_v22 = vadd.f32 %v2407_v46, %v2292_v33  ;;  %v14406_v38 = vld [vmem:[#allocation61_spill] sm:$0xff]  ;;  %v2414_v19 = vmul.f32 %v10904_v20, %v14407_v60  ;;  %v14412_v27 = vld [vmem:[#allocation66_spill] sm:$0xff] }
 0x3a2   :  { %3568 = vperm.xlu1 %8863, %v3497_v61   ;;  %v2293_v61 = vadd.f32 %v2277_v16, %v11142_v59  ;;  %v11247_v12 = vpop.permute.xlu2 %2979  ;;  %v11249_v25 = vpop.permute.xlu0 %2874  ;;  %v11256_v59 = vadd.f32 %v2418_v10, %v2303_v37  ;;  %v2410_v16 = vmul.f32 %v10904_v20, %v14404_v47  ;;  %v2538_v1 = vmul.f32 %v11085_v54, %v14406_v38  ;;  %v14410_v10 = vld [vmem:[#allocation64_spill] sm:$0xff] }
 0x3a3   :  { %v2417_v57 = vmul.f32 %v10904_v20, %v14408_v58  ;;  %v2413_v3 = vmul.f32 %v10904_v20, %v14409_v40  ;;  %v2541_v26 = vmul.f32 %v11085_v54, %v14410_v10  ;;  %v2416_v14 = vmul.f32 %v10904_v20, %v14411_v15  ;;  %v14413_v37 = vld [vmem:[#allocation68_spill] sm:$0xff]  ;;  %v14421_v15 = vld [vmem:[#allocation79_spill] sm:$0xff] }
 0x3a4   :  { %v11242_v51 = vpop.permute.xlu1 %2864  ;;  %v2544_v33 = vmul.f32 %v11085_v54, %v14412_v27  ;;  %v2419_v35 = vmul.f32 %v10904_v20, %v14413_v37  ;;  %v2547_v46 = vmul.f32 %v11085_v54, %v10909_v30  ;;  %v2537_v49 = vmul.f32 %v11085_v54, %v10921_v31  ;;  %3653 = vperm.xlu2 %8862, %v3618_v28   ;;  %v14419_v10 = vld [vmem:[#allocation76_spill] sm:$0xff] }
 0x3a5   :  { %v2424_v56 = vadd.f32 %v2408_v52, %v2293_v61  ;;  %v2437_v47 = vadd.f32 %v2421_v48, %v2306_v21  ;;  %v2426_v36 = vadd.f32 %v2410_v16, %v11202_v11  ;;  %v2427_v38 = vadd.f32 %v2411_v23, %v2296_v63  ;;  %v3621_v16 = vld [vmem:[#allocation2 + $0x111] sm:$0xff] }
 0x3a6   :  { %3643 = vperm.xlu0 %8861, %v10958_v0   ;;  %v2433_v58 = vadd.f32 %v2417_v57, %v2302_v8  ;;  %v2539_v20 = vmul.f32 %v11085_v54, %v10925_v53  ;;  %v2540_v30 = vmul.f32 %v11085_v54, %v10932_v9  ;;  %v2429_v61 = vadd.f32 %v2413_v3, %v11205_v62 }
 0x3a7   :  { %v2554_v0 = vadd.f32 %v2538_v1, %v2424_v56  ;;  %v2557_v21 = vadd.f32 %v2541_v26, %v2427_v38  ;;  %v2432_v11 = vadd.f32 %v2416_v14, %v11210_v18  ;;  %v2553_v52 = vadd.f32 %v2537_v49, %v2423_v22  ;;  %v3619_v18 = vld [vmem:[#allocation2 + $0xf9] sm:$0xff]  ;;  %v14423_v38 = vld [vmem:[#allocation84_spill] sm:$0xff] }
 0x3a8   :  { %v11303_v8 = vadd.f32 %v2547_v46, %v2433_v58  ;;  %v2667_v53 = vmul.f32 %v11096_v7, %v10934_v34  ;;  %v2542_v9 = vmul.f32 %v11085_v54, %v10936_v2  ;;  %v2543_v48 = vmul.f32 %v11085_v54, %v10941_v17  ;;  %v14414_v34 = vld [vmem:[#allocation69_spill] sm:$0xff]  ;;  %v14416_v17 = vld [vmem:[#allocation74_spill] sm:$0xff] }
 0x3a9   :  { %v2670_v62 = vmul.f32 %v11096_v7, %v10943_v55  ;;  %v2555_v23 = vadd.f32 %v2539_v20, %v2425_v6  ;;  %v2556_v28 = vadd.f32 %v2540_v30, %v2426_v36  ;;  %v2549_v22 = vmul.f32 %v11085_v54, %v10963_v13  ;;  %v14415_v2 = vld [vmem:[#allocation73_spill] sm:$0xff]  ;;  %v14417_v55 = vld [vmem:[#allocation75_spill] sm:$0xff]  ;;  %v14418_v6 = vld [vmem:[#allocation70_spill] sm:$0xff] }
 0x3aa   :  { %3633 = vperm.xlu1 %8863, %v10742_v50   ;;  %v2430_v50 = vadd.f32 %v2414_v19, %v2299_v32  ;;  %v11295_v40 = vpop.permute.xlu2 %2994  ;;  %v11297_v31 = vpop.permute.xlu0 %2889  ;;  %v2435_v32 = vadd.f32 %v2419_v35, %v2304_v44  ;;  %v2546_v44 = vmul.f32 %v11085_v54, %v10952_v29  ;;  %v2545_v1 = vmul.f32 %v11085_v54, %v14414_v34  ;;  %v14420_v26 = vld [vmem:[#allocation78_spill] sm:$0xff]  ;;  %v14427_v34 = vld [vmem:[#allocation89_spill] sm:$0xff] }
 0x3ab   :  { %v2673_v19 = vmul.f32 %v11096_v7, %v14415_v2  ;;  %v2548_v57 = vmul.f32 %v11085_v54, %v14416_v17  ;;  %v2676_v3 = vmul.f32 %v11096_v7, %v14417_v55  ;;  %v2551_v29 = vmul.f32 %v11085_v54, %v14419_v10  ;;  %v14422_v36 = vld [vmem:[#allocation82_spill] sm:$0xff]  ;;  %v14430_v17 = vld [vmem:[#allocation32_spill] sm:$0xff]  ;;  %v14431_v55 = vld [vmem:[#allocation33_spill] sm:$0xff] }
 0x3ac   :  { %v11289_v60 = vpop.permute.xlu1 %2879  ;;  %v11301_v63 = vadd.f32 %v2544_v33, %v2430_v50  ;;  %v2679_v13 = vmul.f32 %v11096_v7, %v14420_v26  ;;  %v2668_v14 = vmul.f32 %v11096_v7, %v14421_v15  ;;  %3668 = vperm.xlu2 %8862, %v3621_v16   ;;  %v2683_v27 = vadd.f32 %v2667_v53, %v2553_v52  ;;  %v14424_v16 = vld [vmem:[#allocation85_spill] sm:$0xff]  ;;  %v14436_v15 = vld [vmem:[#allocation42_spill] sm:$0xff] }
 0x3ad   :  { %v2558_v33 = vadd.f32 %v2542_v9, %v11252_v39  ;;  %v2559_v37 = vadd.f32 %v2543_v48, %v2429_v61  ;;  %v2686_v35 = vadd.f32 %v2670_v62, %v2556_v28  ;;  %v2562_v49 = vadd.f32 %v2546_v44, %v2432_v11  ;;  %v3620_v48 = vld [vmem:[#allocation2 + $0x109] sm:$0xff] }
 0x3ae   :  { %3658 = vperm.xlu0 %8861, %v3619_v18   ;;  %v2565_v56 = vadd.f32 %v2549_v22, %v2435_v32  ;;  %v2669_v54 = vmul.f32 %v11096_v7, %v14422_v36  ;;  %v2671_v50 = vmul.f32 %v11096_v7, %v14423_v38  ;;  %v2561_v30 = vadd.f32 %v2545_v1, %v11254_v43  ;;  %v14425_v43 = vld [vmem:[#allocation87_spill] sm:$0xff] }
 0x3af   :  { %v2689_v52 = vadd.f32 %v2673_v19, %v2559_v37  ;;  %v2564_v39 = vadd.f32 %v2548_v57, %v11256_v59  ;;  %v2672_v61 = vmul.f32 %v11096_v7, %v10990_v42  ;;  %v11345_v53 = vadd.f32 %v2676_v3, %v2562_v49  ;;  %v14426_v59 = vld [vmem:[#allocation88_spill] sm:$0xff]  ;;  %v14428_v1 = vld [vmem:[#allocation71_spill] sm:$0xff] }
 0x3b0   :  { %v2567_v11 = vadd.f32 %v2551_v29, %v2437_v47  ;;  %v11347_v32 = vadd.f32 %v2679_v13, %v2565_v56  ;;  %v2684_v9 = vadd.f32 %v2668_v14, %v2554_v0  ;;  %v2800_v62 = vmul.f32 %v11131_v5, %v10992_v41  ;;  %v14429_v19 = vld [vmem:[#allocation92_spill] sm:$0xff]  ;;  %v11383_v49 = vld [vmem:[%s14053_s1 + $0x7] ss:$0 sm:$0xff]  ;;  %v11388_v56 = vld [vmem:[%s14053_s1 + $0x8] ss:$0 sm:$0xff] }
 0x3b1   :  { %v2674_v18 = vmul.f32 %v11096_v7, %v14424_v16  ;;  %v2675_v28 = vmul.f32 %v11096_v7, %v14425_v43  ;;  %v2803_v44 = vmul.f32 %v11131_v5, %v14426_v59  ;;  %v2685_v42 = vadd.f32 %v2669_v54, %v2555_v23  ;;  %v14433_v23 = vld [vmem:[#allocation93_spill] sm:$0xff]  ;;  %v14434_v29 = vld [vmem:[#allocation96_spill] sm:$0xff] }
 0x3b2   :  { %3648 = vperm.xlu1 %8863, %v14418_v6   ;;  %v3010_v58 = vpop.permute.xlu2 %3009  ;;  %v11339_v20 = vpop.permute.xlu0 %2904  ;;  %v2687_v22 = vadd.f32 %v2671_v50, %v2557_v21  ;;  %v2677_v47 = vmul.f32 %v11096_v7, %v14427_v34  ;;  %v2678_v0 = vmul.f32 %v11096_v7, %v14428_v1  ;;  %v2688_v2 = vadd.f32 %v2672_v61, %v2558_v33  ;;  %v14432_v6 = vld [vmem:[#allocation91_spill] sm:$0xff]  ;;  %v14435_v13 = vld [vmem:[#allocation80_spill] sm:$0xff]  ;;  %v14437_v50 = vld [vmem:[#allocation94_spill] sm:$0xff] }
 0x3b3   :  { %v2806_v41 = vmul.f32 %v11131_v5, %v14429_v19  ;;  %v2681_v57 = vmul.f32 %v11096_v7, %v14430_v17  ;;  %v2809_v3 = vmul.f32 %v11131_v5, %v14431_v55  ;;  %v2798_v21 = vmul.f32 %v11131_v5, %v14432_v6  ;;  %v3627_v1 = vld [vmem:[#allocation2 + $0x2a9] sm:$0xff] }
 0x3b4   :  { %v11333_v46 = vpop.permute.xlu1 %2894  ;;  %v2799_v10 = vmul.f32 %v11131_v5, %v14433_v23  ;;  %v2801_v26 = vmul.f32 %v11131_v5, %v14434_v29  ;;  %3683 = vperm.xlu2 %8862, %v14435_v13   ;;  %v11375_v14 = vadd.f32 %v2800_v62, %v2685_v42  ;;  %v2690_v7 = vadd.f32 %v2674_v18, %v11301_v63  ;;  %v14439_v42 = vld [vmem:[#allocation95_spill] sm:$0xff]  ;;  %v14442_v19 = vld [vmem:[#allocation16_spill] sm:$0xff]  ;;  %v11437_v29 = vld [vmem:[%s14054_s2] ss:$0 sm:$0xff] }
 0x3b5   :  { %v2691_v33 = vadd.f32 %v2675_v28, %v2561_v30  ;;  %v11378_v37 = vadd.f32 %v2803_v44, %v2688_v2  ;;  %v2693_v54 = vadd.f32 %v2677_v47, %v11303_v8  ;;  %v2694_v38 = vadd.f32 %v2678_v0, %v2564_v39  ;;  %v14438_v30 = vld [vmem:[#allocation98_spill] sm:$0xff]  ;;  %v14447_v23 = vld [vmem:[#allocation83_spill] sm:$0xff] }
 0x3b6   :  { %3673 = vperm.xlu0 %8861, %v14436_v15   ;;  %v2812_v63 = vmul.f32 %v11131_v5, %v14437_v50  ;;  %v2804_v61 = vmul.f32 %v11131_v5, %v14438_v30  ;;  %v2697_v18 = vadd.f32 %v2681_v57, %v2567_v11  ;;  %v2928_v43 = vmul.f32 %v11383_v49, %v11195_v24  ;;  %v14443_v57 = vld [vmem:[#allocation45_spill] sm:$0xff]  ;;  %v14448_v50 = vld [vmem:[#allocation100_spill] sm:$0xff] }
 0x3b7   :  { %v11401_v16 = vadd.f32 %v2806_v41, %v2691_v33  ;;  %v2931_v8 = vmul.f32 %v11383_v49, %v11242_v51  ;;  %v11407_v39 = vadd.f32 %v2809_v3, %v2694_v38  ;;  %v2814_v28 = vadd.f32 %v2798_v21, %v2683_v27  ;;  %v14440_v51 = vld [vmem:[#allocation97_spill] sm:$0xff] }
 0x3b8   :  { %v2815_v59 = vadd.f32 %v2799_v10, %v2684_v9  ;;  %v2817_v44 = vadd.f32 %v2801_v26, %v2686_v35  ;;  %v2802_v34 = vmul.f32 %v11131_v5, %v14439_v42  ;;  %v3058_v47 = vmul.f32 %v11388_v56, %v11247_v12  ;;  %v14441_v35 = vld [vmem:[#allocation99_spill] sm:$0xff]  ;;  %v14445_v3 = vld [vmem:[#allocation81_spill] sm:$0xff] }
 0x3b9   :  { %v2934_v11 = vmul.f32 %v11383_v49, %v11289_v60  ;;  %v3061_v24 = vmul.f32 %v11388_v56, %v11295_v40  ;;  %v11417_v0 = vadd.f32 %v2812_v63, %v2697_v18  ;;  %v2929_v27 = vmul.f32 %v11383_v49, %v14440_v51  ;;  %v14444_v40 = vld [vmem:[#allocation72_spill] sm:$0xff]  ;;  %v14446_v21 = vld [vmem:[#allocation77_spill] sm:$0xff] }
 0x3ba   :  { %3663 = vperm.xlu1 %8863, %v3620_v48   ;;  %v11397_v48 = vpop.permute.xlu2 %3024  ;;  %v11399_v62 = vpop.permute.xlu0 %2919  ;;  %v2820_v9 = vadd.f32 %v2804_v61, %v2689_v52  ;;  %v2805_v2 = vmul.f32 %v11131_v5, %v14441_v35  ;;  %v2932_v41 = vmul.f32 %v11383_v49, %v14442_v19  ;;  %v2944_v12 = vadd.f32 %v2928_v43, %v2814_v28  ;;  %v14449_v30 = vld [vmem:[#allocation101_spill] sm:$0xff] }
 0x3bb   :  { %v2947_v17 = vadd.f32 %v2931_v8, %v2817_v44  ;;  %v3064_v60 = vmul.f32 %v11388_v56, %v3010_v58  ;;  %v2807_v55 = vmul.f32 %v11131_v5, %v14444_v40  ;;  %v2808_v6 = vmul.f32 %v11131_v5, %v14445_v3  ;;  %v3628_v51 = vld [vmem:[#allocation2 + $0x2b9] sm:$0xff] }
 0x3bc   :  { %v11390_v36 = vpop.permute.xlu1 %2909  ;;  %v2935_v52 = vmul.f32 %v11383_v49, %v14446_v21  ;;  %3698 = vperm.xlu2 %8862, %v3627_v1   ;;  %v2818_v10 = vadd.f32 %v2802_v34, %v2687_v22  ;;  %v3074_v58 = vadd.f32 %v3058_v47, %v2944_v12  ;;  %v2950_v26 = vadd.f32 %v2934_v11, %v2820_v9  ;;  %v3626_v34 = vld [vmem:[#allocation2 + $0x2a1] sm:$0xff]  ;;  %v14450_v9 = vld [vmem:[#allocation17_spill] sm:$0xff] }
 0x3bd   :  { %v3077_v13 = vadd.f32 %v3061_v24, %v2947_v17  ;;  %v2945_v33 = vadd.f32 %v2929_v27, %v2815_v59  ;;  %v2821_v38 = vadd.f32 %v2805_v2, %v2690_v7  ;;  %v2810_v63 = vmul.f32 %v11131_v5, %v14448_v50  ;;  %v3744_v1 = vld [vmem:[#allocation2 + $0xc2] sm:$0xff] }
 0x3be   :  { %3688 = vperm.xlu0 %8861, %v14447_v23   ;;  %v2938_v61 = vmul.f32 %v11383_v49, %v14449_v30  ;;  %v2948_v43 = vadd.f32 %v2932_v41, %v2818_v10  ;;  %v2941_v8 = vmul.f32 %v11383_v49, %v11197_v45  ;;  %v3080_v28 = vadd.f32 %v3064_v60, %v2950_v26  ;;  %v3745_v30 = vld [vmem:[#allocation2 + $0xca] sm:$0xff] }
 0x3bf   :  { %v2823_v42 = vadd.f32 %v2807_v55, %v11345_v53  ;;  %v2824_v59 = vadd.f32 %v2808_v6, %v2693_v54  ;;  %v11449_v7 = vadd.f32 %v2935_v52, %v2821_v38  ;;  %v2930_v5 = vmul.f32 %v11383_v49, %v11199_v4 }
 0x3c0   :  { %v11454_v47 = vadd.f32 %v11437_v29, %v3074_v58  ;;  %v2933_v11 = vmul.f32 %v11383_v49, %v11249_v25  ;;  %v3097_v45 = vadd.f32 %v11437_v29, %v3077_v13  ;;  %v2826_v53 = vadd.f32 %v2810_v63, %v11347_v32  ;;  %v11503_v63 = vld [vmem:[#allocation2 + $0x2c1] sm:$0xff] }
 0x3c1   :  { %v11460_v54 = vadd.f32 %v2938_v61, %v2824_v59  ;;  %v2936_v27 = vmul.f32 %v11383_v49, %v11297_v31  ;;  %v2937_v4 = vmul.f32 %v11383_v49, %v11333_v46  ;;  %v11467_v35 = vadd.f32 %v2941_v8, %v14450_v9  ;;  %v14452_v59 = vld [vmem:[#allocation20_spill] sm:$0xff] }
 0x3c2   :  { %3678 = vperm.xlu1 %8863, %v14443_v57   ;;  %v11443_v18 = vpop.permute.xlu2 %3039  ;;  %v2985_v22 = vpop.permute.xlu0 %2984  ;;  %v11470_v25 = vadd.f32 %v11437_v29, %v3080_v28  ;;  %v2939_v2 = vmul.f32 %v11383_v49, %v11339_v20  ;;  %v2946_v32 = vadd.f32 %v2930_v5, %v11375_v14  ;;  %v2940_v31 = vmul.f32 %v11383_v49, %v11390_v36 }
 0x3c3   :  { %v3059_v44 = vmul.f32 %v11388_v56, %v2985_v22  ;;  %v3067_v46 = vmul.f32 %v11388_v56, %v11397_v48  ;;  %v3110_v41 = vmax.f32 %v11454_v47, 0.0  ;;  %v11482_v12 = vadd.f32 %v2933_v11, %v11378_v37 }
 0x3c4   :  { %v2925_v15 = vpop.permute.xlu1 %2924  ;;  %3763 = vperm.xlu2 %8862, %v3744_v1   ;;  %v3113_v17 = vmax.f32 %v3097_v45, 0.0  ;;  %v11485_v57 = vadd.f32 %v2936_v27, %v11401_v16  ;;  %v2953_v14 = vadd.f32 %v2937_v4, %v2823_v42  ;;  %v2942_v36 = vmul.f32 %v11383_v49, %v11399_v62  ;;  %v14451_v42 = vld [vmem:[#allocation90_spill] sm:$0xff] }
 0x3c5   :  { %v3075_v24 = vadd.f32 %v3059_v44, %v2945_v33  ;;  %v3116_v3 = vmax.f32 %v11470_v25, 0.0  ;;  %v11492_v6 = vadd.f32 %v2939_v2, %v11407_v39  ;;  %v11495_v52 = vadd.f32 %v2940_v31, %v2826_v53 }
 0x3c6   :  { %3703 = vperm.xlu0 %8861, %v3628_v51   ;;  %v3083_v16 = vadd.f32 %v3067_v46, %v2953_v14  ;;  %v2943_v23 = vmul.f32 %v11383_v49, %v2925_v15  ;;  %v11500_v33 = vadd.f32 %v2942_v36, %v11417_v0  ;;  %v11522_v4 = vmul.f32 %v11388_v56, %v11443_v18 }
 0x3c7   :  { %v3095_v19 = vadd.f32 %v11437_v29, %v3075_v24 }
 0x3c8   :  { %v2959_v5 = vadd.f32 %v2943_v23, %v14452_v59  ;;  %v14453_v23 = vld [vmem:[#allocation86_spill] sm:$0xff] }
 0x3c9   :  { %v3111_v20 = vmax.f32 %v3095_v19, 0.0 }
 0x3ca   :  { %3693 = vperm.xlu1 %8863, %v3626_v34   ;;  %v3055_v48 = vpop.permute.xlu2 %3054  ;;  %v3000_v55 = vpop.permute.xlu0 %2999 }
 0x3cb   :  { %v3127_v37 = vmax.f32 %v3111_v20, %v3113_v17  ;;  %v3062_v21 = vmul.f32 %v11388_v56, %v3000_v55  ;;  %v3073_v22 = vmul.f32 %v11388_v56, %v3055_v48 }
 0x3cc   :  { %v2990_v60 = vpop.permute.xlu1 %2989  ;;  %3778 = vperm.xlu2 %8862, %v14451_v42  }
 0x3cd   :  { %v3060_v40 = vmul.f32 %v11388_v56, %v2990_v60  ;;  %v3145_v58 = vrot.slane %v3127_v37, 2  ;;  %v3146_v62 = vrot.slane %v3127_v37, 4  ;;  %v3147_v26 = vrot.slane %v3127_v37, 6 }
 0x3ce   :  { %v3218_v13 = vsel %vm306_vm2, %v3127_v37, -inf  ;;  %v3078_v50 = vadd.f32 %v3062_v21, %v2948_v43  ;;  %3768 = vperm.xlu0 %8861, %v3745_v30   ;;  %v11512_v43 = vadd.f32 %v11437_v29, %v3083_v16  ;;  %v3089_v2 = vadd.f32 %v3073_v22, %v2959_v5 }
 0x3cf   :  { %v3076_v10 = vadd.f32 %v3060_v40, %v2946_v32  ;;  %v3219_v38 = vrot.slane %v3218_v13, 4  ;;  %v3225_v61 = vsel %vm306_vm2, %v3145_v58, -inf  ;;  %v3232_v49 = vsel %vm306_vm2, %v3146_v62, -inf  ;;  %v11533_v58 = vld [vmem:[#allocation2 + $0xf2] sm:$0xff] }
 0x3d0   :  { %v3239_v15 = vsel %vm306_vm2, %v3147_v26, -inf  ;;  %v3226_v0 = vrot.slane %v3225_v61, 4  ;;  %v3233_v28 = vrot.slane %v3232_v49, 4  ;;  %v3098_v47 = vadd.f32 %v11437_v29, %v3078_v50 }
 0x3d1   :  { %v3096_v39 = vadd.f32 %v11437_v29, %v3076_v10  ;;  %v3220_v8 = vmax.f32 %v3218_v13, %v3219_v38  ;;  %v3240_v44 = vrot.slane %v3239_v15, 4  ;;  %v11531_v10 = vld [vmem:[#allocation2 + $0x10a] sm:$0xff]  ;;  %v11538_v13 = vadd.f32 %v11437_v29, %v3089_v2 }
 0x3d2   :  { %3708 = vperm.xlu1 %8863, %v11503_v63   ;;  %v3227_v24 = vmax.f32 %v3225_v61, %v3226_v0  ;;  %v3234_v1 = vmax.f32 %v3232_v49, %v3233_v28  ;;  %v11516_v53 = vpop.permute.xlu2 %3513  ;;  %v11518_v27 = vpop.permute.xlu0 %3014  ;;  %v3114_v19 = vmax.f32 %v3098_v47, 0.0 }
 0x3d3   :  { %v3112_v34 = vmax.f32 %v3096_v39, 0.0  ;;  %v3221_v45 = vrot.slane %v3220_v8, 2  ;;  %v3241_v51 = vmax.f32 %v3239_v15, %v3240_v44 }
 0x3d4   :  { %v3005_v11 = vpop.permute.xlu1 %3004  ;;  %v3228_v31 = vrot.slane %v3227_v24, 2  ;;  %v3235_v46 = vrot.slane %v3234_v1, 2  ;;  %3793 = vperm.xlu2 %8862, %v11531_v10   ;;  %v3128_v0 = vmax.f32 %v3114_v19, %v3116_v3 }
 0x3d5   :  { %v3126_v9 = vmax.f32 %v3110_v41, %v3112_v34  ;;  %v3222_v32 = vmax.f32 %v3220_v8, %v3221_v45  ;;  %v3242_v17 = vrot.slane %v3241_v51, 2  ;;  %v3063_v38 = vmul.f32 %v11388_v56, %v3005_v11 }
 0x3d6   :  { %v3229_v48 = vmax.f32 %v3227_v24, %v3228_v31  ;;  %v3236_v55 = vmax.f32 %v3234_v1, %v3235_v46  ;;  %3783 = vperm.xlu0 %8861, %v11533_v58   ;;  %v3148_v47 = vrot.slane %v3128_v0, 2  ;;  %v3149_v11 = vrot.slane %v3128_v0, 4  ;;  %v11558_v31 = vld [vmem:[#allocation2 + $0xfa] sm:$0xff] }
 0x3d7   :  { %v3142_v20 = vrot.slane %v3126_v9, 2  ;;  %v3143_v60 = vrot.slane %v3126_v9, 4  ;;  %v3144_v14 = vrot.slane %v3126_v9, 6  ;;  %v3190_v36 = vsel %vm306_vm2, %v3126_v9, -inf }
 0x3d8   :  { %v3223_v40 = vrot.slane %v3222_v32, 1  ;;  %v11525_v37 = vmax.f32 %v3241_v51, %v3242_v17  ;;  %v3191_v21 = vrot.slane %v3190_v36, 4  ;;  %v3230_v26 = vrot.slane %v3229_v48, 1 }
 0x3d9   :  { %v3197_v18 = vsel %vm306_vm2, %v3142_v20, -inf  ;;  %v3204_v41 = vsel %vm306_vm2, %v3143_v60, -inf  ;;  %v3211_v16 = vsel %vm306_vm2, %v3144_v14, -inf  ;;  %v3237_v22 = vrot.slane %v3236_v55, 1  ;;  %v3753_v14 = vld [vmem:[#allocation2 + $0x27a] sm:$0xff] }
 0x3da   :  { %3773 = vperm.xlu1 %8863, %v14453_v23   ;;  %v11535_v62 = vmax.f32 %v3222_v32, %v3223_v40  ;;  %v3192_v39 = vmax.f32 %v3190_v36, %v3191_v21  ;;  %v3198_v50 = vrot.slane %v3197_v18, 4  ;;  %v3205_v30 = vrot.slane %v3204_v41, 4  ;;  %v11550_v28 = vpop.permute.xlu2 %3528  ;;  %v11552_v34 = vpop.permute.xlu0 %3029  ;;  %v11561_v36 = vld [vmem:[#allocation2 + $0x112] sm:$0xff] }
 0x3db   :  { %v3212_v61 = vrot.slane %v3211_v16, 4  ;;  %v11545_v15 = vmax.f32 %v3229_v48, %v3230_v26  ;;  %v3244_v8 = vrot.slane %v11525_v37, 1  ;;  %v3150_v45 = vrot.slane %v3128_v0, 6 }
 0x3dc   :  { %v11543_v49 = vpop.permute.xlu1 %3019  ;;  %v3193_v44 = vrot.slane %v3192_v39, 2  ;;  %v3199_v42 = vmax.f32 %v3197_v18, %v3198_v50  ;;  %v3206_v59 = vmax.f32 %v3204_v41, %v3205_v30  ;;  %v3246_v24 = vsel %vm306_vm2, %v3128_v0, -inf  ;;  %3808 = vperm.xlu2 %8862, %v3753_v14   ;;  %v11577_v14 = vld [vmem:[#allocation2 + $0x28a] sm:$0xff] }
 0x3dd   :  { %v3213_v5 = vmax.f32 %v3211_v16, %v3212_v61  ;;  %v3247_v32 = vrot.slane %v3246_v24, 4  ;;  %v3253_v25 = vsel %vm306_vm2, %v3148_v47, -inf  ;;  %v3260_v3 = vsel %vm306_vm2, %v3149_v11, -inf }
 0x3de   :  { %v3194_v1 = vmax.f32 %v3192_v39, %v3193_v44  ;;  %v3200_v51 = vrot.slane %v3199_v42, 2  ;;  %v3207_v9 = vrot.slane %v3206_v59, 2  ;;  %v3267_v19 = vsel %vm306_vm2, %v3150_v45, -inf  ;;  %3798 = vperm.xlu0 %8861, %v11561_v36  }
 0x3df   :  { %v3214_v2 = vrot.slane %v3213_v5, 2  ;;  %v3248_v40 = vmax.f32 %v3246_v24, %v3247_v32  ;;  %v3254_v48 = vrot.slane %v3253_v25, 4  ;;  %v3261_v21 = vrot.slane %v3260_v3, 4 }
 0x3e0   :  { %v3195_v46 = vrot.slane %v3194_v1, 1  ;;  %v3201_v17 = vmax.f32 %v3199_v42, %v3200_v51  ;;  %v3208_v20 = vmax.f32 %v3206_v59, %v3207_v9  ;;  %v3268_v18 = vrot.slane %v3267_v19, 4 }
 0x3e1   :  { %v3215_v60 = vmax.f32 %v3213_v5, %v3214_v2  ;;  %v3238_v41 = vmax.f32 %v3236_v55, %v3237_v22  ;;  %v3249_v39 = vrot.slane %v3248_v40, 2  ;;  %v3255_v50 = vmax.f32 %v3253_v25, %v3254_v48 }
 0x3e2   :  { %3788 = vperm.xlu1 %8863, %v11558_v31   ;;  %v3202_v16 = vrot.slane %v3201_v17, 1  ;;  %v3209_v23 = vrot.slane %v3208_v20, 1  ;;  %v3262_v30 = vmax.f32 %v3260_v3, %v3261_v21  ;;  %v3269_v61 = vmax.f32 %v3267_v19, %v3268_v18  ;;  %v11565_v47 = vpop.permute.xlu2 %3543  ;;  %v3045_v32 = vpop.permute.xlu0 %3044 }
 0x3e3   :  { %v3216_v26 = vrot.slane %v3215_v60, 1  ;;  %v3196_v44 = vmax.f32 %v3194_v1, %v3195_v46  ;;  %v3079_v5 = vadd.f32 %v3063_v38, %v11482_v12  ;;  %v3250_v11 = vmax.f32 %v3248_v40, %v3249_v39  ;;  %v3752_v38 = vld [vmem:[#allocation2 + $0x272] sm:$0xff] }
 0x3e4   :  { %v3035_v0 = vpop.permute.xlu1 %3034  ;;  %v3203_v42 = vmax.f32 %v3201_v17, %v3202_v16  ;;  %v3210_v59 = vmax.f32 %v3208_v20, %v3209_v23  ;;  %v3256_v45 = vrot.slane %v3255_v50, 2  ;;  %v3263_v24 = vrot.slane %v3262_v30, 2 }
 0x3e5   :  { %v3270_v51 = vrot.slane %v3269_v61, 2  ;;  %v3217_v55 = vmax.f32 %v3215_v60, %v3216_v26  ;;  %v3099_v9 = vadd.f32 %v11437_v29, %v3079_v5  ;;  %v3065_v2 = vmul.f32 %v11388_v56, %v11518_v27  ;;  %v11575_v60 = vld [vmem:[#allocation2 + $0x2a2] sm:$0xff] }
 0x3e6   :  { %v3446_v22 = vsel %vm1873_vm3, %v3203_v42, %v3196_v44  ;;  %v3251_v25 = vrot.slane %v3250_v11, 1  ;;  %v3257_v3 = vmax.f32 %v3255_v50, %v3256_v45  ;;  %v3264_v12 = vmax.f32 %v3262_v30, %v3263_v24  ;;  %3823 = vperm.xlu2 %8862, %v11575_v60   ;;  %3813 = vperm.xlu0 %8861, %v11577_v14  }
 0x3e7   :  { %v3447_v1 = vsel %vm1875_vm4, %v3210_v59, %v3446_v22  ;;  %v3245_v19 = vmax.f32 %v11525_v37, %v3244_v8  ;;  %v3271_v17 = vmax.f32 %v3269_v61, %v3270_v51  ;;  %v3081_v20 = vadd.f32 %v3065_v2, %v11449_v7 }
 0x3e8   :  { %v3448_v46 = vsel %vm1877_vm5, %v3217_v55, %v3447_v1  ;;  %v3258_v40 = vrot.slane %v3257_v3, 1  ;;  %v3265_v48 = vrot.slane %v3264_v12, 1  ;;  %v3115_v21 = vmax.f32 %v3099_v9, 0.0 }
 0x3e9   :  { %v3449_v27 = vsel %vm1879_vm6, %v11535_v62, %v3448_v46  ;;  %v3252_v8 = vmax.f32 %v3250_v11, %v3251_v25  ;;  %v3101_v7 = vadd.f32 %v11437_v29, %v3081_v20  ;;  %v3066_v18 = vmul.f32 %v11388_v56, %v11543_v49 }
 0x3ea   :  { %3803 = vperm.xlu1 %8863, %v3752_v38   ;;  %v3450_v37 = vsel %vm1881_vm7, %v11545_v15, %v3449_v27  ;;  %v3259_v23 = vmax.f32 %v3257_v3, %v3258_v40  ;;  %v3266_v62 = vmax.f32 %v3264_v12, %v3265_v48  ;;  %v3272_v26 = vrot.slane %v3271_v17, 1  ;;  %v11604_v11 = vpop.permute.xlu2 %3558  ;;  %v11610_v22 = vpop.permute.xlu0 %3503  ;;  %v11622_v48 = vld [vmem:[#allocation2 + $0x292] sm:$0xff] }
 0x3eb   :  { %v3451_v16 = vsel %vm1883_vm8, %v3238_v41, %v3450_v37  ;;  %v3119_v39 = vmax.f32 %v11512_v43, 0.0  ;;  %v3117_v30 = vmax.f32 %v3101_v7, 0.0  ;;  %v3082_v61 = vadd.f32 %v3066_v18, %v11485_v57  ;;  %v11627_v18 = vld [vmem:[#allocation2 + $0x2aa] sm:$0xff] }
 0x3ec   :  { %v3452_v50 = vsel %vm1885_vm9, %v3245_v19, %v3451_v16  ;;  %v11594_v15 = vadd.f32 %v11522_v4, %v11495_v52  ;;  %v3453_v49 = vsel %vm1873_vm3, %v3259_v23, %v3252_v8  ;;  %v3068_v41 = vmul.f32 %v11388_v56, %v11552_v34  ;;  %v3050_v42 = vpop.permute.xlu1 %3049 }
 0x3ed   :  { %3479 = vst.msk [vmem:[#allocation3 + $0x31] sm:$0xff] %vm304_vm10, %v3452_v50  ;;  %v3069_v44 = vmul.f32 %v11388_v56, %v3035_v0  ;;  %v3125_v43 = vmax.f32 %v11538_v13, 0.0  ;;  %v3129_v59 = vmax.f32 %v3115_v21, %v3117_v30  ;;  %v3102_v5 = vadd.f32 %v11437_v29, %v3082_v61 }
 0x3ee   :  { %v3071_v57 = vmul.f32 %v11388_v56, %v3045_v32  ;;  %v3273_v52 = vmax.f32 %v3271_v17, %v3272_v26  ;;  %v3454_v4 = vsel %vm1875_vm4, %v3266_v62, %v3453_v49  ;;  %v3084_v45 = vadd.f32 %v3068_v41, %v11460_v54  ;;  %3828 = vperm.xlu0 %8861, %v11627_v18  }
 0x3ef   :  { %v3085_v24 = vadd.f32 %v3069_v44, %v11492_v6  ;;  %v3151_v34 = vrot.slane %v3129_v59, 2  ;;  %v3152_v51 = vrot.slane %v3129_v59, 4  ;;  %v3153_v0 = vrot.slane %v3129_v59, 6 }
 0x3f0   :  { %v3274_v55 = vsel %vm306_vm2, %v3129_v59, -inf  ;;  %v3118_v2 = vmax.f32 %v3102_v5, 0.0  ;;  %v3104_v32 = vadd.f32 %v11437_v29, %v3084_v45  ;;  %v3087_v6 = vadd.f32 %v3071_v57, %v11467_v35  ;;  %v11625_v35 = vld [vmem:[#allocation2 + $0x2c2] sm:$0xff] }
 0x3f1   :  { %v3275_v9 = vrot.slane %v3274_v55, 4  ;;  %v3105_v1 = vadd.f32 %v11437_v29, %v3085_v24  ;;  %v3281_v25 = vsel %vm306_vm2, %v3151_v34, -inf  ;;  %v3288_v3 = vsel %vm306_vm2, %v3152_v51, -inf  ;;  %3838 = vperm.xlu2 %8862, %v11625_v35  }
 0x3f2   :  { %v3295_v54 = vsel %vm306_vm2, %v3153_v0, -inf  ;;  %v3282_v38 = vrot.slane %v3281_v25, 4  ;;  %v3289_v19 = vrot.slane %v3288_v3, 4  ;;  %v3455_v17 = vsel %vm1877_vm5, %v3273_v52, %v3454_v4  ;;  %3818 = vperm.xlu1 %8863, %v11622_v48   ;;  %v11640_v57 = vpop.permute.xlu2 %3573  ;;  %v11642_v52 = vpop.permute.xlu0 %3518 }
 0x3f3   :  { %v3276_v12 = vmax.f32 %v3274_v55, %v3275_v9  ;;  %v3296_v46 = vrot.slane %v3295_v54, 4  ;;  %v3120_v20 = vmax.f32 %v3104_v32, 0.0  ;;  %v3121_v27 = vmax.f32 %v3105_v1, 0.0 }
 0x3f4   :  { %v11620_v40 = vadd.f32 %v11437_v29, %v3087_v6  ;;  %v3283_v37 = vmax.f32 %v3281_v25, %v3282_v38  ;;  %v3290_v8 = vmax.f32 %v3288_v3, %v3289_v19  ;;  %v11633_v26 = vmul.f32 %v11388_v56, %v3050_v42  ;;  %v11637_v41 = vpop.permute.xlu1 %3508  ;;  %v11647_v6 = vld [vmem:[#allocation2 + $0x2ba] sm:$0xff] }
 0x3f5   :  { %v3277_v21 = vrot.slane %v3276_v12, 2  ;;  %v3297_v7 = vmax.f32 %v3295_v54, %v3296_v46  ;;  %v3130_v16 = vmax.f32 %v3118_v2, %v3120_v20  ;;  %v11629_v23 = vmax.f32 %v3119_v39, %v3121_v27  ;;  %v11651_v20 = vld [vmem:[#allocation2 + $0xf0] sm:$0xff]  ;;  %v3875_v27 = vld [vmem:[#allocation2 + $0xd8] sm:$0xff] }
 0x3f6   :  { %v3123_v62 = vmax.f32 %v11620_v40, 0.0  ;;  %v3284_v30 = vrot.slane %v3283_v37, 2  ;;  %v3291_v61 = vrot.slane %v3290_v8, 2  ;;  %3894 = vperm.xlu0 %8861, %v3875_v27   ;;  %v3088_v13 = vadd.f32 %v11633_v26, %v11500_v33 }
 0x3f7   :  { %v3278_v50 = vmax.f32 %v3276_v12, %v3277_v21  ;;  %v3298_v49 = vrot.slane %v3297_v7, 2  ;;  %v3154_v44 = vrot.slane %v3130_v16, 2  ;;  %v3155_v59 = vrot.slane %v3130_v16, 4 }
 0x3f8   :  { %v3156_v5 = vrot.slane %v3130_v16, 6  ;;  %v3302_v39 = vsel %vm306_vm2, %v3130_v16, -inf  ;;  %v3285_v42 = vmax.f32 %v3283_v37, %v3284_v30  ;;  %v3292_v4 = vmax.f32 %v3290_v8, %v3291_v61  ;;  %v11654_v16 = vld [vmem:[#allocation3 + $0x30] sm:$0xff] }
 0x3f9   :  { %v3279_v56 = vrot.slane %v3278_v50, 1  ;;  %v3299_v45 = vmax.f32 %v3297_v7, %v3298_v49  ;;  %v3303_v24 = vrot.slane %v3302_v39, 4  ;;  %v3309_v34 = vsel %vm306_vm2, %v3154_v44, -inf  ;;  %3904 = vperm.xlu2 %8862, %v11651_v20   ;;  %14454 = vst [vmem:[#allocation21_spill] sm:$0xff] %v11654_v16 }
 0x3fa   :  { %v3316_v51 = vsel %vm306_vm2, %v3155_v59, -inf  ;;  %v3323_v0 = vsel %vm306_vm2, %v3156_v5, -inf  ;;  %v3286_v9 = vrot.slane %v3285_v42, 1  ;;  %v3293_v2 = vrot.slane %v3292_v4, 1  ;;  %3833 = vperm.xlu1 %8863, %v11647_v6   ;;  %6634 = vst.msk [vmem:[#allocation4 + $0x78] sm:$0xff] %vm304_vm10, %v11654_v16 }
 0x3fb   :  { %v3280_v55 = vmax.f32 %v3278_v50, %v3279_v56  ;;  %v3300_v32 = vrot.slane %v3299_v45, 1  ;;  %v3304_v1 = vmax.f32 %v3302_v39, %v3303_v24  ;;  %v3310_v25 = vrot.slane %v3309_v34, 4  ;;  %v11656_v50 = vld [vmem:[#allocation3 + $0x32] sm:$0xff]  ;;  %7018 = vst.msk [vmem:[#allocation4 + $0x40] sm:$0xff] %vm304_vm10, %v11654_v16 }
 0x3fc   :  { %v3317_v3 = vrot.slane %v3316_v51, 4  ;;  %v3324_v54 = vrot.slane %v3323_v0, 4  ;;  %v3287_v12 = vmax.f32 %v3285_v42, %v3286_v9  ;;  %v3294_v38 = vmax.f32 %v3292_v4, %v3293_v2  ;;  %14455 = vst [vmem:[#allocation23_spill] sm:$0xff] %v11656_v50  ;;  %v11662_v44 = vpop.permute.xlu1 %3523  ;;  %v11667_v42 = vpop.permute.xlu2 %3638  ;;  %v11789_v16 = vld [vmem:[#allocation2 + $0x2b8] sm:$0xff] }
 0x3fd   :  { %v3301_v19 = vmax.f32 %v3299_v45, %v3300_v32  ;;  %v3456_v46 = vsel %vm1879_vm6, %v3280_v55, %v3455_v17  ;;  %v3305_v21 = vrot.slane %v3304_v1, 2  ;;  %v3311_v37 = vmax.f32 %v3309_v34, %v3310_v25  ;;  %14456 = vst [vmem:[#allocation25_spill] sm:$0xff] %v11662_v44  ;;  %v11669_v4 = vpop.permute.xlu0 %3533  ;;  %v6874_v45 = vld [vmem:[#allocation3 + $0x31] sm:$0xff] }
 0x3fe   :  { %v3318_v8 = vmax.f32 %v3316_v51, %v3317_v3  ;;  %v3325_v7 = vmax.f32 %v3323_v0, %v3324_v54  ;;  %v3457_v30 = vsel %vm1881_vm7, %v3287_v12, %v3456_v46  ;;  %v3157_v17 = vrot.slane %v11629_v23, 2  ;;  %14457 = vst [vmem:[#allocation27_spill] sm:$0xff] %v11669_v4  ;;  %v3876_v46 = vld [vmem:[#allocation2 + $0xe0] sm:$0xff] }
 0x3ff   :  { %v3158_v61 = vrot.slane %v11629_v23, 4  ;;  %v3159_v49 = vrot.slane %v11629_v23, 6  ;;  %v3458_v59 = vsel %vm1883_vm8, %v3294_v38, %v3457_v30  ;;  %v3306_v5 = vmax.f32 %v3304_v1, %v3305_v21  ;;  %6763 = vst.msk [vmem:[#allocation4 + $0x80] sm:$0xff] %vm304_vm10, %v11656_v50  ;;  %v11687_v30 = vld [vmem:[#allocation2 + $0xf8] sm:$0xff]  ;;  %v4006_v4 = vld [vmem:[#allocation2 + $0xe1] sm:$0xff] }
 0x400   :  { %v3312_v39 = vrot.slane %v3311_v37, 2  ;;  %v3319_v56 = vrot.slane %v3318_v8, 2  ;;  %v3459_v24 = vsel %vm1885_vm9, %v3301_v19, %v3458_v59  ;;  %v3326_v34 = vrot.slane %v3325_v7, 2  ;;  %6890 = vst.msk [vmem:[#allocation4 + $0x60] sm:$0xff] %vm304_vm10, %v6874_v45  ;;  %3909 = vperm.xlu0 %8861, %v11687_v30  }
 0x401   :  { %v3330_v51 = vsel %vm306_vm2, %v11629_v23, -inf  ;;  %v3337_v0 = vsel %vm306_vm2, %v3157_v17, -inf  ;;  %3480 = vst.msk [vmem:[#allocation3 + $0x41] sm:$0xff] %vm304_vm10, %v3459_v24  ;;  %v3307_v55 = vrot.slane %v3306_v5, 1  ;;  %v3344_v3 = vsel %vm306_vm2, %v3158_v61, -inf  ;;  %v197_v17 = vld [vmem:[%s14052_s0 + $0xb0] sm:$0xff] }
 0x402   :  { %v3313_v9 = vmax.f32 %v3311_v37, %v3312_v39  ;;  %v3320_v2 = vmax.f32 %v3318_v8, %v3319_v56  ;;  %v3331_v32 = vrot.slane %v3330_v51, 4  ;;  %v3327_v1 = vmax.f32 %v3325_v7, %v3326_v34  ;;  %7146 = vst.msk [vmem:[#allocation4 + $0x48] sm:$0xff] %vm304_vm10, %v11656_v50  ;;  %3899 = vperm.xlu1 %8863, %v3876_v46   ;;  %v11685_v7 = vld [vmem:[#allocation2 + $0x110] sm:$0xff]  ;;  %v3883_v46 = vld [vmem:[#allocation2 + $0x288] sm:$0xff] }
 0x403   :  { %v3338_v25 = vrot.slane %v3337_v0, 4  ;;  %v3351_v54 = vsel %vm306_vm2, %v3159_v49, -inf  ;;  %v3308_v23 = vmax.f32 %v3306_v5, %v3307_v55  ;;  %v3345_v37 = vrot.slane %v3344_v3, 4  ;;  %3919 = vperm.xlu2 %8862, %v11685_v7   ;;  %262 = vst.msk [vmem:[#allocation2 + $0x121] sm:$0xff] %vm65_vm0, %v197_v17 }
 0x404   :  { %v3314_v12 = vrot.slane %v3313_v9, 1  ;;  %v3321_v38 = vrot.slane %v3320_v2, 1  ;;  %v3332_v19 = vmax.f32 %v3330_v51, %v3331_v32  ;;  %v3328_v27 = vrot.slane %v3327_v1, 1  ;;  %v11700_v24 = vpop.permute.xlu1 %3538  ;;  %v11706_v40 = vpop.permute.xlu2 %3653 }
 0x405   :  { %v3339_v21 = vmax.f32 %v3337_v0, %v3338_v25  ;;  %v3352_v8 = vrot.slane %v3351_v54, 4  ;;  %v11696_v5 = vmax.f32 %v3123_v62, %v3125_v43  ;;  %v3346_v56 = vmax.f32 %v3344_v3, %v3345_v37  ;;  %14458 = vst [vmem:[#allocation28_spill] sm:$0xff] %v11700_v24  ;;  %v11708_v43 = vpop.permute.xlu0 %3548 }
 0x406   :  { %v3315_v61 = vmax.f32 %v3313_v9, %v3314_v12  ;;  %v3322_v49 = vmax.f32 %v3320_v2, %v3321_v38  ;;  %v3333_v59 = vrot.slane %v3332_v19, 2  ;;  %14459 = vst [vmem:[#allocation29_spill] sm:$0xff] %v11708_v43  ;;  %v3106_v32 = vadd.f32 %v11437_v29, %v11594_v15  ;;  %v198_v15 = vld [vmem:[%s14052_s0 + $0xb8] sm:$0xff] }
 0x407   :  { %v3340_v39 = vrot.slane %v3339_v21, 2  ;;  %v3353_v45 = vmax.f32 %v3351_v54, %v3352_v8  ;;  %v3347_v55 = vrot.slane %v3346_v56, 2  ;;  %v3329_v25 = vmax.f32 %v3327_v1, %v3328_v27  ;;  %263 = vst.msk [vmem:[#allocation2 + $0x129] sm:$0xff] %vm65_vm0, %v198_v15 }
 0x408   :  { %v3460_v34 = vsel %vm1873_vm3, %v3315_v61, %v3308_v23  ;;  %v3334_v51 = vmax.f32 %v3332_v19, %v3333_v59  ;;  %v11711_v2 = vld [vmem:[#allocation3 + $0x40] sm:$0xff]  ;;  %v3163_v54 = vrot.slane %v11696_v5, 2  ;;  %v3164_v38 = vrot.slane %v11696_v5, 4  ;;  %v11721_v19 = vld [vmem:[#allocation2 + $0x108] sm:$0xff] }
 0x409   :  { %v3461_v62 = vsel %vm1875_vm4, %v3322_v49, %v3460_v34  ;;  %v3341_v0 = vmax.f32 %v3339_v21, %v3340_v39  ;;  %v3354_v9 = vrot.slane %v3353_v45, 2  ;;  %14460 = vst [vmem:[#allocation36_spill] sm:$0xff] %v11711_v2  ;;  %v11718_v33 = vld [vmem:[#allocation3 + $0x42] sm:$0xff]  ;;  %v3348_v23 = vmax.f32 %v3346_v56, %v3347_v55  ;;  %v229_v39 = vld [vmem:[%s14052_s0 + $0x1b0] sm:$0xff] }
 0x40a   :  { %v3335_v3 = vrot.slane %v3334_v51, 1  ;;  %6635 = vst.msk [vmem:[#allocation4 + $0xa0] sm:$0xff] %vm304_vm10, %v11711_v2  ;;  %v3462_v1 = vsel %vm1877_vm5, %v3329_v25, %v3461_v62  ;;  %v3165_v21 = vrot.slane %v11696_v5, 6  ;;  %v3108_v37 = vadd.f32 %v11437_v29, %v3088_v13  ;;  %v6875_v8 = vld [vmem:[#allocation3 + $0x41] sm:$0xff]  ;;  %3914 = vperm.xlu1 %8863, %v11721_v19   ;;  %v230_v62 = vld [vmem:[%s14052_s0 + $0x1b8] sm:$0xff] }
 0x40b   :  { %14461 = vst [vmem:[#allocation34_spill] sm:$0xff] %v11718_v33  ;;  %v3342_v26 = vrot.slane %v3341_v0, 1  ;;  %v3355_v12 = vmax.f32 %v3353_v45, %v3354_v9  ;;  %v3349_v61 = vrot.slane %v3348_v23, 1  ;;  %v3386_v59 = vsel %vm306_vm2, %v11696_v5, -inf  ;;  %3934 = vperm.xlu2 %8862, %v3883_v46   ;;  %v11742_v45 = vld [vmem:[#allocation2 + $0x120] sm:$0xff] }
 0x40c   :  { %7019 = vst.msk [vmem:[#allocation4 + $0x68] sm:$0xff] %vm304_vm10, %v11711_v2  ;;  %v3336_v27 = vmax.f32 %v3334_v51, %v3335_v3  ;;  %v3393_v56 = vsel %vm306_vm2, %v3163_v54, -inf  ;;  %v3400_v51 = vsel %vm306_vm2, %v3164_v38, -inf  ;;  %3924 = vperm.xlu0 %8861, %v11742_v45   ;;  %v11748_v13 = vpop.permute.xlu1 %3553  ;;  %v3387_v55 = vrot.slane %v3386_v59, 4  ;;  %v11754_v25 = vpop.permute.xlu2 %3668 }
 0x40d   :  { %v3343_v17 = vmax.f32 %v3341_v0, %v3342_v26  ;;  %v3356_v49 = vrot.slane %v3355_v12, 1  ;;  %6764 = vst.msk [vmem:[#allocation4 + $0xa8] sm:$0xff] %vm304_vm10, %v11718_v33  ;;  %v3350_v34 = vmax.f32 %v3348_v23, %v3349_v61  ;;  %v3124_v9 = vmax.f32 %v3108_v37, 0.0  ;;  %v11756_v3 = vpop.permute.xlu0 %3563 }
 0x40e   :  { %v3463_v29 = vsel %vm1879_vm6, %v3336_v27, %v3462_v1  ;;  %294 = vst.msk [vmem:[#allocation2 + $0x2d1] sm:$0xff] %vm65_vm0, %v229_v39  ;;  %v3122_v54 = vmax.f32 %v3106_v32, 0.0  ;;  %v3394_v23 = vrot.slane %v3393_v56, 4  ;;  %v3407_v38 = vsel %vm306_vm2, %v3165_v21, -inf  ;;  %v11765_v1 = vld [vmem:[#allocation2 + $0x128] sm:$0xff] }
 0x40f   :  { %v3464_v5 = vsel %vm1881_vm7, %v3343_v17, %v3463_v29  ;;  %14462 = vst [vmem:[#allocation35_spill] sm:$0xff] %v11748_v13  ;;  %v3357_v0 = vmax.f32 %v3355_v12, %v3356_v49  ;;  %v3401_v12 = vrot.slane %v3400_v51, 4  ;;  %v11767_v27 = vld [vmem:[#allocation2 + $0x2a8] sm:$0xff]  ;;  %v3388_v37 = vmax.f32 %v3386_v59, %v3387_v55 }
 0x410   :  { %6891 = vst.msk [vmem:[#allocation4 + $0x88] sm:$0xff] %vm304_vm10, %v6875_v8  ;;  %v3465_v26 = vsel %vm1883_vm8, %v3350_v34, %v3464_v5  ;;  %v3132_v15 = vmax.f32 %v3122_v54, %v3124_v9  ;;  %v3408_v32 = vrot.slane %v3407_v38, 4  ;;  %v3884_v8 = vld [vmem:[#allocation2 + $0x290] sm:$0xff]  ;;  %v3395_v17 = vmax.f32 %v3393_v56, %v3394_v23 }
 0x411   :  { %14463 = vst [vmem:[#allocation39_spill] sm:$0xff] %v11754_v25  ;;  %v3466_v46 = vsel %vm1885_vm9, %v3357_v0, %v3465_v26  ;;  %v3402_v39 = vmax.f32 %v3400_v51, %v3401_v12  ;;  %v3389_v56 = vrot.slane %v3388_v37, 2 }
 0x412   :  { %14464 = vst [vmem:[#allocation24_spill] sm:$0xff] %v11756_v3  ;;  %v3160_v61 = vrot.slane %v3132_v15, 2  ;;  %v3161_v49 = vrot.slane %v3132_v15, 4  ;;  %v3162_v21 = vrot.slane %v3132_v15, 6  ;;  %3929 = vperm.xlu1 %8863, %v11765_v1   ;;  %v3358_v29 = vsel %vm306_vm2, %v3132_v15, -inf }
 0x413   :  { %295 = vst.msk [vmem:[#allocation2 + $0x2d9] sm:$0xff] %vm65_vm0, %v230_v62  ;;  %3949 = vperm.xlu2 %8862, %v11767_v27   ;;  %v3359_v34 = vrot.slane %v3358_v29, 4  ;;  %v3409_v55 = vmax.f32 %v3407_v38, %v3408_v32  ;;  %v3396_v51 = vrot.slane %v3395_v17, 2  ;;  %v3390_v32 = vmax.f32 %v3388_v37, %v3389_v56 }
 0x414   :  { %7147 = vst.msk [vmem:[#allocation4 + $0x70] sm:$0xff] %vm304_vm10, %v11718_v33  ;;  %v3365_v5 = vsel %vm306_vm2, %v3160_v61, -inf  ;;  %v3372_v62 = vsel %vm306_vm2, %v3161_v49, -inf  ;;  %v3379_v59 = vsel %vm306_vm2, %v3162_v21, -inf  ;;  %3939 = vperm.xlu0 %8861, %v3884_v8   ;;  %v3569_v0 = vpop.permute.xlu1 %3568  ;;  %v11775_v54 = vpop.permute.xlu2 %3683  ;;  %v11779_v33 = vld [vmem:[#allocation2 + $0x2a0] sm:$0xff]  ;;  %v3403_v49 = vrot.slane %v3402_v39, 2 }
 0x415   :  { %3481 = vst.msk [vmem:[#allocation3 + $0xd1] sm:$0xff] %vm304_vm10, %v3466_v46  ;;  %v3366_v9 = vrot.slane %v3365_v5, 4  ;;  %v11777_v26 = vpop.permute.xlu0 %3578  ;;  %v3360_v23 = vmax.f32 %v3358_v29, %v3359_v34  ;;  %v3373_v46 = vrot.slane %v3372_v62, 4  ;;  %v3380_v12 = vrot.slane %v3379_v59, 4  ;;  %v11783_v2 = vld [vmem:[#allocation2 + $0x2d0] sm:$0xff] }
 0x416   :  { %14465 = vst [vmem:[#allocation37_spill] sm:$0xff] %v11775_v54  ;;  %v3410_v29 = vrot.slane %v3409_v55, 2  ;;  %v3404_v37 = vmax.f32 %v3402_v39, %v3403_v49  ;;  %v11810_v39 = vld [vmem:[%s14053_s1 + $0x1] ss:$0 sm:$0xff] }
 0x417   :  { %v3367_v15 = vmax.f32 %v3365_v5, %v3366_v9  ;;  %v3361_v21 = vrot.slane %v3360_v23, 2  ;;  %v3374_v8 = vmax.f32 %v3372_v62, %v3373_v46  ;;  %v3381_v50 = vmax.f32 %v3379_v59, %v3380_v12 }
 0x418   :  { %v3397_v5 = vmax.f32 %v3395_v17, %v3396_v51  ;;  %v11805_v17 = vld [vmem:[%s14053_s1] ss:$0 sm:$0xff]  ;;  %v3411_v51 = vmax.f32 %v3409_v55, %v3410_v29  ;;  %v3405_v43 = vrot.slane %v3404_v37, 1 }
 0x419   :  { %v3368_v34 = vrot.slane %v3367_v15, 2  ;;  %v3362_v9 = vmax.f32 %v3360_v23, %v3361_v21  ;;  %v3375_v3 = vrot.slane %v3374_v8, 2  ;;  %v3382_v62 = vrot.slane %v3381_v50, 2  ;;  %v11817_v29 = vld [vmem:[#allocation2 + $0x2c0] sm:$0xff] }
 0x41a   :  { %3944 = vperm.xlu1 %8863, %v11779_v33   ;;  %v3398_v49 = vrot.slane %v3397_v5, 1  ;;  %v11822_v44 = vld [vmem:[#allocation2 + $0x2d8] sm:$0xff] }
 0x41b   :  { %v3369_v46 = vmax.f32 %v3367_v15, %v3368_v34  ;;  %3964 = vperm.xlu2 %8862, %v11783_v2   ;;  %v3363_v56 = vrot.slane %v3362_v9, 1  ;;  %v3376_v12 = vmax.f32 %v3374_v8, %v3375_v3  ;;  %v3383_v13 = vmax.f32 %v3381_v50, %v3382_v62 }
 0x41c   :  { %v11781_v61 = vld [vmem:[#allocation3 + $0xd0] sm:$0xff]  ;;  %3954 = vperm.xlu0 %8861, %v11789_v16   ;;  %v3699_v50 = vpop.permute.xlu2 %3698  ;;  %v3391_v15 = vrot.slane %v3390_v32, 1 }
 0x41d   :  { %14466 = vst [vmem:[#allocation38_spill] sm:$0xff] %v11781_v61  ;;  %v11787_v38 = vld [vmem:[#allocation3 + $0xd2] sm:$0xff]  ;;  %v3370_v23 = vrot.slane %v3369_v46, 1  ;;  %v11812_v3 = vpop.permute.xlu0 %3643  ;;  %v3377_v21 = vrot.slane %v3376_v12, 1  ;;  %v3384_v8 = vrot.slane %v3383_v13, 1  ;;  %v3364_v34 = vmax.f32 %v3362_v9, %v3363_v56 }
 0x41e   :  { %6642 = vst.msk [vmem:[#allocation4 + $0x1b8] sm:$0xff] %vm304_vm10, %v11781_v61  ;;  %v6882_v59 = vld [vmem:[#allocation3 + $0xd1] sm:$0xff]  ;;  %v3725_v55 = vmul.f32 %v11810_v39, %v3699_v50  ;;  %v3392_v25 = vmax.f32 %v3390_v32, %v3391_v15  ;;  %v3406_v56 = vmax.f32 %v3404_v37, %v3405_v43 }
 0x41f   :  { %14467 = vst [vmem:[#allocation40_spill] sm:$0xff] %v11787_v38  ;;  %v3371_v62 = vmax.f32 %v3369_v46, %v3370_v23  ;;  %v3378_v24 = vmax.f32 %v3376_v12, %v3377_v21  ;;  %v3385_v54 = vmax.f32 %v3383_v13, %v3384_v8  ;;  %v11841_v43 = vld [vmem:[#allocation2 + $0xf1] sm:$0xff] }
 0x420   :  { %7026 = vst.msk [vmem:[#allocation4 + $0x180] sm:$0xff] %vm304_vm10, %v11781_v61  ;;  %v11798_v61 = vpop.permute.xlu1 %3633  ;;  %v11861_v21 = vld [vmem:[#allocation2 + $0x111] sm:$0xff] }
 0x421   :  { %7154 = vst.msk [vmem:[#allocation4 + $0x188] sm:$0xff] %vm304_vm10, %v11787_v38 }
 0x422   :  { %14468 = vst [vmem:[#allocation43_spill] sm:$0xff] %v11798_v61  ;;  %v3412_v61 = vrot.slane %v3411_v51, 1  ;;  %3959 = vperm.xlu1 %8863, %v11817_v29  }
 0x423   :  { %6771 = vst.msk [vmem:[#allocation4 + $0x1c0] sm:$0xff] %vm304_vm10, %v11787_v38  ;;  %v3595_v38 = vmul.f32 %v11805_v17, %v3569_v0  ;;  %v3399_v0 = vmax.f32 %v3397_v5, %v3398_v49  ;;  %4029 = vperm.xlu2 %8862, %v4006_v4   ;;  %v11839_v4 = vld [vmem:[#allocation2 + $0x109] sm:$0xff] }
 0x424   :  { %14469 = vst [vmem:[#allocation46_spill] sm:$0xff] %v11812_v3  ;;  %v3467_v3 = vsel %vm1873_vm3, %v3371_v62, %v3364_v34  ;;  %3969 = vperm.xlu0 %8861, %v11822_v44   ;;  %v11832_v50 = vpop.permute.xlu2 %3763  ;;  %v11857_v49 = vld [vmem:[#allocation2 + $0x129] sm:$0xff] }
 0x425   :  { %6898 = vst.msk [vmem:[#allocation4 + $0x1a0] sm:$0xff] %vm304_vm10, %v6882_v59  ;;  %v11820_v59 = vadd.f32 %v3725_v55, %v3595_v38  ;;  %v3468_v9 = vsel %vm1875_vm4, %v3378_v24, %v3467_v3  ;;  %v3413_v38 = vmax.f32 %v3411_v51, %v3412_v61  ;;  %v11834_v32 = vpop.permute.xlu0 %3658  ;;  %v11851_v51 = vld [vmem:[#allocation2 + $0xf9] sm:$0xff] }
 0x426   :  { %v3469_v46 = vsel %vm1877_vm5, %v3385_v54, %v3468_v9  ;;  %v4005_v54 = vld [vmem:[#allocation2 + $0xd9] sm:$0xff]  ;;  %v11879_v9 = vld [vmem:[#allocation2 + $0x121] sm:$0xff] }
 0x427   :  { %14470 = vst [vmem:[#allocation41_spill] sm:$0xff] %v11820_v59  ;;  %v3470_v12 = vsel %vm1879_vm6, %v3392_v25, %v3469_v46  ;;  %v8908_v46 = vld [vmem:[#allocation2 + $0x2a1] sm:$0xff]  ;;  %v11901_v59 = vld [vmem:[#allocation2 + $0x2d1] sm:$0xff] }
 0x428   :  { %v11829_v13 = vpop.permute.xlu1 %3648  ;;  %v3471_v23 = vsel %vm1881_vm7, %v3399_v0, %v3470_v12  ;;  %v4013_v0 = vld [vmem:[#allocation2 + $0x289] sm:$0xff]  ;;  %14476 = vst [vmem:[#allocation50_spill] sm:$0xff] %v11901_v59 }
 0x429   :  { %v3472_v24 = vsel %vm1883_vm8, %v3406_v56, %v3471_v23  ;;  %v4014_v23 = vld [vmem:[#allocation2 + $0x291] sm:$0xff] }
 0x42a   :  { %v3473_v5 = vsel %vm1885_vm9, %v3413_v38, %v3472_v24  ;;  %4024 = vperm.xlu1 %8863, %v4005_v54   ;;  %v11888_v24 = vld [vmem:[#allocation2 + $0x2a9] sm:$0xff]  ;;  %v3597_v54 = vmul.f32 %v11805_v17, %v11777_v26 }
 0x42b   :  { %3482 = vst.msk [vmem:[#allocation3 + $0xe1] sm:$0xff] %vm304_vm10, %v3473_v5  ;;  %4044 = vperm.xlu2 %8862, %v11839_v4  }
 0x42c   :  { %4034 = vperm.xlu0 %8861, %v11841_v43   ;;  %v11847_v61 = vpop.permute.xlu2 %3778 }
 0x42d   :  { %v11849_v37 = vpop.permute.xlu0 %3673 }
 0x430   :  { %v11845_v25 = vpop.permute.xlu1 %3663 }
 0x432   :  { %v11853_v3 = vld [vmem:[#allocation3 + $0xe0] sm:$0xff]  ;;  %4039 = vperm.xlu1 %8863, %v11851_v51  }
 0x433   :  { %14471 = vst [vmem:[#allocation44_spill] sm:$0xff] %v11853_v3  ;;  %v11855_v15 = vld [vmem:[#allocation3 + $0xe2] sm:$0xff]  ;;  %4059 = vperm.xlu2 %8862, %v11857_v49  }
 0x434   :  { %14472 = vst [vmem:[#allocation49_spill] sm:$0xff] %v11855_v15  ;;  %v6883_v8 = vld [vmem:[#allocation3 + $0xe1] sm:$0xff]  ;;  %4049 = vperm.xlu0 %8861, %v11861_v21   ;;  %v11875_v62 = vpop.permute.xlu2 %3793 }
 0x435   :  { %6643 = vst.msk [vmem:[#allocation4 + $0x1e0] sm:$0xff] %vm304_vm10, %v11853_v3  ;;  %v11877_v55 = vpop.permute.xlu0 %3688 }
 0x436   :  { %7027 = vst.msk [vmem:[#allocation4 + $0x1a8] sm:$0xff] %vm304_vm10, %v11853_v3  ;;  %v4135_v3 = vld [vmem:[#allocation2 + $0xda] sm:$0xff] }
 0x437   :  { %7155 = vst.msk [vmem:[#allocation4 + $0x1b0] sm:$0xff] %vm304_vm10, %v11855_v15 }
 0x438   :  { %6772 = vst.msk [vmem:[#allocation4 + $0x1e8] sm:$0xff] %vm304_vm10, %v11855_v15  ;;  %v11872_v34 = vpop.permute.xlu1 %3678 }
 0x439   :  { %6899 = vst.msk [vmem:[#allocation4 + $0x1c8] sm:$0xff] %vm304_vm10, %v6883_v8 }
 0x43a   :  { %4054 = vperm.xlu1 %8863, %v11879_v9  }
 0x43b   :  { %4074 = vperm.xlu2 %8862, %v8908_v46  }
 0x43c   :  { %4064 = vperm.xlu0 %8861, %v4013_v0   ;;  %v11884_v12 = vpop.permute.xlu2 %3808 }
 0x43d   :  { %v11886_v38 = vpop.permute.xlu0 %3703 }
 0x43e   :  { %14473 = vst [vmem:[#allocation52_spill] sm:$0xff] %v11886_v38 }
 0x440   :  { %v11882_v56 = vpop.permute.xlu1 %3693 }
 0x442   :  { %4069 = vperm.xlu1 %8863, %v4014_v23   ;;  %v8909_v23 = vld [vmem:[#allocation2 + $0x2b9] sm:$0xff] }
 0x443   :  { %4089 = vperm.xlu2 %8862, %v11503_v63  }
 0x444   :  { %4079 = vperm.xlu0 %8861, %v11888_v24   ;;  %v11895_v0 = vpop.permute.xlu2 %3823 }
 0x445   :  { %14474 = vst [vmem:[#allocation48_spill] sm:$0xff] %v11895_v0  ;;  %v11897_v46 = vpop.permute.xlu0 %3768  ;;  %v4136_v0 = vld [vmem:[#allocation2 + $0xe2] sm:$0xff] }
 0x448   :  { %v3709_v5 = vpop.permute.xlu1 %3708 }
 0x449   :  { %v3727_v8 = vmul.f32 %v11810_v39, %v3709_v5  ;;  %v11910_v5 = vld [vmem:[#allocation2 + $0x2d9] sm:$0xff] }
 0x44a   :  { %4084 = vperm.xlu1 %8863, %v8909_v23   ;;  %14478 = vst [vmem:[#allocation53_spill] sm:$0xff] %v11910_v5  ;;  %v11920_v23 = vld [vmem:[#allocation2 + $0x122] sm:$0xff] }
 0x44b   :  { %v11899_v15 = vadd.f32 %v3727_v8, %v3597_v54  ;;  %4154 = vperm.xlu2 %8862, %v4135_v3  }
 0x44c   :  { %4094 = vperm.xlu0 %8861, %v11901_v59   ;;  %v11906_v38 = vpop.permute.xlu2 %3838 }
 0x44d   :  { %14475 = vst [vmem:[#allocation47_spill] sm:$0xff] %v11899_v15  ;;  %v11908_v26 = vpop.permute.xlu0 %3783 }
 0x44e   :  { %14477 = vst [vmem:[#allocation51_spill] sm:$0xff] %v11908_v26 }
 0x450   :  { %v11904_v63 = vpop.permute.xlu1 %3773 }
 0x452   :  { %4099 = vperm.xlu1 %8863, %v11910_v5  }
 0x453   :  { %4169 = vperm.xlu2 %8862, %v11558_v31  }
 0x454   :  { %4159 = vperm.xlu0 %8861, %v4136_v0   ;;  %v11916_v8 = vpop.permute.xlu2 %3904  ;;  %v11931_v0 = vld [vmem:[#allocation2 + $0x12a] sm:$0xff] }
 0x455   :  { %14479 = vst [vmem:[#allocation54_spill] sm:$0xff] %v11916_v8  ;;  %v11918_v3 = vpop.permute.xlu0 %3798 }
 0x456   :  { %14480 = vst [vmem:[#allocation55_spill] sm:$0xff] %v11918_v3 }
 0x458   :  { %v11914_v54 = vpop.permute.xlu1 %3788 }
 0x45a   :  { %4164 = vperm.xlu1 %8863, %v11533_v58  }
 0x45b   :  { %4184 = vperm.xlu2 %8862, %v11920_v23  }
 0x45c   :  { %4174 = vperm.xlu0 %8861, %v11531_v10   ;;  %v199_v10 = vld [vmem:[%s14052_s0 + $0xc0] sm:$0xff] }
 0x45d   :  { %v11927_v26 = vpop.permute.xlu2 %3919  ;;  %v11929_v31 = vpop.permute.xlu0 %3813  ;;  %264 = vst.msk [vmem:[#allocation2 + $0x139] sm:$0xff] %vm65_vm0, %v199_v10 }
 0x45e   :  { %14481 = vst [vmem:[#allocation56_spill] sm:$0xff] %v11929_v31 }
 0x460   :  { %v11925_v15 = vpop.permute.xlu1 %3803 }
 0x462   :  { %4179 = vperm.xlu1 %8863, %v11561_v36  }
 0x463   :  { %4199 = vperm.xlu2 %8862, %v11622_v48  }
 0x464   :  { %4189 = vperm.xlu0 %8861, %v11931_v0  }
 0x465   :  { %v11938_v58 = vpop.permute.xlu2 %3934  ;;  %v11940_v8 = vpop.permute.xlu0 %3828 }
 0x466   :  { %14482 = vst [vmem:[#allocation57_spill] sm:$0xff] %v11938_v58  ;;  %v11955_v58 = vld [vmem:[#allocation2 + $0x2da] sm:$0xff] }
 0x468   :  { %v11936_v3 = vpop.permute.xlu1 %3818 }
 0x46a   :  { %4194 = vperm.xlu1 %8863, %v11577_v14   ;;  %v200_v14 = vld [vmem:[%s14052_s0 + $0xc8] sm:$0xff] }
 0x46b   :  { %4214 = vperm.xlu2 %8862, %v11647_v6   ;;  %265 = vst.msk [vmem:[#allocation2 + $0x141] sm:$0xff] %vm65_vm0, %v200_v14 }
 0x46c   :  { %4204 = vperm.xlu0 %8861, %v11575_v60  }
 0x46d   :  { %v11951_v48 = vpop.permute.xlu2 %3949  ;;  %v11953_v31 = vpop.permute.xlu0 %3894 }
 0x46e   :  { %14484 = vst [vmem:[#allocation59_spill] sm:$0xff] %v11951_v48 }
 0x46f   :  { %14485 = vst [vmem:[#allocation60_spill] sm:$0xff] %v11953_v31  ;;  %v11970_v31 = vld [vmem:[#allocation2 + $0x2d2] sm:$0xff] }
 0x470   :  { %v11948_v36 = vpop.permute.xlu1 %3833 }
 0x471   :  { %14483 = vst [vmem:[#allocation58_spill] sm:$0xff] %v11948_v36  ;;  %v231_v36 = vld [vmem:[%s14052_s0 + $0x1c0] sm:$0xff] }
 0x472   :  { %4209 = vperm.xlu1 %8863, %v11627_v18   ;;  %296 = vst.msk [vmem:[#allocation2 + $0x2e9] sm:$0xff] %vm65_vm0, %v231_v36 }
 0x473   :  { %4229 = vperm.xlu2 %8862, %v11955_v58  }
 0x474   :  { %4219 = vperm.xlu0 %8861, %v11625_v35  }
 0x475   :  { %v11966_v10 = vpop.permute.xlu2 %3964  ;;  %v11968_v48 = vpop.permute.xlu0 %3909 }
 0x476   :  { %14487 = vst [vmem:[#allocation63_spill] sm:$0xff] %v11966_v10 }
 0x477   :  { %14488 = vst [vmem:[#allocation67_spill] sm:$0xff] %v11968_v48  ;;  %v232_v48 = vld [vmem:[%s14052_s0 + $0x1c8] sm:$0xff] }
 0x478   :  { %v11964_v60 = vpop.permute.xlu1 %3899  ;;  %297 = vst.msk [vmem:[#allocation2 + $0x2f1] sm:$0xff] %vm65_vm0, %v232_v48 }
 0x479   :  { %14486 = vst [vmem:[#allocation61_spill] sm:$0xff] %v11964_v60 }
 0x47a   :  { %4224 = vperm.xlu1 %8863, %v11970_v31  }
 0x47b   :  { %4295 = vperm.xlu2 %8862, %v11721_v19  }
 0x47c   :  { %4285 = vperm.xlu0 %8861, %v11651_v20  }
 0x47d   :  { %v11981_v60 = vpop.permute.xlu2 %4029 }
 0x47e   :  { %14489 = vst [vmem:[#allocation62_spill] sm:$0xff] %v11981_v60  ;;  %v11983_v10 = vpop.permute.xlu0 %3924  ;;  %v11998_v60 = vld [vmem:[#allocation2 + $0x138] sm:$0xff] }
 0x47f   :  { %14490 = vst [vmem:[#allocation64_spill] sm:$0xff] %v11983_v10 }
 0x480   :  { %v11979_v14 = vpop.permute.xlu1 %3914 }
 0x482   :  { %4290 = vperm.xlu1 %8863, %v11687_v30  }
 0x483   :  { %4310 = vperm.xlu2 %8862, %v11765_v1  }
 0x484   :  { %4300 = vperm.xlu0 %8861, %v11685_v7  }
 0x485   :  { %v11994_v20 = vpop.permute.xlu2 %4044 }
 0x486   :  { %14492 = vst [vmem:[#allocation66_spill] sm:$0xff] %v11994_v20  ;;  %v11996_v36 = vpop.permute.xlu0 %3939  ;;  %v12020_v20 = vld [vmem:[#allocation2 + $0x2e8] sm:$0xff] }
 0x487   :  { %14493 = vst [vmem:[#allocation68_spill] sm:$0xff] %v11996_v36 }
 0x488   :  { %v11991_v19 = vpop.permute.xlu1 %3929 }
 0x489   :  { %14491 = vst [vmem:[#allocation65_spill] sm:$0xff] %v11991_v19  ;;  %v12009_v19 = vld [vmem:[#allocation2 + $0x140] sm:$0xff] }
 0x48a   :  { %4305 = vperm.xlu1 %8863, %v11742_v45  }
 0x48b   :  { %4325 = vperm.xlu2 %8862, %v11779_v33  }
 0x48c   :  { %4315 = vperm.xlu0 %8861, %v11998_v60  }
 0x48d   :  { %v12005_v10 = vpop.permute.xlu2 %4059 }
 0x48e   :  { %14494 = vst [vmem:[#allocation69_spill] sm:$0xff] %v12005_v10  ;;  %v12007_v7 = vpop.permute.xlu0 %3954 }
 0x48f   :  { %14495 = vst [vmem:[#allocation73_spill] sm:$0xff] %v12007_v7 }
 0x490   :  { %v12003_v30 = vpop.permute.xlu1 %3944 }
 0x492   :  { %4320 = vperm.xlu1 %8863, %v12009_v19  }
 0x493   :  { %4340 = vperm.xlu2 %8862, %v11817_v29  }
 0x494   :  { %4330 = vperm.xlu0 %8861, %v11767_v27   ;;  %v12031_v27 = vld [vmem:[#allocation2 + $0x2f0] sm:$0xff] }
 0x495   :  { %v12016_v36 = vpop.permute.xlu2 %4074 }
 0x496   :  { %14496 = vst [vmem:[#allocation74_spill] sm:$0xff] %v12016_v36  ;;  %v12018_v33 = vpop.permute.xlu0 %3969 }
 0x497   :  { %14497 = vst [vmem:[#allocation75_spill] sm:$0xff] %v12018_v33 }
 0x498   :  { %v12014_v48 = vpop.permute.xlu1 %3959 }
 0x49a   :  { %4335 = vperm.xlu1 %8863, %v11789_v16  }
 0x49b   :  { %4355 = vperm.xlu2 %8862, %v12020_v20  }
 0x49c   :  { %4345 = vperm.xlu0 %8861, %v11783_v2  }
 0x49d   :  { %v12027_v10 = vpop.permute.xlu2 %4089 }
 0x49e   :  { %14499 = vst [vmem:[#allocation76_spill] sm:$0xff] %v12027_v10  ;;  %v12029_v29 = vpop.permute.xlu0 %4034 }
 0x49f   :  { %14500 = vst [vmem:[#allocation78_spill] sm:$0xff] %v12029_v29 }
 0x4a0   :  { %v12025_v7 = vpop.permute.xlu1 %4024 }
 0x4a1   :  { %14498 = vst [vmem:[#allocation70_spill] sm:$0xff] %v12025_v7 }
 0x4a2   :  { %4350 = vperm.xlu1 %8863, %v11822_v44  }
 0x4a3   :  { %4420 = vperm.xlu2 %8862, %v11851_v51   ;;  %v12051_v51 = vld [vmem:[#allocation2 + $0x141] sm:$0xff] }
 0x4a4   :  { %4360 = vperm.xlu0 %8861, %v12031_v27   ;;  %14507 = vst [vmem:[#allocation89_spill] sm:$0xff] %v12051_v51 }
 0x4a5   :  { %v12038_v16 = vpop.permute.xlu2 %4154 }
 0x4a6   :  { %14502 = vst [vmem:[#allocation82_spill] sm:$0xff] %v12038_v16  ;;  %v12040_v36 = vpop.permute.xlu0 %4049 }
 0x4a7   :  { %14503 = vst [vmem:[#allocation84_spill] sm:$0xff] %v12040_v36 }
 0x4a8   :  { %v12036_v33 = vpop.permute.xlu1 %4039 }
 0x4a9   :  { %14501 = vst [vmem:[#allocation79_spill] sm:$0xff] %v12036_v33  ;;  %v4407_v33 = vld [vmem:[#allocation2 + $0x2c1] sm:$0xff] }
 0x4aa   :  { %4415 = vperm.xlu1 %8863, %v11841_v43  }
 0x4ab   :  { %4435 = vperm.xlu2 %8862, %v11879_v9  }
 0x4ac   :  { %4425 = vperm.xlu0 %8861, %v11839_v4   ;;  %v12062_v4 = vld [vmem:[#allocation2 + $0x139] sm:$0xff] }
 0x4ad   :  { %v12047_v10 = vpop.permute.xlu2 %4169 }
 0x4ae   :  { %14505 = vst [vmem:[#allocation87_spill] sm:$0xff] %v12047_v10  ;;  %v12049_v7 = vpop.permute.xlu0 %4064  ;;  %v4404_v10 = vld [vmem:[#allocation2 + $0x2a1] sm:$0xff] }
 0x4af   :  { %14506 = vst [vmem:[#allocation88_spill] sm:$0xff] %v12049_v7 }
 0x4b0   :  { %v12045_v29 = vpop.permute.xlu1 %4054 }
 0x4b1   :  { %14504 = vst [vmem:[#allocation85_spill] sm:$0xff] %v12045_v29  ;;  %v4406_v29 = vld [vmem:[#allocation2 + $0x2b9] sm:$0xff] }
 0x4b2   :  { %4430 = vperm.xlu1 %8863, %v11861_v21  }
 0x4b3   :  { %4450 = vperm.xlu2 %8862, %v12051_v51  }
 0x4b4   :  { %4440 = vperm.xlu0 %8861, %v11857_v49  }
 0x4b5   :  { %v12058_v43 = vpop.permute.xlu2 %4184 }
 0x4b6   :  { %14509 = vst [vmem:[#allocation92_spill] sm:$0xff] %v12058_v43  ;;  %v12060_v16 = vpop.permute.xlu0 %4079 }
 0x4b7   :  { %14510 = vst [vmem:[#allocation32_spill] sm:$0xff] %v12060_v16 }
 0x4b8   :  { %v12056_v36 = vpop.permute.xlu1 %4069 }
 0x4b9   :  { %14508 = vst [vmem:[#allocation71_spill] sm:$0xff] %v12056_v36 }
 0x4ba   :  { %4445 = vperm.xlu1 %8863, %v12062_v4  }
 0x4bb   :  { %4465 = vperm.xlu2 %8862, %v4406_v29   ;;  %v4526_v29 = vld [vmem:[#allocation2 + $0xf2] sm:$0xff] }
 0x4bc   :  { %4455 = vperm.xlu0 %8861, %v4404_v10   ;;  %v12079_v10 = vld [vmem:[#allocation2 + $0x2e9] sm:$0xff] }
 0x4bd   :  { %v12067_v21 = vpop.permute.xlu2 %4199  ;;  %14515 = vst [vmem:[#allocation80_spill] sm:$0xff] %v12079_v10 }
 0x4be   :  { %v12069_v51 = vpop.permute.xlu0 %4094 }
 0x4bf   :  { %14511 = vst [vmem:[#allocation33_spill] sm:$0xff] %v12069_v51 }
 0x4c0   :  { %v12065_v7 = vpop.permute.xlu1 %4084 }
 0x4c2   :  { %4460 = vperm.xlu1 %8863, %v11888_v24  }
 0x4c3   :  { %4480 = vperm.xlu2 %8862, %v11910_v5  }
 0x4c4   :  { %4470 = vperm.xlu0 %8861, %v4407_v33   ;;  %v12089_v33 = vld [vmem:[#allocation2 + $0x2f1] sm:$0xff] }
 0x4c5   :  { %v12075_v43 = vpop.permute.xlu2 %4214  ;;  %14519 = vst [vmem:[#allocation95_spill] sm:$0xff] %v12089_v33 }
 0x4c6   :  { %14513 = vst [vmem:[#allocation93_spill] sm:$0xff] %v12075_v43  ;;  %v12077_v36 = vpop.permute.xlu0 %4159  ;;  %v4527_v43 = vld [vmem:[#allocation2 + $0xfa] sm:$0xff] }
 0x4c7   :  { %14514 = vst [vmem:[#allocation96_spill] sm:$0xff] %v12077_v36 }
 0x4c8   :  { %v12073_v16 = vpop.permute.xlu1 %4099 }
 0x4c9   :  { %14512 = vst [vmem:[#allocation91_spill] sm:$0xff] %v12073_v16  ;;  %v4529_v16 = vld [vmem:[#allocation2 + $0x112] sm:$0xff] }
 0x4ca   :  { %4475 = vperm.xlu1 %8863, %v11901_v59  }
 0x4cb   :  { %4545 = vperm.xlu2 %8862, %v4526_v29  }
 0x4cc   :  { %4485 = vperm.xlu0 %8861, %v12079_v10   ;;  %v4528_v10 = vld [vmem:[#allocation2 + $0x10a] sm:$0xff] }
 0x4cd   :  { %v12085_v24 = vpop.permute.xlu2 %4229 }
 0x4ce   :  { %14517 = vst [vmem:[#allocation94_spill] sm:$0xff] %v12085_v24  ;;  %v12087_v5 = vpop.permute.xlu0 %4174 }
 0x4cf   :  { %14518 = vst [vmem:[#allocation98_spill] sm:$0xff] %v12087_v5 }
 0x4d0   :  { %v12083_v51 = vpop.permute.xlu1 %4164 }
 0x4d1   :  { %14516 = vst [vmem:[#allocation42_spill] sm:$0xff] %v12083_v51  ;;  %v12098_v51 = vld [vmem:[#allocation2 + $0x13a] sm:$0xff] }
 0x4d2   :  { %4490 = vperm.xlu1 %8863, %v12089_v33   ;;  %14520 = vst [vmem:[#allocation97_spill] sm:$0xff] %v12098_v51  ;;  %v201_v33 = vld [vmem:[%s14052_s0 + $0xd0] sm:$0xff] }
 0x4d3   :  { %4560 = vperm.xlu2 %8862, %v4529_v16   ;;  %266 = vst.msk [vmem:[#allocation2 + $0x151] sm:$0xff] %vm65_vm0, %v201_v33 }
 0x4d4   :  { %4550 = vperm.xlu0 %8861, %v4527_v43   ;;  %v12108_v43 = vld [vmem:[#allocation2 + $0x142] sm:$0xff] }
 0x4d5   :  { %v12094_v59 = vpop.permute.xlu2 %4295  ;;  %14523 = vst [vmem:[#allocation45_spill] sm:$0xff] %v12108_v43 }
 0x4d6   :  { %v12096_v29 = vpop.permute.xlu0 %4189 }
 0x4d8   :  { %v12092_v36 = vpop.permute.xlu1 %4179 }
 0x4da   :  { %4555 = vperm.xlu1 %8863, %v4528_v10   ;;  %v202_v10 = vld [vmem:[%s14052_s0 + $0xd8] sm:$0xff] }
 0x4db   :  { %4575 = vperm.xlu2 %8862, %v12098_v51   ;;  %267 = vst.msk [vmem:[#allocation2 + $0x159] sm:$0xff] %vm65_vm0, %v202_v10 }
 0x4dc   :  { %4565 = vperm.xlu0 %8861, %v11920_v23  }
 0x4dd   :  { %v12104_v24 = vpop.permute.xlu2 %4310 }
 0x4de   :  { %14521 = vst [vmem:[#allocation99_spill] sm:$0xff] %v12104_v24  ;;  %v12106_v16 = vpop.permute.xlu0 %4204  ;;  %v14550_v24 = vld [vmem:[#allocation35_spill] sm:$0xff] }
 0x4df   :  { %14522 = vst [vmem:[#allocation16_spill] sm:$0xff] %v12106_v16  ;;  %v4534_v16 = vld [vmem:[#allocation2 + $0x2a2] sm:$0xff] }
 0x4e0   :  { %v12102_v5 = vpop.permute.xlu1 %4194 }
 0x4e2   :  { %4570 = vperm.xlu1 %8863, %v11931_v0  }
 0x4e3   :  { %4590 = vperm.xlu2 %8862, %v11627_v18   ;;  %v203_v18 = vld [vmem:[%s14052_s0 + $0xe0] sm:$0xff] }
 0x4e4   :  { %4580 = vperm.xlu0 %8861, %v12108_v43   ;;  %268 = vst.msk [vmem:[#allocation2 + $0x169] sm:$0xff] %vm65_vm0, %v203_v18 }
 0x4e5   :  { %v12123_v51 = vpop.permute.xlu2 %4325 }
 0x4e6   :  { %14524 = vst [vmem:[#allocation72_spill] sm:$0xff] %v12123_v51  ;;  %v12125_v0 = vpop.permute.xlu0 %4219  ;;  %v4541_v51 = vld [vmem:[#allocation2 + $0x2f2] sm:$0xff] }
 0x4e7   :  { %14525 = vst [vmem:[#allocation81_spill] sm:$0xff] %v12125_v0  ;;  %v14549_v0 = vld [vmem:[#allocation29_spill] sm:$0xff] }
 0x4e8   :  { %v12120_v23 = vpop.permute.xlu1 %4209 }
 0x4ea   :  { %4585 = vperm.xlu1 %8863, %v4534_v16   ;;  %v204_v16 = vld [vmem:[%s14052_s0 + $0xe8] sm:$0xff] }
 0x4eb   :  { %4605 = vperm.xlu2 %8862, %v11970_v31   ;;  %269 = vst.msk [vmem:[#allocation2 + $0x171] sm:$0xff] %vm65_vm0, %v204_v16  ;;  %v5055_v16 = vld [vmem:[#allocation2 + $0x158] sm:$0xff] }
 0x4ec   :  { %4595 = vperm.xlu0 %8861, %v11647_v6  }
 0x4ed   :  { %v12135_v43 = vpop.permute.xlu2 %4340 }
 0x4ee   :  { %14527 = vst [vmem:[#allocation83_spill] sm:$0xff] %v12135_v43  ;;  %v12137_v10 = vpop.permute.xlu0 %4285  ;;  %v4540_v43 = vld [vmem:[#allocation2 + $0x2ea] sm:$0xff] }
 0x4ef   :  { %14528 = vst [vmem:[#allocation100_spill] sm:$0xff] %v12137_v10  ;;  %v235_v10 = vld [vmem:[%s14052_s0 + $0x1e0] sm:$0xff] }
 0x4f0   :  { %v12132_v33 = vpop.permute.xlu1 %4224  ;;  %300 = vst.msk [vmem:[#allocation2 + $0x319] sm:$0xff] %vm65_vm0, %v235_v10 }
 0x4f1   :  { %14526 = vst [vmem:[#allocation77_spill] sm:$0xff] %v12132_v33 }
 0x4f2   :  { %4600 = vperm.xlu1 %8863, %v11625_v35   ;;  %v233_v35 = vld [vmem:[%s14052_s0 + $0x1d0] sm:$0xff] }
 0x4f3   :  { %4620 = vperm.xlu2 %8862, %v4541_v51   ;;  %298 = vst.msk [vmem:[#allocation2 + $0x301] sm:$0xff] %vm65_vm0, %v233_v35 }
 0x4f4   :  { %4610 = vperm.xlu0 %8861, %v11955_v58  }
 0x4f5   :  { %v12147_v31 = vpop.permute.xlu2 %4355 }
 0x4f6   :  { %14530 = vst [vmem:[#allocation17_spill] sm:$0xff] %v12147_v31  ;;  %v12149_v18 = vpop.permute.xlu0 %4300  ;;  %v14547_v31 = vld [vmem:[#allocation27_spill] sm:$0xff] }
 0x4f7   :  { %14531 = vst [vmem:[#allocation90_spill] sm:$0xff] %v12149_v18 }
 0x4f8   :  { %v12145_v6 = vpop.permute.xlu1 %4290 }
 0x4f9   :  { %14529 = vst [vmem:[#allocation101_spill] sm:$0xff] %v12145_v6  ;;  %v14548_v6 = vld [vmem:[#allocation28_spill] sm:$0xff] }
 0x4fa   :  { %4615 = vperm.xlu1 %8863, %v4540_v43  }
 0x4fb   :  { %5079 = vperm.xlu2 %8862, %v11998_v60   ;;  %v234_v60 = vld [vmem:[%s14052_s0 + $0x1d8] sm:$0xff] }
 0x4fc   :  { %5069 = vperm.xlu0 %8861, %v11742_v45   ;;  %299 = vst.msk [vmem:[#allocation2 + $0x309] sm:$0xff] %vm65_vm0, %v234_v60  ;;  %v236_v45 = vld [vmem:[%s14052_s0 + $0x1e8] sm:$0xff] }
 0x4fd   :  { %v12163_v51 = vpop.permute.xlu2 %4420  ;;  %301 = vst.msk [vmem:[#allocation2 + $0x321] sm:$0xff] %vm65_vm0, %v236_v45  ;;  %v3584_v45 = vmul.f32 %v11805_v17, %v11516_v53  ;;  %v3583_v53 = vmul.f32 %v11805_v17, %v11637_v41  ;;  %v14543_v41 = vld [vmem:[#allocation37_spill] sm:$0xff] }
 0x4fe   :  { %14533 = vst [vmem:[#allocation86_spill] sm:$0xff] %v12163_v51  ;;  %v12165_v43 = vpop.permute.xlu0 %4315  ;;  %v5054_v51 = vld [vmem:[#allocation2 + $0x150] sm:$0xff] }
 0x4ff   :  { %14534 = vst [vmem:[#allocation102_spill] sm:$0xff] %v12165_v43 }
 0x500   :  { %v12160_v58 = vpop.permute.xlu1 %4305 }
 0x501   :  { %14532 = vst [vmem:[#allocation20_spill] sm:$0xff] %v12160_v58  ;;  %v5056_v58 = vld [vmem:[#allocation2 + $0x168] sm:$0xff] }
 0x502   :  { %5074 = vperm.xlu1 %8863, %v11765_v1  }
 0x503   :  { %5094 = vperm.xlu2 %8862, %v5055_v16  }
 0x504   :  { %5084 = vperm.xlu0 %8861, %v12009_v19   ;;  %v5057_v19 = vld [vmem:[#allocation2 + $0x170] sm:$0xff] }
 0x505   :  { %v12179_v35 = vpop.permute.xlu2 %4435 }
 0x506   :  { %14536 = vst [vmem:[#allocation104_spill] sm:$0xff] %v12179_v35  ;;  %v12181_v43 = vpop.permute.xlu0 %4330  ;;  %v3587_v35 = vmul.f32 %v11805_v17, %v11550_v28  ;;  %v3596_v28 = vmul.f32 %v11805_v17, %v11640_v57  ;;  %v14544_v57 = vld [vmem:[#allocation43_spill] sm:$0xff] }
 0x507   :  { %14537 = vst [vmem:[#allocation105_spill] sm:$0xff] %v12181_v43  ;;  %v3713_v43 = vmul.f32 %v11810_v39, %v11667_v42  ;;  %v14541_v42 = vld [vmem:[#allocation39_spill] sm:$0xff] }
 0x508   :  { %v12176_v10 = vpop.permute.xlu1 %4320 }
 0x509   :  { %14535 = vst [vmem:[#allocation103_spill] sm:$0xff] %v12176_v10  ;;  %v3729_v18 = vadd.f32 %v3713_v43, %v3583_v53 }
 0x50a   :  { %5089 = vperm.xlu1 %8863, %v5054_v51   ;;  %v3582_v51 = vmul.f32 %v11805_v17, %v11610_v22  ;;  %v12217_v22 = vld [vmem:[%s14053_s1 + $0x2] ss:$0 sm:$0xff] }
 0x50b   :  { %5109 = vperm.xlu2 %8862, %v11783_v2   ;;  %v3590_v2 = vmul.f32 %v11805_v17, %v11565_v47  ;;  %v3585_v47 = vmul.f32 %v11805_v17, %v11642_v52  ;;  %v14545_v52 = vld [vmem:[#allocation46_spill] sm:$0xff] }
 0x50c   :  { %5099 = vperm.xlu0 %8861, %v5056_v58   ;;  %v12200_v58 = vmul.f32 %v11805_v17, %v11604_v11  ;;  %v3719_v11 = vmul.f32 %v11810_v39, %v14541_v42  ;;  %v3714_v10 = vmul.f32 %v11810_v39, %v14545_v52  ;;  %v3591_v52 = vmul.f32 %v11805_v17, %v14549_v0 }
 0x50d   :  { %v12186_v16 = vpop.permute.xlu2 %4450 }
 0x50e   :  { %14539 = vst [vmem:[#allocation107_spill] sm:$0xff] %v12186_v16  ;;  %v12188_v60 = vpop.permute.xlu0 %4345  ;;  %v3722_v16 = vmul.f32 %v11810_v39, %v14543_v41  ;;  %v3715_v41 = vmul.f32 %v11810_v39, %v11829_v13  ;;  %v3717_v13 = vmul.f32 %v11810_v39, %v11834_v32  ;;  %v3724_v32 = vmul.f32 %v11810_v39, %v11882_v56  ;;  %v14554_v56 = vld [vmem:[#allocation48_spill] sm:$0xff] }
 0x50f   :  { %14540 = vst [vmem:[#allocation108_spill] sm:$0xff] %v12188_v60  ;;  %v3716_v60 = vmul.f32 %v11810_v39, %v11706_v40  ;;  %v14542_v40 = vld [vmem:[#allocation25_spill] sm:$0xff] }
 0x510   :  { %v12184_v1 = vpop.permute.xlu1 %4335 }
 0x511   :  { %14538 = vst [vmem:[#allocation106_spill] sm:$0xff] %v12184_v1  ;;  %v3712_v1 = vmul.f32 %v11810_v39, %v14544_v57 }
 0x512   :  { %5104 = vperm.xlu1 %8863, %v5057_v19   ;;  %v3586_v19 = vmul.f32 %v11805_v17, %v14542_v40  ;;  %v3589_v40 = vmul.f32 %v11805_v17, %v14548_v6  ;;  %v3842_v6 = vmul.f32 %v12217_v22, %v11832_v50  ;;  %v3720_v50 = vmul.f32 %v11810_v39, %v11849_v37 }
 0x513   :  { %5124 = vperm.xlu2 %8862, %v12031_v27   ;;  %v3588_v27 = vmul.f32 %v11805_v17, %v14547_v31  ;;  %v3733_v37 = vadd.f32 %v3717_v13, %v3587_v35 }
 0x514   :  { %5114 = vperm.xlu0 %8861, %v11822_v44   ;;  %v3732_v57 = vadd.f32 %v3716_v60, %v3586_v19  ;;  %v3592_v44 = vmul.f32 %v11805_v17, %v14550_v24  ;;  %v12247_v31 = vadd.f32 %v3719_v11, %v3589_v40  ;;  %v3718_v60 = vmul.f32 %v11810_v39, %v11845_v25  ;;  %v5062_v40 = vld [vmem:[#allocation2 + $0x300] sm:$0xff] }
 0x515   :  { %v12237_v33 = vpop.permute.xlu2 %4465  ;;  %v3728_v19 = vadd.f32 %v3712_v1, %v3582_v51  ;;  %v3730_v24 = vadd.f32 %v3714_v10, %v3584_v45  ;;  %v3845_v11 = vmul.f32 %v12217_v22, %v11847_v61  ;;  %v3848_v25 = vmul.f32 %v12217_v22, %v11875_v62  ;;  %v14553_v1 = vld [vmem:[#allocation52_spill] sm:$0xff]  ;;  %v12281_v62 = vld [vmem:[%s14053_s1 + $0x3] ss:$0 sm:$0xff] }
 0x516   :  { %v12245_v53 = vpop.permute.xlu0 %4360  ;;  %v12255_v0 = vadd.f32 %v3722_v16, %v3592_v44  ;;  %v3723_v10 = vmul.f32 %v11810_v39, %v11877_v55  ;;  %v3726_v16 = vmul.f32 %v11810_v39, %v14553_v1  ;;  %v3734_v45 = vadd.f32 %v3718_v60, %v3588_v27  ;;  %v14555_v44 = vld [vmem:[#allocation51_spill] sm:$0xff] }
 0x517   :  { %14552 = vst [vmem:[#allocation25_spill] sm:$0xff] %v12245_v53  ;;  %v3731_v53 = vadd.f32 %v3715_v41, %v3585_v47  ;;  %v12274_v61 = vadd.f32 %v3842_v6, %v3728_v19  ;;  %v3854_v51 = vmul.f32 %v12217_v22, %v14554_v56  ;;  %v3736_v27 = vadd.f32 %v3720_v50, %v3590_v2 }
 0x518   :  { %v12229_v42 = vpop.permute.xlu1 %4350  ;;  %v3846_v6 = vmul.f32 %v12217_v22, %v14555_v44  ;;  %v3847_v2 = vmul.f32 %v12217_v22, %v11914_v54  ;;  %v3978_v54 = vmul.f32 %v12281_v62, %v11927_v26  ;;  %v14565_v44 = vld [vmem:[#allocation63_spill] sm:$0xff] }
 0x519   :  { %14546 = vst [vmem:[#allocation39_spill] sm:$0xff] %v12229_v42  ;;  %v14551_v42 = vld [vmem:[#allocation24_spill] sm:$0xff]  ;;  %v3861_v47 = vadd.f32 %v3845_v11, %v3731_v53 }
 0x51a   :  { %v3594_v43 = vmul.f32 %v11805_v17, %v14551_v42  ;;  %v3721_v17 = vmul.f32 %v11810_v39, %v11872_v34  ;;  %v5064_v42 = vld [vmem:[#allocation2 + $0x318] sm:$0xff]  ;;  %v3851_v34 = vmul.f32 %v12217_v22, %v11884_v12  ;;  %5119 = vperm.xlu1 %8863, %v12020_v20   ;;  %v3843_v12 = vmul.f32 %v12217_v22, %v11897_v46 }
 0x51b   :  { %5139 = vperm.xlu2 %8862, %v5064_v42   ;;  %v3844_v39 = vmul.f32 %v12217_v22, %v11904_v63  ;;  %v3857_v20 = vmul.f32 %v12217_v22, %v11906_v38  ;;  %v3739_v46 = vadd.f32 %v3723_v10, %v12200_v58  ;;  %v3742_v63 = vadd.f32 %v3726_v16, %v3596_v28  ;;  %v5063_v42 = vld [vmem:[#allocation2 + $0x308] sm:$0xff]  ;;  %v14560_v16 = vld [vmem:[#allocation57_spill] sm:$0xff] }
 0x51c   :  { %v3737_v55 = vadd.f32 %v3721_v17, %v3591_v52  ;;  %5129 = vperm.xlu0 %8861, %v5062_v40   ;;  %v3740_v41 = vadd.f32 %v3724_v32, %v3594_v43  ;;  %v12295_v52 = vadd.f32 %v3848_v25, %v3734_v45  ;;  %v14556_v43 = vld [vmem:[#allocation54_spill] sm:$0xff]  ;;  %v3850_v17 = vmul.f32 %v12217_v22, %v11925_v15  ;;  %v14557_v58 = vld [vmem:[#allocation47_spill] sm:$0xff] }
 0x51d   :  { %v12293_v13 = vpop.permute.xlu2 %4480  ;;  %v3975_v53 = vmul.f32 %v12281_v62, %v14556_v43  ;;  %v3859_v11 = vadd.f32 %v3843_v12, %v3729_v18  ;;  %v3860_v50 = vadd.f32 %v3844_v39, %v3730_v24  ;;  %v12311_v32 = vadd.f32 %v3857_v20, %v14557_v58  ;;  %v14558_v25 = vld [vmem:[#allocation55_spill] sm:$0xff]  ;;  %v14561_v45 = vld [vmem:[#allocation58_spill] sm:$0xff]  ;;  %v14563_v12 = vld [vmem:[#allocation60_spill] sm:$0xff] }
 0x51e   :  { %v12298_v60 = vadd.f32 %v3851_v34, %v3737_v55  ;;  %v12300_v19 = vpop.permute.xlu0 %4425  ;;  %v12302_v38 = vadd.f32 %v3854_v51, %v3740_v41  ;;  %v3853_v28 = vmul.f32 %v12217_v22, %v11936_v3  ;;  %v3862_v40 = vadd.f32 %v3846_v6, %v3732_v57  ;;  %v14559_v34 = vld [vmem:[#allocation56_spill] sm:$0xff]  ;;  %v5065_v15 = vld [vmem:[#allocation2 + $0x320] sm:$0xff] }
 0x51f   :  { %v3849_v10 = vmul.f32 %v12217_v22, %v14558_v25  ;;  %v3852_v1 = vmul.f32 %v12217_v22, %v14559_v34  ;;  %v3981_v18 = vmul.f32 %v12281_v62, %v14560_v16  ;;  %v3855_v24 = vmul.f32 %v12217_v22, %v11940_v8  ;;  %v14562_v57 = vld [vmem:[#allocation59_spill] sm:$0xff] }
 0x520   :  { %v12289_v35 = vpop.permute.xlu1 %4415  ;;  %v3856_v3 = vmul.f32 %v12217_v22, %v14561_v45  ;;  %v3984_v56 = vmul.f32 %v12281_v62, %v14562_v57  ;;  %v3863_v51 = vadd.f32 %v3847_v2, %v3733_v37  ;;  %v12329_v55 = vadd.f32 %v3975_v53, %v3860_v50  ;;  %v12336_v20 = vld [vmem:[%s14053_s1 + $0x4] ss:$0 sm:$0xff]  ;;  %v14564_v22 = vld [vmem:[#allocation61_spill] sm:$0xff] }
 0x521   :  { %v3866_v26 = vadd.f32 %v3850_v17, %v3736_v27  ;;  %v3973_v39 = vmul.f32 %v12281_v62, %v14563_v12  ;;  %v3869_v8 = vadd.f32 %v3853_v28, %v3739_v46  ;;  %v3974_v41 = vmul.f32 %v12281_v62, %v14564_v22  ;;  %v14566_v6 = vld [vmem:[#allocation67_spill] sm:$0xff]  ;;  %v14567_v50 = vld [vmem:[#allocation41_spill] sm:$0xff] }
 0x522   :  { %5134 = vperm.xlu1 %8863, %v5063_v42   ;;  %v3987_v37 = vmul.f32 %v12281_v62, %v14565_v44  ;;  %v3976_v27 = vmul.f32 %v12281_v62, %v14566_v6  ;;  %v3865_v43 = vadd.f32 %v3849_v10, %v12247_v31  ;;  %v12348_v53 = vadd.f32 %v3978_v54, %v3863_v51  ;;  %v14568_v10 = vld [vmem:[#allocation62_spill] sm:$0xff]  ;;  %v12373_v45 = vld [vmem:[#allocation2 + $0x151] sm:$0xff]  ;;  %v14576_v22 = vld [vmem:[#allocation75_spill] sm:$0xff] }
 0x523   :  { %5204 = vperm.xlu2 %8862, %v11857_v49   ;;  %v3868_v17 = vadd.f32 %v3852_v1, %v12255_v0  ;;  %v3977_v49 = vmul.f32 %v12281_v62, %v11979_v14  ;;  %v12355_v42 = vadd.f32 %v3981_v18, %v3866_v26  ;;  %v3871_v58 = vadd.f32 %v3855_v24, %v14567_v50  ;;  %v14569_v0 = vld [vmem:[#allocation64_spill] sm:$0xff]  ;;  %v14570_v14 = vld [vmem:[#allocation65_spill] sm:$0xff] }
 0x524   :  { %5144 = vperm.xlu0 %8861, %v5065_v15   ;;  %v3872_v28 = vadd.f32 %v3856_v3, %v3742_v63  ;;  %v12358_v25 = vadd.f32 %v3984_v56, %v3869_v8  ;;  %v3989_v31 = vadd.f32 %v3973_v39, %v12274_v61  ;;  %v4104_v54 = vmul.f32 %v12336_v20, %v14568_v10  ;;  %v14571_v61 = vld [vmem:[#allocation66_spill] sm:$0xff]  ;;  %v14572_v56 = vld [vmem:[#allocation68_spill] sm:$0xff]  ;;  %v14573_v26 = vld [vmem:[#allocation69_spill] sm:$0xff] }
 0x525   :  { %v12353_v46 = vpop.permute.xlu2 %4545  ;;  %v3979_v1 = vmul.f32 %v12281_v62, %v14569_v0  ;;  %v3980_v15 = vmul.f32 %v12281_v62, %v14570_v14  ;;  %v3990_v16 = vadd.f32 %v3974_v41, %v3859_v11  ;;  %v3992_v24 = vadd.f32 %v3976_v27, %v3861_v47  ;;  %v12384_v11 = vld [vmem:[%s14053_s1 + $0x5] ss:$0 sm:$0xff]  ;;  %v14574_v47 = vld [vmem:[#allocation73_spill] sm:$0xff]  ;;  %v14575_v39 = vld [vmem:[#allocation74_spill] sm:$0xff] }
 0x526   :  { %v12360_v34 = vpop.permute.xlu0 %4440  ;;  %v12369_v18 = vadd.f32 %v3987_v37, %v3872_v28  ;;  %v3983_v63 = vmul.f32 %v12281_v62, %v12003_v30  ;;  %v3993_v3 = vadd.f32 %v3977_v49, %v3862_v40  ;;  %v4107_v57 = vmul.f32 %v12336_v20, %v14571_v61  ;;  %v14577_v27 = vld [vmem:[#allocation70_spill] sm:$0xff] }
 0x527   :  { %v3982_v51 = vmul.f32 %v12281_v62, %v14572_v56  ;;  %v4110_v12 = vmul.f32 %v12336_v20, %v14573_v26  ;;  %v3985_v30 = vmul.f32 %v12281_v62, %v14574_v47  ;;  %v3986_v40 = vmul.f32 %v12281_v62, %v12014_v48  ;;  %v14578_v48 = vld [vmem:[#allocation76_spill] sm:$0xff]  ;;  %v14579_v10 = vld [vmem:[#allocation78_spill] sm:$0xff] }
 0x528   :  { %v12345_v2 = vpop.permute.xlu1 %4430  ;;  %v4113_v8 = vmul.f32 %v12336_v20, %v14575_v39  ;;  %v3988_v41 = vmul.f32 %v12281_v62, %v14576_v22  ;;  %v12395_v44 = vadd.f32 %v4104_v54, %v3990_v16  ;;  %v3995_v37 = vadd.f32 %v3979_v1, %v12295_v52  ;;  %v14580_v62 = vld [vmem:[#allocation79_spill] sm:$0xff]  ;;  %v14581_v14 = vld [vmem:[#allocation82_spill] sm:$0xff] }
 0x529   :  { %v3996_v6 = vadd.f32 %v3980_v15, %v3865_v43  ;;  %v4103_v49 = vmul.f32 %v12336_v20, %v14577_v27  ;;  %v3999_v50 = vadd.f32 %v3983_v63, %v3868_v17  ;;  %v4116_v28 = vmul.f32 %v12336_v20, %v14578_v48  ;;  %v14589_v48 = vld [vmem:[#allocation33_spill] sm:$0xff] }
 0x52a   :  { %5199 = vperm.xlu1 %8863, %v11879_v9   ;;  %v4105_v0 = vmul.f32 %v12336_v20, %v14579_v10  ;;  %v4106_v9 = vmul.f32 %v12336_v20, %v14580_v62  ;;  %v4123_v52 = vadd.f32 %v4107_v57, %v3993_v3  ;;  %v3998_v43 = vadd.f32 %v3982_v51, %v12298_v60  ;;  %v14582_v3 = vld [vmem:[#allocation84_spill] sm:$0xff]  ;;  %v14583_v57 = vld [vmem:[#allocation85_spill] sm:$0xff]  ;;  %v14590_v10 = vld [vmem:[#allocation91_spill] sm:$0xff] }
 0x52b   :  { %5219 = vperm.xlu2 %8862, %v12373_v45   ;;  %v12411_v1 = vadd.f32 %v4110_v12, %v3996_v6  ;;  %v4233_v17 = vmul.f32 %v12384_v11, %v14581_v14  ;;  %v4001_v16 = vadd.f32 %v3985_v30, %v12302_v38  ;;  %v4002_v63 = vadd.f32 %v3986_v40, %v3871_v58  ;;  %v14584_v12 = vld [vmem:[#allocation87_spill] sm:$0xff]  ;;  %v5187_v40 = vld [vmem:[#allocation2 + $0x171] sm:$0xff] }
 0x52c   :  { %5209 = vperm.xlu0 %8861, %v12062_v4   ;;  %v12418_v61 = vadd.f32 %v4113_v8, %v3999_v50  ;;  %v4004_v56 = vadd.f32 %v3988_v41, %v12311_v32  ;;  %v4119_v26 = vadd.f32 %v4103_v49, %v3989_v31  ;;  %v4108_v60 = vmul.f32 %v12336_v20, %v14582_v3  ;;  %v14585_v30 = vld [vmem:[#allocation71_spill] sm:$0xff]  ;;  %v14586_v31 = vld [vmem:[#allocation88_spill] sm:$0xff]  ;;  %v5185_v49 = vld [vmem:[#allocation2 + $0x159] sm:$0xff] }
 0x52d   :  { %v12415_v15 = vpop.permute.xlu2 %4560  ;;  %v4109_v51 = vmul.f32 %v12336_v20, %v14583_v57  ;;  %v4236_v47 = vmul.f32 %v12384_v11, %v14584_v12  ;;  %v12429_v39 = vadd.f32 %v4116_v28, %v4002_v63  ;;  %v4121_v38 = vadd.f32 %v4105_v0, %v12329_v55  ;;  %v14587_v41 = vld [vmem:[#allocation92_spill] sm:$0xff]  ;;  %v14591_v62 = vld [vmem:[#allocation89_spill] sm:$0xff]  ;;  %v14594_v57 = vld [vmem:[#allocation42_spill] sm:$0xff] }
 0x52e   :  { %v12421_v4 = vpop.permute.xlu0 %4455  ;;  %v4122_v58 = vadd.f32 %v4106_v9, %v3992_v24  ;;  %v4112_v32 = vmul.f32 %v12336_v20, %v14585_v30  ;;  %v12434_v8 = vadd.f32 %v4233_v17, %v4119_v26  ;;  %v4111_v22 = vmul.f32 %v12336_v20, %v14586_v31  ;;  %v14588_v50 = vld [vmem:[#allocation32_spill] sm:$0xff]  ;;  %v14596_v30 = vld [vmem:[#allocation98_spill] sm:$0xff] }
 0x52f   :  { %v4239_v6 = vmul.f32 %v12384_v11, %v14587_v41  ;;  %v4115_v27 = vmul.f32 %v12336_v20, %v12065_v7  ;;  %v4114_v55 = vmul.f32 %v12336_v20, %v14588_v50  ;;  %v4242_v24 = vmul.f32 %v12384_v11, %v12067_v21  ;;  %v14592_v7 = vld [vmem:[#allocation93_spill] sm:$0xff]  ;;  %v12459_v21 = vld [vmem:[%s14053_s1 + $0x6] ss:$0 sm:$0xff]  ;;  %v14593_v3 = vld [vmem:[#allocation96_spill] sm:$0xff] }
 0x530   :  { %v12408_v54 = vpop.permute.xlu1 %4445  ;;  %v4117_v28 = vmul.f32 %v12336_v20, %v14589_v48  ;;  %v4118_v0 = vmul.f32 %v12336_v20, %v14590_v10  ;;  %v4124_v9 = vadd.f32 %v4108_v60, %v12348_v53  ;;  %v4125_v14 = vadd.f32 %v4109_v51, %v3995_v37  ;;  %v14595_v53 = vld [vmem:[#allocation94_spill] sm:$0xff] }
 0x531   :  { %v12452_v17 = vadd.f32 %v4236_v47, %v4122_v58  ;;  %v4245_v63 = vmul.f32 %v12384_v11, %v14592_v7  ;;  %v4128_v26 = vadd.f32 %v4112_v32, %v3998_v43  ;;  %v4234_v20 = vmul.f32 %v12384_v11, %v14593_v3 }
 0x532   :  { %5214 = vperm.xlu1 %8863, %v14591_v62   ;;  %v4235_v12 = vmul.f32 %v12384_v11, %v14594_v57  ;;  %v4248_v37 = vmul.f32 %v12384_v11, %v14595_v53  ;;  %v4127_v51 = vadd.f32 %v4111_v22, %v12355_v42  ;;  %v12470_v47 = vadd.f32 %v4239_v6, %v4125_v14  ;;  %v5186_v6 = vld [vmem:[#allocation2 + $0x169] sm:$0xff]  ;;  %v14601_v62 = vld [vmem:[#allocation77_spill] sm:$0xff] }
 0x533   :  { %5234 = vperm.xlu2 %8862, %v5187_v40   ;;  %v4131_v58 = vadd.f32 %v4115_v27, %v4001_v16  ;;  %v4237_v43 = vmul.f32 %v12384_v11, %v14596_v30  ;;  %v4130_v40 = vadd.f32 %v4114_v55, %v12358_v25  ;;  %v12477_v31 = vadd.f32 %v4242_v24, %v4128_v26  ;;  %v14603_v26 = vld [vmem:[#allocation100_spill] sm:$0xff]  ;;  %v14608_v30 = vld [vmem:[#allocation50_spill] sm:$0xff] }
 0x534   :  { %5224 = vperm.xlu0 %8861, %v5185_v49   ;;  %v4133_v41 = vadd.f32 %v4117_v28, %v12369_v18  ;;  %v4134_v50 = vadd.f32 %v4118_v0, %v4004_v56  ;;  %v4238_v42 = vmul.f32 %v12384_v11, %v12092_v36  ;;  %v4366_v16 = vmul.f32 %v12459_v21, %v12094_v59  ;;  %v14597_v36 = vld [vmem:[#allocation99_spill] sm:$0xff]  ;;  %v14598_v59 = vld [vmem:[#allocation16_spill] sm:$0xff] }
 0x535   :  { %v12474_v32 = vpop.permute.xlu2 %4575  ;;  %v12482_v48 = vadd.f32 %v4245_v63, %v4131_v58  ;;  %v4241_v22 = vmul.f32 %v12384_v11, %v12102_v5  ;;  %v4250_v25 = vadd.f32 %v4234_v20, %v12395_v44  ;;  %v4251_v27 = vadd.f32 %v4235_v12, %v4121_v38  ;;  %v14599_v5 = vld [vmem:[#allocation72_spill] sm:$0xff]  ;;  %v14600_v44 = vld [vmem:[#allocation81_spill] sm:$0xff]  ;;  %v12516_v20 = vld [vmem:[%s14053_s1 + $0x7] ss:$0 sm:$0xff] }
 0x536   :  { %v12480_v49 = vpop.permute.xlu0 %4470  ;;  %v12491_v55 = vadd.f32 %v4248_v37, %v4134_v50  ;;  %v4244_v18 = vmul.f32 %v12384_v11, %v12120_v23  ;;  %v4253_v56 = vadd.f32 %v4237_v43, %v4123_v52  ;;  %v4240_v24 = vmul.f32 %v12384_v11, %v12096_v29  ;;  %v14602_v23 = vld [vmem:[#allocation83_spill] sm:$0xff]  ;;  %v14604_v57 = vld [vmem:[#allocation80_spill] sm:$0xff]  ;;  %v14606_v37 = vld [vmem:[#allocation17_spill] sm:$0xff] }
 0x537   :  { %v4369_v28 = vmul.f32 %v12459_v21, %v14597_v36  ;;  %v4243_v10 = vmul.f32 %v12384_v11, %v14598_v59  ;;  %v4372_v0 = vmul.f32 %v12459_v21, %v14599_v5  ;;  %v4246_v38 = vmul.f32 %v12384_v11, %v14600_v44  ;;  %v14607_v58 = vld [vmem:[#allocation90_spill] sm:$0xff] }
 0x538   :  { %v12467_v60 = vpop.permute.xlu1 %4460  ;;  %v4247_v14 = vmul.f32 %v12384_v11, %v14601_v62  ;;  %v4375_v52 = vmul.f32 %v12459_v21, %v14602_v23  ;;  %v4254_v29 = vadd.f32 %v4238_v42, %v4124_v9  ;;  %v12509_v7 = vadd.f32 %v4366_v16, %v4251_v27  ;;  %v14605_v11 = vld [vmem:[#allocation101_spill] sm:$0xff]  ;;  %v14611_v5 = vld [vmem:[#allocation102_spill] sm:$0xff] }
 0x539   :  { %v4257_v63 = vadd.f32 %v4241_v22, %v4127_v51  ;;  %v4364_v3 = vmul.f32 %v12459_v21, %v14603_v26  ;;  %v4260_v12 = vadd.f32 %v4244_v18, %v4130_v40  ;;  %v4365_v53 = vmul.f32 %v12459_v21, %v14605_v11  ;;  %v14609_v40 = vld [vmem:[#allocation20_spill] sm:$0xff] }
 0x53a   :  { %5229 = vperm.xlu1 %8863, %v5186_v6   ;;  %v4378_v9 = vmul.f32 %v12459_v21, %v14606_v37  ;;  %v4367_v51 = vmul.f32 %v12459_v21, %v14607_v58  ;;  %v4256_v50 = vadd.f32 %v4240_v24, %v12411_v1  ;;  %v12529_v42 = vadd.f32 %v4369_v28, %v4254_v29  ;;  %v12544_v1 = vld [vmem:[%s14053_s1 + $0x8] ss:$0 sm:$0xff]  ;;  %v14610_v28 = vld [vmem:[#allocation86_spill] sm:$0xff]  ;;  %v14613_v29 = vld [vmem:[#allocation104_spill] sm:$0xff] }
 0x53b   :  { %5249 = vperm.xlu2 %8862, %v14604_v57   ;;  %v4259_v16 = vadd.f32 %v4243_v10, %v12418_v61  ;;  %v4368_v22 = vmul.f32 %v12459_v21, %v14609_v40  ;;  %v12536_v27 = vadd.f32 %v4372_v0, %v4257_v63  ;;  %v4262_v18 = vadd.f32 %v4246_v38, %v12429_v39  ;;  %v14616_v57 = vld [vmem:[#allocation53_spill] sm:$0xff]  ;;  %v14620_v40 = vld [vmem:[#allocation95_spill] sm:$0xff] }
 0x53c   :  { %5239 = vperm.xlu0 %8861, %v14608_v30   ;;  %v4263_v36 = vadd.f32 %v4247_v14, %v4133_v41  ;;  %v12539_v59 = vadd.f32 %v4375_v52, %v4260_v12  ;;  %v4380_v61 = vadd.f32 %v4364_v3, %v12434_v8  ;;  %v4495_v10 = vmul.f32 %v12516_v20, %v14610_v28  ;;  %v5193_v14 = vld [vmem:[#allocation2 + $0x309] sm:$0xff]  ;;  %v14615_v3 = vld [vmem:[#allocation106_spill] sm:$0xff] }
 0x53d   :  { %v12534_v6 = vpop.permute.xlu2 %4590  ;;  %v4370_v0 = vmul.f32 %v12459_v21, %v14611_v5  ;;  %v4497_v39 = vmul.f32 %v12516_v20, %v12345_v2  ;;  %v4381_v41 = vadd.f32 %v4365_v53, %v4250_v25  ;;  %v4383_v38 = vadd.f32 %v4367_v51, %v12452_v17  ;;  %v14612_v8 = vld [vmem:[#allocation103_spill] sm:$0xff]  ;;  %v14614_v2 = vld [vmem:[#allocation105_spill] sm:$0xff] }
 0x53e   :  { %v12546_v24 = vpop.permute.xlu0 %4485  ;;  %v12555_v44 = vadd.f32 %v4378_v9, %v4263_v36  ;;  %v4494_v62 = vmul.f32 %v12516_v20, %v12289_v35  ;;  %v4384_v23 = vadd.f32 %v4368_v22, %v4253_v56  ;;  %v4371_v52 = vmul.f32 %v12459_v21, %v14612_v8  ;;  %v14617_v53 = vld [vmem:[#allocation107_spill] sm:$0xff]  ;;  %v14618_v9 = vld [vmem:[#allocation108_spill] sm:$0xff] }
 0x53f   :  { %v4498_v63 = vmul.f32 %v12516_v20, %v14613_v29  ;;  %v4627_v26 = vmul.f32 %v12544_v1, %v12415_v15  ;;  %v4373_v25 = vmul.f32 %v12459_v21, %v14614_v2  ;;  %v4374_v17 = vmul.f32 %v12459_v21, %v14615_v3  ;;  %v14619_v51 = vld [vmem:[#allocation39_spill] sm:$0xff] }
 0x540   :  { %v12526_v43 = vpop.permute.xlu1 %4475  ;;  %v4624_v35 = vmul.f32 %v12544_v1, %v12353_v46  ;;  %v4500_v56 = vmul.f32 %v12516_v20, %v12408_v54  ;;  %v4511_v12 = vadd.f32 %v4495_v10, %v4381_v41  ;;  %v4386_v11 = vadd.f32 %v4370_v0, %v12470_v47 }
 0x541   :  { %v4501_v15 = vmul.f32 %v12516_v20, %v14617_v53  ;;  %v4513_v37 = vadd.f32 %v4497_v39, %v4383_v38  ;;  %v4376_v58 = vmul.f32 %v12459_v21, %v14618_v9  ;;  %v4377_v30 = vmul.f32 %v12459_v21, %v14619_v51 }
 0x542   :  { %5244 = vperm.xlu1 %8863, %v14616_v57   ;;  %v4510_v46 = vadd.f32 %v4494_v62, %v4380_v61  ;;  %v4630_v54 = vmul.f32 %v12544_v1, %v12474_v32  ;;  %v4387_v36 = vadd.f32 %v4371_v52, %v4256_v50  ;;  %v12585_v47 = vadd.f32 %v4498_v63, %v4384_v23  ;;  %v12595_v61 = vld [vmem:[%s14054_s2] ss:$0 sm:$0xff]  ;;  %v14621_v50 = vld [vmem:[#allocation25_spill] sm:$0xff]  ;;  %v5310_v63 = vld [vmem:[#allocation2 + $0x122] sm:$0xff] }
 0x543   :  { %5264 = vperm.xlu2 %8862, %v5193_v14   ;;  %v4504_v28 = vmul.f32 %v12516_v20, %v12237_v33  ;;  %v4643_v10 = vadd.f32 %v4627_v26, %v4513_v37  ;;  %v4389_v0 = vadd.f32 %v4373_v25, %v12477_v31  ;;  %v4390_v39 = vadd.f32 %v4374_v17, %v4259_v16  ;;  %v5192_v16 = vld [vmem:[#allocation2 + $0x301] sm:$0xff]  ;;  %v5194_v25 = vld [vmem:[#allocation2 + $0x319] sm:$0xff] }
 0x544   :  { %5254 = vperm.xlu0 %8861, %v14620_v40   ;;  %v4640_v32 = vadd.f32 %v4624_v35, %v4510_v46  ;;  %v4516_v41 = vadd.f32 %v4500_v56, %v4386_v11  ;;  %v4379_v62 = vmul.f32 %v12459_v21, %v14621_v50  ;;  %v4507_v33 = vmul.f32 %v12516_v20, %v12293_v13  ;;  %v5311_v50 = vld [vmem:[#allocation2 + $0x12a] sm:$0xff] }
 0x545   :  { %v12589_v5 = vpop.permute.xlu2 %4605  ;;  %v4496_v14 = vmul.f32 %v12516_v20, %v12300_v19  ;;  %v12604_v23 = vadd.f32 %v4501_v15, %v4387_v36  ;;  %v4392_v8 = vadd.f32 %v4376_v58, %v12482_v48  ;;  %v4393_v52 = vadd.f32 %v4377_v30, %v4262_v18 }
 0x546   :  { %v4551_v38 = vpop.permute.xlu0 %4550  ;;  %v4646_v29 = vadd.f32 %v4630_v54, %v4516_v41  ;;  %v12607_v26 = vadd.f32 %v4504_v28, %v4390_v39  ;;  %v4499_v21 = vmul.f32 %v12516_v20, %v12360_v34  ;;  %v4663_v13 = vadd.f32 %v12595_v61, %v4643_v10 }
 0x547   :  { %v4625_v31 = vmul.f32 %v12544_v1, %v4551_v38  ;;  %v12613_v19 = vadd.f32 %v12595_v61, %v4640_v32  ;;  %v4502_v3 = vmul.f32 %v12516_v20, %v12421_v4  ;;  %v4503_v48 = vmul.f32 %v12516_v20, %v12467_v60 }
 0x548   :  { %v4491_v22 = vpop.permute.xlu1 %4490  ;;  %v4505_v18 = vmul.f32 %v12516_v20, %v12480_v49  ;;  %v4395_v17 = vadd.f32 %v4379_v62, %v12491_v55  ;;  %v12622_v34 = vadd.f32 %v4507_v33, %v4393_v52  ;;  %v4512_v35 = vadd.f32 %v4496_v14, %v12509_v7 }
 0x549   :  { %v4641_v2 = vadd.f32 %v4625_v31, %v4511_v12  ;;  %v12627_v57 = vadd.f32 %v12595_v61, %v4646_v29  ;;  %v4506_v4 = vmul.f32 %v12516_v20, %v12526_v43  ;;  %v4633_v60 = vmul.f32 %v12544_v1, %v12534_v6 }
 0x54a   :  { %5259 = vperm.xlu1 %8863, %v5192_v16   ;;  %v4509_v49 = vmul.f32 %v12516_v20, %v4491_v22  ;;  %v12635_v12 = vadd.f32 %v4499_v21, %v12529_v42  ;;  %v4679_v7 = vmax.f32 %v4663_v13, 0.0  ;;  %v4676_v37 = vmax.f32 %v12613_v19, 0.0  ;;  %v14622_v16 = vld [vmem:[#allocation45_spill] sm:$0xff] }
 0x54b   :  { %v4661_v56 = vadd.f32 %v12595_v61, %v4641_v2  ;;  %5329 = vperm.xlu2 %8862, %v5310_v63   ;;  %v12640_v9 = vadd.f32 %v4502_v3, %v12536_v27  ;;  %v4519_v43 = vadd.f32 %v4503_v48, %v4389_v0  ;;  %v12643_v6 = vadd.f32 %v4505_v18, %v12539_v59  ;;  %v5195_v59 = vld [vmem:[#allocation2 + $0x321] sm:$0xff] }
 0x54c   :  { %5269 = vperm.xlu0 %8861, %v5194_v25   ;;  %v4682_v54 = vmax.f32 %v12627_v57, 0.0  ;;  %v12648_v40 = vadd.f32 %v4506_v4, %v4392_v8  ;;  %v4525_v36 = vadd.f32 %v4509_v49, %v4395_v17  ;;  %v12653_v39 = vmul.f32 %v12516_v20, %v12546_v24 }
 0x54d   :  { %v4677_v11 = vmax.f32 %v4661_v56, 0.0  ;;  %v4621_v15 = vpop.permute.xlu2 %4620  ;;  %v4649_v22 = vadd.f32 %v4633_v60, %v4519_v43 }
 0x54e   :  { %v4566_v58 = vpop.permute.xlu0 %4565  ;;  %v4639_v42 = vmul.f32 %v12544_v1, %v4621_v15 }
 0x54f   :  { %v4693_v51 = vmax.f32 %v4677_v11, %v4679_v7  ;;  %v4628_v46 = vmul.f32 %v12544_v1, %v4566_v58  ;;  %v12662_v63 = vadd.f32 %v12595_v61, %v4649_v22 }
 0x550   :  { %v4556_v55 = vpop.permute.xlu1 %4555  ;;  %v4655_v31 = vadd.f32 %v4639_v42, %v4525_v36  ;;  %v12679_v42 = vld [vmem:[#allocation2 + $0x16a] sm:$0xff] }
 0x551   :  { %v4626_v53 = vmul.f32 %v12544_v1, %v4556_v55  ;;  %v4711_v28 = vrot.slane %v4693_v51, 2  ;;  %v4712_v27 = vrot.slane %v4693_v51, 4  ;;  %v4713_v10 = vrot.slane %v4693_v51, 6 }
 0x552   :  { %v4784_v0 = vsel %vm306_vm2, %v4693_v51, -inf  ;;  %v4644_v38 = vadd.f32 %v4628_v46, %v12585_v47  ;;  %5274 = vperm.xlu1 %8863, %v5195_v59   ;;  %v12666_v47 = vmul.f32 %v12544_v1, %v12589_v5  ;;  %v12681_v46 = vld [vmem:[#allocation2 + $0x152] sm:$0xff] }
 0x553   :  { %v4642_v30 = vadd.f32 %v4626_v53, %v4512_v35  ;;  %v4785_v32 = vrot.slane %v4784_v0, 4  ;;  %v4791_v62 = vsel %vm306_vm2, %v4711_v28, -inf  ;;  %v4798_v33 = vsel %vm306_vm2, %v4712_v27, -inf  ;;  %5344 = vperm.xlu2 %8862, %v14622_v16  }
 0x554   :  { %v4805_v14 = vsel %vm306_vm2, %v4713_v10, -inf  ;;  %v4792_v52 = vrot.slane %v4791_v62, 4  ;;  %v4799_v20 = vrot.slane %v4798_v33, 4  ;;  %5334 = vperm.xlu0 %8861, %v5311_v50   ;;  %v4664_v13 = vadd.f32 %v12595_v61, %v4644_v38 }
 0x555   :  { %v4662_v41 = vadd.f32 %v12595_v61, %v4642_v30  ;;  %v4786_v8 = vmax.f32 %v4784_v0, %v4785_v32  ;;  %v4806_v24 = vrot.slane %v4805_v14, 4  ;;  %v12669_v2 = vpop.permute.xlu2 %5079  ;;  %v12674_v35 = vadd.f32 %v12595_v61, %v4655_v31 }
 0x556   :  { %v4793_v19 = vmax.f32 %v4791_v62, %v4792_v52  ;;  %v4800_v3 = vmax.f32 %v4798_v33, %v4799_v20  ;;  %v12671_v18 = vpop.permute.xlu0 %4580  ;;  %v4680_v56 = vmax.f32 %v4664_v13, 0.0 }
 0x557   :  { %v4678_v21 = vmax.f32 %v4662_v41, 0.0  ;;  %v4787_v25 = vrot.slane %v4786_v8, 2  ;;  %v4807_v48 = vmax.f32 %v4805_v14, %v4806_v24 }
 0x558   :  { %v4571_v29 = vpop.permute.xlu1 %4570  ;;  %v4794_v60 = vrot.slane %v4793_v19, 2  ;;  %v4801_v49 = vrot.slane %v4800_v3, 2  ;;  %v4694_v52 = vmax.f32 %v4680_v56, %v4682_v54 }
 0x559   :  { %v4692_v17 = vmax.f32 %v4676_v37, %v4678_v21  ;;  %v4629_v4 = vmul.f32 %v12544_v1, %v4571_v29  ;;  %v4788_v5 = vmax.f32 %v4786_v8, %v4787_v25  ;;  %v4808_v55 = vrot.slane %v4807_v48, 2  ;;  %v14623_v37 = vld [vmem:[#allocation97_spill] sm:$0xff] }
 0x55a   :  { %v4795_v58 = vmax.f32 %v4793_v19, %v4794_v60  ;;  %v4802_v51 = vmax.f32 %v4800_v3, %v4801_v49  ;;  %5339 = vperm.xlu1 %8863, %v14623_v37   ;;  %v4714_v13 = vrot.slane %v4694_v52, 2  ;;  %v4715_v25 = vrot.slane %v4694_v52, 4  ;;  %v12704_v60 = vld [vmem:[#allocation2 + $0x15a] sm:$0xff] }
 0x55b   :  { %v4708_v7 = vrot.slane %v4692_v17, 2  ;;  %v4709_v11 = vrot.slane %v4692_v17, 4  ;;  %v4710_v53 = vrot.slane %v4692_v17, 6  ;;  %v4756_v15 = vsel %vm306_vm2, %v4692_v17, -inf  ;;  %5359 = vperm.xlu2 %8862, %v12679_v42  }
 0x55c   :  { %v4789_v43 = vrot.slane %v4788_v5, 1  ;;  %v4809_v30 = vmax.f32 %v4807_v48, %v4808_v55  ;;  %v4757_v22 = vrot.slane %v4756_v15, 4  ;;  %v4796_v0 = vrot.slane %v4795_v58, 1  ;;  %5349 = vperm.xlu0 %8861, %v12681_v46   ;;  %v5319_v55 = vld [vmem:[#allocation2 + $0x2da] sm:$0xff] }
 0x55d   :  { %v4763_v36 = vsel %vm306_vm2, %v4708_v7, -inf  ;;  %v4770_v28 = vsel %vm306_vm2, %v4709_v11, -inf  ;;  %v4777_v27 = vsel %vm306_vm2, %v4710_v53, -inf  ;;  %v4803_v59 = vrot.slane %v4802_v51, 1  ;;  %v12693_v14 = vpop.permute.xlu2 %5094  ;;  %v12710_v7 = vld [vmem:[#allocation2 + $0x172] sm:$0xff] }
 0x55e   :  { %v12687_v10 = vmax.f32 %v4788_v5, %v4789_v43  ;;  %v4645_v32 = vadd.f32 %v4629_v4, %v12635_v12  ;;  %v4758_v38 = vmax.f32 %v4756_v15, %v4757_v22  ;;  %v4764_v50 = vrot.slane %v4763_v36, 4  ;;  %14624 = vst [vmem:[#allocation37_spill] sm:$0xff] %v12693_v14  ;;  %v12701_v20 = vpop.permute.xlu0 %4595 }
 0x55f   :  { %v4771_v62 = vrot.slane %v4770_v28, 4  ;;  %v4778_v33 = vrot.slane %v4777_v27, 4  ;;  %v12695_v31 = vmax.f32 %v4795_v58, %v4796_v0  ;;  %v12697_v16 = vmax.f32 %v4802_v51, %v4803_v59 }
 0x560   :  { %v12691_v41 = vpop.permute.xlu1 %4585  ;;  %v4810_v8 = vrot.slane %v4809_v30, 1  ;;  %v4759_v12 = vrot.slane %v4758_v38, 2  ;;  %v4765_v24 = vmax.f32 %v4763_v36, %v4764_v50  ;;  %v4716_v19 = vrot.slane %v4694_v52, 6 }
 0x561   :  { %v4772_v29 = vmax.f32 %v4770_v28, %v4771_v62  ;;  %v4779_v21 = vmax.f32 %v4777_v27, %v4778_v33  ;;  %v4812_v3 = vsel %vm306_vm2, %v4694_v52, -inf  ;;  %v4819_v57 = vsel %vm306_vm2, %v4714_v13, -inf }
 0x562   :  { %v4760_v48 = vmax.f32 %v4758_v38, %v4759_v12  ;;  %v4766_v17 = vrot.slane %v4765_v24, 2  ;;  %v4813_v49 = vrot.slane %v4812_v3, 4  ;;  %v4826_v54 = vsel %vm306_vm2, %v4715_v25, -inf  ;;  %5354 = vperm.xlu1 %8863, %v12704_v60  }
 0x563   :  { %v4773_v4 = vrot.slane %v4772_v29, 2  ;;  %v4780_v5 = vrot.slane %v4779_v21, 2  ;;  %v4833_v56 = vsel %vm306_vm2, %v4716_v19, -inf  ;;  %5374 = vperm.xlu2 %8862, %v5319_v55   ;;  %v4820_v51 = vrot.slane %v4819_v57, 4  ;;  %v12724_v55 = vld [vmem:[#allocation2 + $0x2ea] sm:$0xff] }
 0x564   :  { %v4761_v11 = vrot.slane %v4760_v48, 1  ;;  %v4767_v53 = vmax.f32 %v4765_v24, %v4766_v17  ;;  %v4814_v58 = vmax.f32 %v4812_v3, %v4813_v49  ;;  %v4827_v37 = vrot.slane %v4826_v54, 4  ;;  %5364 = vperm.xlu0 %8861, %v12710_v7  }
 0x565   :  { %v4774_v15 = vmax.f32 %v4772_v29, %v4773_v4  ;;  %v4781_v43 = vmax.f32 %v4779_v21, %v4780_v5  ;;  %v4834_v22 = vrot.slane %v4833_v56, 4  ;;  %v4811_v36 = vmax.f32 %v4809_v30, %v4810_v8  ;;  %v12714_v21 = vpop.permute.xlu2 %5109  ;;  %v5318_v5 = vld [vmem:[#allocation2 + $0x2d2] sm:$0xff] }
 0x566   :  { %v4768_v28 = vrot.slane %v4767_v53, 1  ;;  %v4815_v59 = vrot.slane %v4814_v58, 2  ;;  %v4821_v38 = vmax.f32 %v4819_v57, %v4820_v51  ;;  %v4828_v50 = vmax.f32 %v4826_v54, %v4827_v37  ;;  %v4611_v13 = vpop.permute.xlu0 %4610 }
 0x567   :  { %v4775_v27 = vrot.slane %v4774_v15, 1  ;;  %v4782_v0 = vrot.slane %v4781_v43, 1  ;;  %v4835_v62 = vmax.f32 %v4833_v56, %v4834_v22  ;;  %v4762_v52 = vmax.f32 %v4760_v48, %v4761_v11  ;;  %v12722_v56 = vld [vmem:[#allocation2 + $0x302] sm:$0xff] }
 0x568   :  { %v4601_v33 = vpop.permute.xlu1 %4600  ;;  %v4769_v12 = vmax.f32 %v4767_v53, %v4768_v28  ;;  %v4665_v29 = vadd.f32 %v12595_v61, %v4645_v32  ;;  %v4816_v25 = vmax.f32 %v4814_v58, %v4815_v59  ;;  %v4822_v19 = vrot.slane %v4821_v38, 2 }
 0x569   :  { %v4776_v24 = vmax.f32 %v4774_v15, %v4775_v27  ;;  %v4829_v3 = vrot.slane %v4828_v50, 2  ;;  %v4836_v30 = vrot.slane %v4835_v62, 2  ;;  %v4783_v8 = vmax.f32 %v4781_v43, %v4782_v0 }
 0x56a   :  { %v5012_v17 = vsel %vm1873_vm3, %v4769_v12, %v4762_v52  ;;  %v4631_v4 = vmul.f32 %v12544_v1, %v12671_v18  ;;  %v4632_v48 = vmul.f32 %v12544_v1, %v12691_v41  ;;  %v4817_v32 = vrot.slane %v4816_v25, 1  ;;  %5369 = vperm.xlu1 %8863, %v5318_v5  }
 0x56b   :  { %v5013_v49 = vsel %vm1875_vm4, %v4776_v24, %v5012_v17  ;;  %v4823_v57 = vmax.f32 %v4821_v38, %v4822_v19  ;;  %v4830_v54 = vmax.f32 %v4828_v50, %v4829_v3  ;;  %v4837_v53 = vmax.f32 %v4835_v62, %v4836_v30  ;;  %5389 = vperm.xlu2 %8862, %v12722_v56  }
 0x56c   :  { %v5014_v11 = vsel %vm1877_vm5, %v4783_v8, %v5013_v49  ;;  %v4647_v15 = vadd.f32 %v4631_v4, %v12604_v23  ;;  %v4648_v18 = vadd.f32 %v4632_v48, %v12640_v9  ;;  %v4681_v51 = vmax.f32 %v4665_v29, 0.0  ;;  %5379 = vperm.xlu0 %8861, %v12724_v55  }
 0x56d   :  { %v5015_v41 = vsel %vm1879_vm6, %v12687_v10, %v5014_v11  ;;  %v4824_v43 = vrot.slane %v4823_v57, 1  ;;  %v4831_v58 = vrot.slane %v4830_v54, 1  ;;  %v4818_v22 = vmax.f32 %v4816_v25, %v4817_v32  ;;  %v12754_v29 = vpop.permute.xlu2 %5124 }
 0x56e   :  { %v5016_v37 = vsel %vm1881_vm7, %v12695_v31, %v5015_v41  ;;  %v4838_v28 = vrot.slane %v4837_v53, 1  ;;  %v4667_v27 = vadd.f32 %v12595_v61, %v4647_v15  ;;  %v4668_v59 = vadd.f32 %v12595_v61, %v4648_v18 }
 0x56f   :  { %v5017_v23 = vsel %vm1883_vm8, %v12697_v16, %v5016_v37  ;;  %v4825_v9 = vmax.f32 %v4823_v57, %v4824_v43  ;;  %v4832_v0 = vmax.f32 %v4830_v54, %v4831_v58  ;;  %v4685_v10 = vmax.f32 %v12662_v63, 0.0 }
 0x570   :  { %v4524_v38 = vadd.f32 %v12653_v39, %v12555_v44  ;;  %v5018_v50 = vsel %vm1885_vm9, %v4811_v36, %v5017_v23  ;;  %v4683_v62 = vmax.f32 %v4667_v27, 0.0  ;;  %v12745_v31 = vadd.f32 %v12666_v47, %v12648_v40  ;;  %v4616_v63 = vpop.permute.xlu1 %4615  ;;  %v12756_v40 = vpop.permute.xlu0 %5069 }
 0x571   :  { %5045 = vst.msk [vmem:[#allocation3 + $0x51] sm:$0xff] %vm304_vm10, %v5018_v50  ;;  %v5019_v16 = vsel %vm1873_vm3, %v4825_v9, %v4818_v22  ;;  %v4634_v52 = vmul.f32 %v12544_v1, %v12701_v20  ;;  %v4635_v12 = vmul.f32 %v12544_v1, %v4601_v33  ;;  %v4691_v24 = vmax.f32 %v12674_v35, 0.0  ;;  %v12778_v22 = vld [vmem:[#allocation2 + $0x30a] sm:$0xff] }
 0x572   :  { %v4839_v44 = vmax.f32 %v4837_v53, %v4838_v28  ;;  %v4695_v39 = vmax.f32 %v4681_v51, %v4683_v62  ;;  %v4637_v36 = vmul.f32 %v12544_v1, %v4611_v13  ;;  %v5020_v47 = vsel %vm1875_vm4, %v4832_v0, %v5019_v16 }
 0x573   :  { %v4684_v25 = vmax.f32 %v4668_v59, 0.0  ;;  %v4650_v19 = vadd.f32 %v4634_v52, %v12607_v26  ;;  %v4651_v20 = vadd.f32 %v4635_v12, %v12643_v6  ;;  %v4638_v6 = vmul.f32 %v12544_v1, %v4616_v63  ;;  %v12776_v1 = vld [vmem:[#allocation2 + $0x322] sm:$0xff] }
 0x574   :  { %v4717_v3 = vrot.slane %v4695_v39, 2  ;;  %v4718_v33 = vrot.slane %v4695_v39, 4  ;;  %v4719_v30 = vrot.slane %v4695_v39, 6  ;;  %v4840_v8 = vsel %vm306_vm2, %v4695_v39, -inf  ;;  %5404 = vperm.xlu2 %8862, %v12776_v1   ;;  %5394 = vperm.xlu0 %8861, %v12778_v22  }
 0x575   :  { %v4841_v17 = vrot.slane %v4840_v8, 4  ;;  %v4670_v4 = vadd.f32 %v12595_v61, %v4650_v19  ;;  %v4671_v13 = vadd.f32 %v12595_v61, %v4651_v20  ;;  %v4653_v48 = vadd.f32 %v4637_v36, %v12622_v34  ;;  %v12773_v34 = vld [vmem:[#allocation2 + $0x2f2] sm:$0xff]  ;;  %v12794_v39 = vpop.permute.xlu2 %5139 }
 0x576   :  { %v4847_v5 = vsel %vm306_vm2, %v4717_v3, -inf  ;;  %v4854_v49 = vsel %vm306_vm2, %v4718_v33, -inf  ;;  %v4861_v26 = vsel %vm306_vm2, %v4719_v30, -inf  ;;  %v5021_v53 = vsel %vm1877_vm5, %v4839_v44, %v5020_v47  ;;  %5384 = vperm.xlu1 %8863, %v12773_v34   ;;  %14627 = vst [vmem:[#allocation27_spill] sm:$0xff] %v12794_v39  ;;  %v5970_v39 = vld [vmem:[#allocation2 + $0x301] sm:$0xff] }
 0x577   :  { %v4842_v32 = vmax.f32 %v4840_v8, %v4841_v17  ;;  %v4848_v57 = vrot.slane %v4847_v5, 4  ;;  %v4855_v54 = vrot.slane %v4854_v49, 4  ;;  %v4862_v11 = vrot.slane %v4861_v26, 4 }
 0x578   :  { %v4686_v15 = vmax.f32 %v4670_v4, 0.0  ;;  %v4687_v18 = vmax.f32 %v4671_v13, 0.0  ;;  %v12771_v41 = vadd.f32 %v12595_v61, %v4653_v48  ;;  %v12783_v9 = vadd.f32 %v4638_v6, %v4524_v38  ;;  %v12787_v16 = vpop.permute.xlu1 %5074  ;;  %v12789_v52 = vld [vmem:[#allocation3 + $0x50] sm:$0xff]  ;;  %v12796_v36 = vpop.permute.xlu0 %5084 }
 0x579   :  { %v4843_v43 = vrot.slane %v4842_v32, 2  ;;  %v4849_v58 = vmax.f32 %v4847_v5, %v4848_v57  ;;  %v4856_v51 = vmax.f32 %v4854_v49, %v4855_v54  ;;  %v4863_v37 = vmax.f32 %v4861_v26, %v4862_v11  ;;  %14625 = vst [vmem:[#allocation43_spill] sm:$0xff] %v12789_v52  ;;  %v12791_v12 = vld [vmem:[#allocation3 + $0x52] sm:$0xff]  ;;  %v12808_v57 = vld [vmem:[#allocation2 + $0x31a] sm:$0xff] }
 0x57a   :  { %v4696_v28 = vmax.f32 %v4684_v25, %v4686_v15  ;;  %v12780_v27 = vmax.f32 %v4685_v10, %v4687_v18  ;;  %v4689_v23 = vmax.f32 %v12771_v41, 0.0  ;;  %14626 = vst [vmem:[#allocation46_spill] sm:$0xff] %v12791_v12  ;;  %v6876_v47 = vld [vmem:[#allocation3 + $0x51] sm:$0xff] }
 0x57b   :  { %v4844_v0 = vmax.f32 %v4842_v32, %v4843_v43  ;;  %v4850_v59 = vrot.slane %v4849_v58, 2  ;;  %v4857_v50 = vrot.slane %v4856_v51, 2  ;;  %v4864_v62 = vrot.slane %v4863_v37, 2  ;;  %6636 = vst.msk [vmem:[#allocation4 + $0xc8] sm:$0xff] %vm304_vm10, %v12789_v52  ;;  %v5571_v43 = vld [vmem:[#allocation2 + $0x139] sm:$0xff] }
 0x57c   :  { %v4720_v10 = vrot.slane %v4696_v28, 2  ;;  %v4721_v63 = vrot.slane %v4696_v28, 4  ;;  %v4722_v44 = vrot.slane %v4696_v28, 6  ;;  %v4868_v38 = vsel %vm306_vm2, %v4696_v28, -inf  ;;  %7020 = vst.msk [vmem:[#allocation4 + $0x90] sm:$0xff] %vm304_vm10, %v12789_v52  ;;  %5590 = vperm.xlu2 %8862, %v5571_v43  }
 0x57d   :  { %v4845_v25 = vrot.slane %v4844_v0, 1  ;;  %v4851_v19 = vmax.f32 %v4849_v58, %v4850_v59  ;;  %v4858_v20 = vmax.f32 %v4856_v51, %v4857_v50  ;;  %v4865_v3 = vmax.f32 %v4863_v37, %v4864_v62  ;;  %6765 = vst.msk [vmem:[#allocation4 + $0xd0] sm:$0xff] %vm304_vm10, %v12791_v12  ;;  %v5441_v58 = vld [vmem:[#allocation2 + $0x138] sm:$0xff] }
 0x57e   :  { %v4869_v33 = vrot.slane %v4868_v38, 4  ;;  %v4875_v30 = vsel %vm306_vm2, %v4720_v10, -inf  ;;  %v4882_v8 = vsel %vm306_vm2, %v4721_v63, -inf  ;;  %v4889_v17 = vsel %vm306_vm2, %v4722_v44, -inf  ;;  %6892 = vst.msk [vmem:[#allocation4 + $0xb0] sm:$0xff] %vm304_vm10, %v6876_v47  ;;  %5399 = vperm.xlu1 %8863, %v12808_v57   ;;  %5460 = vperm.xlu0 %8861, %v5441_v58  }
 0x57f   :  { %v4846_v4 = vmax.f32 %v4844_v0, %v4845_v25  ;;  %v4852_v13 = vrot.slane %v4851_v19, 1  ;;  %v4859_v48 = vrot.slane %v4858_v20, 1  ;;  %v4866_v5 = vrot.slane %v4865_v3, 1  ;;  %7148 = vst.msk [vmem:[#allocation4 + $0x98] sm:$0xff] %vm304_vm10, %v12791_v12  ;;  %v12821_v25 = vpop.permute.xlu2 %5204  ;;  %v13081_v12 = vld [vmem:[%s14053_s1 + $0x3] ss:$0 sm:$0xff] }
 0x580   :  { %v4870_v49 = vmax.f32 %v4868_v38, %v4869_v33  ;;  %v4876_v26 = vrot.slane %v4875_v30, 4  ;;  %v4883_v6 = vrot.slane %v4882_v8, 4  ;;  %v4890_v32 = vrot.slane %v4889_v17, 4  ;;  %v12818_v63 = vpop.permute.xlu1 %5089 }
 0x581   :  { %v4853_v54 = vmax.f32 %v4851_v19, %v4852_v13  ;;  %v4860_v11 = vmax.f32 %v4858_v20, %v4859_v48  ;;  %v4867_v15 = vmax.f32 %v4865_v3, %v4866_v5  ;;  %v5022_v18 = vsel %vm1879_vm6, %v4846_v4, %v5021_v53  ;;  %14628 = vst [vmem:[#allocation28_spill] sm:$0xff] %v12818_v63  ;;  %v12823_v19 = vpop.permute.xlu0 %5099 }
 0x582   :  { %v4871_v51 = vrot.slane %v4870_v49, 2  ;;  %v4877_v37 = vmax.f32 %v4875_v30, %v4876_v26  ;;  %v4884_v28 = vmax.f32 %v4882_v8, %v4883_v6  ;;  %v4891_v0 = vmax.f32 %v4889_v17, %v4890_v32 }
 0x583   :  { %v5023_v59 = vsel %vm1881_vm7, %v4853_v54, %v5022_v18  ;;  %v4723_v50 = vrot.slane %v12780_v27, 2  ;;  %v4724_v62 = vrot.slane %v12780_v27, 4  ;;  %v4725_v10 = vrot.slane %v12780_v27, 6 }
 0x584   :  { %v5024_v53 = vsel %vm1883_vm8, %v4860_v11, %v5023_v59  ;;  %v4872_v44 = vmax.f32 %v4870_v49, %v4871_v51  ;;  %v4878_v38 = vrot.slane %v4877_v37, 2  ;;  %v4885_v47 = vrot.slane %v4884_v28, 2  ;;  %v12835_v51 = vld [vmem:[#allocation2 + $0x158] sm:$0xff] }
 0x585   :  { %v5025_v20 = vsel %vm1885_vm9, %v4867_v15, %v5024_v53  ;;  %v4892_v3 = vrot.slane %v4891_v0, 2  ;;  %v4896_v33 = vsel %vm306_vm2, %v12780_v27, -inf  ;;  %v4903_v30 = vsel %vm306_vm2, %v4723_v50, -inf  ;;  %v12832_v15 = vld [vmem:[#allocation2 + $0x150] sm:$0xff]  ;;  %5475 = vperm.xlu2 %8862, %v12835_v51  }
 0x586   :  { %5046 = vst.msk [vmem:[#allocation3 + $0x61] sm:$0xff] %vm304_vm10, %v5025_v20  ;;  %v4873_v8 = vrot.slane %v4872_v44, 1  ;;  %v4879_v17 = vmax.f32 %v4877_v37, %v4878_v38  ;;  %v4886_v4 = vmax.f32 %v4884_v28, %v4885_v47  ;;  %v4897_v13 = vrot.slane %v4896_v33, 4  ;;  %5470 = vperm.xlu1 %8863, %v12832_v15   ;;  %5600 = vperm.xlu0 %8861, %v12373_v45  }
 0x587   :  { %v4893_v48 = vmax.f32 %v4891_v0, %v4892_v3  ;;  %v4904_v5 = vrot.slane %v4903_v30, 4  ;;  %v4910_v49 = vsel %vm306_vm2, %v4724_v62, -inf  ;;  %v4917_v26 = vsel %vm306_vm2, %v4725_v10, -inf  ;;  %v12848_v20 = vpop.permute.xlu2 %5219 }
 0x588   :  { %v4874_v6 = vmax.f32 %v4872_v44, %v4873_v8  ;;  %v4880_v32 = vrot.slane %v4879_v17, 1  ;;  %v4887_v54 = vrot.slane %v4886_v4, 1  ;;  %v4898_v11 = vmax.f32 %v4896_v33, %v4897_v13  ;;  %v12843_v53 = vpop.permute.xlu1 %5104  ;;  %14630 = vst [vmem:[#allocation35_spill] sm:$0xff] %v12848_v20 }
 0x589   :  { %v4894_v27 = vrot.slane %v4893_v48, 1  ;;  %v4905_v18 = vmax.f32 %v4903_v30, %v4904_v5  ;;  %v4911_v43 = vrot.slane %v4910_v49, 4  ;;  %v4918_v58 = vrot.slane %v4917_v26, 4  ;;  %14629 = vst [vmem:[#allocation29_spill] sm:$0xff] %v12843_v53  ;;  %v12850_v35 = vpop.permute.xlu0 %5114 }
 0x58a   :  { %v4881_v37 = vmax.f32 %v4879_v17, %v4880_v32  ;;  %v4888_v28 = vmax.f32 %v4886_v4, %v4887_v54  ;;  %v4899_v0 = vrot.slane %v4898_v11, 2  ;;  %v4699_v59 = vmax.f32 %v4689_v23, %v4691_v24  ;;  %v5442_v4 = vld [vmem:[#allocation2 + $0x140] sm:$0xff] }
 0x58b   :  { %v4906_v50 = vrot.slane %v4905_v18, 2  ;;  %v4912_v62 = vmax.f32 %v4910_v49, %v4911_v43  ;;  %v4919_v10 = vmax.f32 %v4917_v26, %v4918_v58  ;;  %v4674_v47 = vadd.f32 %v12595_v61, %v12783_v9  ;;  %v5572_v26 = vld [vmem:[#allocation2 + $0x141] sm:$0xff] }
 0x58c   :  { %v5026_v44 = vsel %vm1873_vm3, %v4881_v37, %v4874_v6  ;;  %v4900_v38 = vmax.f32 %v4898_v11, %v4899_v0  ;;  %v4672_v33 = vadd.f32 %v12595_v61, %v12745_v31  ;;  %v4895_v30 = vmax.f32 %v4893_v48, %v4894_v27  ;;  %v5701_v6 = vld [vmem:[#allocation2 + $0x13a] sm:$0xff] }
 0x58d   :  { %v5027_v24 = vsel %vm1875_vm4, %v4888_v28, %v5026_v44  ;;  %v4907_v41 = vmax.f32 %v4905_v18, %v4906_v50  ;;  %v4913_v23 = vrot.slane %v4912_v62, 2  ;;  %v4920_v45 = vrot.slane %v4919_v10, 2  ;;  %v12853_v3 = vld [vmem:[#allocation3 + $0x60] sm:$0xff]  ;;  %5595 = vperm.xlu2 %8862, %v5572_v26  }
 0x58e   :  { %14631 = vst [vmem:[#allocation24_spill] sm:$0xff] %v12853_v3  ;;  %v4901_v8 = vrot.slane %v4900_v38, 1  ;;  %v4729_v17 = vrot.slane %v4699_v59, 2  ;;  %v4730_v49 = vrot.slane %v4699_v59, 4  ;;  %v5028_v32 = vsel %vm1877_vm5, %v4895_v30, %v5027_v24  ;;  %5465 = vperm.xlu1 %8863, %v5442_v4   ;;  %v6877_v27 = vld [vmem:[#allocation3 + $0x61] sm:$0xff]  ;;  %5720 = vperm.xlu0 %8861, %v5701_v6  }
 0x58f   :  { %v4908_v13 = vrot.slane %v4907_v41, 1  ;;  %v4914_v9 = vmax.f32 %v4912_v62, %v4913_v23  ;;  %v4921_v5 = vmax.f32 %v4919_v10, %v4920_v45  ;;  %6637 = vst.msk [vmem:[#allocation4 + $0xf0] sm:$0xff] %vm304_vm10, %v12853_v3  ;;  %v4731_v11 = vrot.slane %v4699_v59, 6  ;;  %v7133_v58 = vld [vmem:[#allocation3 + $0x62] sm:$0xff] }
 0x590   :  { %v4902_v54 = vmax.f32 %v4900_v38, %v4901_v8  ;;  %v4690_v18 = vmax.f32 %v4674_v47, 0.0  ;;  %v4952_v48 = vsel %vm306_vm2, %v4699_v59, -inf  ;;  %7021 = vst.msk [vmem:[#allocation4 + $0xb8] sm:$0xff] %vm304_vm10, %v12853_v3  ;;  %v4688_v37 = vmax.f32 %v4672_v33, 0.0  ;;  %v12868_v10 = vpop.permute.xlu1 %5119 }
 0x591   :  { %v4909_v43 = vmax.f32 %v4907_v41, %v4908_v13  ;;  %v4915_v61 = vrot.slane %v4914_v9, 1  ;;  %v4922_v31 = vrot.slane %v4921_v5, 1  ;;  %v4959_v0 = vsel %vm306_vm2, %v4729_v17, -inf  ;;  %6893 = vst.msk [vmem:[#allocation4 + $0xd8] sm:$0xff] %vm304_vm10, %v6877_v27  ;;  %v12872_v41 = vpop.permute.xlu2 %5234  ;;  %v12874_v23 = vpop.permute.xlu0 %5129 }
 0x592   :  { %v5029_v28 = vsel %vm1879_vm6, %v4902_v54, %v5028_v32  ;;  %v4966_v59 = vsel %vm306_vm2, %v4730_v49, -inf  ;;  %7149 = vst.msk [vmem:[#allocation4 + $0xc0] sm:$0xff] %vm304_vm10, %v7133_v58  ;;  %v4953_v38 = vrot.slane %v4952_v48, 4  ;;  %v4973_v47 = vsel %vm306_vm2, %v4731_v11, -inf }
 0x593   :  { %v4916_v50 = vmax.f32 %v4914_v9, %v4915_v61  ;;  %v5030_v62 = vsel %vm1881_vm7, %v4909_v43, %v5029_v28  ;;  %v4923_v44 = vmax.f32 %v4921_v5, %v4922_v31  ;;  %v4698_v24 = vmax.f32 %v4688_v37, %v4690_v18  ;;  %14632 = vst [vmem:[#allocation52_spill] sm:$0xff] %v12872_v41  ;;  %v12880_v5 = vld [vmem:[#allocation2 + $0x168] sm:$0xff]  ;;  %v8910_v61 = vld [vmem:[#allocation2 + $0x159] sm:$0xff] }
 0x594   :  { %14633 = vst [vmem:[#allocation48_spill] sm:$0xff] %v12874_v23  ;;  %v4960_v33 = vrot.slane %v4959_v0, 4  ;;  %v4967_v8 = vrot.slane %v4966_v59, 4  ;;  %v4974_v17 = vrot.slane %v4973_v47, 4  ;;  %v4954_v49 = vmax.f32 %v4952_v48, %v4953_v38  ;;  %v7253_v41 = vld [vmem:[#allocation6 + $0x60] sm:$0xff] }
 0x595   :  { %6766 = vst.msk [vmem:[#allocation4 + $0xf8] sm:$0xff] %vm304_vm10, %v7133_v58  ;;  %v5031_v45 = vsel %vm1883_vm8, %v4916_v50, %v5030_v62  ;;  %v4726_v4 = vrot.slane %v4698_v24, 2  ;;  %v4727_v13 = vrot.slane %v4698_v24, 4  ;;  %v4728_v9 = vrot.slane %v4698_v24, 6  ;;  %5861 = vperm.xlu2 %8862, %v12880_v5  }
 0x596   :  { %v5032_v30 = vsel %vm1885_vm9, %v4923_v44, %v5031_v45  ;;  %v4924_v26 = vsel %vm306_vm2, %v4698_v24, -inf  ;;  %v4961_v6 = vmax.f32 %v4959_v0, %v4960_v33  ;;  %5730 = vperm.xlu1 %8863, %v12681_v46   ;;  %v4968_v18 = vmax.f32 %v4966_v59, %v4967_v8  ;;  %5605 = vperm.xlu0 %8861, %v8910_v61  }
 0x597   :  { %5047 = vst.msk [vmem:[#allocation3 + $0xf1] sm:$0xff] %vm304_vm10, %v5032_v30  ;;  %v4925_v32 = vrot.slane %v4924_v26, 4  ;;  %v4931_v54 = vsel %vm306_vm2, %v4726_v4, -inf  ;;  %v4938_v11 = vsel %vm306_vm2, %v4727_v13, -inf  ;;  %v4975_v31 = vmax.f32 %v4973_v47, %v4974_v17 }
 0x598   :  { %v4932_v43 = vrot.slane %v4931_v54, 4  ;;  %v4939_v58 = vrot.slane %v4938_v11, 4  ;;  %v4945_v48 = vsel %vm306_vm2, %v4728_v9, -inf  ;;  %v12888_v37 = vpop.permute.xlu1 %5134  ;;  %v4955_v28 = vrot.slane %v4954_v49, 2  ;;  %v5962_v9 = vld [vmem:[#allocation2 + $0x151] sm:$0xff] }
 0x599   :  { %v4926_v27 = vmax.f32 %v4924_v26, %v4925_v32  ;;  %14634 = vst [vmem:[#allocation51_spill] sm:$0xff] %v12888_v37  ;;  %v12890_v50 = vpop.permute.xlu2 %5249  ;;  %v12892_v62 = vpop.permute.xlu0 %5144  ;;  %v4962_v44 = vrot.slane %v4961_v6, 2  ;;  %v4946_v24 = vrot.slane %v4945_v48, 4  ;;  %v4969_v45 = vrot.slane %v4968_v18, 2  ;;  %v5702_v26 = vld [vmem:[#allocation2 + $0x142] sm:$0xff] }
 0x59a   :  { %v4933_v0 = vmax.f32 %v4931_v54, %v4932_v43  ;;  %14635 = vst [vmem:[#allocation54_spill] sm:$0xff] %v12892_v62  ;;  %v4940_v38 = vmax.f32 %v4938_v11, %v4939_v58  ;;  %v4976_v8 = vrot.slane %v4975_v31, 2  ;;  %v4956_v32 = vmax.f32 %v4954_v49, %v4955_v28  ;;  %v5582_v37 = vld [vmem:[#allocation2 + $0x309] sm:$0xff] }
 0x59b   :  { %v4927_v59 = vrot.slane %v4926_v27, 2  ;;  %v4947_v13 = vmax.f32 %v4945_v48, %v4946_v24  ;;  %v4963_v11 = vmax.f32 %v4961_v6, %v4962_v44  ;;  %v4970_v48 = vmax.f32 %v4968_v18, %v4969_v45 }
 0x59c   :  { %v4934_v33 = vrot.slane %v4933_v0, 2  ;;  %v4941_v4 = vrot.slane %v4940_v38, 2  ;;  %v4977_v24 = vmax.f32 %v4975_v31, %v4976_v8  ;;  %v4957_v6 = vrot.slane %v4956_v32, 1 }
 0x59d   :  { %v4928_v17 = vmax.f32 %v4926_v27, %v4927_v59  ;;  %v4948_v58 = vrot.slane %v4947_v13, 2  ;;  %5981 = vperm.xlu2 %8862, %v5962_v9   ;;  %v4964_v18 = vrot.slane %v4963_v11, 1  ;;  %v4971_v31 = vrot.slane %v4970_v48, 1 }
 0x59e   :  { %v12894_v30 = vld [vmem:[#allocation3 + $0xf0] sm:$0xff]  ;;  %v4935_v54 = vmax.f32 %v4933_v0, %v4934_v33  ;;  %v4942_v61 = vmax.f32 %v4940_v38, %v4941_v4  ;;  %5851 = vperm.xlu1 %8863, %v12832_v15   ;;  %5725 = vperm.xlu0 %8861, %v5702_v26  }
 0x59f   :  { %14636 = vst [vmem:[#allocation47_spill] sm:$0xff] %v12894_v30  ;;  %v12896_v47 = vld [vmem:[#allocation3 + $0xf2] sm:$0xff]  ;;  %v4929_v43 = vrot.slane %v4928_v17, 1  ;;  %v4949_v28 = vmax.f32 %v4947_v13, %v4948_v58  ;;  %v4978_v13 = vrot.slane %v4977_v24, 1 }
 0x5a0   :  { %14637 = vst [vmem:[#allocation55_spill] sm:$0xff] %v12896_v47  ;;  %v6884_v27 = vld [vmem:[#allocation3 + $0xf1] sm:$0xff]  ;;  %v4936_v59 = vrot.slane %v4935_v54, 1  ;;  %v4943_v49 = vrot.slane %v4942_v61, 1  ;;  %v12905_v0 = vpop.permute.xlu1 %5199 }
 0x5a1   :  { %6644 = vst.msk [vmem:[#allocation4 + $0x208] sm:$0xff] %vm304_vm10, %v12894_v30  ;;  %v4930_v44 = vmax.f32 %v4928_v17, %v4929_v43  ;;  %v12909_v15 = vpop.permute.xlu2 %5264  ;;  %v12911_v33 = vpop.permute.xlu0 %5209  ;;  %v4950_v4 = vrot.slane %v4949_v28, 1  ;;  %v12916_v58 = vld [vmem:[#allocation2 + $0x170] sm:$0xff]  ;;  %v4958_v17 = vmax.f32 %v4956_v32, %v4957_v6 }
 0x5a2   :  { %7028 = vst.msk [vmem:[#allocation4 + $0x1d0] sm:$0xff] %vm304_vm10, %v12894_v30  ;;  %v4937_v38 = vmax.f32 %v4935_v54, %v4936_v59  ;;  %v4944_v45 = vmax.f32 %v4942_v61, %v4943_v49  ;;  %v4965_v54 = vmax.f32 %v4963_v11, %v4964_v18  ;;  %v4972_v59 = vmax.f32 %v4970_v48, %v4971_v31  ;;  %v8911_v61 = vld [vmem:[#allocation2 + $0x169] sm:$0xff]  ;;  %v5963_v48 = vld [vmem:[#allocation2 + $0x159] sm:$0xff] }
 0x5a3   :  { %7156 = vst.msk [vmem:[#allocation4 + $0x1d8] sm:$0xff] %vm304_vm10, %v12896_v47  ;;  %v4951_v9 = vmax.f32 %v4949_v28, %v4950_v4  ;;  %v4979_v49 = vmax.f32 %v4977_v24, %v4978_v13  ;;  %v12945_v13 = vld [vmem:[#allocation2 + $0x171] sm:$0xff] }
 0x5a4   :  { %6773 = vst.msk [vmem:[#allocation4 + $0x210] sm:$0xff] %vm304_vm10, %v12896_v47  ;;  %v5033_v8 = vsel %vm1873_vm3, %v4937_v38, %v4930_v44 }
 0x5a5   :  { %14638 = vst [vmem:[#allocation56_spill] sm:$0xff] %v12909_v15  ;;  %v5034_v26 = vsel %vm1875_vm4, %v4944_v45, %v5033_v8  ;;  %5866 = vperm.xlu2 %8862, %v12916_v58  }
 0x5a6   :  { %6900 = vst.msk [vmem:[#allocation4 + $0x1f0] sm:$0xff] %vm304_vm10, %v6884_v27  ;;  %v5035_v43 = vsel %vm1877_vm5, %v4951_v9, %v5034_v26  ;;  %5735 = vperm.xlu1 %8863, %v12704_v60   ;;  %5991 = vperm.xlu0 %8861, %v8911_v61   ;;  %v12976_v61 = vld [vmem:[#allocation3 + $0x31] sm:$0xff] }
 0x5a7   :  { %v5036_v27 = vsel %vm1879_vm6, %v4958_v17, %v5035_v43  ;;  %v6647_v17 = vld [vmem:[#allocation3 + $0x1] sm:$0xff] }
 0x5a8   :  { %v5037_v28 = vsel %vm1881_vm7, %v4965_v54, %v5036_v27  ;;  %v12923_v44 = vpop.permute.xlu1 %5214  ;;  %v12964_v54 = vld [vmem:[#allocation3 + $0x21] sm:$0xff]  ;;  %v6648_v27 = vld [vmem:[#allocation3 + $0x11] sm:$0xff] }
 0x5a9   :  { %v5038_v38 = vsel %vm1883_vm8, %v4972_v59, %v5037_v28  ;;  %v12926_v32 = vpop.permute.xlu2 %5329  ;;  %v12928_v11 = vpop.permute.xlu0 %5224  ;;  %v5451_v59 = vld [vmem:[#allocation2 + $0x300] sm:$0xff] }
 0x5aa   :  { %14639 = vst [vmem:[#allocation57_spill] sm:$0xff] %v12928_v11  ;;  %v5039_v6 = vsel %vm1885_vm9, %v4979_v49, %v5038_v38  ;;  %v5449_v38 = vld [vmem:[#allocation2 + $0x2e8] sm:$0xff]  ;;  %v6656_v11 = vld [vmem:[#allocation3 + $0xb1] sm:$0xff] }
 0x5ab   :  { %5048 = vst.msk [vmem:[#allocation3 + $0x101] sm:$0xff] %vm304_vm10, %v5039_v6  ;;  %v12986_v6 = vld [vmem:[#allocation3 + $0x41] sm:$0xff] }
 0x5ac   :  { %14646 = vst [vmem:[#allocation41_spill] sm:$0xff] %v12986_v6 }
 0x5ad   :  { %5986 = vperm.xlu2 %8862, %v5963_v48   ;;  %v8912_v48 = vld [vmem:[#allocation2 + $0x301] sm:$0xff] }
 0x5ae   :  { %5856 = vperm.xlu1 %8863, %v12835_v51   ;;  %6111 = vperm.xlu0 %8861, %v12681_v46  }
 0x5b0   :  { %v12934_v24 = vpop.permute.xlu1 %5229 }
 0x5b1   :  { %v12936_v18 = vpop.permute.xlu2 %5344  ;;  %v12938_v45 = vpop.permute.xlu0 %5239 }
 0x5b2   :  { %v6629_v4 = vld [vmem:[#allocation3 + $0x100] sm:$0xff] }
 0x5b3   :  { %6645 = vst.msk [vmem:[#allocation4 + $0x230] sm:$0xff] %vm304_vm10, %v6629_v4  ;;  %v12941_v31 = vld [vmem:[#allocation3 + $0x100] sm:$0xff] }
 0x5b4   :  { %14640 = vst [vmem:[#allocation58_spill] sm:$0xff] %v12941_v31  ;;  %v12943_v8 = vld [vmem:[#allocation3 + $0x102] sm:$0xff] }
 0x5b5   :  { %14641 = vst [vmem:[#allocation59_spill] sm:$0xff] %v12943_v8  ;;  %v6885_v51 = vld [vmem:[#allocation3 + $0x101] sm:$0xff]  ;;  %6126 = vperm.xlu2 %8862, %v12710_v7  }
 0x5b6   :  { %7029 = vst.msk [vmem:[#allocation4 + $0x1f8] sm:$0xff] %vm304_vm10, %v12941_v31  ;;  %6121 = vperm.xlu1 %8863, %v12679_v42   ;;  %5996 = vperm.xlu0 %8861, %v12945_v13   ;;  %v5452_v31 = vld [vmem:[#allocation2 + $0x308] sm:$0xff] }
 0x5b7   :  { %7157 = vst.msk [vmem:[#allocation4 + $0x200] sm:$0xff] %vm304_vm10, %v12943_v8 }
 0x5b8   :  { %6774 = vst.msk [vmem:[#allocation4 + $0x238] sm:$0xff] %vm304_vm10, %v12943_v8  ;;  %v12957_v46 = vpop.permute.xlu1 %5244  ;;  %v5450_v8 = vld [vmem:[#allocation2 + $0x2f0] sm:$0xff] }
 0x5b9   :  { %6901 = vst.msk [vmem:[#allocation4 + $0x218] sm:$0xff] %vm304_vm10, %v6885_v51  ;;  %v12959_v9 = vpop.permute.xlu2 %5359  ;;  %v12961_v26 = vpop.permute.xlu0 %5254 }
 0x5bd   :  { %6683 = vrot.lane.b32.xlu2 %v12964_v54, %s9008_s17 }
 0x5be   :  { %6116 = vperm.xlu1 %8863, %v12704_v60   ;;  %6679 = vrot.lane.b32.xlu0 %v6647_v17, %s9008_s17 }
 0x5c0   :  { %v12969_v42 = vpop.permute.xlu1 %5259 }
 0x5c1   :  { %14642 = vst [vmem:[#allocation60_spill] sm:$0xff] %v12969_v42  ;;  %v12971_v7 = vpop.permute.xlu2 %5374  ;;  %v12973_v43 = vpop.permute.xlu0 %5269  ;;  %v5842_v42 = vld [vmem:[#allocation2 + $0x318] sm:$0xff] }
 0x5c2   :  { %14643 = vst [vmem:[#allocation61_spill] sm:$0xff] %v12973_v43  ;;  %v7256_v43 = vld [vmem:[#allocation6 + $0x78] sm:$0xff] }
 0x5c3   :  { %7365 = vmatpush.msra.mxu0 %v7256_v43 }
 0x5c5   :  { %5510 = vperm.xlu2 %8862, %v5451_v59  }
 0x5c6   :  { %6681 = vrot.lane.b32.xlu1 %v6648_v27, %s9008_s17  ;;  %6685 = vrot.lane.b32.xlu0 %v12976_v61, %s9008_s17  ;;  %v5579_v27 = vld [vmem:[#allocation2 + $0x2e9] sm:$0xff] }
 0x5c8   :  { %v12980_v60 = vpop.permute.xlu1 %5274 }
 0x5c9   :  { %14644 = vst [vmem:[#allocation63_spill] sm:$0xff] %v12980_v60  ;;  %v12982_v49 = vpop.permute.xlu2 %5389  ;;  %v12984_v28 = vpop.permute.xlu0 %5334 }
 0x5ca   :  { %14645 = vst [vmem:[#allocation67_spill] sm:$0xff] %v12982_v49 }
 0x5cd   :  { %5640 = vperm.xlu2 %8862, %v8912_v48  }
 0x5ce   :  { %5500 = vperm.xlu1 %8863, %v5449_v38   ;;  %6687 = vrot.lane.b32.xlu0 %v12986_v6, %s9008_s17 }
 0x5d0   :  { %v12990_v4 = vpop.permute.xlu1 %5339 }
 0x5d1   :  { %v12992_v51 = vpop.permute.xlu2 %5404  ;;  %v12994_v17 = vpop.permute.xlu0 %5349 }
 0x5d2   :  { %14647 = vst [vmem:[#allocation62_spill] sm:$0xff] %v12992_v51  ;;  %v5972_v51 = vld [vmem:[#allocation2 + $0x319] sm:$0xff] }
 0x5d3   :  { %14648 = vst [vmem:[#allocation64_spill] sm:$0xff] %v12994_v17  ;;  %v5973_v17 = vld [vmem:[#allocation2 + $0x321] sm:$0xff] }
 0x5d5   :  { %5760 = vperm.xlu2 %8862, %v12724_v55   ;;  %v5580_v55 = vld [vmem:[#allocation2 + $0x2f1] sm:$0xff] }
 0x5d6   :  { %5630 = vperm.xlu1 %8863, %v5579_v27   ;;  %5505 = vperm.xlu0 %8861, %v5450_v8  }
 0x5d8   :  { %v12997_v38 = vpop.permute.xlu1 %5354 }
 0x5d9   :  { %14649 = vst [vmem:[#allocation65_spill] sm:$0xff] %v12997_v38  ;;  %v12999_v47 = vpop.permute.xlu2 %5590  ;;  %v13001_v48 = vpop.permute.xlu0 %5364 }
 0x5da   :  { %14650 = vst [vmem:[#allocation66_spill] sm:$0xff] %v13001_v48  ;;  %v7255_v48 = vld [vmem:[#allocation6 + $0x70] sm:$0xff] }
 0x5db   :  { %7366 = vmatpush.msra.mxu0 %v7255_v48  ;;  %v7250_v48 = vld [vmem:[#allocation6 + $0x48] sm:$0xff] }
 0x5dd   :  { %5645 = vperm.xlu2 %8862, %v5582_v37  }
 0x5de   :  { %5515 = vperm.xlu1 %8863, %v5452_v31   ;;  %5770 = vperm.xlu0 %8861, %v12722_v56  }
 0x5e0   :  { %v13004_v15 = vpop.permute.xlu1 %5369 }
 0x5e1   :  { %v13006_v30 = vpop.permute.xlu2 %5475  ;;  %v13008_v27 = vpop.permute.xlu0 %5379 }
 0x5e5   :  { %5765 = vperm.xlu2 %8862, %v12773_v34   ;;  %v5843_v34 = vld [vmem:[#allocation2 + $0x320] sm:$0xff] }
 0x5e6   :  { %5635 = vperm.xlu1 %8863, %v5580_v55   ;;  %5891 = vperm.xlu0 %8861, %v5451_v59   ;;  %v205_v59 = vld [vmem:[%s14052_s0 + $0xf0] sm:$0xff] }
 0x5e7   :  { %270 = vst.msk [vmem:[#allocation2 + $0x181] sm:$0xff] %vm65_vm0, %v205_v59  ;;  %v7254_v59 = vld [vmem:[#allocation6 + $0x68] sm:$0xff] }
 0x5e8   :  { %v13011_v8 = vpop.permute.xlu1 %5384  ;;  %7367 = vmatpush.msra.mxu0 %v7254_v59  ;;  %v6655_v59 = vld [vmem:[#allocation3 + $0xa1] sm:$0xff] }
 0x5e9   :  { %v13013_v49 = vpop.permute.xlu2 %5595  ;;  %v13015_v23 = vpop.permute.xlu0 %5394 }
 0x5ea   :  { %14651 = vst [vmem:[#allocation68_spill] sm:$0xff] %v13015_v23  ;;  %v13026_v23 = vld [vmem:[#allocation3 + $0x51] sm:$0xff]  ;;  %7368 = vmatpush.msra.mxu0 %v7253_v41  ;;  %v13048_v41 = vld [vmem:[#allocation3 + $0x61] sm:$0xff] }
 0x5eb   :  { %14653 = vst [vmem:[#allocation73_spill] sm:$0xff] %v13026_v23 }
 0x5ec   :  { %14654 = vst [vmem:[#allocation74_spill] sm:$0xff] %v13048_v41 }
 0x5ed   :  { %6031 = vperm.xlu2 %8862, %v5972_v51  }
 0x5ee   :  { %5901 = vperm.xlu1 %8863, %v5842_v42   ;;  %5775 = vperm.xlu0 %8861, %v12778_v22   ;;  %v13083_v3 = vld [vmem:[#allocation2 + $0x180] sm:$0xff] }
 0x5f0   :  { %v13018_v62 = vpop.permute.xlu1 %5399 }
 0x5f1   :  { %14652 = vst [vmem:[#allocation69_spill] sm:$0xff] %v13018_v62  ;;  %v13020_v60 = vpop.permute.xlu2 %5861  ;;  %v5461_v55 = vpop.permute.xlu0 %5460 }
 0x5f2   :  { %v5539_v14 = vmul.f32 %v13081_v12, %v5461_v55 }
 0x5f5   :  { %5906 = vperm.xlu2 %8862, %v5843_v34  }
 0x5f6   :  { %6021 = vperm.xlu1 %8863, %v5970_v39   ;;  %6689 = vrot.lane.b32.xlu0 %v13026_v23, %s9008_s17 }
 0x5f8   :  { %v5471_v42 = vpop.permute.xlu1 %5470 }
 0x5f9   :  { %v13030_v51 = vpop.permute.xlu2 %5981  ;;  %v13032_v62 = vpop.permute.xlu0 %5600 }
 0x5fd   :  { %6026 = vperm.xlu2 %8862, %v5582_v37   ;;  %v7252_v37 = vld [vmem:[#allocation6 + $0x58] sm:$0xff] }
 0x5fe   :  { %5896 = vperm.xlu1 %8863, %v5452_v31   ;;  %6151 = vperm.xlu0 %8861, %v12722_v56   ;;  %v7251_v56 = vld [vmem:[#allocation6 + $0x50] sm:$0xff] }
 0x5ff   :  { %7369 = vmatpush.msra.mxu0 %v7252_v37 }
 0x600   :  { %v13035_v39 = vpop.permute.xlu1 %5465 }
 0x601   :  { %v13037_v34 = vpop.permute.xlu2 %5866  ;;  %v5721_v53 = vpop.permute.xlu0 %5720  ;;  %7370 = vmatpush.msra.mxu0 %v7251_v56 }
 0x603   :  { %7371 = vmatpush.msra.mxu0 %v7250_v48 }
 0x605   :  { %6166 = vperm.xlu2 %8862, %v12776_v1   ;;  %v13053_v1 = vld [vmem:[%s14053_s1 + $0x1] ss:$0 sm:$0xff] }
 0x606   :  { %6161 = vperm.xlu1 %8863, %v12808_v57   ;;  %6036 = vperm.xlu0 %8861, %v5973_v17   ;;  %v13058_v57 = vld [vmem:[%s14053_s1 + $0x2] ss:$0 sm:$0xff]  ;;  %v5278_v37 = vmul.f32 %v13053_v1, %v12905_v0  ;;  %v5280_v0 = vmul.f32 %v13053_v1, %v12911_v33 }
 0x608   :  { %v13041_v31 = vpop.permute.xlu1 %5730 }
 0x609   :  { %v13043_v43 = vpop.permute.xlu2 %5986  ;;  %v13045_v63 = vpop.permute.xlu0 %5605 }
 0x60d   :  { %6695 = vrot.lane.b32.xlu2 %v6655_v59, %s9008_s17  ;;  %v5408_v59 = vmul.f32 %v13058_v57, %v12926_v32  ;;  %v5410_v32 = vmul.f32 %v13058_v57, %v12990_v4  ;;  %v5541_v4 = vmul.f32 %v13081_v12, %v5471_v42  ;;  %v5279_v42 = vmul.f32 %v13053_v1, %v12821_v25 }
 0x60e   :  { %6156 = vperm.xlu1 %8863, %v12778_v22   ;;  %6691 = vrot.lane.b32.xlu0 %v13048_v41, %s9008_s17  ;;  %v13066_v22 = vld [vmem:[%s14053_s1] ss:$0 sm:$0xff]  ;;  %v13095_v41 = vld [vmem:[%s14053_s1 + $0x4] ss:$0 sm:$0xff]  ;;  %v5542_v25 = vmul.f32 %v13081_v12, %v13006_v30 }
 0x60f   :  { %v5148_v20 = vmul.f32 %v13066_v22, %v12756_v40  ;;  %v5150_v40 = vmul.f32 %v13066_v22, %v12669_v2  ;;  %v5669_v6 = vmul.f32 %v13095_v41, %v12999_v47  ;;  %v13124_v47 = vld [vmem:[#allocation2 + $0x181] sm:$0xff] }
 0x610   :  { %v5852_v17 = vpop.permute.xlu1 %5851 }
 0x611   :  { %v13070_v56 = vpop.permute.xlu2 %6126  ;;  %v13072_v48 = vpop.permute.xlu0 %5725  ;;  %v5294_v38 = vadd.f32 %v5278_v37, %v5148_v20  ;;  %v13100_v20 = vld [vmem:[%s14053_s1 + $0x5] ss:$0 sm:$0xff]  ;;  %v5296_v33 = vadd.f32 %v5280_v0, %v5150_v40  ;;  %v5411_v0 = vmul.f32 %v13058_v57, %v12936_v18 }
 0x612   :  { %v6657_v18 = vld [vmem:[#allocation3 + $0xc1] sm:$0xff] }
 0x613   :  { %v5424_v52 = vadd.f32 %v5408_v59, %v5294_v38  ;;  %v5281_v59 = vmul.f32 %v13053_v1, %v12923_v44  ;;  %v5426_v23 = vadd.f32 %v5410_v32, %v5296_v33  ;;  %v5288_v44 = vmul.f32 %v13053_v1, %v12890_v50 }
 0x614   :  { %v5671_v32 = vmul.f32 %v13095_v41, %v13032_v62  ;;  %v5418_v50 = vmul.f32 %v13058_v57, %v13008_v27  ;;  %v13140_v62 = vld [vmem:[%s14053_s1 + $0x7] ss:$0 sm:$0xff]  ;;  %v5409_v27 = vmul.f32 %v13058_v57, %v12984_v28 }
 0x615   :  { %5490 = vperm.xlu2 %8862, %v13083_v3   ;;  %v5555_v38 = vadd.f32 %v5539_v14, %v5424_v52  ;;  %v5799_v14 = vmul.f32 %v13100_v20, %v5721_v53  ;;  %v5151_v52 = vmul.f32 %v13066_v22, %v12796_v36  ;;  %v5557_v40 = vadd.f32 %v5541_v4, %v5426_v23 }
 0x616   :  { %6697 = vrot.lane.b32.xlu0 %v6656_v11, %s9008_s17  ;;  %v13113_v11 = vld [vmem:[%s14053_s1 + $0x6] ss:$0 sm:$0xff]  ;;  %v5158_v36 = vmul.f32 %v13066_v22, %v12868_v10  ;;  %v5149_v23 = vmul.f32 %v13066_v22, %v12787_v16  ;;  %v5801_v10 = vmul.f32 %v13100_v20, %v13041_v31  ;;  %v13153_v31 = vld [vmem:[%s14053_s1 + $0x8] ss:$0 sm:$0xff] }
 0x617   :  { %v5685_v33 = vadd.f32 %v5669_v6, %v5555_v38  ;;  %v5930_v53 = vmul.f32 %v13113_v11, %v5852_v17  ;;  %v5687_v4 = vadd.f32 %v5671_v32, %v5557_v40 }
 0x618   :  { %v5736_v2 = vpop.permute.xlu1 %5735  ;;  %v5304_v30 = vadd.f32 %v5288_v44, %v5158_v36  ;;  %v5295_v16 = vadd.f32 %v5279_v42, %v5149_v23  ;;  %v6060_v42 = vmul.f32 %v13140_v62, %v13030_v51  ;;  %v7249_v23 = vld [vmem:[#allocation6 + $0x40] sm:$0xff]  ;;  %v206_v51 = vld [vmem:[%s14052_s0 + $0xf8] sm:$0xff] }
 0x619   :  { %v6684_v55 = vpop.permute.xlu2 %6683  ;;  %v5992_v37 = vpop.permute.xlu0 %5991  ;;  %v5815_v6 = vadd.f32 %v5799_v14, %v5685_v33  ;;  %v5817_v40 = vadd.f32 %v5801_v10, %v5687_v4  ;;  %7372 = vmatpush.msra.mxu0 %v7249_v23  ;;  %271 = vst.msk [vmem:[#allocation2 + $0x189] sm:$0xff] %vm65_vm0, %v206_v51  ;;  %v5800_v4 = vmul.f32 %v13100_v20, %v13072_v48  ;;  %v7244_v51 = vld [vmem:[#allocation6 + $0x18] sm:$0xff] }
 0x61a   :  { %6730 = vst.msk [vmem:[#allocation4 + $0x50] sm:$0xff] %vm6727_vm11, %v6684_v55  ;;  %v5297_v55 = vadd.f32 %v5281_v59, %v5151_v52  ;;  %v5672_v59 = vmul.f32 %v13095_v41, %v13045_v63  ;;  %v5434_v44 = vadd.f32 %v5418_v50, %v5304_v30  ;;  %v5802_v63 = vmul.f32 %v13100_v20, %v5736_v2  ;;  %v7248_v30 = vld [vmem:[#allocation6 + $0x38] sm:$0xff] }
 0x61b   :  { %v5946_v52 = vadd.f32 %v5930_v53, %v5815_v6  ;;  %v5425_v53 = vadd.f32 %v5409_v27, %v5295_v16  ;;  %v13172_v27 = vld [vmem:[%s14054_s2] ss:$0 sm:$0xff]  ;;  %v5670_v16 = vmul.f32 %v13095_v41, %v13013_v49  ;;  %7373 = vmatpush.msra.mxu0 %v7248_v30 }
 0x61c   :  { %v5427_v17 = vadd.f32 %v5411_v0, %v5297_v55  ;;  %v5540_v0 = vmul.f32 %v13081_v12, %v13035_v39  ;;  %v5705_v55 = vld [vmem:[#allocation2 + $0x16a] sm:$0xff]  ;;  %v6062_v39 = vmul.f32 %v13140_v62, %v5992_v37  ;;  %v6615_v30 = vld [vmem:[#allocation3] sm:$0xff] }
 0x61d   :  { %5620 = vperm.xlu2 %8862, %v13124_v47   ;;  %v6076_v6 = vadd.f32 %v6060_v42, %v5946_v52  ;;  %v7247_v37 = vld [vmem:[#allocation6 + $0x30] sm:$0xff]  ;;  %v5933_v52 = vmul.f32 %v13113_v11, %v13037_v34  ;;  %6631 = vst.msk [vmem:[#allocation4] sm:$0xff] %vm304_vm10, %v6615_v30 }
 0x61e   :  { %6699 = vrot.lane.b32.xlu0 %v6657_v18, %s9008_s17  ;;  %v5558_v18 = vadd.f32 %v5542_v25, %v5427_v17  ;;  %v5932_v25 = vmul.f32 %v13113_v11, %v13020_v60  ;;  %v5556_v2 = vadd.f32 %v5540_v0, %v5425_v53  ;;  %v7246_v0 = vld [vmem:[#allocation6 + $0x28] sm:$0xff]  ;;  %7374 = vmatpush.msra.mxu0 %v7247_v37 }
 0x620   :  { %v5857_v38 = vpop.permute.xlu1 %5856  ;;  %v5688_v50 = vadd.f32 %v5672_v59, %v5558_v18  ;;  %v5948_v17 = vadd.f32 %v5932_v25, %v5817_v40  ;;  %7375 = vmatpush.msra.mxu0 %v7246_v0  ;;  %v13189_v23 = vld [vmem:[#allocation2 + $0x189] sm:$0xff] }
 0x621   :  { %v5511_v14 = vpop.permute.xlu2 %5510  ;;  %v6112_v33 = vpop.permute.xlu0 %6111  ;;  %v13191_v25 = vld [vmem:[#allocation2 + $0x182] sm:$0xff] }
 0x622   :  { %v5549_v28 = vmul.f32 %v13081_v12, %v5511_v14  ;;  %v6190_v32 = vmul.f32 %v13153_v31, %v6112_v33  ;;  %v5818_v10 = vadd.f32 %v5802_v63, %v5688_v50  ;;  %v6078_v14 = vadd.f32 %v6062_v39, %v5948_v17 }
 0x623   :  { %v6193_v50 = vmul.f32 %v13153_v31, %v13070_v56 }
 0x624   :  { %v5565_v36 = vadd.f32 %v5549_v28, %v5434_v44  ;;  %v6206_v60 = vadd.f32 %v6190_v32, %v6076_v6  ;;  %v5686_v28 = vadd.f32 %v5670_v16, %v5556_v2  ;;  %v5949_v63 = vadd.f32 %v5933_v52, %v5818_v10 }
 0x625   :  { %5740 = vperm.xlu2 %8862, %v5705_v55   ;;  %v6061_v2 = vmul.f32 %v13140_v62, %v13043_v43 }
 0x626   :  { %5485 = vperm.xlu0 %8861, %v12916_v58   ;;  %v5931_v58 = vmul.f32 %v13113_v11, %v5857_v38  ;;  %v6226_v48 = vadd.f32 %v13172_v27, %v6206_v60  ;;  %v5816_v32 = vadd.f32 %v5800_v4, %v5686_v28  ;;  %v7243_v4 = vld [vmem:[#allocation6 + $0x10] sm:$0xff] }
 0x627   :  { %v5706_v28 = vld [vmem:[#allocation2 + $0x172] sm:$0xff] }
 0x628   :  { %v6122_v59 = vpop.permute.xlu1 %6121  ;;  %v5947_v38 = vadd.f32 %v5931_v58, %v5816_v32  ;;  %v6242_v39 = vmax.f32 %v6226_v48, 0.0 }
 0x629   :  { %v6192_v33 = vmul.f32 %v13153_v31, %v6122_v59  ;;  %v5641_v18 = vpop.permute.xlu2 %5640  ;;  %v5997_v44 = vpop.permute.xlu0 %5996 }
 0x62a   :  { %v5679_v42 = vmul.f32 %v13095_v41, %v5641_v18  ;;  %v6063_v49 = vmul.f32 %v13140_v62, %v5997_v44  ;;  %v6077_v59 = vadd.f32 %v6061_v2, %v5947_v38  ;;  %v7242_v18 = vld [vmem:[#allocation6 + $0x8] sm:$0xff] }
 0x62b   :  { %v6208_v40 = vadd.f32 %v6192_v33, %v6078_v14 }
 0x62c   :  { %v13186_v34 = vadd.f32 %v5679_v42, %v5565_v36  ;;  %v6079_v55 = vadd.f32 %v6063_v49, %v5949_v63  ;;  %v7245_v36 = vld [vmem:[#allocation6 + $0x20] sm:$0xff] }
 0x62d   :  { %v6228_v53 = vadd.f32 %v13172_v27, %v6208_v40  ;;  %5625 = vperm.xlu2 %8862, %v13189_v23   ;;  %7376 = vmatpush.msra.mxu0 %v7245_v36  ;;  %v7241_v40 = vld [vmem:[#allocation6] sm:$0xff] }
 0x62e   :  { %5750 = vperm.xlu0 %8861, %v13191_v25   ;;  %v6209_v60 = vadd.f32 %v6193_v50, %v6079_v55 }
 0x62f   :  { %v6244_v6 = vmax.f32 %v6228_v53, 0.0  ;;  %7377 = vmatpush.msra.mxu0 %v7244_v51 }
 0x630   :  { %v6117_v10 = vpop.permute.xlu1 %6116  ;;  %v6229_v48 = vadd.f32 %v13172_v27, %v6209_v60 }
 0x631   :  { %v6258_v17 = vmax.f32 %v6242_v39, %v6244_v6  ;;  %v6191_v56 = vmul.f32 %v13153_v31, %v6117_v10  ;;  %v13201_v37 = vpop.permute.xlu2 %5760  ;;  %v6680_v16 = vpop.permute.xlu0 %6679  ;;  %7378 = vmatpush.msra.mxu0 %v7243_v4 }
 0x632   :  { %6728 = vst.msk [vmem:[#allocation4] sm:$0xff] %vm6727_vm11, %v6680_v16  ;;  %v6245_v51 = vmax.f32 %v6229_v48, 0.0 }
 0x633   :  { %v6274_v52 = vrot.slane %v6258_v17, 2  ;;  %v6275_v14 = vrot.slane %v6258_v17, 4  ;;  %v6276_v33 = vrot.slane %v6258_v17, 6  ;;  %v6322_v43 = vsel %vm306_vm2, %v6258_v17, -inf  ;;  %7379 = vmatpush.msra.mxu0 %v7242_v18  ;;  %v13217_v18 = vld [vmem:[#allocation2 + $0x18a] sm:$0xff] }
 0x634   :  { %v6323_v44 = vrot.slane %v6322_v43, 4  ;;  %v6207_v0 = vadd.f32 %v6191_v56, %v6077_v59  ;;  %v5286_v59 = vmul.f32 %v13053_v1, %v12938_v45 }
 0x635   :  { %v6329_v58 = vsel %vm306_vm2, %v6274_v52, -inf  ;;  %v6336_v42 = vsel %vm306_vm2, %v6275_v14, -inf  ;;  %v6343_v49 = vsel %vm306_vm2, %v6276_v33, -inf  ;;  %5745 = vperm.xlu2 %8862, %v5706_v28   ;;  %7380 = vmatpush.msra.mxu0 %v7241_v40 }
 0x636   :  { %v6324_v63 = vmax.f32 %v6322_v43, %v6323_v44  ;;  %v6330_v32 = vrot.slane %v6329_v58, 4  ;;  %v6337_v53 = vrot.slane %v6336_v42, 4  ;;  %v6344_v55 = vrot.slane %v6343_v49, 4  ;;  %5871 = vperm.xlu0 %8861, %v13083_v3   ;;  %v5968_v43 = vld [vmem:[#allocation2 + $0x199] sm:$0xff] }
 0x637   :  { %v6227_v38 = vadd.f32 %v13172_v27, %v6207_v0 }
 0x638   :  { %v6325_v50 = vrot.slane %v6324_v63, 2  ;;  %v6331_v39 = vmax.f32 %v6329_v58, %v6330_v32  ;;  %v6338_v6 = vmax.f32 %v6336_v42, %v6337_v53  ;;  %v6345_v36 = vmax.f32 %v6343_v49, %v6344_v55  ;;  %v6682_v30 = vpop.permute.xlu1 %6681 }
 0x639   :  { %v6243_v2 = vmax.f32 %v6227_v38, 0.0  ;;  %6729 = vst.msk [vmem:[#allocation4 + $0x28] sm:$0xff] %vm6727_vm11, %v6682_v30  ;;  %v13212_v10 = vpop.permute.xlu2 %5645  ;;  %v6686_v17 = vpop.permute.xlu0 %6685  ;;  %v7161_v60 = vld [vmem:[#allocation4] sm:$0xff]  ;;  %v5156_v42 = vmul.f32 %v13066_v22, %v12714_v21 }
 0x63a   :  { %v6326_v56 = vmax.f32 %v6324_v63, %v6325_v50  ;;  %v6332_v16 = vrot.slane %v6331_v39, 2  ;;  %v6339_v4 = vrot.slane %v6338_v6, 2  ;;  %6731 = vst.msk [vmem:[#allocation4 + $0x78] sm:$0xff] %vm6727_vm11, %v6686_v17  ;;  %7381 = vmatmul.f32.vlgmr.msra.gmra.mxu0 %v7161_v60  ;;  %v6346_v33 = vrot.slane %v6345_v36, 2 }
 0x63b   :  { %v6259_v3 = vmax.f32 %v6243_v2, %v6245_v51  ;;  %v5302_v30 = vadd.f32 %v5286_v59, %v5156_v42 }
 0x63c   :  { %v6333_v52 = vmax.f32 %v6331_v39, %v6332_v16  ;;  %v6340_v14 = vmax.f32 %v6338_v6, %v6339_v4  ;;  %v6327_v49 = vrot.slane %v6326_v56, 1  ;;  %v6347_v38 = vmax.f32 %v6345_v36, %v6346_v33 }
 0x63d   :  { %v6277_v44 = vrot.slane %v6259_v3, 2  ;;  %v6278_v0 = vrot.slane %v6259_v3, 4  ;;  %v6279_v28 = vrot.slane %v6259_v3, 6  ;;  %v6350_v58 = vsel %vm306_vm2, %v6259_v3, -inf  ;;  %6011 = vperm.xlu2 %8862, %v5968_v43  }
 0x63e   :  { %v6334_v48 = vrot.slane %v6333_v52, 1  ;;  %v6341_v40 = vrot.slane %v6340_v14, 1  ;;  %v6351_v63 = vrot.slane %v6350_v58, 4  ;;  %5755 = vperm.xlu0 %8861, %v13217_v18   ;;  %v5416_v16 = vmul.f32 %v13058_v57, %v13004_v15 }
 0x63f   :  { %v6357_v45 = vsel %vm306_vm2, %v6277_v44, -inf  ;;  %v6364_v32 = vsel %vm306_vm2, %v6278_v0, -inf  ;;  %v6371_v53 = vsel %vm306_vm2, %v6279_v28, -inf  ;;  %v6328_v4 = vmax.f32 %v6326_v56, %v6327_v49  ;;  %v6658_v49 = vld [vmem:[#allocation3 + $0xd1] sm:$0xff] }
 0x640   :  { %v6335_v55 = vmax.f32 %v6333_v52, %v6334_v48  ;;  %v6358_v50 = vrot.slane %v6357_v45, 4  ;;  %v5501_v39 = vpop.permute.xlu1 %5500  ;;  %v7166_v6 = vld [vmem:[#allocation4 + $0x28] sm:$0xff]  ;;  %v6352_v21 = vmax.f32 %v6350_v58, %v6351_v63  ;;  %v6365_v51 = vrot.slane %v6364_v32, 4  ;;  %v5839_v58 = vld [vmem:[#allocation2 + $0x1a0] sm:$0xff] }
 0x641   :  { %v6372_v2 = vrot.slane %v6371_v53, 4  ;;  %v13226_v17 = vpop.permute.xlu2 %5765  ;;  %v6688_v60 = vpop.permute.xlu0 %6687  ;;  %v6342_v52 = vmax.f32 %v6340_v14, %v6341_v40  ;;  %v6348_v44 = vrot.slane %v6347_v38, 1  ;;  %v5547_v28 = vmul.f32 %v13081_v12, %v5501_v39 }
 0x642   :  { %v6359_v3 = vmax.f32 %v6357_v45, %v6358_v50  ;;  %6732 = vst.msk [vmem:[#allocation4 + $0xa0] sm:$0xff] %vm6727_vm11, %v6688_v60  ;;  %7384 = vmatmul.f32.gmra.mxu0 %v7166_v6  ;;  %v6353_v36 = vrot.slane %v6352_v21, 2  ;;  %v6366_v33 = vmax.f32 %v6364_v32, %v6365_v51  ;;  %v6578_v59 = vsel %vm1873_vm3, %v6335_v55, %v6328_v4 }
 0x643   :  { %v6373_v43 = vmax.f32 %v6371_v53, %v6372_v2  ;;  %v5432_v15 = vadd.f32 %v5416_v16, %v5302_v30  ;;  %v6579_v45 = vsel %vm1875_vm4, %v6342_v52, %v6578_v59  ;;  %v6349_v32 = vmax.f32 %v6347_v38, %v6348_v44  ;;  %v7171_v16 = vld [vmem:[#allocation4 + $0x50] sm:$0xff]  ;;  %v6623_v44 = vld [vmem:[#allocation3 + $0xa0] sm:$0xff] }
 0x644   :  { %v6360_v0 = vrot.slane %v6359_v3, 2  ;;  %v6354_v42 = vmax.f32 %v6352_v21, %v6353_v36  ;;  %v6367_v48 = vrot.slane %v6366_v33, 2  ;;  %v5289_v4 = vmul.f32 %v13053_v1, %v12961_v26  ;;  %6639 = vst.msk [vmem:[#allocation4 + $0x140] sm:$0xff] %vm304_vm10, %v6623_v44  ;;  %v13297_v44 = vld [vmem:[#allocation2 + $0x188] sm:$0xff] }
 0x645   :  { %v6374_v63 = vrot.slane %v6373_v43, 2  ;;  %5886 = vperm.xlu2 %8862, %v5839_v58   ;;  %v5563_v55 = vadd.f32 %v5547_v28, %v5432_v15  ;;  %v5159_v26 = vmul.f32 %v13066_v22, %v12754_v29  ;;  %v5419_v28 = vmul.f32 %v13058_v57, %v13011_v8 }
 0x646   :  { %v6361_v56 = vmax.f32 %v6359_v3, %v6360_v0  ;;  %v6355_v50 = vrot.slane %v6354_v42, 1  ;;  %v6368_v14 = vmax.f32 %v6366_v33, %v6367_v48  ;;  %6701 = vrot.lane.b32.xlu0 %v6658_v49, %s9008_s17  ;;  %v6580_v3 = vsel %vm1877_vm5, %v6349_v32, %v6579_v45  ;;  %v7176_v49 = vld [vmem:[#allocation4 + $0x78] sm:$0xff] }
 0x647   :  { %v6375_v40 = vmax.f32 %v6373_v43, %v6374_v63  ;;  %v5807_v33 = vmul.f32 %v13100_v20, %v13201_v37  ;;  %v5305_v37 = vadd.f32 %v5289_v4, %v5159_v26  ;;  %v5680_v45 = vmul.f32 %v13095_v41, %v13212_v10 }
 0x648   :  { %v6362_v53 = vrot.slane %v6361_v56, 1  ;;  %v5631_v6 = vpop.permute.xlu1 %5630  ;;  %v6356_v39 = vmax.f32 %v6354_v42, %v6355_v50  ;;  %v6369_v51 = vrot.slane %v6368_v14, 1 }
 0x649   :  { %v6376_v21 = vrot.slane %v6375_v40, 1  ;;  %v5677_v2 = vmul.f32 %v13095_v41, %v5631_v6  ;;  %v13236_v30 = vpop.permute.xlu2 %6031  ;;  %v13238_v60 = vpop.permute.xlu0 %5505  ;;  %v5435_v15 = vadd.f32 %v5419_v28, %v5305_v37 }
 0x64a   :  { %v6363_v52 = vmax.f32 %v6361_v56, %v6362_v53  ;;  %7387 = vmatmul.f32.gmra.mxu0 %v7171_v16  ;;  %v6370_v38 = vmax.f32 %v6368_v14, %v6369_v51  ;;  %v6581_v36 = vsel %vm1879_vm6, %v6356_v39, %v6580_v3  ;;  %v6099_v14 = vld [vmem:[#allocation2 + $0x1a2] sm:$0xff] }
 0x64b   :  { %v5693_v43 = vadd.f32 %v5677_v2, %v5563_v55  ;;  %v6377_v59 = vmax.f32 %v6375_v40, %v6376_v21  ;;  %v5969_v40 = vld [vmem:[#allocation2 + $0x1a1] sm:$0xff] }
 0x64c   :  { %v6582_v0 = vsel %vm1881_vm7, %v6363_v52, %v6581_v36  ;;  %v7181_v51 = vld [vmem:[#allocation4 + $0xa0] sm:$0xff]  ;;  %v5575_v52 = vld [vmem:[#allocation2 + $0x169] sm:$0xff] }
 0x64d   :  { %v6583_v58 = vsel %vm1883_vm8, %v6370_v38, %v6582_v0  ;;  %v13253_v42 = vadd.f32 %v5807_v33, %v5693_v43  ;;  %6006 = vperm.xlu2 %8862, %v13189_v23   ;;  %v6661_v21 = vld [vmem:[#allocation3 + $0x101] sm:$0xff]  ;;  %v5284_v43 = vmul.f32 %v13053_v1, %v12934_v24  ;;  %v5414_v0 = vmul.f32 %v13058_v57, %v12959_v9 }
 0x64e   :  { %v6584_v48 = vsel %vm1885_vm9, %v6377_v59, %v6583_v58  ;;  %6131 = vperm.xlu0 %8861, %v13191_v25   ;;  %v13282_v2 = vld [vmem:[#allocation3 + $0xe1] sm:$0xff]  ;;  %v5154_v59 = vmul.f32 %v13066_v22, %v12823_v19  ;;  %v5157_v24 = vmul.f32 %v13066_v22, %v12850_v35  ;;  %v5417_v19 = vmul.f32 %v13058_v57, %v12971_v7 }
 0x64f   :  { %6611 = vst.msk [vmem:[#allocation3 + $0x71] sm:$0xff] %vm304_vm10, %v6584_v48  ;;  %v14655_v38 = vld [vmem:[#allocation15_spill] sm:$0xff] }
 0x650   :  { %v5516_v63 = vpop.permute.xlu1 %5515  ;;  %v5300_v58 = vadd.f32 %v5284_v43, %v5154_v59 }
 0x651   :  { %v5550_v29 = vmul.f32 %v13081_v12, %v5516_v63  ;;  %v13260_v56 = vpop.permute.xlu2 %5906  ;;  %v5771_v8 = vpop.permute.xlu0 %5770 }
 0x652   :  { %7390 = vmatmul.f32.gmra.mxu0 %v7176_v49  ;;  %v5809_v26 = vmul.f32 %v13100_v20, %v5771_v8  ;;  %v5430_v8 = vadd.f32 %v5414_v0, %v5300_v58 }
 0x653   :  { %v5566_v50 = vadd.f32 %v5550_v29, %v5435_v15 }
 0x654   :  { %v5825_v7 = vadd.f32 %v5809_v26, %v13186_v34 }
 0x655   :  { %v13264_v32 = vadd.f32 %v5680_v45, %v5566_v50  ;;  %6146 = vperm.xlu2 %8862, %v6099_v14  }
 0x656   :  { %v13266_v23 = vld [vmem:[#allocation3 + $0x71] sm:$0xff]  ;;  %6016 = vperm.xlu0 %8861, %v5969_v40  }
 0x657   :  { %v13268_v25 = vld [vmem:[#allocation3 + $0x70] sm:$0xff]  ;;  %6693 = vrot.lane.b32.xlu1 %v13266_v23, %s9008_s17 }
 0x658   :  { %6638 = vst.msk [vmem:[#allocation4 + $0x118] sm:$0xff] %vm304_vm10, %v13268_v25  ;;  %v6878_v53 = vld [vmem:[#allocation3 + $0x71] sm:$0xff]  ;;  %v5636_v10 = vpop.permute.xlu1 %5635 }
 0x659   :  { %v7134_v55 = vld [vmem:[#allocation3 + $0x72] sm:$0xff]  ;;  %7022 = vst.msk [vmem:[#allocation4 + $0xe0] sm:$0xff] %vm304_vm10, %v13268_v25  ;;  %v13276_v6 = vpop.permute.xlu2 %6026  ;;  %v5892_v39 = vpop.permute.xlu0 %5891 }
 0x65a   :  { %6894 = vst.msk [vmem:[#allocation4 + $0x100] sm:$0xff] %vm304_vm10, %v6878_v53  ;;  %7393 = vmatmul.f32.gmra.mxu0 %v7181_v51  ;;  %v5938_v28 = vmul.f32 %v13113_v11, %v5892_v39  ;;  %v5678_v53 = vmul.f32 %v13095_v41, %v5636_v10 }
 0x65b   :  { %7150 = vst.msk [vmem:[#allocation4 + $0xe8] sm:$0xff] %vm304_vm10, %v7134_v55 }
 0x65c   :  { %6767 = vst.msk [vmem:[#allocation4 + $0x120] sm:$0xff] %vm304_vm10, %v7134_v55  ;;  %v5954_v45 = vadd.f32 %v5938_v28, %v13253_v42  ;;  %v14657_v42 = vld [vmem:[#allocation41_spill] sm:$0xff] }
 0x65d   :  { %6707 = vrot.lane.b32.xlu2 %v6661_v21, %s9008_s17 }
 0x65e   :  { %6703 = vrot.lane.b32.xlu0 %v13282_v2, %s9008_s17 }
 0x65f   :  { %5480 = vperm.xlu1 %8863, %v12880_v5  }
 0x660   :  { %v5902_v16 = vpop.permute.xlu1 %5901 }
 0x661   :  { %v13287_v4 = vpop.permute.xlu2 %6166  ;;  %v5776_v3 = vpop.permute.xlu0 %5775  ;;  %v5940_v48 = vmul.f32 %v13113_v11, %v5902_v16 }
 0x662   :  { %v5810_v50 = vmul.f32 %v13100_v20, %v5776_v3 }
 0x663   :  { %v5956_v39 = vadd.f32 %v5940_v48, %v5825_v7  ;;  %v237_v48 = vld [vmem:[%s14052_s0 + $0x1f0] sm:$0xff] }
 0x664   :  { %v5826_v16 = vadd.f32 %v5810_v50, %v13264_v32  ;;  %v5808_v32 = vmul.f32 %v13100_v20, %v13226_v17  ;;  %v6201_v17 = vmul.f32 %v13153_v31, %v13287_v4  ;;  %302 = vst.msk [vmem:[#allocation2 + $0x331] sm:$0xff] %vm65_vm0, %v237_v48 }
 0x665   :  { %7065 = vrot.lane.b32.xlu2 %v12964_v54, %s9008_s17  ;;  %v5287_v54 = vmul.f32 %v13053_v1, %v12957_v46  ;;  %v14656_v46 = vld [vmem:[#allocation19_spill] sm:$0xff] }
 0x666   :  { %6936 = vrot.lane.b32.xlu0 %v14655_v38, %s9008_s17  ;;  %v5941_v38 = vmul.f32 %v13113_v11, %v13260_v56 }
 0x667   :  { %5610 = vperm.xlu1 %8863, %v5575_v52   ;;  %v5303_v29 = vadd.f32 %v5287_v54, %v5157_v24  ;;  %v14658_v52 = vld [vmem:[#allocation22_spill] sm:$0xff] }
 0x668   :  { %v6022_v5 = vpop.permute.xlu1 %6021  ;;  %v5957_v26 = vadd.f32 %v5941_v38, %v5826_v16  ;;  %v5838_v24 = vld [vmem:[#allocation2 + $0x198] sm:$0xff] }
 0x669   :  { %v6696_v36 = vpop.permute.xlu2 %6695  ;;  %v6690_v33 = vpop.permute.xlu0 %6689  ;;  %v6068_v37 = vmul.f32 %v13140_v62, %v6022_v5  ;;  %v5433_v40 = vadd.f32 %v5417_v19, %v5303_v29 }
 0x66a   :  { %6736 = vst.msk [vmem:[#allocation4 + $0x140] sm:$0xff] %vm6727_vm11, %v6696_v36 }
 0x66b   :  { %6733 = vst.msk [vmem:[#allocation4 + $0xc8] sm:$0xff] %vm6727_vm11, %v6690_v33  ;;  %v6084_v51 = vadd.f32 %v6068_v37, %v5954_v45  ;;  %v238_v37 = vld [vmem:[%s14052_s0 + $0x1f8] sm:$0xff] }
 0x66c   :  { %303 = vst.msk [vmem:[#allocation2 + $0x339] sm:$0xff] %vm65_vm0, %v238_v37 }
 0x66d   :  { %7067 = vrot.lane.b32.xlu2 %v12976_v61, %s9008_s17  ;;  %v5548_v61 = vmul.f32 %v13081_v12, %v13238_v60  ;;  %v6070_v60 = vmul.f32 %v13140_v62, %v13236_v30 }
 0x66e   :  { %6808 = vrot.lane.b32.xlu0 %v14656_v46, %s9008_s17 }
 0x66f   :  { %5495 = vperm.xlu1 %8863, %v13297_v44   ;;  %v5564_v21 = vadd.f32 %v5548_v61, %v5433_v40  ;;  %v6086_v5 = vadd.f32 %v6070_v60, %v5956_v39 }
 0x670   :  { %v5897_v9 = vpop.permute.xlu1 %5896 }
 0x671   :  { %v5491_v63 = vpop.permute.xlu2 %5490  ;;  %v6152_v15 = vpop.permute.xlu0 %6151  ;;  %v5694_v3 = vadd.f32 %v5678_v53, %v5564_v21 }
 0x672   :  { %v5545_v35 = vmul.f32 %v13081_v12, %v5491_v63  ;;  %v7186_v49 = vld [vmem:[#allocation4 + $0xc8] sm:$0xff]  ;;  %v6198_v14 = vmul.f32 %v13153_v31, %v6152_v15  ;;  %v6069_v63 = vmul.f32 %v13140_v62, %v13276_v6  ;;  %v14660_v15 = vld [vmem:[#allocation21_spill] sm:$0xff] }
 0x673   :  { %7396 = vmatmul.f32.gmra.mxu0 %v7186_v49  ;;  %v5824_v28 = vadd.f32 %v5808_v32, %v5694_v3 }
 0x674   :  { %v5561_v55 = vadd.f32 %v5545_v35, %v5430_v8  ;;  %v6214_v34 = vadd.f32 %v6198_v14, %v6084_v51 }
 0x675   :  { %7069 = vrot.lane.b32.xlu2 %v14657_v42, %s9008_s17  ;;  %v14661_v42 = vld [vmem:[#allocation74_spill] sm:$0xff] }
 0x676   :  { %6810 = vrot.lane.b32.xlu0 %v14658_v52, %s9008_s17  ;;  %v6234_v54 = vadd.f32 %v13172_v27, %v6214_v34 }
 0x677   :  { %5615 = vperm.xlu1 %8863, %v12945_v13   ;;  %v5939_v13 = vmul.f32 %v13113_v11, %v5897_v9 }
 0x678   :  { %v6162_v10 = vpop.permute.xlu1 %6161  ;;  %v6250_v11 = vmax.f32 %v6234_v54, 0.0  ;;  %v7303_v54 = vld [vmem:[#allocation6 + $0x1f0] sm:$0xff] }
 0x679   :  { %v6200_v36 = vmul.f32 %v13153_v31, %v6162_v10  ;;  %v5621_v30 = vpop.permute.xlu2 %5620  ;;  %v6037_v33 = vpop.permute.xlu0 %6036  ;;  %v5955_v46 = vadd.f32 %v5939_v13, %v5824_v28 }
 0x67a   :  { %v5675_v43 = vmul.f32 %v13095_v41, %v5621_v30  ;;  %v6071_v59 = vmul.f32 %v13140_v62, %v6037_v33  ;;  %v14659_v41 = vld [vmem:[#allocation73_spill] sm:$0xff] }
 0x67b   :  { %v6216_v0 = vadd.f32 %v6200_v36, %v6086_v5  ;;  %v6085_v7 = vadd.f32 %v6069_v63, %v5955_v46  ;;  %v14662_v5 = vld [vmem:[#allocation36_spill] sm:$0xff] }
 0x67c   :  { %v13343_v56 = vadd.f32 %v5675_v43, %v5561_v55  ;;  %v6087_v19 = vadd.f32 %v6071_v59, %v5957_v26 }
 0x67d   :  { %v6236_v58 = vadd.f32 %v13172_v27, %v6216_v0  ;;  %7071 = vrot.lane.b32.xlu2 %v14659_v41, %s9008_s17 }
 0x67e   :  { %6812 = vrot.lane.b32.xlu0 %v14660_v15, %s9008_s17  ;;  %v6217_v8 = vadd.f32 %v6201_v17, %v6087_v19 }
 0x67f   :  { %v6252_v9 = vmax.f32 %v6236_v58, 0.0  ;;  %5881 = vperm.xlu1 %8863, %v5838_v24   ;;  %v13380_v58 = vld [vmem:[#allocation2 + $0x330] sm:$0xff] }
 0x680   :  { %v6157_v4 = vpop.permute.xlu1 %6156  ;;  %v6237_v39 = vadd.f32 %v13172_v27, %v6217_v8 }
 0x681   :  { %v6262_v29 = vmax.f32 %v6250_v11, %v6252_v9  ;;  %v6199_v61 = vmul.f32 %v13153_v31, %v6157_v4  ;;  %v13362_v35 = vpop.permute.xlu2 %5740  ;;  %v6692_v49 = vpop.permute.xlu0 %6691 }
 0x682   :  { %6734 = vst.msk [vmem:[#allocation4 + $0xf0] sm:$0xff] %vm6727_vm11, %v6692_v49  ;;  %v6253_v36 = vmax.f32 %v6237_v39, 0.0 }
 0x683   :  { %v6286_v45 = vrot.slane %v6262_v29, 2  ;;  %v6287_v62 = vrot.slane %v6262_v29, 4  ;;  %v6288_v6 = vrot.slane %v6262_v29, 6  ;;  %v6434_v50 = vsel %vm306_vm2, %v6262_v29, -inf  ;;  %v7302_v29 = vld [vmem:[#allocation6 + $0x1e8] sm:$0xff] }
 0x684   :  { %v6435_v14 = vrot.slane %v6434_v50, 4  ;;  %v6215_v40 = vadd.f32 %v6199_v61, %v6085_v7  ;;  %v14663_v7 = vld [vmem:[#allocation43_spill] sm:$0xff] }
 0x685   :  { %v6441_v53 = vsel %vm306_vm2, %v6286_v45, -inf  ;;  %v6448_v55 = vsel %vm306_vm2, %v6287_v62, -inf  ;;  %v6455_v31 = vsel %vm306_vm2, %v6288_v6, -inf  ;;  %7073 = vrot.lane.b32.xlu2 %v14661_v42, %s9008_s17  ;;  %v7301_v45 = vld [vmem:[#allocation6 + $0x1e0] sm:$0xff] }
 0x686   :  { %v6436_v51 = vmax.f32 %v6434_v50, %v6435_v14  ;;  %v6442_v21 = vrot.slane %v6441_v53, 4  ;;  %v6449_v60 = vrot.slane %v6448_v55, 4  ;;  %v6456_v16 = vrot.slane %v6455_v31, 4  ;;  %6814 = vrot.lane.b32.xlu0 %v14662_v5, %s9008_s17 }
 0x687   :  { %v6235_v34 = vadd.f32 %v13172_v27, %v6215_v40  ;;  %6001 = vperm.xlu1 %8863, %v13124_v47   ;;  %v7304_v47 = vld [vmem:[#allocation6 + $0x1f8] sm:$0xff] }
 0x688   :  { %v6437_v3 = vrot.slane %v6436_v51, 2  ;;  %v6443_v52 = vmax.f32 %v6441_v53, %v6442_v21  ;;  %v6450_v10 = vmax.f32 %v6448_v55, %v6449_v60  ;;  %v6457_v38 = vmax.f32 %v6455_v31, %v6456_v16  ;;  %7560 = vmatpush.msra.mxu3 %v7304_v47  ;;  %v7299_v60 = vld [vmem:[#allocation6 + $0x1d0] sm:$0xff] }
 0x689   :  { %v6251_v30 = vmax.f32 %v6235_v34, 0.0  ;;  %v13377_v33 = vpop.permute.xlu2 %5625  ;;  %v6698_v32 = vpop.permute.xlu0 %6697  ;;  %v7191_v13 = vld [vmem:[#allocation4 + $0xf0] sm:$0xff] }
 0x68a   :  { %v6438_v43 = vmax.f32 %v6436_v51, %v6437_v3  ;;  %v6444_v27 = vrot.slane %v6443_v52, 2  ;;  %v6451_v59 = vrot.slane %v6450_v10, 2  ;;  %6737 = vst.msk [vmem:[#allocation4 + $0x168] sm:$0xff] %vm6727_vm11, %v6698_v32  ;;  %7399 = vmatmul.f32.gmra.mxu0 %v7191_v13  ;;  %v6458_v24 = vrot.slane %v6457_v38, 2  ;;  %7561 = vmatpush.msra.mxu3 %v7303_v54  ;;  %v14664_v16 = vld [vmem:[#allocation57_spill] sm:$0xff] }
 0x68b   :  { %v6263_v0 = vmax.f32 %v6251_v30, %v6253_v36  ;;  %v5283_v34 = vmul.f32 %v13053_v1, %v14664_v16  ;;  %v14665_v32 = vld [vmem:[#allocation37_spill] sm:$0xff] }
 0x68c   :  { %v6445_v26 = vmax.f32 %v6443_v52, %v6444_v27  ;;  %v6452_v28 = vmax.f32 %v6450_v10, %v6451_v59  ;;  %v6439_v9 = vrot.slane %v6438_v43, 1  ;;  %v6459_v61 = vmax.f32 %v6457_v38, %v6458_v24  ;;  %7562 = vmatpush.msra.mxu3 %v7302_v29  ;;  %v6098_v10 = vld [vmem:[#allocation2 + $0x19a] sm:$0xff]  ;;  %v13396_v38 = vld [vmem:[#allocation2 + $0x331] sm:$0xff] }
 0x68d   :  { %v6289_v19 = vrot.slane %v6263_v0, 2  ;;  %v6290_v46 = vrot.slane %v6263_v0, 4  ;;  %v6291_v17 = vrot.slane %v6263_v0, 6  ;;  %v6462_v11 = vsel %vm306_vm2, %v6263_v0, -inf  ;;  %5530 = vperm.xlu2 %8862, %v13380_v58  }
 0x68e   :  { %v6446_v41 = vrot.slane %v6445_v26, 1  ;;  %v6453_v48 = vrot.slane %v6452_v28, 1  ;;  %v6463_v37 = vrot.slane %v6462_v11, 4  ;;  %6816 = vrot.lane.b32.xlu0 %v14663_v7, %s9008_s17  ;;  %v6440_v53 = vmax.f32 %v6438_v43, %v6439_v9  ;;  %7563 = vmatpush.msra.mxu3 %v7301_v45  ;;  %v14666_v43 = vld [vmem:[#allocation65_spill] sm:$0xff] }
 0x68f   :  { %v6469_v63 = vsel %vm306_vm2, %v6289_v19, -inf  ;;  %v6476_v15 = vsel %vm306_vm2, %v6290_v46, -inf  ;;  %v6483_v4 = vsel %vm306_vm2, %v6291_v17, -inf  ;;  %5876 = vperm.xlu1 %8863, %v13297_v44   ;;  %v7300_v44 = vld [vmem:[#allocation6 + $0x1d8] sm:$0xff]  ;;  %v6460_v42 = vrot.slane %v6459_v61, 1 }
 0x690   :  { %v6447_v8 = vmax.f32 %v6445_v26, %v6446_v41  ;;  %v6470_v49 = vrot.slane %v6469_v63, 4  ;;  %v6464_v62 = vmax.f32 %v6462_v11, %v6463_v37  ;;  %v6477_v6 = vrot.slane %v6476_v15, 4  ;;  %7564 = vmatpush.msra.mxu3 %v7300_v44  ;;  %v6909_v26 = vld [vmem:[#allocation3 + $0x62] sm:$0xff] }
 0x691   :  { %v6484_v50 = vrot.slane %v6483_v4, 4  ;;  %v13390_v14 = vpop.permute.xlu2 %5745  ;;  %v6700_v40 = vpop.permute.xlu0 %6699  ;;  %v6454_v31 = vmax.f32 %v6452_v28, %v6453_v48  ;;  %v5153_v13 = vmul.f32 %v13066_v22, %v14665_v32  ;;  %v5413_v27 = vmul.f32 %v13058_v57, %v14666_v43  ;;  %v7298_v28 = vld [vmem:[#allocation6 + $0x1c8] sm:$0xff]  ;;  %v7297_v22 = vld [vmem:[#allocation6 + $0x1c0] sm:$0xff]  ;;  %v7284_v32 = vld [vmem:[#allocation6 + $0x158] sm:$0xff] }
 0x692   :  { %v6471_v55 = vmax.f32 %v6469_v63, %v6470_v49  ;;  %6738 = vst.msk [vmem:[#allocation4 + $0x190] sm:$0xff] %vm6727_vm11, %v6700_v40  ;;  %v6465_v39 = vrot.slane %v6464_v62, 2  ;;  %v6478_v51 = vmax.f32 %v6476_v15, %v6477_v6  ;;  %v6592_v3 = vsel %vm1873_vm3, %v6447_v8, %v6440_v53  ;;  %7565 = vmatpush.msra.mxu3 %v7299_v60  ;;  %v7296_v8 = vld [vmem:[#allocation6 + $0x1b8] sm:$0xff]  ;;  %v7293_v40 = vld [vmem:[#allocation6 + $0x1a0] sm:$0xff] }
 0x693   :  { %v6485_v21 = vmax.f32 %v6483_v4, %v6484_v50  ;;  %v6593_v1 = vsel %vm1875_vm4, %v6454_v31, %v6592_v3  ;;  %v5299_v24 = vadd.f32 %v5283_v34, %v5153_v13  ;;  %v6461_v19 = vmax.f32 %v6459_v61, %v6460_v42  ;;  %v7295_v61 = vld [vmem:[#allocation6 + $0x1b0] sm:$0xff]  ;;  %v7288_v31 = vld [vmem:[#allocation6 + $0x178] sm:$0xff]  ;;  %v7286_v42 = vld [vmem:[#allocation6 + $0x168] sm:$0xff] }
 0x694   :  { %v6472_v52 = vrot.slane %v6471_v55, 2  ;;  %v6466_v5 = vmax.f32 %v6464_v62, %v6465_v39  ;;  %v6479_v36 = vrot.slane %v6478_v51, 2  ;;  %7566 = vmatpush.msra.mxu3 %v7298_v28  ;;  %v13413_v62 = vld [vmem:[#allocation2 + $0x338] sm:$0xff]  ;;  %7495 = vmatpush.msra.mxu2 %v7288_v31  ;;  %v7290_v3 = vld [vmem:[#allocation6 + $0x188] sm:$0xff]  ;;  %v7271_v13 = vld [vmem:[#allocation6 + $0xf0] sm:$0xff] }
 0x695   :  { %v6486_v30 = vrot.slane %v6485_v21, 2  ;;  %5660 = vperm.xlu2 %8862, %v13396_v38   ;;  %v5429_v48 = vadd.f32 %v5413_v27, %v5299_v24  ;;  %v6594_v37 = vsel %vm1877_vm5, %v6461_v19, %v6593_v1  ;;  %v7292_v39 = vld [vmem:[#allocation6 + $0x198] sm:$0xff]  ;;  %v5584_v43 = vld [vmem:[#allocation2 + $0x321] sm:$0xff]  ;;  %v7283_v27 = vld [vmem:[#allocation6 + $0x150] sm:$0xff] }
 0x696   :  { %v6473_v59 = vmax.f32 %v6471_v55, %v6472_v52  ;;  %v6467_v47 = vrot.slane %v6466_v5, 1  ;;  %v6480_v54 = vmax.f32 %v6478_v51, %v6479_v36  ;;  %6946 = vrot.lane.b32.xlu0 %v6909_v26, %s9008_s17  ;;  %7567 = vmatpush.msra.mxu3 %v7297_v22  ;;  %v7287_v51 = vld [vmem:[#allocation6 + $0x170] sm:$0xff]  ;;  %v5713_v60 = vld [vmem:[#allocation2 + $0x31a] sm:$0xff]  ;;  %v7270_v1 = vld [vmem:[#allocation6 + $0xe8] sm:$0xff] }
 0x697   :  { %v6487_v0 = vmax.f32 %v6485_v21, %v6486_v30  ;;  %6141 = vperm.xlu1 %8863, %v6098_v10   ;;  %v7291_v21 = vld [vmem:[#allocation6 + $0x190] sm:$0xff]  ;;  %7496 = vmatpush.msra.mxu2 %v7287_v51  ;;  %v7289_v36 = vld [vmem:[#allocation6 + $0x180] sm:$0xff]  ;;  %v7272_v30 = vld [vmem:[#allocation6 + $0xf8] sm:$0xff] }
 0x698   :  { %v6474_v46 = vrot.slane %v6473_v59, 1  ;;  %v6468_v57 = vmax.f32 %v6466_v5, %v6467_v47  ;;  %v6481_v17 = vrot.slane %v6480_v54, 1  ;;  %7568 = vmatpush.msra.mxu3 %v7296_v8  ;;  %v7285_v5 = vld [vmem:[#allocation6 + $0x160] sm:$0xff]  ;;  %7430 = vmatpush.msra.mxu1 %v7272_v30  ;;  %v7282_v47 = vld [vmem:[#allocation6 + $0x148] sm:$0xff]  ;;  %v7280_v22 = vld [vmem:[#allocation6 + $0x138] sm:$0xff] }
 0x699   :  { %v6488_v11 = vrot.slane %v6487_v0, 1  ;;  %v13405_v9 = vpop.permute.xlu2 %6011  ;;  %v5486_v41 = vpop.permute.xlu0 %5485  ;;  %7497 = vmatpush.msra.mxu2 %v7286_v42  ;;  %v13460_v26 = vld [vmem:[#allocation2 + $0x33a] sm:$0xff]  ;;  %v5846_v19 = vld [vmem:[#allocation2 + $0x348] sm:$0xff] }
 0x69a   :  { %v6475_v63 = vmax.f32 %v6473_v59, %v6474_v46  ;;  %v5544_v15 = vmul.f32 %v13081_v12, %v5486_v41  ;;  %v6482_v4 = vmax.f32 %v6480_v54, %v6481_v17  ;;  %v6595_v29 = vsel %vm1879_vm6, %v6468_v57, %v6594_v37  ;;  %7569 = vmatpush.msra.mxu3 %v7295_v61  ;;  %v7294_v12 = vld [vmem:[#allocation6 + $0x1a8] sm:$0xff]  ;;  %v7269_v28 = vld [vmem:[#allocation6 + $0xe0] sm:$0xff]  ;;  %v7268_v46 = vld [vmem:[#allocation6 + $0xd8] sm:$0xff] }
 0x69b   :  { %v6489_v49 = vmax.f32 %v6487_v0, %v6488_v11  ;;  %7498 = vmatpush.msra.mxu2 %v7285_v5  ;;  %7431 = vmatpush.msra.mxu1 %v7271_v13  ;;  %v7281_v24 = vld [vmem:[#allocation6 + $0x140] sm:$0xff]  ;;  %v7267_v57 = vld [vmem:[#allocation6 + $0xd0] sm:$0xff]  ;;  %v7278_v37 = vld [vmem:[#allocation6 + $0x128] sm:$0xff] }
 0x69c   :  { %v6596_v7 = vsel %vm1881_vm7, %v6475_v63, %v6595_v29  ;;  %v13411_v45 = vadd.f32 %v5544_v15, %v5429_v48  ;;  %7570 = vmatpush.msra.mxu3 %v7294_v12  ;;  %v7279_v17 = vld [vmem:[#allocation6 + $0x130] sm:$0xff]  ;;  %v7266_v48 = vld [vmem:[#allocation6 + $0xc8] sm:$0xff]  ;;  %v7265_v15 = vld [vmem:[#allocation6 + $0xc0] sm:$0xff] }
 0x69d   :  { %v6597_v6 = vsel %vm1883_vm8, %v6482_v4, %v6596_v7  ;;  %5535 = vperm.xlu2 %8862, %v13413_v62   ;;  %7499 = vmatpush.msra.mxu2 %v7284_v32  ;;  %v6910_v63 = vld [vmem:[#allocation3 + $0x72] sm:$0xff]  ;;  %v7277_v4 = vld [vmem:[#allocation6 + $0x120] sm:$0xff]  ;;  %v7262_v12 = vld [vmem:[#allocation6 + $0xa8] sm:$0xff] }
 0x69e   :  { %v6598_v50 = vsel %vm1885_vm9, %v6489_v49, %v6597_v6  ;;  %7075 = vrot.lane.b32.xlu0 %v13266_v23, %s9008_s17  ;;  %7571 = vmatpush.msra.mxu3 %v7293_v40  ;;  %v13428_v23 = vld [vmem:[#allocation3 + $0xf1] sm:$0xff]  ;;  %v14669_v29 = vld [vmem:[#allocation23_spill] sm:$0xff] }
 0x69f   :  { %6613 = vst.msk [vmem:[#allocation3 + $0x111] sm:$0xff] %vm304_vm10, %v6598_v50  ;;  %6136 = vperm.xlu1 %8863, %v13217_v18   ;;  %7500 = vmatpush.msra.mxu2 %v7283_v27  ;;  %v7264_v8 = vld [vmem:[#allocation6 + $0xb8] sm:$0xff]  ;;  %v7263_v6 = vld [vmem:[#allocation6 + $0xb0] sm:$0xff]  ;;  %v6744_v42 = vld [vmem:[#allocation3 + $0x2] sm:$0xff] }
 0x6a0   :  { %7572 = vmatpush.msra.mxu3 %v7292_v39  ;;  %7432 = vmatpush.msra.mxu1 %v7270_v1  ;;  %v7276_v61 = vld [vmem:[#allocation6 + $0x118] sm:$0xff]  ;;  %v7275_v50 = vld [vmem:[#allocation6 + $0x110] sm:$0xff]  ;;  %6760 = vst.msk [vmem:[#allocation4 + $0x8] sm:$0xff] %vm304_vm10, %v6744_v42  ;;  %v7258_v13 = vld [vmem:[#allocation6 + $0x88] sm:$0xff] }
 0x6a1   :  { %v13422_v53 = vpop.permute.xlu2 %5886  ;;  %v5751_v55 = vpop.permute.xlu0 %5750  ;;  %7501 = vmatpush.msra.mxu2 %v7282_v47  ;;  %v13474_v40 = vld [vmem:[#allocation2 + $0x332] sm:$0xff]  ;;  %v14672_v27 = vld [vmem:[#allocation35_spill] sm:$0xff] }
 0x6a2   :  { %v5805_v44 = vmul.f32 %v13100_v20, %v5751_v55  ;;  %7573 = vmatpush.msra.mxu3 %v7291_v21  ;;  %v14667_v20 = vld [vmem:[#allocation24_spill] sm:$0xff]  ;;  %7433 = vmatpush.msra.mxu1 %v7269_v28  ;;  %v13484_v21 = vld [vmem:[#allocation2 + $0x339] sm:$0xff] }
 0x6a3   :  { %7502 = vmatpush.msra.mxu2 %v7281_v24  ;;  %v7274_v55 = vld [vmem:[#allocation6 + $0x108] sm:$0xff]  ;;  %v7259_v5 = vld [vmem:[#allocation6 + $0x90] sm:$0xff]  ;;  %v7257_v24 = vld [vmem:[#allocation6 + $0x80] sm:$0xff] }
 0x6a4   :  { %v13426_v18 = vadd.f32 %v5805_v44, %v13343_v56  ;;  %7574 = vmatpush.msra.mxu3 %v7290_v3  ;;  %7434 = vmatpush.msra.mxu1 %v7268_v46  ;;  %v6106_v3 = vld [vmem:[#allocation2 + $0x34a] sm:$0xff]  ;;  %v14676_v42 = vld [vmem:[#allocation29_spill] sm:$0xff] }
 0x6a5   :  { %6818 = vrot.lane.b32.xlu2 %v14667_v20, %s9008_s17  ;;  %7503 = vmatpush.msra.mxu2 %v7280_v22  ;;  %v7273_v20 = vld [vmem:[#allocation6 + $0x100] sm:$0xff]  ;;  %v14673_v46 = vld [vmem:[#allocation28_spill] sm:$0xff] }
 0x6a6   :  { %v13430_v16 = vld [vmem:[#allocation3 + $0x110] sm:$0xff]  ;;  %5780 = vperm.xlu0 %8861, %v5713_v60   ;;  %7575 = vmatpush.msra.mxu3 %v7289_v36  ;;  %v7261_v60 = vld [vmem:[#allocation6 + $0xa0] sm:$0xff] }
 0x6a7   :  { %v13432_v34 = vld [vmem:[#allocation3 + $0x112] sm:$0xff]  ;;  %6705 = vrot.lane.b32.xlu1 %v13428_v23, %s9008_s17  ;;  %6646 = vst.msk [vmem:[#allocation4 + $0x258] sm:$0xff] %vm304_vm10, %v13430_v16  ;;  %7435 = vmatpush.msra.mxu1 %v7267_v57  ;;  %v14674_v57 = vld [vmem:[#allocation64_spill] sm:$0xff] }
 0x6a8   :  { %v6886_v56 = vld [vmem:[#allocation3 + $0x111] sm:$0xff]  ;;  %7030 = vst.msk [vmem:[#allocation4 + $0x220] sm:$0xff] %vm304_vm10, %v13430_v16  ;;  %7504 = vmatpush.msra.mxu2 %v7279_v17 }
 0x6a9   :  { %v13442_v52 = vpop.permute.xlu2 %6006  ;;  %v13444_v10 = vpop.permute.xlu0 %5871  ;;  %7158 = vst.msk [vmem:[#allocation4 + $0x228] sm:$0xff] %vm304_vm10, %v13432_v34  ;;  %v13451_v59 = vld [vmem:[#allocation3 + $0x111] sm:$0xff]  ;;  %7436 = vmatpush.msra.mxu1 %v7266_v48 }
 0x6aa   :  { %6902 = vst.msk [vmem:[#allocation4 + $0x240] sm:$0xff] %vm304_vm10, %v6886_v56  ;;  %7505 = vmatpush.msra.mxu2 %v7278_v37  ;;  %v14671_v56 = vld [vmem:[#allocation46_spill] sm:$0xff]  ;;  %v13516_v37 = vld [vmem:[%s14053_s1 + $0x3] ss:$0 sm:$0xff] }
 0x6ab   :  { %6775 = vst.msk [vmem:[#allocation4 + $0x260] sm:$0xff] %vm304_vm10, %v13432_v34  ;;  %7437 = vmatpush.msra.mxu1 %v7265_v15 }
 0x6ac   :  { %7506 = vmatpush.msra.mxu2 %v7277_v4 }
 0x6ad   :  { %5911 = vperm.xlu2 %8862, %v13380_v58   ;;  %v14668_v58 = vld [vmem:[#allocation18_spill] sm:$0xff]  ;;  %7438 = vmatpush.msra.mxu1 %v7264_v8 }
 0x6ae   :  { %5655 = vperm.xlu0 %8861, %v5584_v43   ;;  %7507 = vmatpush.msra.mxu2 %v7276_v61  ;;  %v13493_v43 = vld [vmem:[%s14053_s1 + $0x1] ss:$0 sm:$0xff] }
 0x6af   :  { %6709 = vrot.lane.b32.xlu1 %v13451_v59, %s9008_s17  ;;  %7439 = vmatpush.msra.mxu1 %v7263_v6  ;;  %v5282_v1 = vmul.f32 %v13493_v43, %v14672_v27  ;;  %v13523_v6 = vld [vmem:[%s14053_s1 + $0x4] ss:$0 sm:$0xff]  ;;  %v7206_v27 = vld [vmem:[#allocation4 + $0x168] sm:$0xff] }
 0x6b0   :  { %7508 = vmatpush.msra.mxu2 %v7275_v50 }
 0x6b1   :  { %v13456_v54 = vpop.permute.xlu2 %6146  ;;  %v13458_v0 = vpop.permute.xlu0 %5755  ;;  %7440 = vmatpush.msra.mxu1 %v7262_v12 }
 0x6b2   :  { %7509 = vmatpush.msra.mxu2 %v7274_v55 }
 0x6b3   :  { %7441 = vmatpush.msra.mxu1 %v7261_v60  ;;  %v7040_v60 = vld [vmem:[#allocation3 + $0x91] sm:$0xff] }
 0x6b4   :  { %7510 = vmatpush.msra.mxu2 %v7273_v20  ;;  %v6107_v20 = vld [vmem:[#allocation2 + $0x352] sm:$0xff] }
 0x6b5   :  { %5795 = vperm.xlu2 %8862, %v13460_v26  }
 0x6b6   :  { %5921 = vperm.xlu0 %8861, %v5846_v19   ;;  %v13502_v19 = vld [vmem:[%s14053_s1] ss:$0 sm:$0xff] }
 0x6b7   :  { %6938 = vrot.lane.b32.xlu1 %v14668_v58, %s9008_s17  ;;  %v5152_v22 = vmul.f32 %v13502_v19, %v14673_v46  ;;  %v13509_v58 = vld [vmem:[%s14053_s1 + $0x2] ss:$0 sm:$0xff] }
 0x6b8   :  { %v5412_v17 = vmul.f32 %v13509_v58, %v14674_v57 }
 0x6b9   :  { %v6708_v11 = vpop.permute.xlu2 %6707  ;;  %v6702_v41 = vpop.permute.xlu0 %6701  ;;  %v5298_v48 = vadd.f32 %v5282_v1, %v5152_v22  ;;  %v14678_v22 = vld [vmem:[#allocation61_spill] sm:$0xff] }
 0x6ba   :  { %6742 = vst.msk [vmem:[#allocation4 + $0x230] sm:$0xff] %vm6727_vm11, %v6708_v11  ;;  %v5453_v11 = vld [vmem:[#allocation2 + $0x318] sm:$0xff]  ;;  %v5292_v57 = vmul.f32 %v13493_v43, %v14678_v22 }
 0x6bb   :  { %6739 = vst.msk [vmem:[#allocation4 + $0x1b8] sm:$0xff] %vm6727_vm11, %v6702_v41  ;;  %v5977_v41 = vld [vmem:[#allocation2 + $0x351] sm:$0xff]  ;;  %v5428_v15 = vadd.f32 %v5412_v17, %v5298_v48  ;;  %v5676_v17 = vmul.f32 %v13523_v6, %v13377_v33  ;;  %v14679_v48 = vld [vmem:[#allocation27_spill] sm:$0xff] }
 0x6bd   :  { %6948 = vrot.lane.b32.xlu2 %v6910_v63, %s9008_s17 }
 0x6be   :  { %6041 = vperm.xlu0 %8861, %v13396_v38   ;;  %v14670_v38 = vld [vmem:[#allocation34_spill] sm:$0xff] }
 0x6bf   :  { %6940 = vrot.lane.b32.xlu1 %v14669_v29, %s9008_s17  ;;  %v7201_v29 = vld [vmem:[#allocation4 + $0x140] sm:$0xff] }
 0x6c1   :  { %v7066_v49 = vpop.permute.xlu2 %7065  ;;  %v13471_v7 = vpop.permute.xlu0 %6131 }
 0x6c2   :  { %7113 = vst.msk [vmem:[#allocation4 + $0x18] sm:$0xff] %vm6727_vm11, %v7066_v49 }
 0x6c5   :  { %6171 = vperm.xlu2 %8862, %v13474_v40  }
 0x6c6   :  { %5916 = vperm.xlu0 %8861, %v13413_v62   ;;  %v7260_v62 = vld [vmem:[#allocation6 + $0x98] sm:$0xff] }
 0x6c7   :  { %6942 = vrot.lane.b32.xlu1 %v14670_v38, %s9008_s17  ;;  %7442 = vmatpush.msra.mxu1 %v7260_v62  ;;  %v13533_v38 = vld [vmem:[%s14053_s1 + $0x5] ss:$0 sm:$0xff]  ;;  %v14677_v62 = vld [vmem:[#allocation66_spill] sm:$0xff] }
 0x6c9   :  { %v6694_v44 = vpop.permute.xlu1 %6693  ;;  %v7068_v31 = vpop.permute.xlu2 %7067  ;;  %v7164_v39 = vld [vmem:[#allocation4 + $0x18] sm:$0xff]  ;;  %7443 = vmatpush.msra.mxu1 %v7259_v5  ;;  %v13544_v5 = vld [vmem:[%s14053_s1 + $0x6] ss:$0 sm:$0xff] }
 0x6ca   :  { %6735 = vst.msk [vmem:[#allocation4 + $0x118] sm:$0xff] %vm6727_vm11, %v6694_v44  ;;  %v13481_v51 = vpop.permute.xlu0 %6016  ;;  %7576 = vmatmul.f32.vlgmr.msra.gmra.mxu3 %v7164_v39  ;;  %v5803_v44 = vmul.f32 %v13533_v38, %v13362_v35  ;;  %v5583_v39 = vld [vmem:[#allocation2 + $0x319] sm:$0xff]  ;;  %v5937_v33 = vmul.f32 %v13544_v5, %v13422_v53 }
 0x6cb   :  { %7114 = vst.msk [vmem:[#allocation4 + $0x40] sm:$0xff] %vm6727_vm11, %v7068_v31  ;;  %7444 = vmatpush.msra.mxu1 %v7258_v13 }
 0x6cd   :  { %6046 = vperm.xlu2 %8862, %v13484_v21   ;;  %7445 = vmatpush.msra.mxu1 %v7257_v24 }
 0x6ce   :  { %6181 = vperm.xlu0 %8861, %v6106_v3   ;;  %v5155_v3 = vmul.f32 %v13502_v19, %v14676_v42 }
 0x6cf   :  { %6944 = vrot.lane.b32.xlu1 %v14671_v56, %s9008_s17  ;;  %v5415_v56 = vmul.f32 %v13509_v58, %v14677_v62  ;;  %v5804_v62 = vmul.f32 %v13533_v38, %v13390_v14 }
 0x6d1   :  { %v5481_v36 = vpop.permute.xlu1 %5480  ;;  %v7196_v30 = vld [vmem:[#allocation4 + $0x118] sm:$0xff]  ;;  %v7070_v32 = vpop.permute.xlu2 %7069 }
 0x6d2   :  { %7402 = vmatmul.f32.gmra.mxu0 %v7196_v30  ;;  %7115 = vst.msk [vmem:[#allocation4 + $0x68] sm:$0xff] %vm6727_vm11, %v7070_v32  ;;  %v6704_v47 = vpop.permute.xlu0 %6703  ;;  %v7169_v28 = vld [vmem:[#allocation4 + $0x40] sm:$0xff]  ;;  %v5543_v63 = vmul.f32 %v13516_v37, %v5481_v36  ;;  %v5934_v36 = vmul.f32 %v13544_v5, %v13444_v10 }
 0x6d3   :  { %6740 = vst.msk [vmem:[#allocation4 + $0x1e0] sm:$0xff] %vm6727_vm11, %v6704_v47  ;;  %7579 = vmatmul.f32.gmra.mxu3 %v7169_v28 }
 0x6d4   :  { %v5559_v49 = vadd.f32 %v5543_v63, %v5428_v15  ;;  %v5162_v63 = vmul.f32 %v13502_v19, %v14679_v48  ;;  %v14680_v15 = vld [vmem:[#allocation69_spill] sm:$0xff]  ;;  %v14683_v48 = vld [vmem:[#allocation62_spill] sm:$0xff] }
 0x6d5   :  { %6176 = vperm.xlu2 %8862, %v13460_v26   ;;  %v14675_v26 = vld [vmem:[#allocation52_spill] sm:$0xff] }
 0x6d6   :  { %6056 = vperm.xlu0 %8861, %v5977_v41   ;;  %v5285_v55 = vmul.f32 %v13493_v43, %v14675_v26  ;;  %v5454_v41 = vld [vmem:[#allocation2 + $0x320] sm:$0xff] }
 0x6d7   :  { %5520 = vperm.xlu1 %8863, %v5453_v11  }
 0x6d8   :  { %v5301_v35 = vadd.f32 %v5285_v55, %v5155_v3  ;;  %v7211_v55 = vld [vmem:[#allocation4 + $0x190] sm:$0xff] }
 0x6d9   :  { %v5611_v4 = vpop.permute.xlu1 %5610  ;;  %v7072_v8 = vpop.permute.xlu2 %7071  ;;  %v7174_v61 = vld [vmem:[#allocation4 + $0x68] sm:$0xff] }
 0x6da   :  { %v5673_v50 = vmul.f32 %v13523_v6, %v5611_v4  ;;  %7405 = vmatmul.f32.gmra.mxu0 %v7201_v29  ;;  %7116 = vst.msk [vmem:[#allocation4 + $0x90] sm:$0xff] %vm6727_vm11, %v7072_v8  ;;  %v6937_v12 = vpop.permute.xlu0 %6936  ;;  %v5431_v28 = vadd.f32 %v5415_v56, %v5301_v35  ;;  %v5422_v4 = vmul.f32 %v13509_v58, %v14680_v15  ;;  %v13582_v56 = vld [vmem:[%s14053_s1 + $0x8] ss:$0 sm:$0xff] }
 0x6db   :  { %6984 = vst.msk [vmem:[#allocation4 + $0x10] sm:$0xff] %vm6727_vm11, %v6937_v12  ;;  %7582 = vmatmul.f32.gmra.mxu3 %v7174_v61  ;;  %v5806_v29 = vmul.f32 %v13533_v38, %v13458_v0  ;;  %v7041_v61 = vld [vmem:[#allocation3 + $0xc1] sm:$0xff] }
 0x6dc   :  { %v5689_v31 = vadd.f32 %v5673_v50, %v5559_v49  ;;  %v5308_v49 = vadd.f32 %v5292_v57, %v5162_v63  ;;  %v5423_v63 = vmul.f32 %v13509_v58, %v14683_v48 }
 0x6dd   :  { %7079 = vrot.lane.b32.xlu2 %v7040_v60, %s9008_s17 }
 0x6de   :  { %v5819_v30 = vadd.f32 %v5803_v44, %v5689_v31  ;;  %6186 = vperm.xlu0 %8861, %v6107_v20   ;;  %v5438_v12 = vadd.f32 %v5422_v4, %v5308_v49 }
 0x6df   :  { %5650 = vperm.xlu1 %8863, %v5583_v39   ;;  %v13570_v39 = vld [vmem:[%s14053_s1 + $0x7] ss:$0 sm:$0xff] }
 0x6e0   :  { %v13549_v32 = vadd.f32 %v5934_v36, %v5819_v30  ;;  %v6067_v0 = vmul.f32 %v13570_v39, %v13481_v51  ;;  %v6197_v51 = vmul.f32 %v13582_v56, %v13456_v54 }
 0x6e1   :  { %v5496_v13 = vpop.permute.xlu1 %5495  ;;  %v7074_v1 = vpop.permute.xlu2 %7073  ;;  %v7179_v47 = vld [vmem:[#allocation4 + $0x90] sm:$0xff] }
 0x6e2   :  { %v5546_v24 = vmul.f32 %v13516_v37, %v5496_v13  ;;  %7408 = vmatmul.f32.gmra.mxu0 %v7206_v27  ;;  %7117 = vst.msk [vmem:[#allocation4 + $0xb8] sm:$0xff] %vm6727_vm11, %v7074_v1  ;;  %v6809_v46 = vpop.permute.xlu0 %6808  ;;  %v7163_v10 = vld [vmem:[#allocation4 + $0x10] sm:$0xff] }
 0x6e3   :  { %6856 = vst.msk [vmem:[#allocation4 + $0x8] sm:$0xff] %vm6727_vm11, %v6809_v46  ;;  %7511 = vmatmul.f32.vlgmr.msra.gmra.mxu2 %v7163_v10  ;;  %7585 = vmatmul.f32.gmra.mxu3 %v7179_v47  ;;  %v7042_v13 = vld [vmem:[#allocation3 + $0xd1] sm:$0xff] }
 0x6e4   :  { %v5562_v11 = vadd.f32 %v5546_v24, %v5431_v28  ;;  %v7216_v47 = vld [vmem:[#allocation4 + $0x1b8] sm:$0xff] }
 0x6e5   :  { %7081 = vrot.lane.b32.xlu2 %v7041_v61, %s9008_s17 }
 0x6e6   :  { %v5692_v8 = vadd.f32 %v5676_v17, %v5562_v11  ;;  %v14682_v11 = vld [vmem:[#allocation54_spill] sm:$0xff] }
 0x6e7   :  { %5525 = vperm.xlu1 %8863, %v5454_v41   ;;  %v5163_v41 = vmul.f32 %v13502_v19, %v14682_v11  ;;  %v7310_v11 = vld [vmem:[#allocation6 + $0x228] sm:$0xff] }
 0x6e8   :  { %v5822_v50 = vadd.f32 %v5806_v29, %v5692_v8  ;;  %v7221_v8 = vld [vmem:[#allocation4 + $0x1e0] sm:$0xff] }
 0x6e9   :  { %v5616_v26 = vpop.permute.xlu1 %5615  ;;  %v5531_v44 = vpop.permute.xlu2 %5530  ;;  %v7184_v31 = vld [vmem:[#allocation4 + $0xb8] sm:$0xff] }
 0x6ea   :  { %v5953_v60 = vadd.f32 %v5937_v33, %v5822_v50  ;;  %v5674_v20 = vmul.f32 %v13523_v6, %v5616_v26  ;;  %7411 = vmatmul.f32.gmra.mxu0 %v7211_v55  ;;  %v5553_v53 = vmul.f32 %v13516_v37, %v5531_v44  ;;  %v6811_v42 = vpop.permute.xlu0 %6810  ;;  %v7162_v3 = vld [vmem:[#allocation4 + $0x8] sm:$0xff] }
 0x6eb   :  { %6857 = vst.msk [vmem:[#allocation4 + $0x30] sm:$0xff] %vm6727_vm11, %v6811_v42  ;;  %7446 = vmatmul.f32.vlgmr.msra.gmra.mxu1 %v7162_v3  ;;  %7588 = vmatmul.f32.gmra.mxu3 %v7184_v31  ;;  %v5714_v26 = vld [vmem:[#allocation2 + $0x322] sm:$0xff] }
 0x6ec   :  { %v6083_v36 = vadd.f32 %v6067_v0, %v5953_v60  ;;  %v5690_v30 = vadd.f32 %v5674_v20, %v13411_v45  ;;  %v5569_v35 = vadd.f32 %v5553_v53, %v5438_v12  ;;  %v14681_v45 = vld [vmem:[#allocation63_spill] sm:$0xff] }
 0x6ed   :  { %7083 = vrot.lane.b32.xlu2 %v7042_v13, %s9008_s17  ;;  %v5293_v22 = vmul.f32 %v13493_v43, %v14681_v45  ;;  %v5976_v53 = vld [vmem:[#allocation2 + $0x349] sm:$0xff]  ;;  %v7045_v42 = vld [vmem:[#allocation3 + $0x101] sm:$0xff] }
 0x6ee   :  { %v5820_v27 = vadd.f32 %v5804_v62, %v5690_v30  ;;  %v13587_v1 = vadd.f32 %v6197_v51, %v6083_v36 }
 0x6ef   :  { %5790 = vperm.xlu1 %8863, %v13474_v40   ;;  %v6066_v40 = vmul.f32 %v13570_v39, %v13405_v9  ;;  %v5309_v4 = vadd.f32 %v5293_v22, %v5163_v41 }
 0x6f1   :  { %v5882_v14 = vpop.permute.xlu1 %5881  ;;  %v5661_v28 = vpop.permute.xlu2 %5660  ;;  %v5439_v61 = vadd.f32 %v5423_v63, %v5309_v4 }
 0x6f2   :  { %v5936_v24 = vmul.f32 %v13544_v5, %v5882_v14  ;;  %7414 = vmatmul.f32.gmra.mxu0 %v7216_v47  ;;  %v5683_v54 = vmul.f32 %v13523_v6, %v5661_v28  ;;  %v6813_v46 = vpop.permute.xlu0 %6812  ;;  %v7167_v10 = vld [vmem:[#allocation4 + $0x30] sm:$0xff] }
 0x6f3   :  { %6858 = vst.msk [vmem:[#allocation4 + $0x58] sm:$0xff] %vm6727_vm11, %v6813_v46  ;;  %7449 = vmatmul.f32.gmra.mxu1 %v7167_v10 }
 0x6f4   :  { %v5952_v57 = vadd.f32 %v5936_v24, %v13426_v18  ;;  %v13599_v17 = vadd.f32 %v5683_v54, %v5569_v35  ;;  %v7312_v24 = vld [vmem:[#allocation6 + $0x238] sm:$0xff]  ;;  %v7311_v54 = vld [vmem:[#allocation6 + $0x230] sm:$0xff] }
 0x6f5   :  { %7085 = vrot.lane.b32.xlu2 %v13282_v2, %s9008_s17  ;;  %7633 = vmatpush.msrb.mxu0 %v7312_v24 }
 0x6f6   :  { %v6082_v15 = vadd.f32 %v6066_v40, %v5952_v57 }
 0x6f7   :  { %5665 = vperm.xlu1 %8863, %v13484_v21   ;;  %v6194_v21 = vmul.f32 %v13582_v56, %v13471_v7  ;;  %v6065_v7 = vmul.f32 %v13570_v39, %v13442_v52  ;;  %v13631_v52 = vld [vmem:[%s14054_s2] ss:$0 sm:$0xff]  ;;  %7634 = vmatpush.msrb.mxu0 %v7311_v54 }
 0x6f9   :  { %v6002_v29 = vpop.permute.xlu1 %6001  ;;  %v5536_v9 = vpop.permute.xlu2 %5535  ;;  %7635 = vmatpush.msrb.mxu0 %v7310_v11 }
 0x6fa   :  { %v6064_v18 = vmul.f32 %v13570_v39, %v6002_v29  ;;  %7417 = vmatmul.f32.gmra.mxu0 %v7221_v8  ;;  %v5554_v49 = vmul.f32 %v13516_v37, %v5536_v9  ;;  %v6815_v33 = vpop.permute.xlu0 %6814  ;;  %v7172_v50 = vld [vmem:[#allocation4 + $0x58] sm:$0xff] }
 0x6fb   :  { %6859 = vst.msk [vmem:[#allocation4 + $0x80] sm:$0xff] %vm6727_vm11, %v6815_v33  ;;  %7452 = vmatmul.f32.gmra.mxu1 %v7172_v50 }
 0x6fc   :  { %v6080_v2 = vadd.f32 %v6064_v18, %v13549_v32  ;;  %v13614_v12 = vadd.f32 %v5554_v49, %v5439_v61  ;;  %v6233_v18 = vadd.f32 %v13631_v52, %v13587_v1  ;;  %v7308_v49 = vld [vmem:[#allocation6 + $0x218] sm:$0xff] }
 0x6fd   :  { %7087 = vrot.lane.b32.xlu2 %v13428_v23, %s9008_s17 }
 0x6fe   :  { %v6210_v55 = vadd.f32 %v6194_v21, %v6080_v2 }
 0x6ff   :  { %5785 = vperm.xlu1 %8863, %v5714_v26  }
 0x700   :  { %v6230_v35 = vadd.f32 %v13631_v52, %v6210_v55  ;;  %v7307_v55 = vld [vmem:[#allocation6 + $0x210] sm:$0xff] }
 0x701   :  { %v5877_v44 = vpop.permute.xlu1 %5876  ;;  %v6819_v31 = vpop.permute.xlu2 %6818 }
 0x702   :  { %v5935_v0 = vmul.f32 %v13544_v5, %v5877_v44  ;;  %6861 = vst.msk [vmem:[#allocation4 + $0xd0] sm:$0xff] %vm6727_vm11, %v6819_v31  ;;  %v6817_v60 = vpop.permute.xlu0 %6816  ;;  %v7177_v20 = vld [vmem:[#allocation4 + $0x80] sm:$0xff]  ;;  %v6246_v47 = vmax.f32 %v6230_v35, 0.0 }
 0x703   :  { %6860 = vst.msk [vmem:[#allocation4 + $0xa8] sm:$0xff] %vm6727_vm11, %v6817_v60  ;;  %7455 = vmatmul.f32.gmra.mxu1 %v7177_v20  ;;  %v7305_v35 = vld [vmem:[#allocation6 + $0x200] sm:$0xff] }
 0x704   :  { %v5951_v32 = vadd.f32 %v5935_v0, %v5820_v27  ;;  %v5847_v27 = vld [vmem:[#allocation2 + $0x350] sm:$0xff] }
 0x705   :  { %7089 = vrot.lane.b32.xlu2 %v7045_v42, %s9008_s17  ;;  %v7306_v42 = vld [vmem:[#allocation6 + $0x208] sm:$0xff] }
 0x706   :  { %v6081_v3 = vadd.f32 %v6065_v7, %v5951_v32 }
 0x707   :  { %6051 = vperm.xlu1 %8863, %v5976_v53   ;;  %v6249_v53 = vmax.f32 %v6233_v18, 0.0 }
 0x709   :  { %v6142_v23 = vpop.permute.xlu1 %6141  ;;  %v13624_v62 = vpop.permute.xlu2 %5911  ;;  %v7187_v57 = vld [vmem:[#allocation4 + $0xd0] sm:$0xff] }
 0x70a   :  { %v6196_v51 = vmul.f32 %v13582_v56, %v6142_v23  ;;  %v6947_v36 = vpop.permute.xlu0 %6946  ;;  %v7182_v30 = vld [vmem:[#allocation4 + $0xa8] sm:$0xff] }
 0x70b   :  { %6989 = vst.msk [vmem:[#allocation4 + $0xd8] sm:$0xff] %vm6727_vm11, %v6947_v36  ;;  %7458 = vmatmul.f32.gmra.mxu1 %v7182_v30 }
 0x70c   :  { %v6212_v13 = vadd.f32 %v6196_v51, %v6082_v15  ;;  %v7309_v15 = vld [vmem:[#allocation6 + $0x220] sm:$0xff] }
 0x70d   :  { %7091 = vrot.lane.b32.xlu2 %v13451_v59, %s9008_s17  ;;  %7636 = vmatpush.msrb.mxu0 %v7309_v15 }
 0x70e   :  { %v6232_v14 = vadd.f32 %v13631_v52, %v6212_v13 }
 0x70f   :  { %5926 = vperm.xlu1 %8863, %v5847_v27   ;;  %7637 = vmatpush.msrb.mxu0 %v7308_v49 }
 0x710   :  { %v6248_v28 = vmax.f32 %v6232_v14, 0.0 }
 0x711   :  { %v6137_v46 = vpop.permute.xlu1 %6136  ;;  %v13637_v10 = vpop.permute.xlu2 %5795  ;;  %7638 = vmatpush.msrb.mxu0 %v7307_v55 }
 0x712   :  { %v6260_v45 = vmax.f32 %v6246_v47, %v6248_v28  ;;  %v6195_v22 = vmul.f32 %v13582_v56, %v6137_v46  ;;  %v7076_v40 = vpop.permute.xlu0 %7075 }
 0x713   :  { %7118 = vst.msk [vmem:[#allocation4 + $0xe0] sm:$0xff] %vm6727_vm11, %v7076_v40  ;;  %7461 = vmatmul.f32.gmra.mxu1 %v7187_v57  ;;  %7639 = vmatpush.msrb.mxu0 %v7306_v42 }
 0x714   :  { %v6280_v41 = vrot.slane %v6260_v45, 2  ;;  %v6281_v59 = vrot.slane %v6260_v45, 4  ;;  %v6282_v48 = vrot.slane %v6260_v45, 6  ;;  %v6378_v63 = vsel %vm306_vm2, %v6260_v45, -inf }
 0x715   :  { %v6379_v4 = vrot.slane %v6378_v63, 4  ;;  %v6211_v29 = vadd.f32 %v6195_v22, %v6081_v3  ;;  %v7008_v3 = vld [vmem:[#allocation3 + $0x90] sm:$0xff]  ;;  %7640 = vmatpush.msrb.mxu0 %v7305_v35 }
 0x716   :  { %v6385_v8 = vsel %vm306_vm2, %v6280_v41, -inf  ;;  %v6392_v9 = vsel %vm306_vm2, %v6281_v59, -inf  ;;  %v6399_v61 = vsel %vm306_vm2, %v6282_v48, -inf  ;;  %7024 = vst.msk [vmem:[#allocation4 + $0x130] sm:$0xff] %vm304_vm10, %v7008_v3 }
 0x717   :  { %v6380_v33 = vmax.f32 %v6378_v63, %v6379_v4  ;;  %v6386_v50 = vrot.slane %v6385_v8, 4  ;;  %v6393_v21 = vrot.slane %v6392_v9, 4  ;;  %v6400_v2 = vrot.slane %v6399_v61, 4 }
 0x718   :  { %v6231_v26 = vadd.f32 %v13631_v52, %v6211_v29 }
 0x719   :  { %v6381_v44 = vrot.slane %v6380_v33, 2  ;;  %v6387_v31 = vmax.f32 %v6385_v8, %v6386_v50  ;;  %v6394_v0 = vmax.f32 %v6392_v9, %v6393_v21  ;;  %v6401_v60 = vmax.f32 %v6399_v61, %v6400_v2  ;;  %v6706_v20 = vpop.permute.xlu1 %6705  ;;  %v6949_v7 = vpop.permute.xlu2 %6948 }
 0x71a   :  { %v6247_v32 = vmax.f32 %v6231_v26, 0.0  ;;  %6741 = vst.msk [vmem:[#allocation4 + $0x208] sm:$0xff] %vm6727_vm11, %v6706_v20  ;;  %v7189_v1 = vld [vmem:[#allocation4 + $0xe0] sm:$0xff] }
 0x71b   :  { %v6382_v23 = vmax.f32 %v6380_v33, %v6381_v44  ;;  %v6388_v51 = vrot.slane %v6387_v31, 2  ;;  %v6395_v36 = vrot.slane %v6394_v0, 2  ;;  %6990 = vst.msk [vmem:[#allocation4 + $0x100] sm:$0xff] %vm6727_vm11, %v6949_v7  ;;  %7591 = vmatmul.f32.gmra.mxu3 %v7189_v1  ;;  %v6402_v14 = vrot.slane %v6401_v60, 2  ;;  %v13658_v33 = vpop.f32.mrf.mxu0 }
 0x71c   :  { %v6261_v30 = vmax.f32 %v6247_v32, %v6249_v53 }
 0x71d   :  { %v6389_v13 = vmax.f32 %v6387_v31, %v6388_v51  ;;  %v6396_v27 = vmax.f32 %v6394_v0, %v6395_v36  ;;  %v6383_v46 = vrot.slane %v6382_v23, 1  ;;  %v6403_v48 = vmax.f32 %v6401_v60, %v6402_v14  ;;  %v7231_v36 = vld [vmem:[#allocation4 + $0x230] sm:$0xff] }
 0x71e   :  { %v6283_v47 = vrot.slane %v6261_v30, 2  ;;  %v6284_v28 = vrot.slane %v6261_v30, 4  ;;  %v6285_v24 = vrot.slane %v6261_v30, 6  ;;  %v6406_v54 = vsel %vm306_vm2, %v6261_v30, -inf }
 0x71f   :  { %v6390_v45 = vrot.slane %v6389_v13, 1  ;;  %v6397_v22 = vrot.slane %v6396_v27, 1  ;;  %v6407_v40 = vrot.slane %v6406_v54, 4  ;;  %v6384_v18 = vmax.f32 %v6382_v23, %v6383_v46 }
 0x720   :  { %v6413_v57 = vsel %vm306_vm2, %v6283_v47, -inf  ;;  %v6420_v11 = vsel %vm306_vm2, %v6284_v28, -inf  ;;  %v6427_v41 = vsel %vm306_vm2, %v6285_v24, -inf  ;;  %v6404_v55 = vrot.slane %v6403_v48, 1 }
 0x721   :  { %v6391_v59 = vmax.f32 %v6389_v13, %v6390_v45  ;;  %v6414_v63 = vrot.slane %v6413_v57, 4  ;;  %v6710_v15 = vpop.permute.xlu1 %6709  ;;  %v7226_v4 = vld [vmem:[#allocation4 + $0x208] sm:$0xff]  ;;  %v13655_v29 = vpop.permute.xlu2 %6171  ;;  %v6408_v8 = vmax.f32 %v6406_v54, %v6407_v40  ;;  %v6421_v9 = vrot.slane %v6420_v11, 4 }
 0x722   :  { %v6428_v61 = vrot.slane %v6427_v41, 4  ;;  %6743 = vst.msk [vmem:[#allocation4 + $0x258] sm:$0xff] %vm6727_vm11, %v6710_v15  ;;  %7420 = vmatmul.f32.gmra.mxu0 %v7226_v4  ;;  %v6398_v50 = vmax.f32 %v6396_v27, %v6397_v22  ;;  %v6405_v3 = vmax.f32 %v6403_v48, %v6404_v55  ;;  %v5781_v48 = vpop.permute.xlu0 %5780  ;;  %v7170_v55 = vld [vmem:[#allocation4 + $0x48] sm:$0xff] }
 0x723   :  { %v6415_v49 = vmax.f32 %v6413_v57, %v6414_v63  ;;  %v6409_v21 = vrot.slane %v6408_v8, 2  ;;  %v6422_v2 = vmax.f32 %v6420_v11, %v6421_v9  ;;  %v6585_v44 = vsel %vm1873_vm3, %v6391_v59, %v6384_v18  ;;  %v13668_v45 = vpop.f32.mrf.mxu0  ;;  %v7165_v18 = vld [vmem:[#allocation4 + $0x20] sm:$0xff] }
 0x724   :  { %v6429_v26 = vmax.f32 %v6427_v41, %v6428_v61  ;;  %v6586_v32 = vsel %vm1875_vm4, %v6398_v50, %v6585_v44  ;;  %v6784_v50 = vld [vmem:[#allocation3 + $0xb0] sm:$0xff] }
 0x725   :  { %v6416_v31 = vrot.slane %v6415_v49, 2  ;;  %v6410_v0 = vmax.f32 %v6408_v8, %v6409_v21  ;;  %v6423_v60 = vrot.slane %v6422_v2, 2  ;;  %v6587_v14 = vsel %vm1877_vm5, %v6405_v3, %v6586_v32  ;;  %v14685_v32 = vld [vmem:[#allocation60_spill] sm:$0xff] }
 0x726   :  { %v6430_v20 = vrot.slane %v6429_v26, 2 }
 0x727   :  { %v6417_v7 = vmax.f32 %v6415_v49, %v6416_v31  ;;  %v6411_v53 = vrot.slane %v6410_v0, 1  ;;  %v6424_v1 = vmax.f32 %v6422_v2, %v6423_v60 }
 0x728   :  { %v6431_v42 = vmax.f32 %v6429_v26, %v6430_v20  ;;  %v7175_v20 = vld [vmem:[#allocation4 + $0x70] sm:$0xff] }
 0x729   :  { %v6418_v23 = vrot.slane %v6417_v7, 1  ;;  %v6939_v51 = vpop.permute.xlu1 %6938  ;;  %v13662_v30 = vpop.permute.xlu2 %6046  ;;  %v6412_v35 = vmax.f32 %v6410_v0, %v6411_v53  ;;  %v6425_v13 = vrot.slane %v6424_v1, 1  ;;  %v7236_v11 = vld [vmem:[#allocation4 + $0x258] sm:$0xff]  ;;  %v5290_v53 = vmul.f32 %v13493_v43, %v14685_v32 }
 0x72a   :  { %v6432_v27 = vrot.slane %v6431_v42, 1  ;;  %6985 = vst.msk [vmem:[#allocation4 + $0x38] sm:$0xff] %vm6727_vm11, %v6939_v51  ;;  %7423 = vmatmul.f32.gmra.mxu0 %v7231_v36  ;;  %v13686_v21 = vpop.permute.xlu0 %5655  ;;  %v14684_v0 = vld [vmem:[#allocation30_spill] sm:$0xff] }
 0x72b   :  { %v6419_v47 = vmax.f32 %v6417_v7, %v6418_v23  ;;  %v6426_v28 = vmax.f32 %v6424_v1, %v6425_v13  ;;  %v6588_v24 = vsel %vm1879_vm6, %v6412_v35, %v6587_v14  ;;  %v13676_v8 = vpop.f32.mrf.mxu0  ;;  %v14687_v23 = vld [vmem:[#allocation67_spill] sm:$0xff]  ;;  %v14688_v14 = vld [vmem:[#allocation26_spill] sm:$0xff] }
 0x72c   :  { %v6433_v54 = vmax.f32 %v6431_v42, %v6432_v27  ;;  %v14686_v42 = vld [vmem:[#allocation48_spill] sm:$0xff]  ;;  %v5420_v51 = vmul.f32 %v13509_v58, %v14687_v23 }
 0x72d   :  { %v6589_v46 = vsel %vm1881_vm7, %v6419_v47, %v6588_v24  ;;  %v5160_v3 = vmul.f32 %v13502_v19, %v14686_v42  ;;  %v14689_v47 = vld [vmem:[#allocation38_spill] sm:$0xff]  ;;  %v14694_v42 = vld [vmem:[#allocation56_spill] sm:$0xff] }
 0x72e   :  { %v6590_v22 = vsel %vm1883_vm8, %v6426_v28, %v6589_v46  ;;  %v7188_v24 = vld [vmem:[#allocation4 + $0xd8] sm:$0xff] }
 0x72f   :  { %v6591_v40 = vsel %vm1885_vm9, %v6433_v54, %v6590_v22  ;;  %v5306_v35 = vadd.f32 %v5290_v53, %v5160_v3  ;;  %v7180_v54 = vld [vmem:[#allocation4 + $0x98] sm:$0xff]  ;;  %v5291_v3 = vmul.f32 %v13493_v43, %v14694_v42 }
 0x730   :  { %6612 = vst.msk [vmem:[#allocation3 + $0x81] sm:$0xff] %vm304_vm10, %v6591_v40 }
 0x731   :  { %v6941_v57 = vpop.permute.xlu1 %6940  ;;  %v7168_v41 = vld [vmem:[#allocation4 + $0x38] sm:$0xff]  ;;  %v13673_v59 = vpop.permute.xlu2 %6176  ;;  %v5436_v27 = vadd.f32 %v5420_v51, %v5306_v35  ;;  %v14695_v51 = vld [vmem:[#allocation51_spill] sm:$0xff] }
 0x732   :  { %6986 = vst.msk [vmem:[#allocation4 + $0x60] sm:$0xff] %vm6727_vm11, %v6941_v57  ;;  %7426 = vmatmul.f32.gmra.mxu0 %v7236_v11  ;;  %7514 = vmatmul.f32.gmra.mxu2 %v7168_v41  ;;  %v13703_v1 = vpop.permute.xlu0 %5921  ;;  %v5811_v57 = vmul.f32 %v13533_v38, %v5781_v48  ;;  %v7185_v48 = vld [vmem:[#allocation4 + $0xc0] sm:$0xff]  ;;  %v5161_v35 = vmul.f32 %v13502_v19, %v14695_v51 }
 0x733   :  { %v13693_v31 = vpop.f32.mrf.mxu0 }
 0x737   :  { %v7039_v63 = vld [vmem:[#allocation3 + $0x81] sm:$0xff] }
 0x738   :  { %v6783_v15 = vld [vmem:[#allocation3 + $0x80] sm:$0xff]  ;;  %7077 = vrot.lane.b32.xlu1 %v7039_v63, %s9008_s17  ;;  %6895 = vst.msk [vmem:[#allocation4 + $0x128] sm:$0xff] %vm304_vm10, %v7039_v63 }
 0x739   :  { %v6911_v4 = vld [vmem:[#allocation3 + $0x82] sm:$0xff]  ;;  %6822 = vrot.lane.b32.xlu0 %v6783_v15, %s9008_s17  ;;  %v6943_v9 = vpop.permute.xlu1 %6942  ;;  %v7080_v49 = vpop.permute.xlu2 %7079  ;;  %7023 = vst.msk [vmem:[#allocation4 + $0x108] sm:$0xff] %vm304_vm10, %v6783_v15  ;;  %v5942_v15 = vmul.f32 %v13544_v5, %v13624_v62 }
 0x73a   :  { %7151 = vst.msk [vmem:[#allocation4 + $0x110] sm:$0xff] %vm304_vm10, %v6911_v4  ;;  %v7173_v61 = vld [vmem:[#allocation4 + $0x60] sm:$0xff]  ;;  %8837 = vmatmul.msk.f32.vlgmr.msrb.gmra.mxu0 %vm304_vm10, %v7165_v18  ;;  %v6042_v63 = vpop.permute.xlu0 %6041 }
 0x73b   :  { %6987 = vst.msk [vmem:[#allocation4 + $0x88] sm:$0xff] %vm6727_vm11, %v6943_v9  ;;  %7517 = vmatmul.f32.gmra.mxu2 %v7173_v61  ;;  %v13709_v36 = vpop.f32.mrf.mxu0  ;;  %v6072_v9 = vmul.f32 %v13570_v39, %v6042_v63  ;;  %v14690_v18 = vld [vmem:[#allocation31_spill] sm:$0xff] }
 0x73c   :  { %7120 = vst.msk [vmem:[#allocation4 + $0x130] sm:$0xff] %vm6727_vm11, %v7080_v49  ;;  %v14691_v49 = vld [vmem:[#allocation44_spill] sm:$0xff] }
 0x740   :  { %6820 = vrot.lane.b32.xlu1 %v13268_v25, %s9008_s17 }
 0x741   :  { %6824 = vrot.lane.b32.xlu0 %v6784_v50, %s9008_s17  ;;  %v6945_v2 = vpop.permute.xlu1 %6944  ;;  %v7082_v44 = vpop.permute.xlu2 %7081 }
 0x742   :  { %v7178_v26 = vld [vmem:[#allocation4 + $0x88] sm:$0xff]  ;;  %6988 = vst.msk [vmem:[#allocation4 + $0xb0] sm:$0xff] %vm6727_vm11, %v6945_v2  ;;  %8838 = vmatmul.msk.f32.gmra.mxu0 %vm304_vm10, %v7170_v55  ;;  %v7193_v2 = vld [vmem:[#allocation4 + $0x100] sm:$0xff]  ;;  %v6202_v55 = vmul.f32 %v13582_v56, %v13655_v29  ;;  %v5917_v23 = vpop.permute.xlu0 %5916 }
 0x743   :  { %7520 = vmatmul.f32.gmra.mxu2 %v7178_v26  ;;  %7121 = vst.msk [vmem:[#allocation4 + $0x158] sm:$0xff] %vm6727_vm11, %v7082_v44  ;;  %v13720_v41 = vpop.f32.mrf.mxu0  ;;  %v7190_v29 = vld [vmem:[#allocation4 + $0xe8] sm:$0xff] }
 0x748   :  { %6950 = vrot.lane.b32.xlu1 %v6911_v4, %s9008_s17 }
 0x749   :  { %6826 = vrot.lane.b32.xlu0 %v14684_v0, %s9008_s17  ;;  %v5521_v25 = vpop.permute.xlu1 %5520  ;;  %v7183_v60 = vld [vmem:[#allocation4 + $0xb0] sm:$0xff]  ;;  %v7084_v7 = vpop.permute.xlu2 %7083 }
 0x74a   :  { %8839 = vmatmul.msk.f32.gmra.mxu0 %vm304_vm10, %v7175_v20  ;;  %7122 = vst.msk [vmem:[#allocation4 + $0x180] sm:$0xff] %vm6727_vm11, %v7084_v7  ;;  %v5551_v13 = vmul.f32 %v13516_v37, %v5521_v25  ;;  %v7136_v25 = vld [vmem:[#allocation3 + $0x92] sm:$0xff]  ;;  %v14693_v20 = vld [vmem:[#allocation47_spill] sm:$0xff] }
 0x74b   :  { %7523 = vmatmul.f32.gmra.mxu2 %v7183_v60  ;;  %v13733_v0 = vpop.f32.mrf.mxu0  ;;  %7152 = vst.msk [vmem:[#allocation4 + $0x138] sm:$0xff] %vm304_vm10, %v7136_v25  ;;  %v14692_v60 = vld [vmem:[#allocation40_spill] sm:$0xff]  ;;  %v7205_v25 = vld [vmem:[#allocation4 + $0x160] sm:$0xff] }
 0x74c   :  { %v5567_v22 = vadd.f32 %v5551_v13, %v5436_v27  ;;  %v14696_v13 = vld [vmem:[#allocation68_spill] sm:$0xff] }
 0x74d   :  { %v5421_v27 = vmul.f32 %v13509_v58, %v14696_v13  ;;  %v5814_v58 = vmul.f32 %v13533_v38, %v13637_v10 }
 0x750   :  { %6952 = vrot.lane.b32.xlu1 %v14688_v14, %s9008_s17  ;;  %v14697_v14 = vld [vmem:[#allocation49_spill] sm:$0xff] }
 0x751   :  { %6828 = vrot.lane.b32.xlu0 %v14689_v47, %s9008_s17  ;;  %v5651_v28 = vpop.permute.xlu1 %5650  ;;  %v7086_v46 = vpop.permute.xlu2 %7085  ;;  %v14698_v47 = vld [vmem:[#allocation58_spill] sm:$0xff] }
 0x752   :  { %v5681_v40 = vmul.f32 %v13523_v6, %v5651_v28  ;;  %8840 = vmatmul.msk.f32.gmra.mxu0 %vm304_vm10, %v7180_v54  ;;  %7123 = vst.msk [vmem:[#allocation4 + $0x1a8] sm:$0xff] %vm6727_vm11, %v7086_v46  ;;  %v5307_v46 = vadd.f32 %v5291_v3, %v5161_v35  ;;  %v7210_v3 = vld [vmem:[#allocation4 + $0x188] sm:$0xff] }
 0x753   :  { %7526 = vmatmul.f32.gmra.mxu2 %v7188_v24  ;;  %v13742_v53 = vpop.f32.mrf.mxu0  ;;  %v7195_v24 = vld [vmem:[#allocation4 + $0x110] sm:$0xff] }
 0x754   :  { %v5697_v11 = vadd.f32 %v5681_v40, %v5567_v22  ;;  %v5437_v19 = vadd.f32 %v5421_v27, %v5307_v46 }
 0x756   :  { %v5827_v4 = vadd.f32 %v5811_v57, %v5697_v11 }
 0x758   :  { %v5958_v61 = vadd.f32 %v5942_v15, %v5827_v4  ;;  %6954 = vrot.lane.b32.xlu1 %v14690_v18, %s9008_s17  ;;  %v7200_v15 = vld [vmem:[#allocation4 + $0x138] sm:$0xff]  ;;  %v14699_v4 = vld [vmem:[#allocation55_spill] sm:$0xff] }
 0x759   :  { %6830 = vrot.lane.b32.xlu0 %v14691_v49, %s9008_s17  ;;  %v5526_v50 = vpop.permute.xlu1 %5525  ;;  %v7088_v26 = vpop.permute.xlu2 %7087  ;;  %v5943_v49 = vmul.f32 %v13544_v5, %v5917_v23 }
 0x75a   :  { %v6088_v44 = vadd.f32 %v6072_v9, %v5958_v61  ;;  %8841 = vmatmul.msk.f32.gmra.mxu0 %vm304_vm10, %v7185_v48  ;;  %7124 = vst.msk [vmem:[#allocation4 + $0x1d0] sm:$0xff] %vm6727_vm11, %v7088_v26  ;;  %v5552_v22 = vmul.f32 %v13516_v37, %v5526_v50  ;;  %v5682_v37 = vmul.f32 %v13523_v6, %v13686_v21  ;;  %v6182_v9 = vpop.permute.xlu0 %6181 }
 0x75b   :  { %7529 = vmatmul.f32.gmra.mxu2 %v7193_v2  ;;  %v13761_v63 = vpop.f32.mrf.mxu0  ;;  %v6203_v48 = vmul.f32 %v13582_v56, %v13673_v59 }
 0x75c   :  { %v6218_v62 = vadd.f32 %v6202_v55, %v6088_v44  ;;  %v5568_v57 = vadd.f32 %v5552_v22, %v5437_v19 }
 0x75e   :  { %v5698_v18 = vadd.f32 %v5682_v37, %v5568_v57  ;;  %v6238_v59 = vadd.f32 %v13631_v52, %v6218_v62 }
 0x760   :  { %6956 = vrot.lane.b32.xlu1 %v14692_v60, %s9008_s17  ;;  %v6254_v23 = vmax.f32 %v6238_v59, 0.0  ;;  %v6752_v59 = vld [vmem:[#allocation3 + $0xa2] sm:$0xff] }
 0x761   :  { %6832 = vrot.lane.b32.xlu0 %v14693_v20, %s9008_s17  ;;  %v5791_v7 = vpop.permute.xlu1 %5790  ;;  %v7090_v32 = vpop.permute.xlu2 %7089  ;;  %6768 = vst.msk [vmem:[#allocation4 + $0x148] sm:$0xff] %vm304_vm10, %v6752_v59 }
 0x762   :  { %8842 = vmatmul.msk.f32.gmra.mxu0 %vm304_vm10, %v7190_v29  ;;  %7125 = vst.msk [vmem:[#allocation4 + $0x1f8] sm:$0xff] %vm6727_vm11, %v7090_v32  ;;  %v5813_v10 = vmul.f32 %v13533_v38, %v5791_v7 }
 0x763   :  { %v13782_v55 = vpop.f32.mrf.mxu0 }
 0x764   :  { %v5829_v21 = vadd.f32 %v5813_v10, %v13599_v17  ;;  %v6057_v17 = vpop.permute.xlu0 %6056 }
 0x766   :  { %v7512_v59 = vpop.f32.mrf.mxu2 }
 0x768   :  { %6958 = vrot.lane.b32.xlu1 %v14697_v14, %s9008_s17 }
 0x769   :  { %6834 = vrot.lane.b32.xlu0 %v14698_v47, %s9008_s17  ;;  %v5666_v28 = vpop.permute.xlu1 %5665  ;;  %v7092_v54 = vpop.permute.xlu2 %7091  ;;  %v6075_v47 = vmul.f32 %v13570_v39, %v6057_v17 }
 0x76a   :  { %v5684_v43 = vmul.f32 %v13523_v6, %v5666_v28  ;;  %8843 = vmatmul.msk.f32.gmra.mxu0 %vm304_vm10, %v7195_v24  ;;  %7126 = vst.msk [vmem:[#allocation4 + $0x220] sm:$0xff] %vm6727_vm11, %v7092_v54  ;;  %v6073_v6 = vmul.f32 %v13570_v39, %v13662_v30 }
 0x76b   :  { %v13793_v13 = vpop.f32.mrf.mxu0 }
 0x76c   :  { %v5700_v40 = vadd.f32 %v5684_v43, %v13614_v12  ;;  %v6187_v62 = vpop.permute.xlu0 %6186 }
 0x76d   :  { %v6205_v43 = vmul.f32 %v13582_v56, %v6187_v62 }
 0x76e   :  { %v5830_v11 = vadd.f32 %v5814_v58, %v5700_v40 }
 0x770   :  { %6960 = vrot.lane.b32.xlu1 %v14699_v4, %s9008_s17 }
 0x771   :  { %6836 = vrot.lane.b32.xlu0 %v13430_v16, %s9008_s17  ;;  %v5786_v61 = vpop.permute.xlu1 %5785  ;;  %v5944_v16 = vmul.f32 %v13544_v5, %v13703_v1  ;;  %v6204_v1 = vmul.f32 %v13582_v56, %v6182_v9 }
 0x772   :  { %v5812_v12 = vmul.f32 %v13533_v38, %v5786_v61  ;;  %8844 = vmatmul.msk.f32.gmra.mxu0 %vm304_vm10, %v7200_v15  ;;  %v14700_v38 = vld [vmem:[#allocation59_spill] sm:$0xff]  ;;  %v7215_v15 = vld [vmem:[#allocation4 + $0x1b0] sm:$0xff] }
 0x773   :  { %v5960_v20 = vadd.f32 %v5944_v16, %v5829_v21 }
 0x774   :  { %v5828_v50 = vadd.f32 %v5812_v12, %v5698_v18  ;;  %v13804_v12 = vpop.f32.mrf.mxu0 }
 0x776   :  { %v5959_v2 = vadd.f32 %v5943_v49, %v5828_v50 }
 0x778   :  { %v6089_v26 = vadd.f32 %v6073_v6, %v5959_v2  ;;  %6962 = vrot.lane.b32.xlu1 %v14700_v38, %s9008_s17 }
 0x779   :  { %v6052_v44 = vpop.permute.xlu1 %6051 }
 0x77a   :  { %v6219_v60 = vadd.f32 %v6203_v48, %v6089_v26  ;;  %v6074_v30 = vmul.f32 %v13570_v39, %v6052_v44  ;;  %8845 = vmatmul.msk.f32.gmra.mxu0 %vm304_vm10, %v7205_v25 }
 0x77c   :  { %v6090_v7 = vadd.f32 %v6074_v30, %v5960_v20  ;;  %v6239_v37 = vadd.f32 %v13631_v52, %v6219_v60  ;;  %v7220_v60 = vld [vmem:[#allocation4 + $0x1d8] sm:$0xff]  ;;  %v13812_v62 = vpop.f32.mrf.mxu0 }
 0x77e   :  { %v6220_v29 = vadd.f32 %v6204_v1, %v6090_v7  ;;  %v6255_v21 = vmax.f32 %v6239_v37, 0.0 }
 0x780   :  { %v6240_v32 = vadd.f32 %v13631_v52, %v6220_v29  ;;  %6964 = vrot.lane.b32.xlu1 %v13432_v34, %s9008_s17 }
 0x781   :  { %v5927_v42 = vpop.permute.xlu1 %5926 }
 0x782   :  { %v6256_v51 = vmax.f32 %v6240_v32, 0.0  ;;  %v5945_v35 = vmul.f32 %v13544_v5, %v5927_v42  ;;  %8846 = vmatmul.msk.f32.gmra.mxu0 %vm304_vm10, %v7210_v3 }
 0x784   :  { %v6264_v27 = vmax.f32 %v6254_v23, %v6256_v51  ;;  %v5961_v14 = vadd.f32 %v5945_v35, %v5830_v11 }
 0x786   :  { %v6292_v28 = vrot.slane %v6264_v27, 2  ;;  %v6293_v24 = vrot.slane %v6264_v27, 4  ;;  %v6294_v54 = vrot.slane %v6264_v27, 6  ;;  %v6490_v34 = vsel %vm306_vm2, %v6264_v27, -inf }
 0x787   :  { %v6491_v46 = vrot.slane %v6490_v34, 4  ;;  %v6091_v22 = vadd.f32 %v6075_v47, %v5961_v14 }
 0x788   :  { %v6497_v5 = vsel %vm306_vm2, %v6292_v28, -inf  ;;  %v6504_v19 = vsel %vm306_vm2, %v6293_v24, -inf  ;;  %v6511_v58 = vsel %vm306_vm2, %v6294_v54, -inf }
 0x789   :  { %v6492_v40 = vmax.f32 %v6490_v34, %v6491_v46  ;;  %v6498_v57 = vrot.slane %v6497_v5, 4  ;;  %v6505_v11 = vrot.slane %v6504_v19, 4  ;;  %v6512_v39 = vrot.slane %v6511_v58, 4 }
 0x78a   :  { %v6221_v4 = vadd.f32 %v6205_v43, %v6091_v22  ;;  %8847 = vmatmul.msk.f32.gmra.mxu0 %vm304_vm10, %v7215_v15 }
 0x78b   :  { %v6493_v9 = vrot.slane %v6492_v40, 2  ;;  %v6499_v61 = vmax.f32 %v6497_v5, %v6498_v57  ;;  %v6506_v10 = vmax.f32 %v6504_v19, %v6505_v11  ;;  %v6513_v56 = vmax.f32 %v6511_v58, %v6512_v39 }
 0x78c   :  { %v6241_v18 = vadd.f32 %v13631_v52, %v6221_v4 }
 0x78d   :  { %v6494_v49 = vmax.f32 %v6492_v40, %v6493_v9  ;;  %v6500_v50 = vrot.slane %v6499_v61, 2  ;;  %v6507_v6 = vrot.slane %v6506_v10, 2  ;;  %v6514_v26 = vrot.slane %v6513_v56, 2  ;;  %v7225_v40 = vld [vmem:[#allocation4 + $0x200] sm:$0xff] }
 0x78e   :  { %v6257_v2 = vmax.f32 %v6241_v18, 0.0 }
 0x78f   :  { %v6501_v16 = vmax.f32 %v6499_v61, %v6500_v50  ;;  %v6508_v48 = vmax.f32 %v6506_v10, %v6507_v6  ;;  %v6495_v44 = vrot.slane %v6494_v49, 1  ;;  %v6515_v7 = vmax.f32 %v6513_v56, %v6514_v26 }
 0x790   :  { %v6265_v38 = vmax.f32 %v6255_v21, %v6257_v2 }
 0x791   :  { %v6502_v25 = vrot.slane %v6501_v16, 1  ;;  %v6509_v52 = vrot.slane %v6508_v48, 1  ;;  %v6496_v14 = vmax.f32 %v6494_v49, %v6495_v44  ;;  %v6516_v46 = vrot.slane %v6515_v7, 1 }
 0x792   :  { %v6295_v20 = vrot.slane %v6265_v38, 2  ;;  %v6296_v30 = vrot.slane %v6265_v38, 4  ;;  %v6297_v17 = vrot.slane %v6265_v38, 6  ;;  %v6518_v1 = vsel %vm306_vm2, %v6265_v38, -inf  ;;  %8848 = vmatmul.msk.f32.gmra.mxu0 %vm304_vm10, %v7220_v60  ;;  %v7230_v38 = vld [vmem:[#allocation4 + $0x228] sm:$0xff] }
 0x793   :  { %v6519_v29 = vrot.slane %v6518_v1, 4  ;;  %v6503_v32 = vmax.f32 %v6501_v16, %v6502_v25  ;;  %v6510_v28 = vmax.f32 %v6508_v48, %v6509_v52  ;;  %v6517_v4 = vmax.f32 %v6515_v7, %v6516_v46  ;;  %v7447_v16 = vpop.f32.mrf.mxu1 }
 0x794   :  { %v6525_v42 = vsel %vm306_vm2, %v6295_v20, -inf  ;;  %v6532_v3 = vsel %vm306_vm2, %v6296_v30, -inf  ;;  %v6539_v23 = vsel %vm306_vm2, %v6297_v17, -inf }
 0x795   :  { %v6520_v51 = vmax.f32 %v6518_v1, %v6519_v29  ;;  %v6526_v35 = vrot.slane %v6525_v42, 4  ;;  %v6533_v27 = vrot.slane %v6532_v3, 4  ;;  %v6540_v47 = vrot.slane %v6539_v23, 4  ;;  %v7577_v29 = vpop.f32.mrf.mxu3 }
 0x796   :  { %v6599_v22 = vsel %vm1873_vm3, %v6503_v32, %v6496_v14 }
 0x797   :  { %v6521_v24 = vrot.slane %v6520_v51, 2  ;;  %v6527_v54 = vmax.f32 %v6525_v42, %v6526_v35  ;;  %v6534_v34 = vmax.f32 %v6532_v3, %v6533_v27  ;;  %v6541_v43 = vmax.f32 %v6539_v23, %v6540_v47  ;;  %v13841_v42 = vld [vmem:[%s14056_s4] ss:$0 sm:$0xff] }
 0x798   :  { %v6600_v11 = vsel %vm1875_vm4, %v6510_v28, %v6599_v22  ;;  %v7383_v3 = vadd.f32 %v13841_v42, %v13658_v33  ;;  %v7199_v22 = vld [vmem:[#allocation4 + $0x130] sm:$0xff] }
 0x799   :  { %v6522_v5 = vmax.f32 %v6520_v51, %v6521_v24  ;;  %v6528_v19 = vrot.slane %v6527_v54, 2  ;;  %v6535_v58 = vrot.slane %v6534_v34, 2  ;;  %v6542_v57 = vrot.slane %v6541_v43, 2 }
 0x79a   :  { %8849 = vmatmul.msk.f32.gmra.mxu0 %vm304_vm10, %v7225_v40  ;;  %v6601_v18 = vsel %vm1877_vm5, %v6517_v4, %v6600_v11  ;;  %v7448_v27 = vadd.f32 %v7447_v16, %v7383_v3  ;;  %v7386_v24 = vadd.f32 %v13841_v42, %v13668_v45 }
 0x79b   :  { %v6523_v39 = vrot.slane %v6522_v5, 1  ;;  %v6529_v15 = vmax.f32 %v6527_v54, %v6528_v19  ;;  %v6536_v37 = vmax.f32 %v6534_v34, %v6535_v58  ;;  %v6543_v9 = vmax.f32 %v6541_v43, %v6542_v57  ;;  %v7450_v17 = vpop.f32.mrf.mxu1  ;;  %v7048_v43 = vld [vmem:[#allocation3 + $0x131] sm:$0xff] }
 0x79c   :  { %v7513_v33 = vadd.f32 %v7512_v59, %v7448_v27  ;;  %v7451_v46 = vadd.f32 %v7450_v17, %v7386_v24 }
 0x79d   :  { %v6524_v61 = vmax.f32 %v6522_v5, %v6523_v39  ;;  %v6530_v10 = vrot.slane %v6529_v15, 1  ;;  %v6537_v56 = vrot.slane %v6536_v37, 1  ;;  %v6544_v49 = vrot.slane %v6543_v9, 1  ;;  %v7580_v54 = vpop.f32.mrf.mxu3 }
 0x79e   :  { %v7578_v57 = vadd.f32 %v7577_v29, %v7513_v33 }
 0x79f   :  { %v6531_v50 = vmax.f32 %v6529_v15, %v6530_v10  ;;  %v6538_v6 = vmax.f32 %v6536_v37, %v6537_v56  ;;  %v6602_v21 = vsel %vm1879_vm6, %v6524_v61, %v6601_v18  ;;  %v13819_v2 = vpop.f32.mrf.mxu0  ;;  %v6545_v48 = vmax.f32 %v6543_v9, %v6544_v49 }
 0x7a1   :  { %v6603_v26 = vsel %vm1881_vm7, %v6531_v50, %v6602_v21  ;;  %v7204_v21 = vld [vmem:[#allocation4 + $0x158] sm:$0xff] }
 0x7a2   :  { %v6604_v44 = vsel %vm1883_vm8, %v6538_v6, %v6603_v26  ;;  %8850 = vmatmul.msk.f32.gmra.mxu0 %vm304_vm10, %v7230_v38  ;;  %v7389_v6 = vadd.f32 %v13841_v42, %v13676_v8 }
 0x7a3   :  { %v6605_v25 = vsel %vm1885_vm9, %v6545_v48, %v6604_v44  ;;  %v7453_v47 = vpop.f32.mrf.mxu1  ;;  %v7392_v48 = vadd.f32 %v13841_v42, %v13693_v31 }
 0x7a4   :  { %6614 = vst.msk [vmem:[#allocation3 + $0x121] sm:$0xff] %vm304_vm10, %v6605_v25  ;;  %v7454_v26 = vadd.f32 %v7453_v47, %v7389_v6 }
 0x7a5   :  { %v7583_v9 = vpop.f32.mrf.mxu3 }
 0x7a7   :  { %v13826_v60 = vpop.f32.mrf.mxu0 }
 0x7aa   :  { %v7078_v20 = vpop.permute.xlu1 %7077 }
 0x7ab   :  { %v6823_v30 = vpop.permute.xlu0 %6822  ;;  %7119 = vst.msk [vmem:[#allocation4 + $0x108] sm:$0xff] %vm6727_vm11, %v7078_v20  ;;  %v7047_v1 = vld [vmem:[#allocation3 + $0x121] sm:$0xff]  ;;  %v7456_v15 = vpop.f32.mrf.mxu1 }
 0x7ac   :  { %v6919_v52 = vld [vmem:[#allocation3 + $0x122] sm:$0xff]  ;;  %6863 = vst.msk [vmem:[#allocation4 + $0x120] sm:$0xff] %vm6727_vm11, %v6823_v30  ;;  %7093 = vrot.lane.b32.xlu2 %v7047_v1, %s9008_s17  ;;  %v7457_v30 = vadd.f32 %v7456_v15, %v7392_v48 }
 0x7ad   :  { %v6791_v7 = vld [vmem:[#allocation3 + $0x120] sm:$0xff]  ;;  %6966 = vrot.lane.b32.xlu1 %v6919_v52, %s9008_s17  ;;  %7159 = vst.msk [vmem:[#allocation4 + $0x250] sm:$0xff] %vm304_vm10, %v6919_v52 }
 0x7ae   :  { %6838 = vrot.lane.b32.xlu0 %v6791_v7, %s9008_s17  ;;  %7031 = vst.msk [vmem:[#allocation4 + $0x248] sm:$0xff] %vm304_vm10, %v6791_v7 }
 0x7af   :  { %v13835_v32 = vpop.f32.mrf.mxu0  ;;  %6903 = vst.msk [vmem:[#allocation4 + $0x268] sm:$0xff] %vm304_vm10, %v7047_v1 }
 0x7b2   :  { %v6821_v23 = vpop.permute.xlu1 %6820  ;;  %v7194_v35 = vld [vmem:[#allocation4 + $0x108] sm:$0xff] }
 0x7b3   :  { %v6825_v51 = vpop.permute.xlu0 %6824  ;;  %6862 = vst.msk [vmem:[#allocation4 + $0xf8] sm:$0xff] %vm6727_vm11, %v6821_v23  ;;  %7594 = vmatmul.f32.gmra.mxu3 %v7194_v35  ;;  %v7197_v49 = vld [vmem:[#allocation4 + $0x120] sm:$0xff]  ;;  %v7459_v3 = vpop.f32.mrf.mxu1 }
 0x7b4   :  { %6864 = vst.msk [vmem:[#allocation4 + $0x148] sm:$0xff] %vm6727_vm11, %v6825_v51  ;;  %v7235_v14 = vld [vmem:[#allocation4 + $0x250] sm:$0xff]  ;;  %7095 = vrot.lane.b32.xlu2 %v7048_v43, %s9008_s17  ;;  %v7209_v43 = vld [vmem:[#allocation4 + $0x180] sm:$0xff] }
 0x7b5   :  { %8851 = vmatmul.msk.f32.gmra.mxu0 %vm304_vm10, %v7235_v14  ;;  %v7515_v28 = vpop.f32.mrf.mxu2 }
 0x7b6   :  { %v7516_v5 = vadd.f32 %v7515_v28, %v7451_v46 }
 0x7b7   :  { %v7642_v34 = vpop.f32.mrf.mxu0 }
 0x7b8   :  { %v7643_v11 = vadd.f32 %v7642_v34, %v7578_v57  ;;  %v7581_v39 = vadd.f32 %v7580_v54, %v7516_v5  ;;  %v7586_v54 = vpop.f32.mrf.mxu3 }
 0x7ba   :  { %v6951_v19 = vpop.permute.xlu1 %6950  ;;  %v7192_v40 = vld [vmem:[#allocation4 + $0xf8] sm:$0xff]  ;;  %v7690_v61 = vmax.f32 %v7643_v11, 0.0 }
 0x7bb   :  { %v6827_v58 = vpop.permute.xlu0 %6826  ;;  %6991 = vst.msk [vmem:[#allocation4 + $0x128] sm:$0xff] %vm6727_vm11, %v6951_v19  ;;  %7464 = vmatmul.f32.gmra.mxu1 %v7192_v40  ;;  %7597 = vmatmul.f32.gmra.mxu3 %v7199_v22  ;;  %v7202_v28 = vld [vmem:[#allocation4 + $0x148] sm:$0xff] }
 0x7bc   :  { %6865 = vst.msk [vmem:[#allocation4 + $0x170] sm:$0xff] %vm6727_vm11, %v6827_v58 }
 0x7be   :  { %v7518_v45 = vpop.f32.mrf.mxu2 }
 0x7bf   :  { %v7645_v37 = vpop.f32.mrf.mxu0  ;;  %v7519_v52 = vadd.f32 %v7518_v45, %v7454_v26 }
 0x7c0   :  { %v7646_v4 = vadd.f32 %v7645_v37, %v7581_v39 }
 0x7c1   :  { %v7584_v5 = vadd.f32 %v7583_v9, %v7519_v52 }
 0x7c2   :  { %v7691_v10 = vmax.f32 %v7646_v4, 0.0  ;;  %v6953_v56 = vpop.permute.xlu1 %6952  ;;  %v7198_v50 = vld [vmem:[#allocation4 + $0x128] sm:$0xff] }
 0x7c3   :  { %v6829_v18 = vpop.permute.xlu0 %6828  ;;  %6992 = vst.msk [vmem:[#allocation4 + $0x150] sm:$0xff] %vm6727_vm11, %v6953_v56  ;;  %7467 = vmatmul.f32.gmra.mxu1 %v7197_v49  ;;  %7532 = vmatmul.f32.gmra.mxu2 %v7198_v50  ;;  %v7395_v50 = vadd.f32 %v13841_v42, %v13709_v36  ;;  %v7207_v26 = vld [vmem:[#allocation4 + $0x170] sm:$0xff]  ;;  %v7398_v36 = vadd.f32 %v13841_v42, %v13720_v41 }
 0x7c4   :  { %v7706_v16 = vmax.f32 %v7690_v61, %v7691_v10  ;;  %6866 = vst.msk [vmem:[#allocation4 + $0x198] sm:$0xff] %vm6727_vm11, %v6829_v18  ;;  %7600 = vmatmul.f32.gmra.mxu3 %v7204_v21 }
 0x7c5   :  { %v7460_v52 = vadd.f32 %v7459_v3, %v7395_v50 }
 0x7c6   :  { %v7521_v38 = vpop.f32.mrf.mxu2  ;;  %v7722_v44 = vrot.slane %v7706_v16, 2  ;;  %v7723_v25 = vrot.slane %v7706_v16, 4  ;;  %v7724_v20 = vrot.slane %v7706_v16, 6  ;;  %v7771_v8 = vsel %vm7770_vm12, %v7706_v16, -inf }
 0x7c7   :  { %v7772_v17 = vrot.slane %v7771_v8, 4  ;;  %v7648_v1 = vpop.f32.mrf.mxu0  ;;  %v7522_v27 = vadd.f32 %v7521_v38, %v7457_v30  ;;  %v7462_v30 = vpop.f32.mrf.mxu1 }
 0x7c8   :  { %v7778_v7 = vsel %vm7770_vm12, %v7722_v44, -inf  ;;  %v7785_v29 = vsel %vm7770_vm12, %v7723_v25, -inf  ;;  %v7792_v59 = vsel %vm7770_vm12, %v7724_v20, -inf  ;;  %v7649_v11 = vadd.f32 %v7648_v1, %v7584_v5  ;;  %v7589_v1 = vpop.f32.mrf.mxu3 }
 0x7c9   :  { %v7773_v23 = vmax.f32 %v7771_v8, %v7772_v17  ;;  %v7779_v31 = vrot.slane %v7778_v7, 4  ;;  %v7786_v51 = vrot.slane %v7785_v29, 4  ;;  %v7793_v35 = vrot.slane %v7792_v59, 4  ;;  %v7214_v8 = vld [vmem:[#allocation4 + $0x1a8] sm:$0xff] }
 0x7ca   :  { %v6955_v14 = vpop.permute.xlu1 %6954  ;;  %v7203_v24 = vld [vmem:[#allocation4 + $0x150] sm:$0xff]  ;;  %v7587_v39 = vadd.f32 %v7586_v54, %v7522_v27  ;;  %v7692_v6 = vmax.f32 %v7649_v11, 0.0 }
 0x7cb   :  { %v6831_v47 = vpop.permute.xlu0 %6830  ;;  %v7774_v34 = vrot.slane %v7773_v23, 2  ;;  %v7780_v33 = vmax.f32 %v7778_v7, %v7779_v31  ;;  %v7787_v46 = vmax.f32 %v7785_v29, %v7786_v51  ;;  %v7794_v22 = vmax.f32 %v7792_v59, %v7793_v35  ;;  %6993 = vst.msk [vmem:[#allocation4 + $0x178] sm:$0xff] %vm6727_vm11, %v6955_v14  ;;  %7470 = vmatmul.f32.gmra.mxu1 %v7202_v28 }
 0x7cc   :  { %6867 = vst.msk [vmem:[#allocation4 + $0x1c0] sm:$0xff] %vm6727_vm11, %v6831_v47  ;;  %7535 = vmatmul.f32.gmra.mxu2 %v7203_v24  ;;  %7603 = vmatmul.f32.gmra.mxu3 %v7209_v43  ;;  %v7463_v35 = vadd.f32 %v7462_v30, %v7398_v36 }
 0x7cd   :  { %v7775_v19 = vmax.f32 %v7773_v23, %v7774_v34  ;;  %v7781_v58 = vrot.slane %v7780_v33, 2  ;;  %v7788_v40 = vrot.slane %v7787_v46, 2  ;;  %v7795_v57 = vrot.slane %v7794_v22, 2 }
 0x7ce   :  { %v7524_v45 = vpop.f32.mrf.mxu2 }
 0x7cf   :  { %v7776_v15 = vrot.slane %v7775_v19, 1  ;;  %v7782_v37 = vmax.f32 %v7780_v33, %v7781_v58  ;;  %v7789_v4 = vmax.f32 %v7787_v46, %v7788_v40  ;;  %v7796_v61 = vmax.f32 %v7794_v22, %v7795_v57  ;;  %v7651_v10 = vpop.f32.mrf.mxu0  ;;  %v7212_v40 = vld [vmem:[#allocation4 + $0x198] sm:$0xff] }
 0x7d0   :  { %v7652_v56 = vadd.f32 %v7651_v10, %v7587_v39  ;;  %v7525_v14 = vadd.f32 %v7524_v45, %v7460_v52 }
 0x7d1   :  { %v7783_v18 = vrot.slane %v7782_v37, 1  ;;  %v7790_v49 = vrot.slane %v7789_v4, 1  ;;  %v7797_v9 = vrot.slane %v7796_v61, 1  ;;  %v7777_v44 = vmax.f32 %v7775_v19, %v7776_v15  ;;  %v7219_v15 = vld [vmem:[#allocation4 + $0x1d0] sm:$0xff] }
 0x7d2   :  { %v7693_v21 = vmax.f32 %v7652_v56, 0.0  ;;  %v6957_v16 = vpop.permute.xlu1 %6956  ;;  %v7208_v38 = vld [vmem:[#allocation4 + $0x178] sm:$0xff] }
 0x7d3   :  { %v6833_v48 = vpop.permute.xlu0 %6832  ;;  %v7784_v25 = vmax.f32 %v7782_v37, %v7783_v18  ;;  %v7791_v20 = vmax.f32 %v7789_v4, %v7790_v49  ;;  %6994 = vst.msk [vmem:[#allocation4 + $0x1a0] sm:$0xff] %vm6727_vm11, %v6957_v16  ;;  %7473 = vmatmul.f32.gmra.mxu1 %v7207_v26  ;;  %v7798_v7 = vmax.f32 %v7796_v61, %v7797_v9  ;;  %v7592_v61 = vpop.f32.mrf.mxu3 }
 0x7d4   :  { %v7707_v17 = vmax.f32 %v7692_v6, %v7693_v21  ;;  %6868 = vst.msk [vmem:[#allocation4 + $0x1e8] sm:$0xff] %vm6727_vm11, %v6833_v48  ;;  %7538 = vmatmul.f32.gmra.mxu2 %v7208_v38  ;;  %7606 = vmatmul.f32.gmra.mxu3 %v7214_v8  ;;  %v7590_v4 = vadd.f32 %v7589_v1, %v7525_v14  ;;  %v7217_v1 = vld [vmem:[#allocation4 + $0x1c0] sm:$0xff] }
 0x7d5   :  { %v8027_v29 = vsel %vm1873_vm3, %v7784_v25, %v7777_v44 }
 0x7d6   :  { %v8028_v59 = vsel %vm1875_vm4, %v7791_v20, %v8027_v29  ;;  %v7725_v23 = vrot.slane %v7707_v17, 2  ;;  %v7726_v31 = vrot.slane %v7707_v17, 4  ;;  %v7727_v51 = vrot.slane %v7707_v17, 6  ;;  %v7527_v28 = vpop.f32.mrf.mxu2 }
 0x7d7   :  { %v8029_v27 = vsel %vm1877_vm5, %v7798_v7, %v8028_v59  ;;  %v7799_v47 = vsel %vm7770_vm12, %v7707_v17, -inf  ;;  %v7654_v24 = vpop.f32.mrf.mxu0  ;;  %v7528_v5 = vadd.f32 %v7527_v28, %v7463_v35 }
 0x7d8   :  { %8059 = vst [vmem:[#allocation5] sm:$0xf] %v8029_v27  ;;  %v7800_v41 = vrot.slane %v7799_v47, 4  ;;  %v7806_v3 = vsel %vm7770_vm12, %v7725_v23, -inf  ;;  %v7813_v54 = vsel %vm7770_vm12, %v7726_v31, -inf  ;;  %v7820_v34 = vsel %vm7770_vm12, %v7727_v51, -inf }
 0x7d9   :  { %v7807_v33 = vrot.slane %v7806_v3, 4  ;;  %v7814_v46 = vrot.slane %v7813_v54, 4  ;;  %v7821_v22 = vrot.slane %v7820_v34, 4  ;;  %v7655_v9 = vadd.f32 %v7654_v24, %v7590_v4  ;;  %v7224_v23 = vld [vmem:[#allocation4 + $0x1f8] sm:$0xff] }
 0x7da   :  { %v7801_v43 = vmax.f32 %v7799_v47, %v7800_v41  ;;  %v6959_v19 = vpop.permute.xlu1 %6958  ;;  %v7213_v57 = vld [vmem:[#allocation4 + $0x1a0] sm:$0xff]  ;;  %v7593_v50 = vadd.f32 %v7592_v61, %v7528_v5 }
 0x7db   :  { %v6835_v58 = vpop.permute.xlu0 %6834  ;;  %v7808_v45 = vmax.f32 %v7806_v3, %v7807_v33  ;;  %v7815_v11 = vmax.f32 %v7813_v54, %v7814_v46  ;;  %v7822_v39 = vmax.f32 %v7820_v34, %v7821_v22  ;;  %6995 = vst.msk [vmem:[#allocation4 + $0x1c8] sm:$0xff] %vm6727_vm11, %v6959_v19  ;;  %7476 = vmatmul.f32.gmra.mxu1 %v7212_v40  ;;  %v7694_v8 = vmax.f32 %v7655_v9, 0.0 }
 0x7dc   :  { %v7802_v37 = vrot.slane %v7801_v43, 2  ;;  %6869 = vst.msk [vmem:[#allocation4 + $0x210] sm:$0xff] %vm6727_vm11, %v6835_v58  ;;  %7541 = vmatmul.f32.gmra.mxu2 %v7213_v57  ;;  %7609 = vmatmul.f32.gmra.mxu3 %v7219_v15  ;;  %v7222_v58 = vld [vmem:[#allocation4 + $0x1e8] sm:$0xff] }
 0x7dd   :  { %v7809_v10 = vrot.slane %v7808_v45, 2  ;;  %v7816_v56 = vrot.slane %v7815_v11, 2  ;;  %v7823_v18 = vrot.slane %v7822_v39, 2 }
 0x7de   :  { %v7803_v49 = vmax.f32 %v7801_v43, %v7802_v37 }
 0x7df   :  { %v7810_v6 = vmax.f32 %v7808_v45, %v7809_v10  ;;  %v7817_v21 = vmax.f32 %v7815_v11, %v7816_v56  ;;  %v7824_v16 = vmax.f32 %v7822_v39, %v7823_v18  ;;  %v7657_v48 = vpop.f32.mrf.mxu0  ;;  %v7229_v39 = vld [vmem:[#allocation4 + $0x220] sm:$0xff] }
 0x7e0   :  { %v7804_v26 = vrot.slane %v7803_v49, 1  ;;  %v7658_v38 = vadd.f32 %v7657_v48, %v7593_v50 }
 0x7e1   :  { %v7811_v44 = vrot.slane %v7810_v6, 1  ;;  %v7818_v25 = vrot.slane %v7817_v21, 1  ;;  %v7825_v20 = vrot.slane %v7824_v16, 1 }
 0x7e2   :  { %v7695_v30 = vmax.f32 %v7658_v38, 0.0  ;;  %v6961_v17 = vpop.permute.xlu1 %6960  ;;  %v7218_v52 = vld [vmem:[#allocation4 + $0x1c8] sm:$0xff]  ;;  %v7805_v7 = vmax.f32 %v7803_v49, %v7804_v26 }
 0x7e3   :  { %v6837_v36 = vpop.permute.xlu0 %6836  ;;  %v7812_v29 = vmax.f32 %v7810_v6, %v7811_v44  ;;  %v7819_v59 = vmax.f32 %v7817_v21, %v7818_v25  ;;  %6996 = vst.msk [vmem:[#allocation4 + $0x1f0] sm:$0xff] %vm6727_vm11, %v6961_v17  ;;  %7479 = vmatmul.f32.gmra.mxu1 %v7217_v1  ;;  %v7826_v51 = vmax.f32 %v7824_v16, %v7825_v20  ;;  %v7227_v48 = vld [vmem:[#allocation4 + $0x210] sm:$0xff]  ;;  %v8170_v1 = vld [vmem:[#allocation9 + $0x178] sm:$0xff] }
 0x7e4   :  { %v7708_v31 = vmax.f32 %v7694_v8, %v7695_v30  ;;  %6870 = vst.msk [vmem:[#allocation4 + $0x238] sm:$0xff] %vm6727_vm11, %v6837_v36  ;;  %7544 = vmatmul.f32.gmra.mxu2 %v7218_v52  ;;  %7612 = vmatmul.f32.gmra.mxu3 %v7224_v23  ;;  %v8084_v36 = vld [vmem:[#allocation9 + $0x78] sm:$0xff]  ;;  %v8083_v23 = vld [vmem:[#allocation9 + $0x70] sm:$0xff] }
 0x7e5   :  { %v8030_v35 = vsel %vm1873_vm3, %v7812_v29, %v7805_v7  ;;  %8133 = vmatpush.msrb.mxu2 %v8084_v36  ;;  %8176 = vmatpush.msrb.mxu3 %v8170_v1  ;;  %v8102_v29 = vld [vmem:[#allocation9 + $0xf8] sm:$0xff] }
 0x7e6   :  { %v8031_v27 = vsel %vm1875_vm4, %v7819_v59, %v8030_v35  ;;  %v7728_v14 = vrot.slane %v7708_v31, 2  ;;  %v7729_v47 = vrot.slane %v7708_v31, 4  ;;  %v7730_v28 = vrot.slane %v7708_v31, 6  ;;  %v7016_v59 = vld [vmem:[#allocation3 + $0x130] sm:$0xff]  ;;  %8108 = vmatpush.msrb.mxu1 %v8102_v29  ;;  %v8162_v36 = vld [vmem:[#allocation9 + $0x138] sm:$0xff] }
 0x7e7   :  { %v8032_v24 = vsel %vm1877_vm5, %v7826_v51, %v8031_v27  ;;  %v7827_v41 = vsel %vm7770_vm12, %v7708_v31, -inf  ;;  %7032 = vst.msk [vmem:[#allocation4 + $0x270] sm:$0xff] %vm304_vm10, %v7016_v59  ;;  %8134 = vmatpush.msrb.mxu2 %v8083_v23  ;;  %v8169_v31 = vld [vmem:[#allocation9 + $0x170] sm:$0xff]  ;;  %v8082_v27 = vld [vmem:[#allocation9 + $0x68] sm:$0xff] }
 0x7e8   :  { %8060 = vst [vmem:[#allocation5 + $0x4] sm:$0xf] %v8032_v24  ;;  %v7828_v3 = vrot.slane %v7827_v41, 4  ;;  %v7834_v54 = vsel %vm7770_vm12, %v7728_v14, -inf  ;;  %v7841_v34 = vsel %vm7770_vm12, %v7729_v47, -inf  ;;  %v7848_v33 = vsel %vm7770_vm12, %v7730_v28, -inf  ;;  %8177 = vmatpush.msrb.mxu3 %v8169_v31 }
 0x7e9   :  { %v7835_v46 = vrot.slane %v7834_v54, 4  ;;  %v7842_v22 = vrot.slane %v7841_v34, 4  ;;  %v7849_v43 = vrot.slane %v7848_v33, 4  ;;  %v8101_v35 = vld [vmem:[#allocation9 + $0xf0] sm:$0xff]  ;;  %v8168_v14 = vld [vmem:[#allocation9 + $0x168] sm:$0xff]  ;;  %8135 = vmatpush.msrb.mxu2 %v8082_v27 }
 0x7ea   :  { %v7829_v5 = vmax.f32 %v7827_v41, %v7828_v3  ;;  %v6963_v19 = vpop.permute.xlu1 %6962  ;;  %v7223_v40 = vld [vmem:[#allocation4 + $0x1f0] sm:$0xff]  ;;  %8109 = vmatpush.msrb.mxu1 %v8101_v35  ;;  %v8100_v47 = vld [vmem:[#allocation9 + $0xe8] sm:$0xff]  ;;  %8178 = vmatpush.msrb.mxu3 %v8168_v14  ;;  %v8081_v41 = vld [vmem:[#allocation9 + $0x60] sm:$0xff] }
 0x7eb   :  { %v7836_v57 = vmax.f32 %v7834_v54, %v7835_v46  ;;  %v7843_v45 = vmax.f32 %v7841_v34, %v7842_v22  ;;  %v7850_v11 = vmax.f32 %v7848_v33, %v7849_v43  ;;  %6997 = vst.msk [vmem:[#allocation4 + $0x218] sm:$0xff] %vm6727_vm11, %v6963_v19  ;;  %7482 = vmatmul.f32.gmra.mxu1 %v7222_v58  ;;  %v7232_v52 = vld [vmem:[#allocation4 + $0x238] sm:$0xff]  ;;  %v8167_v54 = vld [vmem:[#allocation9 + $0x160] sm:$0xff]  ;;  %v8093_v23 = vld [vmem:[#allocation9 + $0xb0] sm:$0xff] }
 0x7ec   :  { %v7830_v15 = vrot.slane %v7829_v5, 2  ;;  %7547 = vmatmul.f32.gmra.mxu2 %v7223_v40  ;;  %7615 = vmatmul.f32.gmra.mxu3 %v7229_v39  ;;  %v7144_v24 = vld [vmem:[#allocation3 + $0x132] sm:$0xff]  ;;  %v8099_v43 = vld [vmem:[#allocation9 + $0xe0] sm:$0xff]  ;;  %v8092_v27 = vld [vmem:[#allocation9 + $0xa8] sm:$0xff] }
 0x7ed   :  { %v7837_v37 = vrot.slane %v7836_v57, 2  ;;  %v7844_v4 = vrot.slane %v7843_v45, 2  ;;  %v7851_v61 = vrot.slane %v7850_v11, 2  ;;  %8110 = vmatpush.msrb.mxu1 %v8100_v47  ;;  %7160 = vst.msk [vmem:[#allocation4 + $0x278] sm:$0xff] %vm304_vm10, %v7144_v24  ;;  %8136 = vmatpush.msrb.mxu2 %v8081_v41  ;;  %v8166_v19 = vld [vmem:[#allocation9 + $0x158] sm:$0xff]  ;;  %v8079_v40 = vld [vmem:[#allocation9 + $0x50] sm:$0xff]  ;;  %v7407_v24 = vadd.f32 %v13841_v42, %v13761_v63 }
 0x7ee   :  { %v7831_v10 = vmax.f32 %v7829_v5, %v7830_v15  ;;  %8179 = vmatpush.msrb.mxu3 %v8167_v54  ;;  %v8080_v5 = vld [vmem:[#allocation9 + $0x58] sm:$0xff]  ;;  %v8161_v31 = vld [vmem:[#allocation9 + $0x130] sm:$0xff]  ;;  %v8160_v14 = vld [vmem:[#allocation9 + $0x128] sm:$0xff] }
 0x7ef   :  { %v7838_v56 = vmax.f32 %v7836_v57, %v7837_v37  ;;  %v7845_v18 = vmax.f32 %v7843_v45, %v7844_v4  ;;  %v7852_v49 = vmax.f32 %v7850_v11, %v7851_v61  ;;  %8111 = vmatpush.msrb.mxu1 %v8099_v43  ;;  %8137 = vmatpush.msrb.mxu2 %v8080_v5  ;;  %v8098_v58 = vld [vmem:[#allocation9 + $0xd8] sm:$0xff]  ;;  %v7660_v11 = vpop.f32.mrf.mxu0  ;;  %v7530_v61 = vpop.f32.mrf.mxu2 }
 0x7f0   :  { %v7832_v9 = vrot.slane %v7831_v10, 1  ;;  %8180 = vmatpush.msrb.mxu3 %v8166_v19  ;;  %v7401_v37 = vadd.f32 %v13841_v42, %v13733_v0  ;;  %v8095_v0 = vld [vmem:[#allocation9 + $0xc0] sm:$0xff] }
 0x7f1   :  { %v7839_v50 = vrot.slane %v7838_v56, 1  ;;  %v7846_v6 = vrot.slane %v7845_v18, 1  ;;  %v7853_v21 = vrot.slane %v7852_v49, 1  ;;  %8112 = vmatpush.msrb.mxu1 %v8098_v58  ;;  %8138 = vmatpush.msrb.mxu2 %v8079_v40  ;;  %v8091_v19 = vld [vmem:[#allocation9 + $0xa0] sm:$0xff] }
 0x7f2   :  { %v6965_v16 = vpop.permute.xlu1 %6964  ;;  %v7228_v26 = vld [vmem:[#allocation4 + $0x218] sm:$0xff]  ;;  %v7833_v38 = vmax.f32 %v7831_v10, %v7832_v9  ;;  %v7404_v9 = vadd.f32 %v13841_v42, %v13742_v53  ;;  %v8073_v58 = vld [vmem:[#allocation9 + $0x20] sm:$0xff] }
 0x7f3   :  { %v7840_v44 = vmax.f32 %v7838_v56, %v7839_v50  ;;  %v7847_v25 = vmax.f32 %v7845_v18, %v7846_v6  ;;  %6998 = vst.msk [vmem:[#allocation4 + $0x240] sm:$0xff] %vm6727_vm11, %v6965_v16  ;;  %7485 = vmatmul.f32.gmra.mxu1 %v7227_v48  ;;  %v7854_v20 = vmax.f32 %v7852_v49, %v7853_v21  ;;  %v8165_v50 = vld [vmem:[#allocation9 + $0x150] sm:$0xff]  ;;  %v8096_v21 = vld [vmem:[#allocation9 + $0xc8] sm:$0xff]  ;;  %v8094_v53 = vld [vmem:[#allocation9 + $0xb8] sm:$0xff] }
 0x7f4   :  { %7550 = vmatmul.f32.gmra.mxu2 %v7228_v26  ;;  %v7240_v34 = vld [vmem:[#allocation4 + $0x278] sm:$0xff]  ;;  %v8097_v6 = vld [vmem:[#allocation9 + $0xd0] sm:$0xff]  ;;  %8181 = vmatpush.msrb.mxu3 %v8165_v50  ;;  %v8078_v16 = vld [vmem:[#allocation9 + $0x48] sm:$0xff] }
 0x7f5   :  { %v8033_v8 = vsel %vm1873_vm3, %v7840_v44, %v7833_v38  ;;  %8852 = vmatmul.msk.f32.gmra.mxu0 %vm304_vm10, %v7240_v34  ;;  %8113 = vmatpush.msrb.mxu1 %v8097_v6  ;;  %v8164_v48 = vld [vmem:[#allocation9 + $0x148] sm:$0xff]  ;;  %v8077_v44 = vld [vmem:[#allocation9 + $0x40] sm:$0xff]  ;;  %v8089_v50 = vld [vmem:[#allocation9 + $0x90] sm:$0xff] }
 0x7f6   :  { %v8034_v30 = vsel %vm1875_vm4, %v7847_v25, %v8033_v8  ;;  %8139 = vmatpush.msrb.mxu2 %v8078_v16  ;;  %v8163_v25 = vld [vmem:[#allocation9 + $0x140] sm:$0xff]  ;;  %8182 = vmatpush.msrb.mxu3 %v8164_v48  ;;  %v8076_v8 = vld [vmem:[#allocation9 + $0x38] sm:$0xff]  ;;  %v8071_v6 = vld [vmem:[#allocation9 + $0x10] sm:$0xff] }
 0x7f7   :  { %v8035_v17 = vsel %vm1877_vm5, %v7854_v20, %v8034_v30  ;;  %v7663_v56 = vpop.f32.mrf.mxu0  ;;  %8114 = vmatpush.msrb.mxu1 %v8096_v21  ;;  %v8157_v21 = vld [vmem:[#allocation9 + $0x110] sm:$0xff] }
 0x7f8   :  { %8061 = vst [vmem:[#allocation5 + $0x8] sm:$0xf] %v8035_v17  ;;  %8140 = vmatpush.msrb.mxu2 %v8077_v44  ;;  %8183 = vmatpush.msrb.mxu3 %v8163_v25  ;;  %v8070_v44 = vld [vmem:[#allocation9 + $0x8] sm:$0xff] }
 0x7f9   :  { %8115 = vmatpush.msrb.mxu1 %v8095_v0  ;;  %v8088_v0 = vld [vmem:[#allocation9 + $0x88] sm:$0xff] }
 0x7fa   :  { %v7233_v7 = vld [vmem:[#allocation4 + $0x240] sm:$0xff]  ;;  %8141 = vmatpush.msrb.mxu2 %v8076_v8  ;;  %8184 = vmatpush.msrb.mxu3 %v8162_v36  ;;  %v8156_v25 = vld [vmem:[#allocation9 + $0x108] sm:$0xff] }
 0x7fb   :  { %7488 = vmatmul.f32.gmra.mxu1 %v7232_v52  ;;  %v8075_v52 = vld [vmem:[#allocation9 + $0x30] sm:$0xff]  ;;  %v8069_v36 = vld [vmem:[#allocation9] sm:$0xff] }
 0x7fc   :  { %7553 = vmatmul.f32.gmra.mxu2 %v7233_v7  ;;  %8116 = vmatpush.msrb.mxu1 %v8094_v53  ;;  %v8613_v53 = vld [vmem:[#allocation9 + $0x678] sm:$0xff] }
 0x7fd   :  { %8142 = vmatpush.msrb.mxu2 %v8075_v52  ;;  %8185 = vmatpush.msrb.mxu3 %v8161_v31  ;;  %v8155_v31 = vld [vmem:[#allocation9 + $0x100] sm:$0xff] }
 0x7fe   :  { %8117 = vmatpush.msrb.mxu1 %v8093_v23  ;;  %8619 = vmatpush.msra.mxu0 %v8613_v53  ;;  %v8209_v53 = vld [vmem:[#allocation9 + $0x1d0] sm:$0xff] }
 0x7ff   :  { %v13907_v7 = vpop.f32.mrf.mxu0  ;;  %8186 = vmatpush.msrb.mxu3 %v8160_v14 }
 0x800   :  { %8118 = vmatpush.msrb.mxu1 %v8092_v27  ;;  %v8259_v27 = vld [vmem:[#allocation9 + $0x278] sm:$0xff] }
 0x802   :  { %8119 = vmatpush.msrb.mxu1 %v8091_v19 }
 0x806   :  { %v7094_v51 = vpop.permute.xlu2 %7093 }
 0x807   :  { %7127 = vst.msk [vmem:[#allocation4 + $0x248] sm:$0xff] %vm6727_vm11, %v7094_v51  ;;  %v8074_v51 = vld [vmem:[#allocation9 + $0x28] sm:$0xff]  ;;  %v13914_v63 = vpop.f32.mrf.mxu0 }
 0x808   :  { %8143 = vmatpush.msrb.mxu2 %v8074_v51  ;;  %v8214_v51 = vld [vmem:[#allocation9 + $0x1f8] sm:$0xff] }
 0x80a   :  { %8144 = vmatpush.msrb.mxu2 %v8073_v58  ;;  %v8212_v58 = vld [vmem:[#allocation9 + $0x1e8] sm:$0xff] }
 0x80e   :  { %v7234_v28 = vld [vmem:[#allocation4 + $0x248] sm:$0xff]  ;;  %v7096_v3 = vpop.permute.xlu2 %7095 }
 0x80f   :  { %7618 = vmatmul.f32.gmra.mxu3 %v7234_v28  ;;  %7128 = vst.msk [vmem:[#allocation4 + $0x270] sm:$0xff] %vm6727_vm11, %v7096_v3 }
 0x816   :  { %v7239_v33 = vld [vmem:[#allocation4 + $0x270] sm:$0xff] }
 0x817   :  { %7621 = vmatmul.f32.gmra.mxu3 %v7239_v33 }
 0x81f   :  { %v6967_v46 = vpop.permute.xlu1 %6966 }
 0x820   :  { %6999 = vst.msk [vmem:[#allocation4 + $0x268] sm:$0xff] %vm6727_vm11, %v6967_v46  ;;  %v6839_v22 = vpop.permute.xlu0 %6838 }
 0x821   :  { %6871 = vst.msk [vmem:[#allocation4 + $0x260] sm:$0xff] %vm6727_vm11, %v6839_v22 }
 0x827   :  { %v7238_v57 = vld [vmem:[#allocation4 + $0x268] sm:$0xff] }
 0x828   :  { %v7237_v45 = vld [vmem:[#allocation4 + $0x260] sm:$0xff]  ;;  %7556 = vmatmul.f32.gmra.mxu2 %v7238_v57 }
 0x829   :  { %7491 = vmatmul.f32.gmra.mxu1 %v7237_v45  ;;  %v8159_v57 = vld [vmem:[#allocation9 + $0x120] sm:$0xff] }
 0x82a   :  { %8187 = vmatpush.msrb.mxu3 %v8159_v57  ;;  %v7413_v57 = vadd.f32 %v13841_v42, %v13793_v13  ;;  %v8300_v13 = vld [vmem:[#allocation9 + $0x2e0] sm:$0xff] }
 0x836   :  { %v7595_v39 = vpop.f32.mrf.mxu3 }
 0x838   :  { %v7465_v15 = vpop.f32.mrf.mxu1 }
 0x839   :  { %v7466_v4 = vadd.f32 %v7465_v15, %v7401_v37  ;;  %v8090_v37 = vld [vmem:[#allocation9 + $0x98] sm:$0xff] }
 0x83a   :  { %8120 = vmatpush.msrb.mxu1 %v8090_v37 }
 0x83b   :  { %v7531_v49 = vadd.f32 %v7530_v61, %v7466_v4  ;;  %v8072_v4 = vld [vmem:[#allocation9 + $0x18] sm:$0xff] }
 0x83c   :  { %v8158_v61 = vld [vmem:[#allocation9 + $0x118] sm:$0xff]  ;;  %8145 = vmatpush.msrb.mxu2 %v8072_v4  ;;  %8121 = vmatpush.msrb.mxu1 %v8089_v50  ;;  %v8211_v4 = vld [vmem:[#allocation9 + $0x1e0] sm:$0xff] }
 0x83d   :  { %v7596_v26 = vadd.f32 %v7595_v39, %v7531_v49  ;;  %8188 = vmatpush.msrb.mxu3 %v8158_v61 }
 0x83e   :  { %v7598_v10 = vpop.f32.mrf.mxu3  ;;  %8146 = vmatpush.msrb.mxu2 %v8071_v6  ;;  %8122 = vmatpush.msrb.mxu1 %v8088_v0  ;;  %v8299_v0 = vld [vmem:[#allocation9 + $0x2d8] sm:$0xff] }
 0x83f   :  { %v7661_v29 = vadd.f32 %v7660_v11, %v7596_v26  ;;  %8189 = vmatpush.msrb.mxu3 %v8157_v21 }
 0x840   :  { %v7468_v18 = vpop.f32.mrf.mxu1  ;;  %8147 = vmatpush.msrb.mxu2 %v8070_v44 }
 0x841   :  { %v7469_v38 = vadd.f32 %v7468_v18, %v7404_v9  ;;  %v7696_v47 = vmax.f32 %v7661_v29, 0.0  ;;  %v7410_v9 = vadd.f32 %v13841_v42, %v13782_v55  ;;  %v8087_v55 = vld [vmem:[#allocation9 + $0x80] sm:$0xff]  ;;  %8190 = vmatpush.msrb.mxu3 %v8156_v25 }
 0x842   :  { %8123 = vmatpush.msrb.mxu1 %v8087_v55  ;;  %8148 = vmatpush.msrb.mxu2 %v8069_v36  ;;  %v8254_v55 = vld [vmem:[#allocation9 + $0x250] sm:$0xff] }
 0x843   :  { %8191 = vmatpush.msrb.mxu3 %v8155_v31  ;;  %v8298_v36 = vld [vmem:[#allocation9 + $0x2d0] sm:$0xff]  ;;  %v8208_v31 = vld [vmem:[#allocation9 + $0x1c8] sm:$0xff] }
 0x844   :  { %8220 = vmatpush.msra.mxu1 %v8214_v51  ;;  %8265 = vmatpush.msra.mxu2 %v8259_v27  ;;  %v8253_v51 = vld [vmem:[#allocation9 + $0x248] sm:$0xff] }
 0x846   :  { %v7533_v20 = vpop.f32.mrf.mxu2 }
 0x847   :  { %v7534_v30 = vadd.f32 %v7533_v20, %v7469_v38  ;;  %v13905_v17 = vpop.f32.mrf.mxu3 }
 0x848   :  { %v7471_v1 = vpop.f32.mrf.mxu1 }
 0x849   :  { %v7599_v59 = vadd.f32 %v7598_v10, %v7534_v30  ;;  %v7472_v54 = vadd.f32 %v7471_v1, %v7407_v24 }
 0x84b   :  { %v7664_v35 = vadd.f32 %v7663_v56, %v7599_v59 }
 0x84d   :  { %v7697_v28 = vmax.f32 %v7664_v35, 0.0 }
 0x84f   :  { %v7709_v41 = vmax.f32 %v7696_v47, %v7697_v28  ;;  %v7536_v3 = vpop.f32.mrf.mxu2  ;;  %v13912_v5 = vpop.f32.mrf.mxu3 }
 0x850   :  { %v7474_v34 = vpop.f32.mrf.mxu1  ;;  %v7537_v15 = vadd.f32 %v7536_v3, %v7472_v54 }
 0x851   :  { %v7731_v33 = vrot.slane %v7709_v41, 2  ;;  %v7732_v46 = vrot.slane %v7709_v41, 4  ;;  %v7733_v22 = vrot.slane %v7709_v41, 6  ;;  %v7855_v43 = vsel %vm7770_vm12, %v7709_v41, -inf  ;;  %v8213_v41 = vld [vmem:[#allocation9 + $0x1f0] sm:$0xff] }
 0x852   :  { %v7856_v40 = vrot.slane %v7855_v43, 4  ;;  %v7602_v20 = vadd.f32 %v13905_v17, %v7537_v15  ;;  %v7475_v8 = vadd.f32 %v7474_v34, %v7410_v9  ;;  %v8303_v17 = vld [vmem:[#allocation9 + $0x2f8] sm:$0xff]  ;;  %8221 = vmatpush.msra.mxu1 %v8213_v41 }
 0x853   :  { %v7862_v45 = vsel %vm7770_vm12, %v7731_v33, -inf  ;;  %v7869_v11 = vsel %vm7770_vm12, %v7732_v46, -inf  ;;  %v7876_v39 = vsel %vm7770_vm12, %v7733_v22, -inf  ;;  %v8258_v33 = vld [vmem:[#allocation9 + $0x270] sm:$0xff]  ;;  %8309 = vmatpush.msra.mxu3 %v8303_v17 }
 0x854   :  { %v7857_v10 = vmax.f32 %v7855_v43, %v7856_v40  ;;  %v7863_v56 = vrot.slane %v7862_v45, 4  ;;  %v7870_v18 = vrot.slane %v7869_v11, 4  ;;  %v7877_v49 = vrot.slane %v7876_v39, 4  ;;  %v8302_v46 = vld [vmem:[#allocation9 + $0x2f0] sm:$0xff]  ;;  %8266 = vmatpush.msra.mxu2 %v8258_v33  ;;  %8222 = vmatpush.msra.mxu1 %v8212_v58  ;;  %v8611_v33 = vld [vmem:[#allocation9 + $0x668] sm:$0xff]  ;;  %v8206_v58 = vld [vmem:[#allocation9 + $0x1b8] sm:$0xff] }
 0x855   :  { %v7667_v3 = vadd.f32 %v13907_v7, %v7602_v20  ;;  %v8612_v40 = vld [vmem:[#allocation9 + $0x670] sm:$0xff]  ;;  %8310 = vmatpush.msra.mxu3 %v8302_v46 }
 0x856   :  { %v7858_v16 = vrot.slane %v7857_v10, 2  ;;  %v7864_v48 = vmax.f32 %v7862_v45, %v7863_v56  ;;  %v7871_v26 = vmax.f32 %v7869_v11, %v7870_v18  ;;  %v7878_v38 = vmax.f32 %v7876_v39, %v7877_v49  ;;  %v13928_v45 = vpop.f32.mrf.mxu0  ;;  %v8301_v11 = vld [vmem:[#allocation9 + $0x2e8] sm:$0xff]  ;;  %8620 = vmatpush.msra.mxu0 %v8612_v40  ;;  %v8256_v18 = vld [vmem:[#allocation9 + $0x260] sm:$0xff]  ;;  %8223 = vmatpush.msra.mxu1 %v8211_v4 }
 0x857   :  { %v7539_v30 = vpop.f32.mrf.mxu2  ;;  %v13924_v34 = vpop.f32.mrf.mxu3  ;;  %v7698_v61 = vmax.f32 %v7667_v3, 0.0  ;;  %8311 = vmatpush.msra.mxu3 %v8301_v11  ;;  %v8252_v3 = vld [vmem:[#allocation9 + $0x240] sm:$0xff] }
 0x858   :  { %v7859_v1 = vmax.f32 %v7857_v10, %v7858_v16  ;;  %v7865_v52 = vrot.slane %v7864_v48, 2  ;;  %v7872_v29 = vrot.slane %v7871_v26, 2  ;;  %v7879_v59 = vrot.slane %v7878_v38, 2  ;;  %v7477_v23 = vpop.f32.mrf.mxu1  ;;  %8621 = vmatpush.msra.mxu0 %v8611_v33  ;;  %v13944_v4 = vld [vmem:[%s14056_s4] ss:$0 sm:$0xff]  ;;  %v8201_v33 = vld [vmem:[#allocation9 + $0x190] sm:$0xff] }
 0x859   :  { %v7540_v35 = vadd.f32 %v7539_v30, %v7475_v8  ;;  %8312 = vmatpush.msra.mxu3 %v8300_v13  ;;  %v8294_v13 = vld [vmem:[#allocation9 + $0x2b0] sm:$0xff] }
 0x85a   :  { %v7860_v14 = vrot.slane %v7859_v1, 1  ;;  %v7866_v47 = vmax.f32 %v7864_v48, %v7865_v52  ;;  %v7873_v28 = vmax.f32 %v7871_v26, %v7872_v29  ;;  %v7880_v24 = vmax.f32 %v7878_v38, %v7879_v59  ;;  %v8210_v26 = vld [vmem:[#allocation9 + $0x1d8] sm:$0xff] }
 0x85b   :  { %v7605_v54 = vadd.f32 %v13912_v5, %v7540_v35  ;;  %v8257_v5 = vld [vmem:[#allocation9 + $0x268] sm:$0xff]  ;;  %v8255_v38 = vld [vmem:[#allocation9 + $0x258] sm:$0xff]  ;;  %8224 = vmatpush.msra.mxu1 %v8210_v26  ;;  %8313 = vmatpush.msra.mxu3 %v8299_v0 }
 0x85c   :  { %v7867_v22 = vrot.slane %v7866_v47, 1  ;;  %v7874_v43 = vrot.slane %v7873_v28, 1  ;;  %v7881_v19 = vrot.slane %v7880_v24, 1  ;;  %v7861_v39 = vmax.f32 %v7859_v1, %v7860_v14  ;;  %8267 = vmatpush.msra.mxu2 %v8257_v5  ;;  %v8297_v35 = vld [vmem:[#allocation9 + $0x2c8] sm:$0xff]  ;;  %v8295_v5 = vld [vmem:[#allocation9 + $0x2b8] sm:$0xff] }
 0x85d   :  { %v7670_v7 = vadd.f32 %v13914_v63, %v7605_v54  ;;  %v7478_v63 = vadd.f32 %v7477_v23, %v7413_v57  ;;  %v7416_v1 = vadd.f32 %v13841_v42, %v13804_v12  ;;  %8225 = vmatpush.msra.mxu1 %v8209_v53  ;;  %8314 = vmatpush.msra.mxu3 %v8298_v36  ;;  %v8296_v54 = vld [vmem:[#allocation9 + $0x2c0] sm:$0xff]  ;;  %v8293_v0 = vld [vmem:[#allocation9 + $0x2a8] sm:$0xff] }
 0x85e   :  { %v7868_v15 = vmax.f32 %v7866_v47, %v7867_v22  ;;  %v7875_v37 = vmax.f32 %v7873_v28, %v7874_v43  ;;  %v7882_v49 = vmax.f32 %v7880_v24, %v7881_v19  ;;  %8268 = vmatpush.msra.mxu2 %v8256_v18  ;;  %v8207_v28 = vld [vmem:[#allocation9 + $0x1c0] sm:$0xff]  ;;  %v7675_v24 = vpop.f32.mrf.mxu0  ;;  %v8250_v18 = vld [vmem:[#allocation9 + $0x230] sm:$0xff] }
 0x85f   :  { %v7699_v10 = vmax.f32 %v7670_v7, 0.0  ;;  %v7542_v56 = vpop.f32.mrf.mxu2  ;;  %v7610_v23 = vpop.f32.mrf.mxu3  ;;  %8226 = vmatpush.msra.mxu1 %v8208_v31  ;;  %8315 = vmatpush.msra.mxu3 %v8297_v35  ;;  %v8251_v7 = vld [vmem:[#allocation9 + $0x238] sm:$0xff]  ;;  %v8248_v53 = vld [vmem:[#allocation9 + $0x220] sm:$0xff] }
 0x860   :  { %v8036_v9 = vsel %vm1873_vm3, %v7868_v15, %v7861_v39  ;;  %v7480_v50 = vpop.f32.mrf.mxu1  ;;  %v7543_v48 = vadd.f32 %v7542_v56, %v7478_v63  ;;  %8269 = vmatpush.msra.mxu2 %v8255_v38 }
 0x861   :  { %v8037_v6 = vsel %vm1875_vm4, %v7875_v37, %v8036_v9  ;;  %v7710_v21 = vmax.f32 %v7698_v61, %v7699_v10  ;;  %v7481_v42 = vadd.f32 %v7480_v50, %v7416_v1  ;;  %8227 = vmatpush.msra.mxu1 %v8207_v28  ;;  %8316 = vmatpush.msra.mxu3 %v8296_v54  ;;  %v8205_v37 = vld [vmem:[#allocation9 + $0x1b0] sm:$0xff] }
 0x862   :  { %v8038_v16 = vsel %vm1877_vm5, %v7882_v49, %v8037_v6  ;;  %8270 = vmatpush.msra.mxu2 %v8254_v55  ;;  %v7608_v12 = vadd.f32 %v13924_v34, %v7543_v48  ;;  %v7419_v61 = vadd.f32 %v13944_v4, %v13812_v62  ;;  %v8610_v49 = vld [vmem:[#allocation9 + $0x660] sm:$0xff]  ;;  %v8249_v48 = vld [vmem:[#allocation9 + $0x228] sm:$0xff] }
 0x863   :  { %8062 = vst [vmem:[#allocation5 + $0xc] sm:$0xf] %v8038_v16  ;;  %v7734_v44 = vrot.slane %v7710_v21, 2  ;;  %v7735_v25 = vrot.slane %v7710_v21, 4  ;;  %v7736_v20 = vrot.slane %v7710_v21, 6  ;;  %v7883_v8 = vsel %vm7770_vm12, %v7710_v21, -inf  ;;  %8228 = vmatpush.msra.mxu1 %v8206_v58  ;;  %8317 = vmatpush.msra.mxu3 %v8295_v5 }
 0x864   :  { %v7884_v30 = vrot.slane %v7883_v8, 4  ;;  %8271 = vmatpush.msra.mxu2 %v8253_v51  ;;  %v7673_v10 = vadd.f32 %v13928_v45, %v7608_v12  ;;  %v8204_v21 = vld [vmem:[#allocation9 + $0x1a8] sm:$0xff]  ;;  %8622 = vmatpush.msra.mxu0 %v8610_v49 }
 0x865   :  { %v7890_v52 = vsel %vm7770_vm12, %v7734_v44, -inf  ;;  %v7897_v29 = vsel %vm7770_vm12, %v7735_v25, -inf  ;;  %v7904_v59 = vsel %vm7770_vm12, %v7736_v20, -inf  ;;  %8229 = vmatpush.msra.mxu1 %v8205_v37  ;;  %8318 = vmatpush.msra.mxu3 %v8294_v13  ;;  %v8203_v44 = vld [vmem:[#allocation9 + $0x1a0] sm:$0xff] }
 0x866   :  { %v7885_v27 = vmax.f32 %v7883_v8, %v7884_v30  ;;  %v7891_v17 = vrot.slane %v7890_v52, 4  ;;  %v7898_v14 = vrot.slane %v7897_v29, 4  ;;  %v7905_v47 = vrot.slane %v7904_v59, 4  ;;  %8272 = vmatpush.msra.mxu2 %v8252_v3 }
 0x867   :  { %v7545_v41 = vpop.f32.mrf.mxu2  ;;  %v7700_v25 = vmax.f32 %v7673_v10, 0.0  ;;  %v7613_v8 = vpop.f32.mrf.mxu3  ;;  %8230 = vmatpush.msra.mxu1 %v8204_v21  ;;  %8319 = vmatpush.msra.mxu3 %v8293_v0  ;;  %v8199_v10 = vld [vmem:[#allocation9 + $0x180] sm:$0xff] }
 0x868   :  { %v7886_v46 = vrot.slane %v7885_v27, 2  ;;  %v7892_v22 = vmax.f32 %v7890_v52, %v7891_v17  ;;  %v7899_v43 = vmax.f32 %v7897_v29, %v7898_v14  ;;  %v7906_v19 = vmax.f32 %v7904_v59, %v7905_v47  ;;  %v7483_v57 = vpop.f32.mrf.mxu1  ;;  %8273 = vmatpush.msra.mxu2 %v8251_v7  ;;  %v8292_v29 = vld [vmem:[#allocation9 + $0x2a0] sm:$0xff]  ;;  %v7678_v59 = vpop.f32.mrf.mxu0  ;;  %v8247_v17 = vld [vmem:[#allocation9 + $0x218] sm:$0xff] }
 0x869   :  { %v7546_v40 = vadd.f32 %v7545_v41, %v7481_v42  ;;  %v7484_v45 = vadd.f32 %v7483_v57, %v7419_v61  ;;  %8231 = vmatpush.msra.mxu1 %v8203_v44  ;;  %v8291_v14 = vld [vmem:[#allocation9 + $0x298] sm:$0xff]  ;;  %8320 = vmatpush.msra.mxu3 %v8292_v29  ;;  %v7422_v41 = vadd.f32 %v13944_v4, %v13819_v2  ;;  %v8289_v61 = vld [vmem:[#allocation9 + $0x288] sm:$0xff] }
 0x86a   :  { %v7887_v34 = vmax.f32 %v7885_v27, %v7886_v46  ;;  %v7893_v11 = vrot.slane %v7892_v22, 2  ;;  %v7900_v39 = vrot.slane %v7899_v43, 2  ;;  %v7907_v15 = vrot.slane %v7906_v19, 2  ;;  %8274 = vmatpush.msra.mxu2 %v8250_v18  ;;  %v8202_v27 = vld [vmem:[#allocation9 + $0x198] sm:$0xff]  ;;  %v8246_v46 = vld [vmem:[#allocation9 + $0x210] sm:$0xff] }
 0x86b   :  { %v7611_v56 = vadd.f32 %v7610_v23, %v7546_v40  ;;  %8232 = vmatpush.msra.mxu1 %v8202_v27  ;;  %8321 = vmatpush.msra.mxu3 %v8291_v14  ;;  %v8608_v14 = vld [vmem:[#allocation9 + $0x650] sm:$0xff] }
 0x86c   :  { %v7888_v9 = vrot.slane %v7887_v34, 1  ;;  %v7894_v63 = vmax.f32 %v7892_v22, %v7893_v11  ;;  %v7901_v50 = vmax.f32 %v7899_v43, %v7900_v39  ;;  %v7908_v6 = vmax.f32 %v7906_v19, %v7907_v15  ;;  %8275 = vmatpush.msra.mxu2 %v8249_v48  ;;  %v8290_v22 = vld [vmem:[#allocation9 + $0x290] sm:$0xff]  ;;  %v8245_v11 = vld [vmem:[#allocation9 + $0x208] sm:$0xff] }
 0x86d   :  { %v7676_v16 = vadd.f32 %v7675_v24, %v7611_v56  ;;  %8233 = vmatpush.msra.mxu1 %v8201_v33  ;;  %8322 = vmatpush.msra.mxu3 %v8290_v22  ;;  %v8244_v56 = vld [vmem:[#allocation9 + $0x200] sm:$0xff] }
 0x86e   :  { %v7895_v26 = vrot.slane %v7894_v63, 1  ;;  %v7902_v62 = vrot.slane %v7901_v50, 1  ;;  %v7909_v38 = vrot.slane %v7908_v6, 1  ;;  %v7889_v55 = vmax.f32 %v7887_v34, %v7888_v9  ;;  %8276 = vmatpush.msra.mxu2 %v8248_v53  ;;  %v8200_v34 = vld [vmem:[#allocation9 + $0x188] sm:$0xff] }
 0x86f   :  { %v7701_v20 = vmax.f32 %v7676_v16, 0.0  ;;  %v7548_v30 = vpop.f32.mrf.mxu2  ;;  %8234 = vmatpush.msra.mxu1 %v8200_v34  ;;  %v7616_v21 = vpop.f32.mrf.mxu3  ;;  %8323 = vmatpush.msra.mxu3 %v8289_v61  ;;  %v8607_v61 = vld [vmem:[#allocation9 + $0x648] sm:$0xff] }
 0x870   :  { %v7896_v36 = vmax.f32 %v7894_v63, %v7895_v26  ;;  %v7903_v1 = vmax.f32 %v7901_v50, %v7902_v62  ;;  %v7549_v52 = vadd.f32 %v7548_v30, %v7484_v45  ;;  %v7910_v31 = vmax.f32 %v7908_v6, %v7909_v38  ;;  %v7486_v42 = vpop.f32.mrf.mxu1  ;;  %8277 = vmatpush.msra.mxu2 %v8247_v17  ;;  %v8288_v63 = vld [vmem:[#allocation9 + $0x280] sm:$0xff]  ;;  %v8609_v50 = vld [vmem:[#allocation9 + $0x658] sm:$0xff]  ;;  %v7681_v38 = vpop.f32.mrf.mxu0 }
 0x871   :  { %v7711_v23 = vmax.f32 %v7700_v25, %v7701_v20  ;;  %v7487_v5 = vadd.f32 %v7486_v42, %v7422_v41  ;;  %8235 = vmatpush.msra.mxu1 %v8199_v10  ;;  %8623 = vmatpush.msra.mxu0 %v8609_v50  ;;  %v8085_v30 = vld [vmem:[#allocation5 + $0x1] sm:$0x1]  ;;  %v8391_v42 = vld [vmem:[#allocation9 + $0x3f8] sm:$0xff] }
 0x872   :  { %v8039_v51 = vsel %vm1873_vm3, %v7896_v36, %v7889_v55  ;;  %v7614_v35 = vadd.f32 %v7613_v8, %v7549_v52  ;;  %8278 = vmatpush.msra.mxu2 %v8246_v46  ;;  %8324 = vmatpush.msra.mxu3 %v8288_v63  ;;  %v8067_v55 = vld [vmem:[#allocation5] sm:$0x1]  ;;  %v8436_v46 = vld [vmem:[#allocation9 + $0x478] sm:$0xff] }
 0x873   :  { %v8040_v47 = vsel %vm1875_vm4, %v7903_v1, %v8039_v51  ;;  %v7737_v28 = vrot.slane %v7711_v23, 2  ;;  %v7738_v24 = vrot.slane %v7711_v23, 4  ;;  %v7739_v12 = vrot.slane %v7711_v23, 6  ;;  %8624 = vmatpush.msra.mxu0 %v8608_v14 }
 0x874   :  { %v8041_v3 = vsel %vm1877_vm5, %v7910_v31, %v8040_v47  ;;  %v7911_v54 = vsel %vm7770_vm12, %v7711_v23, -inf  ;;  %v7679_v15 = vadd.f32 %v7678_v59, %v7614_v35  ;;  %8279 = vmatpush.msra.mxu2 %v8245_v11  ;;  %v8153_v23 = vld [vmem:[#allocation5 + $0x2] sm:$0x1] }
 0x875   :  { %8063 = vst [vmem:[#allocation5 + $0x10] sm:$0xf] %v8041_v3  ;;  %v7912_v43 = vrot.slane %v7911_v54, 4  ;;  %v7918_v19 = vsel %vm7770_vm12, %v7737_v28, -inf  ;;  %v7925_v58 = vsel %vm7770_vm12, %v7738_v24, -inf  ;;  %v7932_v40 = vsel %vm7770_vm12, %v7739_v12, -inf  ;;  %8625 = vmatpush.msra.mxu0 %v8607_v61 }
 0x876   :  { %v7919_v57 = vrot.slane %v7918_v19, 4  ;;  %v7926_v2 = vrot.slane %v7925_v58, 4  ;;  %v7933_v7 = vrot.slane %v7932_v40, 4  ;;  %8280 = vmatpush.msra.mxu2 %v8244_v56  ;;  %v7702_v0 = vmax.f32 %v7679_v15, 0.0  ;;  %v8347_v12 = vld [vmem:[#allocation9 + $0x378] sm:$0xff]  ;;  %v8389_v15 = vld [vmem:[#allocation9 + $0x3e8] sm:$0xff] }
 0x877   :  { %v7913_v39 = vmax.f32 %v7911_v54, %v7912_v43  ;;  %v7551_v37 = vpop.f32.mrf.mxu2  ;;  %v8605_v61 = vld [vmem:[#allocation9 + $0x638] sm:$0xff] }
 0x878   :  { %v7920_v18 = vmax.f32 %v7918_v19, %v7919_v57  ;;  %v7927_v13 = vmax.f32 %v7925_v58, %v7926_v2  ;;  %v7934_v49 = vmax.f32 %v7932_v40, %v7933_v7  ;;  %v7552_v9 = vadd.f32 %v7551_v37, %v7487_v5  ;;  %v8346_v19 = vld [vmem:[#allocation9 + $0x370] sm:$0xff] }
 0x879   :  { %v7914_v6 = vrot.slane %v7913_v39, 2  ;;  %v8390_v58 = vld [vmem:[#allocation9 + $0x3f0] sm:$0xff] }
 0x87a   :  { %v7921_v16 = vrot.slane %v7920_v18, 2  ;;  %v7928_v48 = vrot.slane %v7927_v13, 2  ;;  %v7935_v26 = vrot.slane %v7934_v49, 2  ;;  %v7617_v62 = vadd.f32 %v7616_v21, %v7552_v9  ;;  %v8435_v5 = vld [vmem:[#allocation9 + $0x470] sm:$0xff]  ;;  %v8344_v9 = vld [vmem:[#allocation9 + $0x360] sm:$0xff] }
 0x87b   :  { %v7915_v45 = vmax.f32 %v7913_v39, %v7914_v6  ;;  %v8345_v39 = vld [vmem:[#allocation9 + $0x368] sm:$0xff]  ;;  %v8388_v21 = vld [vmem:[#allocation9 + $0x3e0] sm:$0xff] }
 0x87c   :  { %v7922_v44 = vmax.f32 %v7920_v18, %v7921_v16  ;;  %v7929_v25 = vmax.f32 %v7927_v13, %v7928_v48  ;;  %v7936_v20 = vmax.f32 %v7934_v49, %v7935_v26  ;;  %v7682_v8 = vadd.f32 %v7681_v38, %v7617_v62  ;;  %v8086_v53 = vld [vmem:[#allocation5 + $0x11] sm:$0x1]  ;;  %v8068_v36 = vld [vmem:[#allocation5 + $0x10] sm:$0x1]  ;;  %v8154_v1 = vld [vmem:[#allocation5 + $0x12] sm:$0x1] }
 0x87d   :  { %v7916_v52 = vrot.slane %v7915_v45, 1  ;;  %v8105_v29 = vrot.slane %v8086_v53, 7  ;;  %v8130_v59 = vrot.slane %v8068_v36, 7  ;;  %v8173_v31 = vrot.slane %v8154_v1, 7  ;;  %v8198_v22 = vld [vmem:[#allocation5 + $0x13] sm:$0x1] }
 0x87e   :  { %v7923_v51 = vrot.slane %v7922_v44, 1  ;;  %v7930_v35 = vrot.slane %v7929_v25, 1  ;;  %v7937_v27 = vrot.slane %v7936_v20, 1  ;;  %v7703_v17 = vmax.f32 %v7682_v8, 0.0  ;;  %v8434_v49 = vld [vmem:[#allocation9 + $0x468] sm:$0xff]  ;;  %v8433_v26 = vld [vmem:[#allocation9 + $0x460] sm:$0xff] }
 0x87f   :  { %v8106_v47 = vsel %vm1873_vm3, %v8105_v29, %v8085_v30  ;;  %v8131_v28 = vsel %vm1873_vm3, %v8130_v59, %v8067_v55  ;;  %v8174_v24 = vsel %vm1873_vm3, %v8173_v31, %v8153_v23  ;;  %v7917_v41 = vmax.f32 %v7915_v45, %v7916_v52  ;;  %v8197_v45 = vld [vmem:[#allocation5 + $0x3] sm:$0x1]  ;;  %v8432_v30 = vld [vmem:[#allocation9 + $0x458] sm:$0xff]  ;;  %v8342_v1 = vld [vmem:[#allocation9 + $0x350] sm:$0xff] }
 0x880   :  { %v7924_v3 = vmax.f32 %v7922_v44, %v7923_v51  ;;  %v7931_v54 = vmax.f32 %v7929_v25, %v7930_v35  ;;  %v7712_v33 = vmax.f32 %v7702_v0, %v7703_v17  ;;  %8124 = vmatmul.f32.vlgmr.msrb.gmra.mxu1 %v8106_v47  ;;  %v7938_v43 = vmax.f32 %v7936_v20, %v7937_v27  ;;  %v8343_v0 = vld [vmem:[#allocation9 + $0x358] sm:$0xff]  ;;  %v8606_v53 = vld [vmem:[#allocation9 + $0x640] sm:$0xff]  ;;  %v8386_v52 = vld [vmem:[#allocation9 + $0x3d0] sm:$0xff] }
 0x881   :  { %8149 = vmatmul.f32.vlgmr.msrb.gmra.mxu2 %v8131_v28  ;;  %8192 = vmatmul.f32.vlgmr.msrb.gmra.mxu3 %v8174_v24  ;;  %v8217_v37 = vrot.slane %v8198_v22, 7  ;;  %v8387_v44 = vld [vmem:[#allocation9 + $0x3d8] sm:$0xff]  ;;  %v8431_v23 = vld [vmem:[#allocation9 + $0x450] sm:$0xff]  ;;  %v8341_v35 = vld [vmem:[#allocation9 + $0x348] sm:$0xff] }
 0x882   :  { %v8042_v40 = vsel %vm1873_vm3, %v7924_v3, %v7917_v41  ;;  %v7740_v57 = vrot.slane %v7712_v33, 2  ;;  %v7741_v2 = vrot.slane %v7712_v33, 4  ;;  %v7742_v7 = vrot.slane %v7712_v33, 6  ;;  %8353 = vmatpush.msrb.mxu1 %v8347_v12  ;;  %8397 = vmatpush.msrb.mxu2 %v8391_v42  ;;  %v8385_v27 = vld [vmem:[#allocation9 + $0x3c8] sm:$0xff]  ;;  %v8340_v41 = vld [vmem:[#allocation9 + $0x340] sm:$0xff] }
 0x883   :  { %v8043_v34 = vsel %vm1875_vm4, %v7931_v54, %v8042_v40  ;;  %v7939_v11 = vsel %vm7770_vm12, %v7712_v33, -inf  ;;  %8442 = vmatpush.msrb.mxu3 %v8436_v46  ;;  %v8218_v8 = vsel %vm1873_vm3, %v8217_v37, %v8197_v45  ;;  %8626 = vmatpush.msra.mxu0 %v8606_v53  ;;  %v8430_v47 = vld [vmem:[#allocation9 + $0x448] sm:$0xff]  ;;  %v8384_v3 = vld [vmem:[#allocation9 + $0x3c0] sm:$0xff]  ;;  %v8338_v37 = vld [vmem:[#allocation9 + $0x330] sm:$0xff] }
 0x884   :  { %v8044_v10 = vsel %vm1877_vm5, %v7938_v43, %v8043_v34  ;;  %v7940_v56 = vrot.slane %v7939_v11, 4  ;;  %v7946_v18 = vsel %vm7770_vm12, %v7740_v57, -inf  ;;  %v7953_v13 = vsel %vm7770_vm12, %v7741_v2, -inf  ;;  %8354 = vmatpush.msrb.mxu1 %v8346_v19  ;;  %8398 = vmatpush.msrb.mxu2 %v8390_v58  ;;  %v8429_v43 = vld [vmem:[#allocation9 + $0x440] sm:$0xff]  ;;  %v8383_v34 = vld [vmem:[#allocation9 + $0x3b8] sm:$0xff]  ;;  %v8334_v45 = vld [vmem:[#allocation9 + $0x310] sm:$0xff] }
 0x885   :  { %8064 = vst [vmem:[#allocation5 + $0x14] sm:$0xf] %v8044_v10  ;;  %v7947_v63 = vrot.slane %v7946_v18, 4  ;;  %v7954_v50 = vrot.slane %v7953_v13, 4  ;;  %v7960_v6 = vsel %vm7770_vm12, %v7742_v7, -inf  ;;  %8443 = vmatpush.msrb.mxu3 %v8435_v5  ;;  %v8339_v5 = vld [vmem:[#allocation9 + $0x338] sm:$0xff]  ;;  %8627 = vmatpush.msra.mxu0 %v8605_v61 }
 0x886   :  { %v7941_v16 = vmax.f32 %v7939_v11, %v7940_v56  ;;  %v7961_v48 = vrot.slane %v7960_v6, 4  ;;  %8355 = vmatpush.msrb.mxu1 %v8345_v39  ;;  %8399 = vmatpush.msrb.mxu2 %v8389_v15  ;;  %v8242_v19 = vld [vmem:[#allocation5 + $0x4] sm:$0x1]  ;;  %v8286_v58 = vld [vmem:[#allocation5 + $0x5] sm:$0x1]  ;;  %v8428_v11 = vld [vmem:[#allocation9 + $0x438] sm:$0xff] }
 0x887   :  { %v7948_v62 = vmax.f32 %v7946_v18, %v7947_v63  ;;  %v7955_v38 = vmax.f32 %v7953_v13, %v7954_v50  ;;  %8444 = vmatpush.msrb.mxu3 %v8434_v49  ;;  %v8382_v56 = vld [vmem:[#allocation9 + $0x3b0] sm:$0xff]  ;;  %v8337_v49 = vld [vmem:[#allocation9 + $0x328] sm:$0xff]  ;;  %v8564_v61 = vld [vmem:[#allocation9 + $0x5d8] sm:$0xff] }
 0x888   :  { %v7942_v25 = vrot.slane %v7941_v16, 2  ;;  %v7962_v20 = vmax.f32 %v7960_v6, %v7961_v48  ;;  %8356 = vmatpush.msrb.mxu1 %v8344_v9  ;;  %8400 = vmatpush.msrb.mxu2 %v8388_v21  ;;  %v8427_v18 = vld [vmem:[#allocation9 + $0x430] sm:$0xff]  ;;  %v8381_v63 = vld [vmem:[#allocation9 + $0x3a8] sm:$0xff]  ;;  %v8336_v6 = vld [vmem:[#allocation9 + $0x320] sm:$0xff] }
 0x889   :  { %v7949_v55 = vrot.slane %v7948_v62, 2  ;;  %v7956_v36 = vrot.slane %v7955_v38, 2  ;;  %8445 = vmatpush.msrb.mxu3 %v8433_v26  ;;  %8236 = vmatmul.f32.vlgmr.msra.gmra.mxu1 %v8218_v8  ;;  %v8604_v9 = vld [vmem:[#allocation9 + $0x630] sm:$0xff]  ;;  %v8426_v50 = vld [vmem:[#allocation9 + $0x428] sm:$0xff]  ;;  %v8380_v21 = vld [vmem:[#allocation9 + $0x3a0] sm:$0xff] }
 0x88a   :  { %v7943_v29 = vmax.f32 %v7941_v16, %v7942_v25  ;;  %v7963_v59 = vrot.slane %v7962_v20, 2  ;;  %8357 = vmatpush.msrb.mxu1 %v8343_v0  ;;  %8401 = vmatpush.msrb.mxu2 %v8387_v44  ;;  %v8425_v16 = vld [vmem:[#allocation9 + $0x420] sm:$0xff]  ;;  %v8335_v48 = vld [vmem:[#allocation9 + $0x318] sm:$0xff]  ;;  %v8378_v0 = vld [vmem:[#allocation9 + $0x390] sm:$0xff] }
 0x88b   :  { %v7950_v31 = vmax.f32 %v7948_v62, %v7949_v55  ;;  %v7957_v51 = vmax.f32 %v7955_v38, %v7956_v36  ;;  %8446 = vmatpush.msrb.mxu3 %v8432_v30  ;;  %8628 = vmatpush.msra.mxu0 %v8604_v9  ;;  %v8379_v26 = vld [vmem:[#allocation9 + $0x398] sm:$0xff]  ;;  %v8603_v38 = vld [vmem:[#allocation9 + $0x628] sm:$0xff]  ;;  %v8423_v44 = vld [vmem:[#allocation9 + $0x410] sm:$0xff] }
 0x88c   :  { %v7944_v17 = vrot.slane %v7943_v29, 1  ;;  %v7964_v14 = vmax.f32 %v7962_v20, %v7963_v59  ;;  %8358 = vmatpush.msrb.mxu1 %v8342_v1  ;;  %8402 = vmatpush.msrb.mxu2 %v8386_v52  ;;  %v8243_v28 = vld [vmem:[#allocation5 + $0x14] sm:$0x1]  ;;  %v8287_v24 = vld [vmem:[#allocation5 + $0x15] sm:$0x1]  ;;  %v8424_v62 = vld [vmem:[#allocation9 + $0x418] sm:$0xff] }
 0x88d   :  { %v7951_v12 = vrot.slane %v7950_v31, 1  ;;  %v7958_v42 = vrot.slane %v7957_v51, 1  ;;  %8447 = vmatpush.msrb.mxu3 %v8431_v23  ;;  %v8262_v54 = vrot.slane %v8243_v28, 7  ;;  %v8306_v33 = vrot.slane %v8287_v24, 7  ;;  %v8331_v25 = vld [vmem:[#allocation5 + $0x16] sm:$0x1]  ;;  %8629 = vmatpush.msra.mxu0 %v8603_v38 }
 0x88e   :  { %v7945_v46 = vmax.f32 %v7943_v29, %v7944_v17  ;;  %v7965_v22 = vrot.slane %v7964_v14, 1  ;;  %8359 = vmatpush.msrb.mxu1 %v8341_v35  ;;  %8403 = vmatpush.msrb.mxu2 %v8385_v27  ;;  %v8375_v20 = vld [vmem:[#allocation5 + $0x17] sm:$0x1]  ;;  %v8333_v8 = vld [vmem:[#allocation9 + $0x308] sm:$0xff]  ;;  %v8332_v36 = vld [vmem:[#allocation9 + $0x300] sm:$0xff]  ;;  %v8350_v1 = vrot.slane %v8331_v25, 7  ;;  %v7489_v29 = vpop.f32.mrf.mxu1 }
 0x88f   :  { %v7952_v40 = vmax.f32 %v7950_v31, %v7951_v12  ;;  %v7959_v57 = vmax.f32 %v7957_v51, %v7958_v42  ;;  %8448 = vmatpush.msrb.mxu3 %v8430_v47  ;;  %v8263_v2 = vsel %vm1873_vm3, %v8262_v54, %v8242_v19  ;;  %v8307_v7 = vsel %vm1873_vm3, %v8306_v33, %v8286_v58  ;;  %v8377_v53 = vld [vmem:[#allocation9 + $0x388] sm:$0xff]  ;;  %v8376_v59 = vld [vmem:[#allocation9 + $0x380] sm:$0xff]  ;;  %v8480_v27 = vld [vmem:[#allocation9 + $0x4f8] sm:$0xff]  ;;  %v7554_v12 = vpop.f32.mrf.mxu2 }
 0x890   :  { %8360 = vmatpush.msrb.mxu1 %v8340_v41  ;;  %8404 = vmatpush.msrb.mxu2 %v8384_v3  ;;  %v7966_v39 = vmax.f32 %v7964_v14, %v7965_v22  ;;  %v8422_v55 = vld [vmem:[#allocation9 + $0x408] sm:$0xff]  ;;  %v8394_v52 = vrot.slane %v8375_v20, 7  ;;  %v8421_v23 = vld [vmem:[#allocation9 + $0x400] sm:$0xff]  ;;  %v8524_v17 = vld [vmem:[#allocation9 + $0x578] sm:$0xff]  ;;  %v7425_v54 = vadd.f32 %v13944_v4, %v13826_v60  ;;  %v7684_v22 = vpop.f32.mrf.mxu0 }
 0x891   :  { %v8045_v15 = vsel %vm1873_vm3, %v7952_v40, %v7945_v46  ;;  %8449 = vmatpush.msrb.mxu3 %v8429_v43  ;;  %8281 = vmatmul.f32.vlgmr.msra.gmra.mxu2 %v8263_v2  ;;  %v8330_v51 = vld [vmem:[#allocation5 + $0x6] sm:$0x1]  ;;  %v8374_v35 = vld [vmem:[#allocation5 + $0x7] sm:$0x1]  ;;  %v8568_v28 = vld [vmem:[#allocation9 + $0x5f8] sm:$0xff] }
 0x892   :  { %v8046_v10 = vsel %vm1875_vm4, %v7959_v57, %v8045_v15  ;;  %8325 = vmatmul.f32.vlgmr.msra.gmra.mxu3 %v8307_v7  ;;  %8361 = vmatpush.msrb.mxu1 %v8339_v5  ;;  %v8351_v14 = vsel %vm1873_vm3, %v8350_v1, %v8330_v51  ;;  %v8395_v47 = vsel %vm1873_vm3, %v8394_v52, %v8374_v35  ;;  %v8419_v24 = vld [vmem:[#allocation5 + $0x8] sm:$0x1]  ;;  %v7619_v42 = vpop.f32.mrf.mxu3  ;;  %v8479_v3 = vld [vmem:[#allocation9 + $0x4f0] sm:$0xff]  ;;  %v8477_v57 = vld [vmem:[#allocation9 + $0x4e0] sm:$0xff] }
 0x893   :  { %v8047_v13 = vsel %vm1877_vm5, %v7966_v39, %v8046_v10  ;;  %8405 = vmatpush.msrb.mxu2 %v8383_v34  ;;  %8450 = vmatpush.msrb.mxu3 %v8428_v11  ;;  %v8523_v33 = vld [vmem:[#allocation9 + $0x570] sm:$0xff]  ;;  %v8478_v43 = vld [vmem:[#allocation9 + $0x4e8] sm:$0xff]  ;;  %v7490_v19 = vadd.f32 %v7489_v29, %v7425_v54  ;;  %v7428_v7 = vadd.f32 %v13944_v4, %v13835_v32  ;;  %v8521_v5 = vld [vmem:[#allocation9 + $0x560] sm:$0xff] }
 0x894   :  { %8065 = vst [vmem:[#allocation5 + $0x18] sm:$0xf] %v8047_v13  ;;  %8362 = vmatpush.msrb.mxu1 %v8338_v37  ;;  %v8567_v46 = vld [vmem:[#allocation9 + $0x5f0] sm:$0xff]  ;;  %v8522_v58 = vld [vmem:[#allocation9 + $0x568] sm:$0xff]  ;;  %v8565_v34 = vld [vmem:[#allocation9 + $0x5e0] sm:$0xff] }
 0x895   :  { %8406 = vmatpush.msrb.mxu2 %v8382_v56  ;;  %8451 = vmatpush.msrb.mxu3 %v8427_v18  ;;  %v8566_v40 = vld [vmem:[#allocation9 + $0x5e8] sm:$0xff]  ;;  %v7555_v60 = vadd.f32 %v7554_v12, %v7490_v19  ;;  %v8476_v11 = vld [vmem:[#allocation9 + $0x4d8] sm:$0xff]  ;;  %v8475_v10 = vld [vmem:[#allocation9 + $0x4d0] sm:$0xff] }
 0x896   :  { %8363 = vmatpush.msrb.mxu1 %v8337_v49  ;;  %v8520_v37 = vld [vmem:[#allocation9 + $0x558] sm:$0xff]  ;;  %v8519_v13 = vld [vmem:[#allocation9 + $0x550] sm:$0xff]  ;;  %v8602_v49 = vld [vmem:[#allocation9 + $0x620] sm:$0xff] }
 0x897   :  { %8407 = vmatpush.msrb.mxu2 %v8381_v63  ;;  %8452 = vmatpush.msrb.mxu3 %v8426_v50  ;;  %v7620_v39 = vadd.f32 %v7619_v42, %v7555_v60  ;;  %v8563_v32 = vld [vmem:[#allocation9 + $0x5d0] sm:$0xff]  ;;  %v8474_v9 = vld [vmem:[#allocation9 + $0x4c8] sm:$0xff]  ;;  %v8516_v25 = vld [vmem:[#allocation9 + $0x538] sm:$0xff] }
 0x898   :  { %8364 = vmatpush.msrb.mxu1 %v8336_v6  ;;  %v7687_v63 = vpop.f32.mrf.mxu0  ;;  %v8518_v6 = vld [vmem:[#allocation9 + $0x548] sm:$0xff]  ;;  %8630 = vmatpush.msra.mxu0 %v8602_v49  ;;  %v8560_v20 = vld [vmem:[#allocation9 + $0x5b8] sm:$0xff]  ;;  %v8600_v1 = vld [vmem:[#allocation9 + $0x610] sm:$0xff] }
 0x899   :  { %8408 = vmatpush.msrb.mxu2 %v8380_v21  ;;  %8453 = vmatpush.msrb.mxu3 %v8425_v16  ;;  %v7685_v50 = vadd.f32 %v7684_v22, %v7620_v39  ;;  %v8562_v21 = vld [vmem:[#allocation9 + $0x5c8] sm:$0xff]  ;;  %v8557_v12 = vld [vmem:[#allocation9 + $0x5a0] sm:$0xff]  ;;  %v8512_v22 = vld [vmem:[#allocation9 + $0x518] sm:$0xff] }
 0x89a   :  { %8365 = vmatpush.msrb.mxu1 %v8335_v48  ;;  %v7622_v18 = vpop.f32.mrf.mxu3  ;;  %v8473_v48 = vld [vmem:[#allocation9 + $0x4c0] sm:$0xff]  ;;  %v8470_v52 = vld [vmem:[#allocation9 + $0x4a8] sm:$0xff] }
 0x89b   :  { %8409 = vmatpush.msrb.mxu2 %v8379_v26  ;;  %8454 = vmatpush.msrb.mxu3 %v8424_v62  ;;  %v8420_v30 = vld [vmem:[#allocation5 + $0x18] sm:$0x1]  ;;  %v8517_v26 = vld [vmem:[#allocation9 + $0x540] sm:$0xff]  ;;  %v8514_v51 = vld [vmem:[#allocation9 + $0x528] sm:$0xff] }
 0x89c   :  { %8366 = vmatpush.msrb.mxu1 %v8334_v45  ;;  %v8439_v31 = vrot.slane %v8420_v30, 7  ;;  %v8561_v62 = vld [vmem:[#allocation9 + $0x5c0] sm:$0xff]  ;;  %v8601_v45 = vld [vmem:[#allocation9 + $0x618] sm:$0xff]  ;;  %v8471_v30 = vld [vmem:[#allocation9 + $0x4b0] sm:$0xff] }
 0x89d   :  { %8410 = vmatpush.msrb.mxu2 %v8378_v0  ;;  %8455 = vmatpush.msrb.mxu3 %v8423_v44  ;;  %v8472_v0 = vld [vmem:[#allocation9 + $0x4b8] sm:$0xff]  ;;  %v7704_v44 = vmax.f32 %v7685_v50, 0.0  ;;  %v8558_v35 = vld [vmem:[#allocation9 + $0x5a8] sm:$0xff] }
 0x89e   :  { %8367 = vmatpush.msrb.mxu1 %v8333_v8  ;;  %v8440_v41 = vsel %vm1873_vm3, %v8439_v31, %v8419_v24  ;;  %8631 = vmatpush.msra.mxu0 %v8601_v45  ;;  %v8513_v24 = vld [vmem:[#allocation9 + $0x520] sm:$0xff]  ;;  %v8464_v19 = vld [vmem:[#allocation5 + $0x19] sm:$0x1]  ;;  %v8508_v60 = vld [vmem:[#allocation5 + $0x1a] sm:$0x1] }
 0x89f   :  { %8411 = vmatpush.msrb.mxu2 %v8377_v53  ;;  %8456 = vmatpush.msrb.mxu3 %v8422_v55  ;;  %v8515_v55 = vld [vmem:[#allocation9 + $0x530] sm:$0xff] }
 0x8a0   :  { %8368 = vmatpush.msrb.mxu1 %v8332_v36  ;;  %v8559_v36 = vld [vmem:[#allocation9 + $0x5b0] sm:$0xff]  ;;  %8632 = vmatpush.msra.mxu0 %v8600_v1  ;;  %v8745_v1 = vld [vmem:[#allocation9 + $0x7f8] sm:$0xff] }
 0x8a1   :  { %8412 = vmatpush.msrb.mxu2 %v8376_v59  ;;  %8457 = vmatpush.msrb.mxu3 %v8421_v23 }
 0x8a2   :  { %8369 = vmatmul.f32.vlgmr.msrb.gmra.mxu1 %v8351_v14  ;;  %8413 = vmatmul.f32.vlgmr.msrb.gmra.mxu2 %v8395_v47 }
 0x8a3   :  { %8486 = vmatpush.msra.mxu1 %v8480_v27  ;;  %8530 = vmatpush.msra.mxu2 %v8524_v17  ;;  %v8469_v17 = vld [vmem:[#allocation9 + $0x4a0] sm:$0xff] }
 0x8a4   :  { %8574 = vmatpush.msra.mxu3 %v8568_v28 }
 0x8a5   :  { %8458 = vmatmul.f32.vlgmr.msrb.gmra.mxu3 %v8440_v41  ;;  %8487 = vmatpush.msra.mxu1 %v8479_v3 }
 0x8a6   :  { %8531 = vmatpush.msra.mxu2 %v8523_v33  ;;  %8575 = vmatpush.msra.mxu3 %v8567_v46  ;;  %v7492_v2 = vpop.f32.mrf.mxu1  ;;  %v8468_v33 = vld [vmem:[#allocation9 + $0x498] sm:$0xff]  ;;  %v8599_v46 = vld [vmem:[#allocation9 + $0x608] sm:$0xff] }
 0x8a7   :  { %8488 = vmatpush.msra.mxu1 %v8478_v43  ;;  %v7493_v15 = vadd.f32 %v7492_v2, %v7428_v7  ;;  %v8556_v43 = vld [vmem:[#allocation9 + $0x598] sm:$0xff]  ;;  %8633 = vmatpush.msra.mxu0 %v8599_v46  ;;  %v8467_v7 = vld [vmem:[#allocation9 + $0x490] sm:$0xff] }
 0x8a8   :  { %8532 = vmatpush.msra.mxu2 %v8522_v58  ;;  %8576 = vmatpush.msra.mxu3 %v8566_v40  ;;  %v8740_v46 = vld [vmem:[#allocation9 + $0x7d0] sm:$0xff] }
 0x8a9   :  { %8489 = vmatpush.msra.mxu1 %v8477_v57 }
 0x8aa   :  { %8533 = vmatpush.msra.mxu2 %v8521_v5  ;;  %8577 = vmatpush.msra.mxu3 %v8565_v34  ;;  %v8598_v5 = vld [vmem:[#allocation9 + $0x600] sm:$0xff]  ;;  %v8511_v34 = vld [vmem:[#allocation9 + $0x510] sm:$0xff] }
 0x8ab   :  { %v7557_v56 = vpop.f32.mrf.mxu2  ;;  %8490 = vmatpush.msra.mxu1 %v8476_v11  ;;  %v8555_v11 = vld [vmem:[#allocation9 + $0x590] sm:$0xff]  ;;  %8634 = vmatpush.msra.mxu0 %v8598_v5  ;;  %v8649_v5 = vld [vmem:[#allocation9 + $0x6b8] sm:$0xff] }
 0x8ac   :  { %v7558_v4 = vadd.f32 %v7557_v56, %v7493_v15  ;;  %8534 = vmatpush.msra.mxu2 %v8520_v37  ;;  %8578 = vmatpush.msra.mxu3 %v8564_v61  ;;  %v8552_v56 = vld [vmem:[#allocation5 + $0x1b] sm:$0x1] }
 0x8ad   :  { %8491 = vmatpush.msra.mxu1 %v8475_v10  ;;  %v8466_v10 = vld [vmem:[#allocation9 + $0x488] sm:$0xff] }
 0x8ae   :  { %v7623_v16 = vadd.f32 %v7622_v18, %v7558_v4  ;;  %8535 = vmatpush.msra.mxu2 %v8519_v13  ;;  %8579 = vmatpush.msra.mxu3 %v8563_v32  ;;  %v8510_v18 = vld [vmem:[#allocation9 + $0x508] sm:$0xff]  ;;  %v8483_v32 = vrot.slane %v8464_v19, 7  ;;  %v8527_v4 = vrot.slane %v8508_v60, 7 }
 0x8af   :  { %8492 = vmatpush.msra.mxu1 %v8474_v9  ;;  %v8554_v13 = vld [vmem:[#allocation9 + $0x588] sm:$0xff] }
 0x8b0   :  { %v7688_v38 = vadd.f32 %v7687_v63, %v7623_v16  ;;  %8536 = vmatpush.msra.mxu2 %v8518_v6  ;;  %8580 = vmatpush.msra.mxu3 %v8562_v21  ;;  %v8465_v6 = vld [vmem:[#allocation9 + $0x480] sm:$0xff]  ;;  %v8739_v19 = vld [vmem:[#allocation9 + $0x7c8] sm:$0xff] }
 0x8b1   :  { %8493 = vmatpush.msra.mxu1 %v8473_v48  ;;  %v8509_v21 = vld [vmem:[#allocation9 + $0x500] sm:$0xff]  ;;  %v8463_v48 = vld [vmem:[#allocation5 + $0x9] sm:$0x1]  ;;  %v8596_v60 = vld [vmem:[#allocation5 + $0xc] sm:$0x1] }
 0x8b2   :  { %v7705_v8 = vmax.f32 %v7688_v38, 0.0  ;;  %8537 = vmatpush.msra.mxu2 %v8517_v26  ;;  %8581 = vmatpush.msra.mxu3 %v8561_v62  ;;  %v8553_v16 = vld [vmem:[#allocation9 + $0x580] sm:$0xff]  ;;  %v8571_v26 = vrot.slane %v8552_v56, 7  ;;  %v8691_v56 = vld [vmem:[#allocation9 + $0x728] sm:$0xff] }
 0x8b3   :  { %8494 = vmatpush.msra.mxu1 %v8472_v0  ;;  %v8507_v0 = vld [vmem:[#allocation5 + $0xa] sm:$0x1] }
 0x8b4   :  { %v7713_v53 = vmax.f32 %v7704_v44, %v7705_v8  ;;  %8538 = vmatpush.msra.mxu2 %v8516_v25  ;;  %8582 = vmatpush.msra.mxu3 %v8560_v20  ;;  %v8484_v44 = vsel %vm1873_vm3, %v8483_v32, %v8463_v48  ;;  %v8528_v25 = vsel %vm1873_vm3, %v8527_v4, %v8507_v0  ;;  %v8657_v20 = vld [vmem:[#allocation9 + $0x6f8] sm:$0xff]  ;;  %v8690_v32 = vld [vmem:[#allocation9 + $0x720] sm:$0xff] }
 0x8b5   :  { %8495 = vmatpush.msra.mxu1 %v8471_v30  ;;  %v8734_v4 = vld [vmem:[#allocation9 + $0x7a0] sm:$0xff] }
 0x8b6   :  { %v7743_v29 = vrot.slane %v7713_v53, 2  ;;  %v7744_v59 = vrot.slane %v7713_v53, 4  ;;  %v7745_v23 = vrot.slane %v7713_v53, 6  ;;  %v7967_v31 = vsel %vm7770_vm12, %v7713_v53, -inf  ;;  %8539 = vmatpush.msra.mxu2 %v8515_v55  ;;  %8583 = vmatpush.msra.mxu3 %v8559_v36  ;;  %v8551_v55 = vld [vmem:[#allocation5 + $0xb] sm:$0x1] }
 0x8b7   :  { %v7968_v27 = vrot.slane %v7967_v31, 4  ;;  %8496 = vmatpush.msra.mxu1 %v8470_v52  ;;  %v8701_v36 = vld [vmem:[#allocation9 + $0x778] sm:$0xff]  ;;  %v8572_v52 = vsel %vm1873_vm3, %v8571_v26, %v8551_v55  ;;  %v8643_v26 = vld [vmem:[#allocation9 + $0x688] sm:$0xff]  ;;  %v8642_v0 = vld [vmem:[#allocation9 + $0x680] sm:$0xff] }
 0x8b8   :  { %v7974_v14 = vsel %vm7770_vm12, %v7743_v29, -inf  ;;  %v7981_v47 = vsel %vm7770_vm12, %v7744_v59, -inf  ;;  %v7988_v28 = vsel %vm7770_vm12, %v7745_v23, -inf  ;;  %8540 = vmatpush.msra.mxu2 %v8514_v51  ;;  %8584 = vmatpush.msra.mxu3 %v8558_v35  ;;  %v8656_v29 = vld [vmem:[#allocation9 + $0x6f0] sm:$0xff]  ;;  %v8684_v55 = vld [vmem:[#allocation5 + $0xe] sm:$0x1] }
 0x8b9   :  { %v7969_v42 = vmax.f32 %v7967_v31, %v7968_v27  ;;  %v7975_v41 = vrot.slane %v7974_v14, 4  ;;  %v7982_v3 = vrot.slane %v7981_v47, 4  ;;  %v7989_v54 = vrot.slane %v7988_v28, 4  ;;  %8497 = vmatpush.msra.mxu1 %v8469_v17  ;;  %v8700_v31 = vld [vmem:[#allocation9 + $0x770] sm:$0xff]  ;;  %v8655_v27 = vld [vmem:[#allocation9 + $0x6e8] sm:$0xff] }
 0x8ba   :  { %8541 = vmatpush.msra.mxu2 %v8513_v24  ;;  %8585 = vmatpush.msra.mxu3 %v8557_v12  ;;  %v8744_v51 = vld [vmem:[#allocation9 + $0x7f0] sm:$0xff]  ;;  %v8698_v24 = vld [vmem:[#allocation9 + $0x760] sm:$0xff] }
 0x8bb   :  { %v7970_v58 = vrot.slane %v7969_v42, 2  ;;  %v7976_v40 = vmax.f32 %v7974_v14, %v7975_v41  ;;  %v7983_v57 = vmax.f32 %v7981_v47, %v7982_v3  ;;  %v7990_v2 = vmax.f32 %v7988_v28, %v7989_v54  ;;  %8498 = vmatpush.msra.mxu1 %v8468_v33  ;;  %v8699_v14 = vld [vmem:[#allocation9 + $0x768] sm:$0xff]  ;;  %v8654_v28 = vld [vmem:[#allocation9 + $0x6e0] sm:$0xff]  ;;  %v8697_v41 = vld [vmem:[#allocation9 + $0x758] sm:$0xff] }
 0x8bc   :  { %8542 = vmatpush.msra.mxu2 %v8512_v22  ;;  %8586 = vmatpush.msra.mxu3 %v8556_v43  ;;  %v8743_v47 = vld [vmem:[#allocation9 + $0x7e8] sm:$0xff]  ;;  %v8742_v12 = vld [vmem:[#allocation9 + $0x7e0] sm:$0xff]  ;;  %v8741_v3 = vld [vmem:[#allocation9 + $0x7d8] sm:$0xff] }
 0x8bd   :  { %v7971_v39 = vmax.f32 %v7969_v42, %v7970_v58  ;;  %v7977_v15 = vrot.slane %v7976_v40, 2  ;;  %v7984_v37 = vrot.slane %v7983_v57, 2  ;;  %v7991_v61 = vrot.slane %v7990_v2, 2  ;;  %8499 = vmatpush.msra.mxu1 %v8467_v7  ;;  %v8653_v42 = vld [vmem:[#allocation9 + $0x6d8] sm:$0xff]  ;;  %v8652_v54 = vld [vmem:[#allocation9 + $0x6d0] sm:$0xff]  ;;  %v8651_v22 = vld [vmem:[#allocation9 + $0x6c8] sm:$0xff] }
 0x8be   :  { %8543 = vmatpush.msra.mxu2 %v8511_v34  ;;  %8587 = vmatpush.msra.mxu3 %v8555_v11  ;;  %v8696_v33 = vld [vmem:[#allocation9 + $0x750] sm:$0xff]  ;;  %v8695_v43 = vld [vmem:[#allocation9 + $0x748] sm:$0xff]  ;;  %v8738_v7 = vld [vmem:[#allocation9 + $0x7c0] sm:$0xff] }
 0x8bf   :  { %v7972_v49 = vrot.slane %v7971_v39, 1  ;;  %v7978_v9 = vmax.f32 %v7976_v40, %v7977_v15  ;;  %v7985_v63 = vmax.f32 %v7983_v57, %v7984_v37  ;;  %v7992_v50 = vmax.f32 %v7990_v2, %v7991_v61  ;;  %8500 = vmatpush.msra.mxu1 %v8466_v10  ;;  %v8650_v40 = vld [vmem:[#allocation9 + $0x6c0] sm:$0xff]  ;;  %v8693_v11 = vld [vmem:[#allocation9 + $0x738] sm:$0xff]  ;;  %v8648_v15 = vld [vmem:[#allocation9 + $0x6b0] sm:$0xff] }
 0x8c0   :  { %8544 = vmatpush.msra.mxu2 %v8510_v18  ;;  %8588 = vmatpush.msra.mxu3 %v8554_v13  ;;  %v8694_v2 = vld [vmem:[#allocation9 + $0x740] sm:$0xff]  ;;  %v8692_v37 = vld [vmem:[#allocation9 + $0x730] sm:$0xff]  ;;  %v8647_v10 = vld [vmem:[#allocation9 + $0x6a8] sm:$0xff] }
 0x8c1   :  { %v7979_v62 = vrot.slane %v7978_v9, 1  ;;  %v7986_v38 = vrot.slane %v7985_v63, 1  ;;  %v7993_v45 = vrot.slane %v7992_v50, 1  ;;  %8501 = vmatpush.msra.mxu1 %v8465_v6  ;;  %v7973_v8 = vmax.f32 %v7971_v39, %v7972_v49  ;;  %v8737_v39 = vld [vmem:[#allocation9 + $0x7b8] sm:$0xff]  ;;  %v8736_v61 = vld [vmem:[#allocation9 + $0x7b0] sm:$0xff]  ;;  %v8735_v18 = vld [vmem:[#allocation9 + $0x7a8] sm:$0xff] }
 0x8c2   :  { %8545 = vmatpush.msra.mxu2 %v8509_v21  ;;  %8589 = vmatpush.msra.mxu3 %v8553_v16  ;;  %v8646_v13 = vld [vmem:[#allocation9 + $0x6a0] sm:$0xff]  ;;  %v8645_v49 = vld [vmem:[#allocation9 + $0x698] sm:$0xff]  ;;  %v8688_v6 = vld [vmem:[#allocation9 + $0x710] sm:$0xff] }
 0x8c3   :  { %v7980_v30 = vmax.f32 %v7978_v9, %v7979_v62  ;;  %v7987_v53 = vmax.f32 %v7985_v63, %v7986_v38  ;;  %8502 = vmatmul.f32.vlgmr.msra.gmra.mxu1 %v8484_v44  ;;  %8546 = vmatmul.f32.vlgmr.msra.gmra.mxu2 %v8528_v25  ;;  %v7994_v59 = vmax.f32 %v7992_v50, %v7993_v45  ;;  %v8689_v9 = vld [vmem:[#allocation9 + $0x718] sm:$0xff]  ;;  %v8644_v50 = vld [vmem:[#allocation9 + $0x690] sm:$0xff]  ;;  %v8687_v38 = vld [vmem:[#allocation9 + $0x708] sm:$0xff] }
 0x8c4   :  { %8590 = vmatmul.f32.vlgmr.msra.gmra.mxu3 %v8572_v52  ;;  %8663 = vmatpush.msrb.mxu1 %v8657_v20  ;;  %v8733_v63 = vld [vmem:[#allocation9 + $0x798] sm:$0xff]  ;;  %v8732_v21 = vld [vmem:[#allocation9 + $0x790] sm:$0xff]  ;;  %v8731_v45 = vld [vmem:[#allocation9 + $0x788] sm:$0xff] }
 0x8c5   :  { %v8048_v23 = vsel %vm1873_vm3, %v7980_v30, %v7973_v8  ;;  %8707 = vmatpush.msrb.mxu2 %v8701_v36  ;;  %8751 = vmatpush.msrb.mxu3 %v8745_v1  ;;  %v8686_v20 = vld [vmem:[#allocation9 + $0x700] sm:$0xff]  ;;  %v8728_v52 = vld [vmem:[#allocation5 + $0xf] sm:$0x1] }
 0x8c6   :  { %v8049_v35 = vsel %vm1875_vm4, %v7987_v53, %v8048_v23  ;;  %8664 = vmatpush.msrb.mxu1 %v8656_v29  ;;  %v8730_v8 = vld [vmem:[#allocation9 + $0x780] sm:$0xff]  ;;  %v8640_v53 = vld [vmem:[#allocation5 + $0xd] sm:$0x1]  ;;  %v8792_v23 = vld [vmem:[%s14059_s7 + $0x70] sm:$0xff] }
 0x8c7   :  { %v8050_v17 = vsel %vm1877_vm5, %v7994_v59, %v8049_v35  ;;  %8708 = vmatpush.msrb.mxu2 %v8700_v31  ;;  %8752 = vmatpush.msrb.mxu3 %v8744_v51  ;;  %v8793_v59 = vld [vmem:[%s14059_s7 + $0x78] sm:$0xff]  ;;  %v8791_v31 = vld [vmem:[%s14059_s7 + $0x68] sm:$0xff]  ;;  %v8790_v51 = vld [vmem:[%s14059_s7 + $0x60] sm:$0xff] }
 0x8c8   :  { %8066 = vst [vmem:[#allocation5 + $0x1c] sm:$0xf] %v8050_v17  ;;  %8665 = vmatpush.msrb.mxu1 %v8655_v27  ;;  %8798 = vmatpush.msrb.mxu0 %v8793_v59  ;;  %v8789_v35 = vld [vmem:[%s14059_s7 + $0x58] sm:$0xff]  ;;  %v8788_v27 = vld [vmem:[%s14059_s7 + $0x50] sm:$0xff]  ;;  %v8787_v17 = vld [vmem:[%s14059_s7 + $0x48] sm:$0xff] }
 0x8c9   :  { %8709 = vmatpush.msrb.mxu2 %v8699_v14  ;;  %8753 = vmatpush.msrb.mxu3 %v8743_v47  ;;  %v8786_v14 = vld [vmem:[%s14059_s7 + $0x40] sm:$0xff] }
 0x8ca   :  { %8666 = vmatpush.msrb.mxu1 %v8654_v28  ;;  %8799 = vmatpush.msrb.mxu0 %v8792_v23 }
 0x8cb   :  { %8710 = vmatpush.msrb.mxu2 %v8698_v24  ;;  %8754 = vmatpush.msrb.mxu3 %v8742_v12  ;;  %v8785_v24 = vld [vmem:[%s14059_s7 + $0x38] sm:$0xff]  ;;  %v8784_v12 = vld [vmem:[%s14059_s7 + $0x30] sm:$0xff] }
 0x8cc   :  { %8667 = vmatpush.msrb.mxu1 %v8653_v42  ;;  %8800 = vmatpush.msrb.mxu0 %v8791_v31 }
 0x8cd   :  { %8711 = vmatpush.msrb.mxu2 %v8697_v41  ;;  %8755 = vmatpush.msrb.mxu3 %v8741_v3  ;;  %v8783_v41 = vld [vmem:[%s14059_s7 + $0x28] sm:$0xff] }
 0x8ce   :  { %8668 = vmatpush.msrb.mxu1 %v8652_v54  ;;  %8801 = vmatpush.msrb.mxu0 %v8790_v51 }
 0x8cf   :  { %v8597_v58 = vld [vmem:[#allocation5 + $0x1c] sm:$0x1]  ;;  %8712 = vmatpush.msrb.mxu2 %v8696_v33  ;;  %8756 = vmatpush.msrb.mxu3 %v8740_v46  ;;  %v8641_v16 = vld [vmem:[#allocation5 + $0x1d] sm:$0x1]  ;;  %v8685_v48 = vld [vmem:[#allocation5 + $0x1e] sm:$0x1] }
 0x8d0   :  { %v8616_v57 = vrot.slane %v8597_v58, 7  ;;  %8669 = vmatpush.msrb.mxu1 %v8651_v22  ;;  %v8729_v62 = vld [vmem:[#allocation5 + $0x1f] sm:$0x1]  ;;  %v8660_v44 = vrot.slane %v8641_v16, 7  ;;  %v8704_v25 = vrot.slane %v8685_v48, 7  ;;  %8802 = vmatpush.msrb.mxu0 %v8789_v35 }
 0x8d1   :  { %8713 = vmatpush.msrb.mxu2 %v8695_v43  ;;  %8757 = vmatpush.msrb.mxu3 %v8739_v19  ;;  %v8748_v30 = vrot.slane %v8729_v62, 7  ;;  %v8782_v19 = vld [vmem:[%s14059_s7 + $0x20] sm:$0xff]  ;;  %v8781_v58 = vld [vmem:[%s14059_s7 + $0x18] sm:$0xff] }
 0x8d2   :  { %v8617_v34 = vsel %vm1873_vm3, %v8616_v57, %v8596_v60  ;;  %8670 = vmatpush.msrb.mxu1 %v8650_v40  ;;  %v8661_v36 = vsel %vm1873_vm3, %v8660_v44, %v8640_v53  ;;  %v8705_v1 = vsel %vm1873_vm3, %v8704_v25, %v8684_v55  ;;  %8803 = vmatpush.msrb.mxu0 %v8788_v27  ;;  %v8780_v57 = vld [vmem:[%s14059_s7 + $0x10] sm:$0xff]  ;;  %v8779_v60 = vld [vmem:[%s14059_s7 + $0x8] sm:$0xff] }
 0x8d3   :  { %8635 = vmatmul.f32.vlgmr.msra.gmra.mxu0 %v8617_v34  ;;  %8714 = vmatpush.msrb.mxu2 %v8694_v2  ;;  %v8749_v29 = vsel %vm1873_vm3, %v8748_v30, %v8728_v52 }
 0x8d4   :  { %8758 = vmatpush.msrb.mxu3 %v8738_v7  ;;  %8671 = vmatpush.msrb.mxu1 %v8649_v5 }
 0x8d5   :  { %8715 = vmatpush.msrb.mxu2 %v8693_v11  ;;  %8804 = vmatpush.msrb.mxu0 %v8787_v17  ;;  %v8778_v11 = vld [vmem:[%s14059_s7] sm:$0xff] }
 0x8d6   :  { %8759 = vmatpush.msrb.mxu3 %v8737_v39  ;;  %8672 = vmatpush.msrb.mxu1 %v8648_v15 }
 0x8d7   :  { %8716 = vmatpush.msrb.mxu2 %v8692_v37  ;;  %8805 = vmatpush.msrb.mxu0 %v8786_v14 }
 0x8d8   :  { %8760 = vmatpush.msrb.mxu3 %v8736_v61  ;;  %8673 = vmatpush.msrb.mxu1 %v8647_v10 }
 0x8d9   :  { %8717 = vmatpush.msrb.mxu2 %v8691_v56  ;;  %8806 = vmatpush.msrb.mxu0 %v8785_v24 }
 0x8da   :  { %8761 = vmatpush.msrb.mxu3 %v8735_v18  ;;  %8674 = vmatpush.msrb.mxu1 %v8646_v13 }
 0x8db   :  { %8718 = vmatpush.msrb.mxu2 %v8690_v32  ;;  %8807 = vmatpush.msrb.mxu0 %v8784_v12 }
 0x8dc   :  { %8762 = vmatpush.msrb.mxu3 %v8734_v4  ;;  %8675 = vmatpush.msrb.mxu1 %v8645_v49 }
 0x8dd   :  { %8719 = vmatpush.msrb.mxu2 %v8689_v9  ;;  %8808 = vmatpush.msrb.mxu0 %v8783_v41 }
 0x8de   :  { %8763 = vmatpush.msrb.mxu3 %v8733_v63  ;;  %8676 = vmatpush.msrb.mxu1 %v8644_v50 }
 0x8df   :  { %8720 = vmatpush.msrb.mxu2 %v8688_v6  ;;  %8809 = vmatpush.msrb.mxu0 %v8782_v19 }
 0x8e0   :  { %8764 = vmatpush.msrb.mxu3 %v8732_v21  ;;  %8677 = vmatpush.msrb.mxu1 %v8643_v26  ;;  %v8905_v21 = vld [vmem:[%s14058_s6] ss:$0 sm:$0xff] }
 0x8e1   :  { %8721 = vmatpush.msrb.mxu2 %v8687_v38  ;;  %8810 = vmatpush.msrb.mxu0 %v8781_v58  ;;  %v8906_v38 = vld [vmem:[%s14060_s8] ss:$0 sm:$0xff] }
 0x8e2   :  { %8765 = vmatpush.msrb.mxu3 %v8731_v45  ;;  %8678 = vmatpush.msrb.mxu1 %v8642_v0 }
 0x8e3   :  { %8722 = vmatpush.msrb.mxu2 %v8686_v20  ;;  %8679 = vmatmul.f32.vlgmr.msrb.gmra.mxu1 %v8661_v36 }
 0x8e4   :  { %8766 = vmatpush.msrb.mxu3 %v8730_v8  ;;  %8723 = vmatmul.f32.vlgmr.msrb.gmra.mxu2 %v8705_v1 }
 0x8e5   :  { %8767 = vmatmul.f32.vlgmr.msrb.gmra.mxu3 %v8749_v29  ;;  %8811 = vmatpush.msrb.mxu0 %v8780_v57 }
 0x8e7   :  { %8812 = vmatpush.msrb.mxu0 %v8779_v60 }
 0x8e9   :  { %8813 = vmatpush.msrb.mxu0 %v8778_v11 }
 0x8fd   :  { %v8125_v47 = vpop.f32.mrf.mxu1 }
 0x904   :  { %v8150_v28 = vpop.f32.mrf.mxu2  ;;  %v8193_v3 = vpop.f32.mrf.mxu3 }
 0x905   :  { %v8151_v42 = vadd.f32 %v8150_v28, %v8125_v47 }
 0x906   :  { %v8237_v33 = vpop.f32.mrf.mxu1 }
 0x907   :  { %v8196_v54 = vadd.f32 %v8193_v3, %v8151_v42 }
 0x909   :  { %v8240_v22 = vadd.f32 %v8237_v33, %v8196_v54 }
 0x914   :  { %v8282_v46 = vpop.f32.mrf.mxu2 }
 0x915   :  { %v8285_v43 = vadd.f32 %v8282_v46, %v8240_v22  ;;  %v8326_v40 = vpop.f32.mrf.mxu3 }
 0x917   :  { %v8329_v7 = vadd.f32 %v8326_v40, %v8285_v43 }
 0x91f   :  { %v8370_v2 = vpop.f32.mrf.mxu1 }
 0x920   :  { %v8373_v34 = vadd.f32 %v8370_v2, %v8329_v7 }
 0x925   :  { %v8414_v5 = vpop.f32.mrf.mxu2 }
 0x926   :  { %v8417_v39 = vadd.f32 %v8414_v5, %v8373_v34 }
 0x928   :  { %v8459_v15 = vpop.f32.mrf.mxu3 }
 0x929   :  { %v8462_v61 = vadd.f32 %v8459_v15, %v8417_v39 }
 0x940   :  { %v8503_v37 = vpop.f32.mrf.mxu1 }
 0x941   :  { %v8506_v56 = vadd.f32 %v8503_v37, %v8462_v61 }
 0x946   :  { %v8547_v10 = vpop.f32.mrf.mxu2 }
 0x947   :  { %v8550_v18 = vadd.f32 %v8547_v10, %v8506_v56  ;;  %v8591_v13 = vpop.f32.mrf.mxu3 }
 0x949   :  { %v8594_v4 = vadd.f32 %v8591_v13, %v8550_v18 }
 0x950   :  { %v8636_v32 = vpop.f32.mrf.mxu0 }
 0x951   :  { %v8639_v9 = vadd.f32 %v8636_v32, %v8594_v4 }
 0x960   :  { %v8680_v49 = vpop.f32.mrf.mxu1 }
 0x961   :  { %v8683_v63 = vadd.f32 %v8680_v49, %v8639_v9 }
 0x967   :  { %v8724_v50 = vpop.f32.mrf.mxu2 }
 0x968   :  { %v8727_v6 = vadd.f32 %v8724_v50, %v8683_v63  ;;  %v8768_v16 = vpop.f32.mrf.mxu3 }
 0x96a   :  { %v8771_v48 = vadd.f32 %v8768_v16, %v8727_v6 }
 0x96c   :  { %v8776_v26 = vadd.f32 %v8905_v21, %v8771_v48 }
 0x96e   :  { %v8777_v62 = vmax.f32 %v8776_v26, 0.0 }
 0x970   :  { %8814 = vmatmul.f32.vlgmr.msrb.gmra.mxu0 %v8777_v62 }
 0x9ed   :  { %v8815_v45 = vpop.f32.mrf.mxu0 }
 0x9ee   :  { %v8816_v0 = vadd.f32 %v8906_v38, %v8815_v45 }
 0x9f0   :  { %8818 = vst [vmem:[#allocation11] sm:$0x3] %v8816_v0 }
 0x9f1   :  { %8829 = dma.vmem_to_hbm [thread:$0]  %s8825_s27, 32, %s8827_s30, [#allocation8]  }
 0x9f2   :  { %9000 = dma.done.wait [#allocation8], 32  }
 0x9f3   :  { %9001 = vsyncadd [#allocation8], 4294967264 }
 0x9f4   :  { %8834 = vsyncpa [#allocation7], 1 }
 0x9f5   :  { %8835 = vsyncpa [#allocation10], 1 }
 0x9f6   :  { %8836 = vsyncpa [#allocation8], 1 }

</bundles_post_ra>
